<compile_context>
chip_gen: v7x
topology: tpu7x:2x2x1
jax: 0.10.0
libtpu: 0.0.40
codegen_flags: <defaults>
</compile_context>

<pallas_src>
import numpy as np
import jax
import jax.numpy as jnp
from jax.experimental import pallas as pl
from jax.experimental.pallas import tpu as pltpu

PAD = 2      # padding of conv1d_5
KSIZE = 5    # kernel size of conv1d_5


def _conv_len(L, k, s, p):
    return (L + 2 * p - k) // s + 1


# ---------------------------------------------------------------------------
# host-side constant builders
# ---------------------------------------------------------------------------

def _ghat(L_in, L_out, stride, k, pad):
    """G[j, t*L_in + l] = 1 iff l == stride*j + t - pad (strided-conv gather+tap-sum)."""
    G = np.zeros((L_out, k * L_in), np.float32)
    for t in range(k):
        for j in range(L_out):
            l = stride * j + t - pad
            if 0 <= l < L_in:
                G[j, t * L_in + l] = 1.0
    return G


def _zhat(L_in, L_out, stride, k, pad):
    """Z[r, t*L_in + i] = 1 iff r == stride*i + t - pad (ConvTranspose1d scatter)."""
    Z = np.zeros((L_out, k * L_in), np.float32)
    for t in range(k):
        for i in range(L_in):
            r = stride * i + t - pad
            if 0 <= r < L_out:
                Z[r, t * L_in + i] = 1.0
    return Z


def _conv_flat(w):
    """PyTorch Conv1d weight (Cout, Cin, k) -> im2col weight (k*Cin, Cout), bf16."""
    w = np.asarray(w)
    cout, cin, k = w.shape
    return jnp.asarray(np.transpose(w, (2, 1, 0)).reshape(k * cin, cout), jnp.bfloat16)


def prepare_params(params, seq_len):
    """Transform torch-layout params into the flat dict of kernel operands."""
    bf = jnp.bfloat16
    L0 = seq_len
    L1 = _conv_len(L0, KSIZE, 5, PAD)
    L2 = _conv_len(L1, KSIZE, 5, PAD)
    L3 = _conv_len(L2, KSIZE, 5, PAD)
    L4 = _conv_len(L3, KSIZE, 4, PAD)
    U3 = (L4 - 1) * 4 + 4 - 2
    U2 = (U3 - 1) * 5 + 5 - 2
    U1 = (U2 - 1) * 5 + 5
    assert (U3, U2, U1) == (L3, L2, L1), \
        "U-Net skip connections only line up for flattened length in [196, 200]"
    assert KSIZE * L1 <= seq_len + 2 * PAD

    p = {}

    # ---- encoder 1 (Cin=1): the strided gather is done host-side (im2col input) ----
    b1, b2 = params['enc1']
    p['enc1_w1'] = jnp.asarray(
        np.transpose(np.asarray(b1['conv1']), (2, 1, 0)).reshape(KSIZE, 32), bf)
    p['enc1_wd'] = jnp.asarray(np.asarray(b1['down'])[:, 0, 0][None, :], bf)  # (1, 32)
    p['enc1_b1w2'] = _conv_flat(b1['conv2'])
    p['enc1_b2w1'] = _conv_flat(b2['conv1'])
    p['enc1_b2w2'] = _conv_flat(b2['conv2'])

    # ---- encoders 2-4: strided conv1 + 1x1 downsample share one wide matmul ----
    for (i, lin, lout, s, cout) in [(2, L1, L2, 5, 64),
                                    (3, L2, L3, 5, 128),
                                    (4, L3, L4, 4, 256)]:
        b1, b2 = params[f'enc{i}']
        conv1 = np.asarray(b1['conv1'])                       # (cout, cin, 5)
        down = np.asarray(b1['down'])                         # (cout, cin, 1)
        cin = conv1.shape[1]
        w_all = np.transpose(conv1, (1, 2, 0)).reshape(cin, KSIZE * cout)
        w_ext = np.concatenate([w_all, down[:, :, 0].T], axis=1)   # (cin, (k+1)*cout)
        p[f'enc{i}_wext'] = jnp.asarray(w_ext, bf)
        p[f'enc{i}_ghat'] = jnp.asarray(_ghat(lin, lout, s, KSIZE, PAD), bf)
        p[f'enc{i}_b1w2'] = _conv_flat(b1['conv2'])
        p[f'enc{i}_b2w1'] = _conv_flat(b2['conv1'])
        p[f'enc{i}_b2w2'] = _conv_flat(b2['conv2'])

    # ---- decoders: ConvTranspose1d = one wide matmul + one 0/1 scatter matmul ----
    for (j, lin, lup, k, s, pd, cout) in [(3, L4, L3, 4, 4, 1, 128),
                                          (2, L3, L2, 5, 5, 1, 64),
                                          (1, L2, L1, 5, 5, 0, 32)]:
        d = params[f'dec{j}']
        up = np.asarray(d['up'])                              # (cin, cout, k)
        cin = up.shape[0]
        p[f'dec{j}_wup'] = jnp.asarray(
            np.transpose(up, (0, 2, 1)).reshape(cin, k * cout), bf)
        p[f'dec{j}_zhat'] = jnp.asarray(_zhat(lin, lup, s, k, pd), bf)
        p[f'dec{j}_w1'] = _conv_flat(d['conv1'])              # input = cat(up, skip)
        p[f'dec{j}_w2'] = _conv_flat(d['conv2'])

    # ---- head: ConvTranspose1d(32,1,3,stride=5) folded into MLP layer 1 (row-major) ----
    w1x1 = np.asarray(params['conv1x1'])                      # (32, 1, 3)
    k1 = w1x1.shape[2]
    mlp = params['mlp']
    w1 = np.asarray(mlp[0]['w'])                              # (dim, 64), dim = 5*(L1-1)+3
    idx = (5 * np.arange(L1)[None, :] + np.arange(k1)[:, None]).reshape(-1)
    p['head_A'] = jnp.asarray(w1x1[:, 0, :].T, bf)            # (3, 32)
    p['head_B'] = jnp.asarray(w1[idx, :], bf)                 # (3*L1, 64)
    p['head_b1'] = jnp.asarray(mlp[0]['b'], jnp.float32)[None, :]
    p['head_w2'] = jnp.asarray(mlp[1]['w'], bf)               # (64, 32)
    p['head_b2'] = jnp.asarray(mlp[1]['b'], jnp.float32)[None, :]
    p['head_w3'] = jnp.asarray(mlp[2]['w'], bf)               # (32, n_outputs)
    p['head_b3'] = jnp.asarray(mlp[2]['b'], jnp.float32)[None, :]
    return p, (L1, L2, L3, L4)


# ---------------------------------------------------------------------------
# fused forward (single pallas_call)
# ---------------------------------------------------------------------------

def make_forward(params, batch, seq_len, n_outputs):
    prep, (L1, L2, L3, L4) = prepare_params(params, seq_len)
    names = list(prep.keys())
    arrays = [prep[n] for n in names]

    def kernel(x_ref, *rest):
        w = dict(zip(names, rest))
        o_ref = rest[-1]
        f32, bf = jnp.float32, jnp.bfloat16

        def mm(a, b):
            # bf16 operands / f32 accumulation; casts only at the matmul boundary
            return jnp.dot(a.astype(bf), b.astype(bf), preferred_element_type=f32)

        def same_conv(x, w_ref):
            # stride-1 'same' Conv1d: zero-pad + k shifted slices concatenated
            # along lanes (im2col) -> ONE MXU matmul with (k*Cin, Cout) weights.
            L, C = x.shape
            zp = jnp.zeros((PAD, C), f32)
            xp = jnp.concatenate([zp, x, zp], axis=0)
            cols = jnp.concatenate([xp[t:t + L, :] for t in range(KSIZE)], axis=1)
            return mm(cols, w_ref[...])

        def block_s1(x, w1_ref, w2_ref):
            out = jnp.maximum(same_conv(x, w1_ref), 0.0)
            out = jnp.maximum(same_conv(out, w2_ref), 0.0)
            return jnp.maximum(out + x, 0.0)

        def block_strided(x, wext_ref, ghat_ref, w2_ref, cout, lin):
            # strided conv1 and the 1x1 downsample share one wide matmul; the
            # per-tap gather + tap-sum is a single tiny 0/1 matmul (ghat).
            yext = mm(x, wext_ref[...])                       # (Lin, (k+1)*Cout)
            ystack = jnp.concatenate(
                [yext[:, t * cout:(t + 1) * cout] for t in range(KSIZE)], axis=0)
            g = ghat_ref[...]
            c1 = jnp.maximum(mm(g, ystack), 0.0)              # (Lout, Cout)
            c2 = jnp.maximum(same_conv(c1, w2_ref), 0.0)
            res = mm(g[:, PAD * lin:(PAD + 1) * lin], yext[:, KSIZE * cout:])
            return jnp.maximum(c2 + res, 0.0)

        def upsample(x, wup_ref, zhat_ref, k, cout):
            # ConvTranspose1d: one wide matmul, then the zero-stuffing scatter
            # as one 0/1 gather matmul (zhat).
            y = mm(x, wup_ref[...])                           # (Lin, k*Cout)
            ystack = jnp.concatenate(
                [y[:, t * cout:(t + 1) * cout] for t in range(k)], axis=0)
            return mm(zhat_ref[...], ystack)                  # (Lup, Cout)

        def decoder(xd, skip, j, k, cout):
            up = upsample(xd, w[f'dec{j}_wup'], w[f'dec{j}_zhat'], k, cout)
            cat = jnp.concatenate([up, skip], axis=1)         # cat(up, skip) channels
            o = jnp.maximum(same_conv(cat, w[f'dec{j}_w1']), 0.0)
            return jnp.maximum(same_conv(o, w[f'dec{j}_w2']), 0.0)

        # ---- encoder 1 (input already im2col'd host-side: (L1, 5)) ----
        xc = x_ref[0].astype(f32)
        c1 = jnp.maximum(mm(xc, w['enc1_w1'][...]), 0.0)      # (L1, 32)
        c2 = jnp.maximum(same_conv(c1, w['enc1_b1w2']), 0.0)
        res = xc[:, PAD:PAD + 1] * w['enc1_wd'][...].astype(f32)   # x[5j] * wd
        e1 = jnp.maximum(c2 + res, 0.0)
        d1 = block_s1(e1, w['enc1_b2w1'], w['enc1_b2w2'])     # (L1, 32)

        d2 = block_strided(d1, w['enc2_wext'], w['enc2_ghat'], w['enc2_b1w2'], 64, L1)
        d2 = block_s1(d2, w['enc2_b2w1'], w['enc2_b2w2'])     # (L2, 64)
        d3 = block_strided(d2, w['enc3_wext'], w['enc3_ghat'], w['enc3_b1w2'], 128, L2)
        d3 = block_s1(d3, w['enc3_b2w1'], w['enc3_b2w2'])     # (L3, 128)
        d4 = block_strided(d3, w['enc4_wext'], w['enc4_ghat'], w['enc4_b1w2'], 256, L3)
        d4 = block_s1(d4, w['enc4_b2w1'], w['enc4_b2w2'])     # (L4, 256)

        u3 = decoder(d4, d3, 3, 4, 128)                       # (L3, 128)
        u2 = decoder(u3, d2, 2, KSIZE, 64)                    # (L2, 64)
        u1 = decoder(u2, d1, 1, KSIZE, 32)                    # (L1, 32)

        # ---- head (row-major, lane-dense output) ----
        # V[t, i] = sum_c w1x1[c,0,t] * u1[i, c]   (q.k^T-style contraction)
        v = jax.lax.dot_general(
            w['head_A'][...], u1.astype(bf),
            dimension_numbers=(((1,), (1,)), ((), ())),
            preferred_element_type=f32)                       # (3, L1)
        vrow = jnp.concatenate([v[t:t + 1, :] for t in range(3)], axis=1)  # (1, 3*L1)
        h = jnp.maximum(mm(vrow, w['head_B'][...]) + w['head_b1'][...], 0.0)
        h = jnp.maximum(mm(h, w['head_w2'][...]) + w['head_b2'][...], 0.0)
        y = mm(h, w['head_w3'][...]) + w['head_b3'][...]      # (1, n_outputs)
        o_ref[0] = y

    in_specs = [pl.BlockSpec((1, L1, KSIZE), lambda b: (b, 0, 0))]
    for a in arrays:
        in_specs.append(pl.BlockSpec(a.shape, lambda b, nd=a.ndim: (0,) * nd))
    out_spec = pl.BlockSpec((1, 1, n_outputs), lambda b: (b, 0, 0))

    call = pl.pallas_call(
        kernel,
        out_shape=jax.ShapeDtypeStruct((batch, 1, n_outputs), jnp.float32),
        grid=(batch,),
        in_specs=in_specs,
        out_specs=out_spec,
        compiler_params=pltpu.CompilerParams(
            dimension_semantics=("parallel",),   # samples shard over v7x's 2 TCs
            vmem_limit_bytes=32 * 1024 * 1024,   # ~4 MB bf16 weights (double-buffered)
        ),
    )

    @jax.jit
    def forward(x):                                           # x: (batch, seq_len)
        # host-side layout plumbing only: zero-pad + im2col of the Cin=1 input
        xp = jnp.pad(x.astype(jnp.float32), ((0, 0), (PAD, PAD)))
        xc = xp[:, :KSIZE * L1].reshape(batch, L1, KSIZE)
        return call(xc, *arrays).reshape(batch, n_outputs)

    return forward


# ---------------------------------------------------------------------------
# parameters (torch layout) and a pure-JAX float32 reference
# ---------------------------------------------------------------------------

def init_params(key, seq_len, n_outputs):
    keys = iter(jax.random.split(key, 64))

    def he(shape, fan_in):
        return (jax.random.normal(next(keys), shape, jnp.float32)
                * np.sqrt(2.0 / float(fan_in)))

    def make_encoder(in_c, planes):
        b1 = {'conv1': he((planes, in_c, 5), in_c * 5),
              'conv2': he((planes, planes, 5), planes * 5),
              'down':  he((planes, in_c, 1), in_c)}
        b2 = {'conv1': he((planes, planes, 5), planes * 5),
              'conv2': he((planes, planes, 5), planes * 5)}
        return [b1, b2]

    def make_decoder(in_c, out_c, k):
        return {'up':    he((in_c, out_c, k), in_c * k),
                'conv1': he((out_c, in_c, 5), in_c * 5),
                'conv2': he((out_c, out_c, 5), out_c * 5)}

    # flattened ResNet output size (== cdim((1, 1, seq_len)))
    L1 = _conv_len(seq_len, KSIZE, 5, PAD)
    L2 = _conv_len(L1, KSIZE, 5, PAD)
    L3 = _conv_len(L2, KSIZE, 5, PAD)
    L4 = _conv_len(L3, KSIZE, 4, PAD)
    U3 = (L4 - 1) * 4 + 4 - 2
    U2 = (U3 - 1) * 5 + 5 - 2
    U1 = (U2 - 1) * 5 + 5
    dim = (U1 - 1) * 5 + 3                               # 198 for seq_len = 196

    sizes = [dim, 64, 32, n_outputs]
    mlp = [{'w': he((sizes[i], sizes[i + 1]), sizes[i]),
            'b': 0.1 * jax.random.normal(next(keys), (sizes[i + 1],), jnp.float32)}
           for i in range(len(sizes) - 1)]

    return {
        'enc1': make_encoder(1, 32),
        'enc2': make_encoder(32, 64),
        'enc3': make_encoder(64, 128),
        'enc4': make_encoder(128, 256),
        'dec3': make_decoder(256, 128, 4),
        'dec2': make_decoder(128, 64, 5),
        'dec1': make_decoder(64, 32, 5),
        'conv1x1': he((32, 1, 3), 32 * 3),
        'mlp': mlp,
    }


def _ref_conv1d(x, w, stride=1, padding=0):
    return jax.lax.conv_general_dilated(
        x, w, window_strides=(stride,), padding=[(padding, padding)],
        dimension_numbers=('NCH', 'OIH', 'NCH'))


def _ref_conv_transpose1d(x, w, stride, padding=0):
    k = w.shape[2]
    wf = jnp.transpose(jnp.flip(w, 2), (1, 0, 2))        # (Cout, Cin, k)
    return jax.lax.conv_general_dilated(
        x, wf, window_strides=(1,), padding=[(k - 1 - padding,) * 2],
        lhs_dilation=(stride,), dimension_numbers=('NCH', 'OIH', 'NCH'))


def _ref_block(p, x, stride):
    out = jax.nn.relu(_ref_conv1d(x, p['conv1'], stride, PAD))
    out = jax.nn.relu(_ref_conv1d(out, p['conv2'], 1, PAD))
    res = _ref_conv1d(x, p['down'], stride, 0) if 'down' in p else x
    return jax.nn.relu(out + res)


def _ref_decoder(p, x1, x2, stride, padding):
    x1 = _ref_conv_transpose1d(x1, p['up'], stride, padding)
    out = jnp.concatenate((x1, x2), axis=1)
    out = jax.nn.relu(_ref_conv1d(out, p['conv1'], 1, PAD))
    return jax.nn.relu(_ref_conv1d(out, p['conv2'], 1, PAD))


def reference_forward(params, x, n_outputs):
    """Pure-JAX float32 reference of Net.forward (torch semantics)."""
    h = x.reshape(x.shape[0], 1, -1)
    d1 = _ref_block(params['enc1'][1], _ref_block(params['enc1'][0], h, 5), 1)
    d2 = _ref_block(params['enc2'][1], _ref_block(params['enc2'][0], d1, 5), 1)
    d3 = _ref_block(params['enc3'][1], _ref_block(params['enc3'][0], d2, 5), 1)
    d4 = _ref_block(params['enc4'][1], _ref_block(params['enc4'][0], d3, 4), 1)
    u3 = _ref_decoder(params['dec3'], d4, d3, 4, 1)
    u2 = _ref_decoder(params['dec2'], u3, d2, 5, 1)
    u1 = _ref_decoder(params['dec1'], u2, d1, 5, 0)
    out = _ref_conv_transpose1d(u1, params['conv1x1'], 5, 0)[:, 0, :]
    mlp = params['mlp']
    for i, layer in enumerate(mlp):
        out = out @ layer['w'] + layer['b']
        if i < len(mlp) - 1:
            out = jax.nn.relu(out)
    return out.reshape(-1, n_outputs)


# ---------------------------------------------------------------------------

if __name__ == "__main__":
    user = 14                    # args.user; flattened length 196 (smallest valid)
    n_outputs = 14
    batch = 2

    key = jax.random.PRNGKey(0)
    pkey, xkey = jax.random.split(key)
    params = init_params(pkey, seq_len=user * user, n_outputs=n_outputs)
    x = jax.random.normal(xkey, (batch, user * user), jnp.float32)

    fwd = make_forward(params, batch, user * user, n_outputs)
    out = fwd(x)
    jax.block_until_ready(out)
    assert out.shape == (batch, n_outputs), out.shape

    # bf16 MXU operands across ~20 stacked layers vs. a pure-f32 reference:
    # keep a loose-but-meaningful tolerance.
    ref = reference_forward(params, x, n_outputs)
    assert bool(jnp.allclose(out, ref, rtol=0.2, atol=0.2)), (
        "max |out - ref| = %f" % float(jnp.max(jnp.abs(out - ref))))
    print("KERNEL_OK")
</pallas_src>

<mosaic_0001>
module attributes {stable_mosaic.version = 11 : i64} {
  func.func @kernel(%arg0: i32, %arg1: memref<1x40x5xf32, #tpu.memory_space<vmem>>, %arg2: memref<5x32xbf16, #tpu.memory_space<vmem>>, %arg3: memref<1x32xbf16, #tpu.memory_space<vmem>>, %arg4: memref<160x32xbf16, #tpu.memory_space<vmem>>, %arg5: memref<160x32xbf16, #tpu.memory_space<vmem>>, %arg6: memref<160x32xbf16, #tpu.memory_space<vmem>>, %arg7: memref<32x384xbf16, #tpu.memory_space<vmem>>, %arg8: memref<8x200xbf16, #tpu.memory_space<vmem>>, %arg9: memref<320x64xbf16, #tpu.memory_space<vmem>>, %arg10: memref<320x64xbf16, #tpu.memory_space<vmem>>, %arg11: memref<320x64xbf16, #tpu.memory_space<vmem>>, %arg12: memref<64x768xbf16, #tpu.memory_space<vmem>>, %arg13: memref<2x40xbf16, #tpu.memory_space<vmem>>, %arg14: memref<640x128xbf16, #tpu.memory_space<vmem>>, %arg15: memref<640x128xbf16, #tpu.memory_space<vmem>>, %arg16: memref<640x128xbf16, #tpu.memory_space<vmem>>, %arg17: memref<128x1536xbf16, #tpu.memory_space<vmem>>, %arg18: memref<1x10xbf16, #tpu.memory_space<vmem>>, %arg19: memref<1280x256xbf16, #tpu.memory_space<vmem>>, %arg20: memref<1280x256xbf16, #tpu.memory_space<vmem>>, %arg21: memref<1280x256xbf16, #tpu.memory_space<vmem>>, %arg22: memref<256x512xbf16, #tpu.memory_space<vmem>>, %arg23: memref<2x4xbf16, #tpu.memory_space<vmem>>, %arg24: memref<1280x128xbf16, #tpu.memory_space<vmem>>, %arg25: memref<640x128xbf16, #tpu.memory_space<vmem>>, %arg26: memref<128x320xbf16, #tpu.memory_space<vmem>>, %arg27: memref<8x10xbf16, #tpu.memory_space<vmem>>, %arg28: memref<640x64xbf16, #tpu.memory_space<vmem>>, %arg29: memref<320x64xbf16, #tpu.memory_space<vmem>>, %arg30: memref<64x160xbf16, #tpu.memory_space<vmem>>, %arg31: memref<40x40xbf16, #tpu.memory_space<vmem>>, %arg32: memref<320x32xbf16, #tpu.memory_space<vmem>>, %arg33: memref<160x32xbf16, #tpu.memory_space<vmem>>, %arg34: memref<3x32xbf16, #tpu.memory_space<vmem>>, %arg35: memref<120x64xbf16, #tpu.memory_space<vmem>>, %arg36: memref<1x64xf32, #tpu.memory_space<vmem>>, %arg37: memref<64x32xbf16, #tpu.memory_space<vmem>>, %arg38: memref<1x32xf32, #tpu.memory_space<vmem>>, %arg39: memref<32x14xbf16, #tpu.memory_space<vmem>>, %arg40: memref<1x14xf32, #tpu.memory_space<vmem>>, %arg41: memref<1x1x14xf32, #tpu.memory_space<vmem>>) attributes {dimension_semantics = [#tpu.dimension_semantics<parallel>], iteration_bounds = array<i64: 2>, scalar_prefetch = 0 : i64, scratch_operands = 0 : i64, tpu.core_type = #tpu.core_type<tc>, window_params = [{transform_indices = @transform_0, window_bounds = array<i64: 1, 40, 5>}, {pipeline_mode = #tpu.pipeline_mode<synchronous>, transform_indices = @transform_1, window_bounds = array<i64: 5, 32>}, {pipeline_mode = #tpu.pipeline_mode<synchronous>, transform_indices = @transform_2, window_bounds = array<i64: 1, 32>}, {pipeline_mode = #tpu.pipeline_mode<synchronous>, transform_indices = @transform_3, window_bounds = array<i64: 160, 32>}, {pipeline_mode = #tpu.pipeline_mode<synchronous>, transform_indices = @transform_4, window_bounds = array<i64: 160, 32>}, {pipeline_mode = #tpu.pipeline_mode<synchronous>, transform_indices = @transform_5, window_bounds = array<i64: 160, 32>}, {pipeline_mode = #tpu.pipeline_mode<synchronous>, transform_indices = @transform_6, window_bounds = array<i64: 32, 384>}, {pipeline_mode = #tpu.pipeline_mode<synchronous>, transform_indices = @transform_7, window_bounds = array<i64: 8, 200>}, {pipeline_mode = #tpu.pipeline_mode<synchronous>, transform_indices = @transform_8, window_bounds = array<i64: 320, 64>}, {pipeline_mode = #tpu.pipeline_mode<synchronous>, transform_indices = @transform_9, window_bounds = array<i64: 320, 64>}, {pipeline_mode = #tpu.pipeline_mode<synchronous>, transform_indices = @transform_10, window_bounds = array<i64: 320, 64>}, {pipeline_mode = #tpu.pipeline_mode<synchronous>, transform_indices = @transform_11, window_bounds = array<i64: 64, 768>}, {pipeline_mode = #tpu.pipeline_mode<synchronous>, transform_indices = @transform_12, window_bounds = array<i64: 2, 40>}, {pipeline_mode = #tpu.pipeline_mode<synchronous>, transform_indices = @transform_13, window_bounds = array<i64: 640, 128>}, {pipeline_mode = #tpu.pipeline_mode<synchronous>, transform_indices = @transform_14, window_bounds = array<i64: 640, 128>}, {pipeline_mode = #tpu.pipeline_mode<synchronous>, transform_indices = @transform_15, window_bounds = array<i64: 640, 128>}, {pipeline_mode = #tpu.pipeline_mode<synchronous>, transform_indices = @transform_16, window_bounds = array<i64: 128, 1536>}, {pipeline_mode = #tpu.pipeline_mode<synchronous>, transform_indices = @transform_17, window_bounds = array<i64: 1, 10>}, {pipeline_mode = #tpu.pipeline_mode<synchronous>, transform_indices = @transform_18, window_bounds = array<i64: 1280, 256>}, {pipeline_mode = #tpu.pipeline_mode<synchronous>, transform_indices = @transform_19, window_bounds = array<i64: 1280, 256>}, {pipeline_mode = #tpu.pipeline_mode<synchronous>, transform_indices = @transform_20, window_bounds = array<i64: 1280, 256>}, {pipeline_mode = #tpu.pipeline_mode<synchronous>, transform_indices = @transform_21, window_bounds = array<i64: 256, 512>}, {pipeline_mode = #tpu.pipeline_mode<synchronous>, transform_indices = @transform_22, window_bounds = array<i64: 2, 4>}, {pipeline_mode = #tpu.pipeline_mode<synchronous>, transform_indices = @transform_23, window_bounds = array<i64: 1280, 128>}, {pipeline_mode = #tpu.pipeline_mode<synchronous>, transform_indices = @transform_24, window_bounds = array<i64: 640, 128>}, {pipeline_mode = #tpu.pipeline_mode<synchronous>, transform_indices = @transform_25, window_bounds = array<i64: 128, 320>}, {pipeline_mode = #tpu.pipeline_mode<synchronous>, transform_indices = @transform_26, window_bounds = array<i64: 8, 10>}, {pipeline_mode = #tpu.pipeline_mode<synchronous>, transform_indices = @transform_27, window_bounds = array<i64: 640, 64>}, {pipeline_mode = #tpu.pipeline_mode<synchronous>, transform_indices = @transform_28, window_bounds = array<i64: 320, 64>}, {pipeline_mode = #tpu.pipeline_mode<synchronous>, transform_indices = @transform_29, window_bounds = array<i64: 64, 160>}, {pipeline_mode = #tpu.pipeline_mode<synchronous>, transform_indices = @transform_30, window_bounds = array<i64: 40, 40>}, {pipeline_mode = #tpu.pipeline_mode<synchronous>, transform_indices = @transform_31, window_bounds = array<i64: 320, 32>}, {pipeline_mode = #tpu.pipeline_mode<synchronous>, transform_indices = @transform_32, window_bounds = array<i64: 160, 32>}, {pipeline_mode = #tpu.pipeline_mode<synchronous>, transform_indices = @transform_33, window_bounds = array<i64: 3, 32>}, {pipeline_mode = #tpu.pipeline_mode<synchronous>, transform_indices = @transform_34, window_bounds = array<i64: 120, 64>}, {pipeline_mode = #tpu.pipeline_mode<synchronous>, transform_indices = @transform_35, window_bounds = array<i64: 1, 64>}, {pipeline_mode = #tpu.pipeline_mode<synchronous>, transform_indices = @transform_36, window_bounds = array<i64: 64, 32>}, {pipeline_mode = #tpu.pipeline_mode<synchronous>, transform_indices = @transform_37, window_bounds = array<i64: 1, 32>}, {pipeline_mode = #tpu.pipeline_mode<synchronous>, transform_indices = @transform_38, window_bounds = array<i64: 32, 14>}, {pipeline_mode = #tpu.pipeline_mode<synchronous>, transform_indices = @transform_39, window_bounds = array<i64: 1, 14>}, {transform_indices = @transform_40, window_bounds = array<i64: 1, 1, 14>}]} {
    %c0 = arith.constant 0 : index
    %c0_0 = arith.constant 0 : index
    %c0_1 = arith.constant 0 : index
    %0 = vector.load %arg1[%c0, %c0_0, %c0_1] : memref<1x40x5xf32, #tpu.memory_space<vmem>>, vector<1x40x5xf32>
    %1 = vector.shape_cast %0 : vector<1x40x5xf32> to vector<40x5xf32>
    %c0_2 = arith.constant 0 : index
    %c0_3 = arith.constant 0 : index
    %2 = vector.load %arg2[%c0_2, %c0_3] : memref<5x32xbf16, #tpu.memory_space<vmem>>, vector<5x32xbf16>
    %3 = arith.truncf %1 : vector<40x5xf32> to vector<40x5xbf16>
    %cst = arith.constant dense<0.000000e+00> : vector<40x32xf32>
    %4 = tpu.matmul %3, %2, %cst {dimension_numbers = #tpu.dot_dimension_numbers<[1], [0], [0], [1], [0, 0, 1, 1], [], []>} : vector<40x5xbf16>, vector<5x32xbf16>, vector<40x32xf32> -> vector<40x32xf32>
    %cst_4 = arith.constant 0.000000e+00 : f32
    %5 = vector.broadcast %cst_4 : f32 to vector<40x32xf32>
    %6 = arith.maximumf %4, %5 : vector<40x32xf32>
    %cst_5 = arith.constant 0.000000e+00 : f32
    %7 = vector.broadcast %cst_5 : f32 to vector<2x32xf32>
    %8 = tpu.concatenate %7, %6, %7 in 0 : vector<2x32xf32>, vector<40x32xf32>, vector<2x32xf32> -> vector<44x32xf32>
    %9 = vector.extract_strided_slice %8 {offsets = [0, 0], sizes = [40, 32], strides = [1, 1]} : vector<44x32xf32> to vector<40x32xf32>
    %10 = vector.extract_strided_slice %8 {offsets = [1, 0], sizes = [40, 32], strides = [1, 1]} : vector<44x32xf32> to vector<40x32xf32>
    %11 = vector.extract_strided_slice %8 {offsets = [2, 0], sizes = [40, 32], strides = [1, 1]} : vector<44x32xf32> to vector<40x32xf32>
    %12 = vector.extract_strided_slice %8 {offsets = [3, 0], sizes = [40, 32], strides = [1, 1]} : vector<44x32xf32> to vector<40x32xf32>
    %13 = vector.extract_strided_slice %8 {offsets = [4, 0], sizes = [40, 32], strides = [1, 1]} : vector<44x32xf32> to vector<40x32xf32>
    %14 = tpu.concatenate %9, %10, %11, %12, %13 in 1 : vector<40x32xf32>, vector<40x32xf32>, vector<40x32xf32>, vector<40x32xf32>, vector<40x32xf32> -> vector<40x160xf32>
    %c0_6 = arith.constant 0 : index
    %c0_7 = arith.constant 0 : index
    %15 = vector.load %arg4[%c0_6, %c0_7] : memref<160x32xbf16, #tpu.memory_space<vmem>>, vector<160x32xbf16>
    %16 = arith.truncf %14 : vector<40x160xf32> to vector<40x160xbf16>
    %cst_8 = arith.constant dense<0.000000e+00> : vector<40x32xf32>
    %17 = tpu.matmul %16, %15, %cst_8 {dimension_numbers = #tpu.dot_dimension_numbers<[1], [0], [0], [1], [0, 0, 1, 1], [], []>} : vector<40x160xbf16>, vector<160x32xbf16>, vector<40x32xf32> -> vector<40x32xf32>
    %cst_9 = arith.constant 0.000000e+00 : f32
    %18 = vector.broadcast %cst_9 : f32 to vector<40x32xf32>
    %19 = arith.maximumf %17, %18 : vector<40x32xf32>
    %20 = vector.extract_strided_slice %1 {offsets = [0, 2], sizes = [40, 1], strides = [1, 1]} : vector<40x5xf32> to vector<40x1xf32>
    %c0_10 = arith.constant 0 : index
    %c0_11 = arith.constant 0 : index
    %21 = vector.load %arg3[%c0_10, %c0_11] : memref<1x32xbf16, #tpu.memory_space<vmem>>, vector<1x32xbf16>
    %22 = arith.extf %21 : vector<1x32xbf16> to vector<1x32xf32>
    %23 = vector.broadcast %20 : vector<40x1xf32> to vector<40x32xf32>
    %24 = vector.broadcast %22 : vector<1x32xf32> to vector<40x32xf32>
    %25 = arith.mulf %23, %24 : vector<40x32xf32>
    %26 = arith.addf %19, %25 : vector<40x32xf32>
    %cst_12 = arith.constant 0.000000e+00 : f32
    %27 = vector.broadcast %cst_12 : f32 to vector<40x32xf32>
    %28 = arith.maximumf %26, %27 : vector<40x32xf32>
    %cst_13 = arith.constant 0.000000e+00 : f32
    %29 = vector.broadcast %cst_13 : f32 to vector<2x32xf32>
    %30 = tpu.concatenate %29, %28, %29 in 0 : vector<2x32xf32>, vector<40x32xf32>, vector<2x32xf32> -> vector<44x32xf32>
    %31 = vector.extract_strided_slice %30 {offsets = [0, 0], sizes = [40, 32], strides = [1, 1]} : vector<44x32xf32> to vector<40x32xf32>
    %32 = vector.extract_strided_slice %30 {offsets = [1, 0], sizes = [40, 32], strides = [1, 1]} : vector<44x32xf32> to vector<40x32xf32>
    %33 = vector.extract_strided_slice %30 {offsets = [2, 0], sizes = [40, 32], strides = [1, 1]} : vector<44x32xf32> to vector<40x32xf32>
    %34 = vector.extract_strided_slice %30 {offsets = [3, 0], sizes = [40, 32], strides = [1, 1]} : vector<44x32xf32> to vector<40x32xf32>
    %35 = vector.extract_strided_slice %30 {offsets = [4, 0], sizes = [40, 32], strides = [1, 1]} : vector<44x32xf32> to vector<40x32xf32>
    %36 = tpu.concatenate %31, %32, %33, %34, %35 in 1 : vector<40x32xf32>, vector<40x32xf32>, vector<40x32xf32>, vector<40x32xf32>, vector<40x32xf32> -> vector<40x160xf32>
    %c0_14 = arith.constant 0 : index
    %c0_15 = arith.constant 0 : index
    %37 = vector.load %arg5[%c0_14, %c0_15] : memref<160x32xbf16, #tpu.memory_space<vmem>>, vector<160x32xbf16>
    %38 = arith.truncf %36 : vector<40x160xf32> to vector<40x160xbf16>
    %cst_16 = arith.constant dense<0.000000e+00> : vector<40x32xf32>
    %39 = tpu.matmul %38, %37, %cst_16 {dimension_numbers = #tpu.dot_dimension_numbers<[1], [0], [0], [1], [0, 0, 1, 1], [], []>} : vector<40x160xbf16>, vector<160x32xbf16>, vector<40x32xf32> -> vector<40x32xf32>
    %cst_17 = arith.constant 0.000000e+00 : f32
    %40 = vector.broadcast %cst_17 : f32 to vector<40x32xf32>
    %41 = arith.maximumf %39, %40 : vector<40x32xf32>
    %cst_18 = arith.constant 0.000000e+00 : f32
    %42 = vector.broadcast %cst_18 : f32 to vector<2x32xf32>
    %43 = tpu.concatenate %42, %41, %42 in 0 : vector<2x32xf32>, vector<40x32xf32>, vector<2x32xf32> -> vector<44x32xf32>
    %44 = vector.extract_strided_slice %43 {offsets = [0, 0], sizes = [40, 32], strides = [1, 1]} : vector<44x32xf32> to vector<40x32xf32>
    %45 = vector.extract_strided_slice %43 {offsets = [1, 0], sizes = [40, 32], strides = [1, 1]} : vector<44x32xf32> to vector<40x32xf32>
    %46 = vector.extract_strided_slice %43 {offsets = [2, 0], sizes = [40, 32], strides = [1, 1]} : vector<44x32xf32> to vector<40x32xf32>
    %47 = vector.extract_strided_slice %43 {offsets = [3, 0], sizes = [40, 32], strides = [1, 1]} : vector<44x32xf32> to vector<40x32xf32>
    %48 = vector.extract_strided_slice %43 {offsets = [4, 0], sizes = [40, 32], strides = [1, 1]} : vector<44x32xf32> to vector<40x32xf32>
    %49 = tpu.concatenate %44, %45, %46, %47, %48 in 1 : vector<40x32xf32>, vector<40x32xf32>, vector<40x32xf32>, vector<40x32xf32>, vector<40x32xf32> -> vector<40x160xf32>
    %c0_19 = arith.constant 0 : index
    %c0_20 = arith.constant 0 : index
    %50 = vector.load %arg6[%c0_19, %c0_20] : memref<160x32xbf16, #tpu.memory_space<vmem>>, vector<160x32xbf16>
    %51 = arith.truncf %49 : vector<40x160xf32> to vector<40x160xbf16>
    %cst_21 = arith.constant dense<0.000000e+00> : vector<40x32xf32>
    %52 = tpu.matmul %51, %50, %cst_21 {dimension_numbers = #tpu.dot_dimension_numbers<[1], [0], [0], [1], [0, 0, 1, 1], [], []>} : vector<40x160xbf16>, vector<160x32xbf16>, vector<40x32xf32> -> vector<40x32xf32>
    %cst_22 = arith.constant 0.000000e+00 : f32
    %53 = vector.broadcast %cst_22 : f32 to vector<40x32xf32>
    %54 = arith.maximumf %52, %53 : vector<40x32xf32>
    %55 = arith.addf %54, %28 : vector<40x32xf32>
    %cst_23 = arith.constant 0.000000e+00 : f32
    %56 = vector.broadcast %cst_23 : f32 to vector<40x32xf32>
    %57 = arith.maximumf %55, %56 : vector<40x32xf32>
    %c0_24 = arith.constant 0 : index
    %c0_25 = arith.constant 0 : index
    %58 = vector.load %arg7[%c0_24, %c0_25] : memref<32x384xbf16, #tpu.memory_space<vmem>>, vector<32x384xbf16>
    %59 = arith.truncf %57 : vector<40x32xf32> to vector<40x32xbf16>
    %cst_26 = arith.constant dense<0.000000e+00> : vector<40x384xf32>
    %60 = tpu.matmul %59, %58, %cst_26 {dimension_numbers = #tpu.dot_dimension_numbers<[1], [0], [0], [1], [0, 0, 1, 1], [], []>} : vector<40x32xbf16>, vector<32x384xbf16>, vector<40x384xf32> -> vector<40x384xf32>
    %61 = vector.extract_strided_slice %60 {offsets = [0, 0], sizes = [40, 64], strides = [1, 1]} : vector<40x384xf32> to vector<40x64xf32>
    %62 = vector.extract_strided_slice %60 {offsets = [0, 64], sizes = [40, 64], strides = [1, 1]} : vector<40x384xf32> to vector<40x64xf32>
    %63 = vector.extract_strided_slice %60 {offsets = [0, 128], sizes = [40, 64], strides = [1, 1]} : vector<40x384xf32> to vector<40x64xf32>
    %64 = vector.extract_strided_slice %60 {offsets = [0, 192], sizes = [40, 64], strides = [1, 1]} : vector<40x384xf32> to vector<40x64xf32>
    %65 = vector.extract_strided_slice %60 {offsets = [0, 256], sizes = [40, 64], strides = [1, 1]} : vector<40x384xf32> to vector<40x64xf32>
    %66 = tpu.concatenate %61, %62, %63, %64, %65 in 0 : vector<40x64xf32>, vector<40x64xf32>, vector<40x64xf32>, vector<40x64xf32>, vector<40x64xf32> -> vector<200x64xf32>
    %c0_27 = arith.constant 0 : index
    %c0_28 = arith.constant 0 : index
    %67 = vector.load %arg8[%c0_27, %c0_28] : memref<8x200xbf16, #tpu.memory_space<vmem>>, vector<8x200xbf16>
    %68 = arith.truncf %66 : vector<200x64xf32> to vector<200x64xbf16>
    %cst_29 = arith.constant dense<0.000000e+00> : vector<8x64xf32>
    %69 = tpu.matmul %67, %68, %cst_29 {dimension_numbers = #tpu.dot_dimension_numbers<[1], [0], [0], [1], [0, 0, 1, 1], [], []>} : vector<8x200xbf16>, vector<200x64xbf16>, vector<8x64xf32> -> vector<8x64xf32>
    %cst_30 = arith.constant 0.000000e+00 : f32
    %70 = vector.broadcast %cst_30 : f32 to vector<8x64xf32>
    %71 = arith.maximumf %69, %70 : vector<8x64xf32>
    %cst_31 = arith.constant 0.000000e+00 : f32
    %72 = vector.broadcast %cst_31 : f32 to vector<2x64xf32>
    %73 = tpu.concatenate %72, %71, %72 in 0 : vector<2x64xf32>, vector<8x64xf32>, vector<2x64xf32> -> vector<12x64xf32>
    %74 = vector.extract_strided_slice %73 {offsets = [0, 0], sizes = [8, 64], strides = [1, 1]} : vector<12x64xf32> to vector<8x64xf32>
    %75 = vector.extract_strided_slice %73 {offsets = [1, 0], sizes = [8, 64], strides = [1, 1]} : vector<12x64xf32> to vector<8x64xf32>
    %76 = vector.extract_strided_slice %73 {offsets = [2, 0], sizes = [8, 64], strides = [1, 1]} : vector<12x64xf32> to vector<8x64xf32>
    %77 = vector.extract_strided_slice %73 {offsets = [3, 0], sizes = [8, 64], strides = [1, 1]} : vector<12x64xf32> to vector<8x64xf32>
    %78 = vector.extract_strided_slice %73 {offsets = [4, 0], sizes = [8, 64], strides = [1, 1]} : vector<12x64xf32> to vector<8x64xf32>
    %79 = tpu.concatenate %74, %75, %76, %77, %78 in 1 : vector<8x64xf32>, vector<8x64xf32>, vector<8x64xf32>, vector<8x64xf32>, vector<8x64xf32> -> vector<8x320xf32>
    %c0_32 = arith.constant 0 : index
    %c0_33 = arith.constant 0 : index
    %80 = vector.load %arg9[%c0_32, %c0_33] : memref<320x64xbf16, #tpu.memory_space<vmem>>, vector<320x64xbf16>
    %81 = arith.truncf %79 : vector<8x320xf32> to vector<8x320xbf16>
    %cst_34 = arith.constant dense<0.000000e+00> : vector<8x64xf32>
    %82 = tpu.matmul %81, %80, %cst_34 {dimension_numbers = #tpu.dot_dimension_numbers<[1], [0], [0], [1], [0, 0, 1, 1], [], []>} : vector<8x320xbf16>, vector<320x64xbf16>, vector<8x64xf32> -> vector<8x64xf32>
    %cst_35 = arith.constant 0.000000e+00 : f32
    %83 = vector.broadcast %cst_35 : f32 to vector<8x64xf32>
    %84 = arith.maximumf %82, %83 : vector<8x64xf32>
    %85 = vector.extract_strided_slice %67 {offsets = [0, 80], sizes = [8, 40], strides = [1, 1]} : vector<8x200xbf16> to vector<8x40xbf16>
    %86 = vector.extract_strided_slice %60 {offsets = [0, 320], sizes = [40, 64], strides = [1, 1]} : vector<40x384xf32> to vector<40x64xf32>
    %87 = arith.truncf %86 : vector<40x64xf32> to vector<40x64xbf16>
    %cst_36 = arith.constant dense<0.000000e+00> : vector<8x64xf32>
    %88 = tpu.matmul %85, %87, %cst_36 {dimension_numbers = #tpu.dot_dimension_numbers<[1], [0], [0], [1], [0, 0, 1, 1], [], []>} : vector<8x40xbf16>, vector<40x64xbf16>, vector<8x64xf32> -> vector<8x64xf32>
    %89 = arith.addf %84, %88 : vector<8x64xf32>
    %cst_37 = arith.constant 0.000000e+00 : f32
    %90 = vector.broadcast %cst_37 : f32 to vector<8x64xf32>
    %91 = arith.maximumf %89, %90 : vector<8x64xf32>
    %cst_38 = arith.constant 0.000000e+00 : f32
    %92 = vector.broadcast %cst_38 : f32 to vector<2x64xf32>
    %93 = tpu.concatenate %92, %91, %92 in 0 : vector<2x64xf32>, vector<8x64xf32>, vector<2x64xf32> -> vector<12x64xf32>
    %94 = vector.extract_strided_slice %93 {offsets = [0, 0], sizes = [8, 64], strides = [1, 1]} : vector<12x64xf32> to vector<8x64xf32>
    %95 = vector.extract_strided_slice %93 {offsets = [1, 0], sizes = [8, 64], strides = [1, 1]} : vector<12x64xf32> to vector<8x64xf32>
    %96 = vector.extract_strided_slice %93 {offsets = [2, 0], sizes = [8, 64], strides = [1, 1]} : vector<12x64xf32> to vector<8x64xf32>
    %97 = vector.extract_strided_slice %93 {offsets = [3, 0], sizes = [8, 64], strides = [1, 1]} : vector<12x64xf32> to vector<8x64xf32>
    %98 = vector.extract_strided_slice %93 {offsets = [4, 0], sizes = [8, 64], strides = [1, 1]} : vector<12x64xf32> to vector<8x64xf32>
    %99 = tpu.concatenate %94, %95, %96, %97, %98 in 1 : vector<8x64xf32>, vector<8x64xf32>, vector<8x64xf32>, vector<8x64xf32>, vector<8x64xf32> -> vector<8x320xf32>
    %c0_39 = arith.constant 0 : index
    %c0_40 = arith.constant 0 : index
    %100 = vector.load %arg10[%c0_39, %c0_40] : memref<320x64xbf16, #tpu.memory_space<vmem>>, vector<320x64xbf16>
    %101 = arith.truncf %99 : vector<8x320xf32> to vector<8x320xbf16>
    %cst_41 = arith.constant dense<0.000000e+00> : vector<8x64xf32>
    %102 = tpu.matmul %101, %100, %cst_41 {dimension_numbers = #tpu.dot_dimension_numbers<[1], [0], [0], [1], [0, 0, 1, 1], [], []>} : vector<8x320xbf16>, vector<320x64xbf16>, vector<8x64xf32> -> vector<8x64xf32>
    %cst_42 = arith.constant 0.000000e+00 : f32
    %103 = vector.broadcast %cst_42 : f32 to vector<8x64xf32>
    %104 = arith.maximumf %102, %103 : vector<8x64xf32>
    %cst_43 = arith.constant 0.000000e+00 : f32
    %105 = vector.broadcast %cst_43 : f32 to vector<2x64xf32>
    %106 = tpu.concatenate %105, %104, %105 in 0 : vector<2x64xf32>, vector<8x64xf32>, vector<2x64xf32> -> vector<12x64xf32>
    %107 = vector.extract_strided_slice %106 {offsets = [0, 0], sizes = [8, 64], strides = [1, 1]} : vector<12x64xf32> to vector<8x64xf32>
    %108 = vector.extract_strided_slice %106 {offsets = [1, 0], sizes = [8, 64], strides = [1, 1]} : vector<12x64xf32> to vector<8x64xf32>
    %109 = vector.extract_strided_slice %106 {offsets = [2, 0], sizes = [8, 64], strides = [1, 1]} : vector<12x64xf32> to vector<8x64xf32>
    %110 = vector.extract_strided_slice %106 {offsets = [3, 0], sizes = [8, 64], strides = [1, 1]} : vector<12x64xf32> to vector<8x64xf32>
    %111 = vector.extract_strided_slice %106 {offsets = [4, 0], sizes = [8, 64], strides = [1, 1]} : vector<12x64xf32> to vector<8x64xf32>
    %112 = tpu.concatenate %107, %108, %109, %110, %111 in 1 : vector<8x64xf32>, vector<8x64xf32>, vector<8x64xf32>, vector<8x64xf32>, vector<8x64xf32> -> vector<8x320xf32>
    %c0_44 = arith.constant 0 : index
    %c0_45 = arith.constant 0 : index
    %113 = vector.load %arg11[%c0_44, %c0_45] : memref<320x64xbf16, #tpu.memory_space<vmem>>, vector<320x64xbf16>
    %114 = arith.truncf %112 : vector<8x320xf32> to vector<8x320xbf16>
    %cst_46 = arith.constant dense<0.000000e+00> : vector<8x64xf32>
    %115 = tpu.matmul %114, %113, %cst_46 {dimension_numbers = #tpu.dot_dimension_numbers<[1], [0], [0], [1], [0, 0, 1, 1], [], []>} : vector<8x320xbf16>, vector<320x64xbf16>, vector<8x64xf32> -> vector<8x64xf32>
    %cst_47 = arith.constant 0.000000e+00 : f32
    %116 = vector.broadcast %cst_47 : f32 to vector<8x64xf32>
    %117 = arith.maximumf %115, %116 : vector<8x64xf32>
    %118 = arith.addf %117, %91 : vector<8x64xf32>
    %cst_48 = arith.constant 0.000000e+00 : f32
    %119 = vector.broadcast %cst_48 : f32 to vector<8x64xf32>
    %120 = arith.maximumf %118, %119 : vector<8x64xf32>
    %c0_49 = arith.constant 0 : index
    %c0_50 = arith.constant 0 : index
    %121 = vector.load %arg12[%c0_49, %c0_50] : memref<64x768xbf16, #tpu.memory_space<vmem>>, vector<64x768xbf16>
    %122 = arith.truncf %120 : vector<8x64xf32> to vector<8x64xbf16>
    %cst_51 = arith.constant dense<0.000000e+00> : vector<8x768xf32>
    %123 = tpu.matmul %122, %121, %cst_51 {dimension_numbers = #tpu.dot_dimension_numbers<[1], [0], [0], [1], [0, 0, 1, 1], [], []>} : vector<8x64xbf16>, vector<64x768xbf16>, vector<8x768xf32> -> vector<8x768xf32>
    %124 = vector.extract_strided_slice %123 {offsets = [0, 0], sizes = [8, 128], strides = [1, 1]} : vector<8x768xf32> to vector<8x128xf32>
    %125 = vector.extract_strided_slice %123 {offsets = [0, 128], sizes = [8, 128], strides = [1, 1]} : vector<8x768xf32> to vector<8x128xf32>
    %126 = vector.extract_strided_slice %123 {offsets = [0, 256], sizes = [8, 128], strides = [1, 1]} : vector<8x768xf32> to vector<8x128xf32>
    %127 = vector.extract_strided_slice %123 {offsets = [0, 384], sizes = [8, 128], strides = [1, 1]} : vector<8x768xf32> to vector<8x128xf32>
    %128 = vector.extract_strided_slice %123 {offsets = [0, 512], sizes = [8, 128], strides = [1, 1]} : vector<8x768xf32> to vector<8x128xf32>
    %129 = tpu.concatenate %124, %125, %126, %127, %128 in 0 : vector<8x128xf32>, vector<8x128xf32>, vector<8x128xf32>, vector<8x128xf32>, vector<8x128xf32> -> vector<40x128xf32>
    %c0_52 = arith.constant 0 : index
    %c0_53 = arith.constant 0 : index
    %130 = vector.load %arg13[%c0_52, %c0_53] : memref<2x40xbf16, #tpu.memory_space<vmem>>, vector<2x40xbf16>
    %131 = arith.truncf %129 : vector<40x128xf32> to vector<40x128xbf16>
    %cst_54 = arith.constant dense<0.000000e+00> : vector<2x128xf32>
    %132 = tpu.matmul %130, %131, %cst_54 {dimension_numbers = #tpu.dot_dimension_numbers<[1], [0], [0], [1], [0, 0, 1, 1], [], []>} : vector<2x40xbf16>, vector<40x128xbf16>, vector<2x128xf32> -> vector<2x128xf32>
    %cst_55 = arith.constant 0.000000e+00 : f32
    %133 = vector.broadcast %cst_55 : f32 to vector<2x128xf32>
    %134 = arith.maximumf %132, %133 : vector<2x128xf32>
    %cst_56 = arith.constant 0.000000e+00 : f32
    %135 = vector.broadcast %cst_56 : f32 to vector<2x128xf32>
    %136 = tpu.concatenate %135, %134, %135 in 0 : vector<2x128xf32>, vector<2x128xf32>, vector<2x128xf32> -> vector<6x128xf32>
    %137 = vector.extract_strided_slice %136 {offsets = [0, 0], sizes = [2, 128], strides = [1, 1]} : vector<6x128xf32> to vector<2x128xf32>
    %138 = vector.extract_strided_slice %136 {offsets = [1, 0], sizes = [2, 128], strides = [1, 1]} : vector<6x128xf32> to vector<2x128xf32>
    %139 = vector.extract_strided_slice %136 {offsets = [2, 0], sizes = [2, 128], strides = [1, 1]} : vector<6x128xf32> to vector<2x128xf32>
    %140 = vector.extract_strided_slice %136 {offsets = [3, 0], sizes = [2, 128], strides = [1, 1]} : vector<6x128xf32> to vector<2x128xf32>
    %141 = vector.extract_strided_slice %136 {offsets = [4, 0], sizes = [2, 128], strides = [1, 1]} : vector<6x128xf32> to vector<2x128xf32>
    %142 = tpu.concatenate %137, %138, %139, %140, %141 in 1 : vector<2x128xf32>, vector<2x128xf32>, vector<2x128xf32>, vector<2x128xf32>, vector<2x128xf32> -> vector<2x640xf32>
    %c0_57 = arith.constant 0 : index
    %c0_58 = arith.constant 0 : index
    %143 = vector.load %arg14[%c0_57, %c0_58] : memref<640x128xbf16, #tpu.memory_space<vmem>>, vector<640x128xbf16>
    %144 = arith.truncf %142 : vector<2x640xf32> to vector<2x640xbf16>
    %cst_59 = arith.constant dense<0.000000e+00> : vector<2x128xf32>
    %145 = tpu.matmul %144, %143, %cst_59 {dimension_numbers = #tpu.dot_dimension_numbers<[1], [0], [0], [1], [0, 0, 1, 1], [], []>} : vector<2x640xbf16>, vector<640x128xbf16>, vector<2x128xf32> -> vector<2x128xf32>
    %cst_60 = arith.constant 0.000000e+00 : f32
    %146 = vector.broadcast %cst_60 : f32 to vector<2x128xf32>
    %147 = arith.maximumf %145, %146 : vector<2x128xf32>
    %148 = vector.extract_strided_slice %130 {offsets = [0, 16], sizes = [2, 8], strides = [1, 1]} : vector<2x40xbf16> to vector<2x8xbf16>
    %149 = vector.extract_strided_slice %123 {offsets = [0, 640], sizes = [8, 128], strides = [1, 1]} : vector<8x768xf32> to vector<8x128xf32>
    %150 = arith.truncf %149 : vector<8x128xf32> to vector<8x128xbf16>
    %cst_61 = arith.constant dense<0.000000e+00> : vector<2x128xf32>
    %151 = tpu.matmul %148, %150, %cst_61 {dimension_numbers = #tpu.dot_dimension_numbers<[1], [0], [0], [1], [0, 0, 1, 1], [], []>} : vector<2x8xbf16>, vector<8x128xbf16>, vector<2x128xf32> -> vector<2x128xf32>
    %152 = arith.addf %147, %151 : vector<2x128xf32>
    %cst_62 = arith.constant 0.000000e+00 : f32
    %153 = vector.broadcast %cst_62 : f32 to vector<2x128xf32>
    %154 = arith.maximumf %152, %153 : vector<2x128xf32>
    %cst_63 = arith.constant 0.000000e+00 : f32
    %155 = vector.broadcast %cst_63 : f32 to vector<2x128xf32>
    %156 = tpu.concatenate %155, %154, %155 in 0 : vector<2x128xf32>, vector<2x128xf32>, vector<2x128xf32> -> vector<6x128xf32>
    %157 = vector.extract_strided_slice %156 {offsets = [0, 0], sizes = [2, 128], strides = [1, 1]} : vector<6x128xf32> to vector<2x128xf32>
    %158 = vector.extract_strided_slice %156 {offsets = [1, 0], sizes = [2, 128], strides = [1, 1]} : vector<6x128xf32> to vector<2x128xf32>
    %159 = vector.extract_strided_slice %156 {offsets = [2, 0], sizes = [2, 128], strides = [1, 1]} : vector<6x128xf32> to vector<2x128xf32>
    %160 = vector.extract_strided_slice %156 {offsets = [3, 0], sizes = [2, 128], strides = [1, 1]} : vector<6x128xf32> to vector<2x128xf32>
    %161 = vector.extract_strided_slice %156 {offsets = [4, 0], sizes = [2, 128], strides = [1, 1]} : vector<6x128xf32> to vector<2x128xf32>
    %162 = tpu.concatenate %157, %158, %159, %160, %161 in 1 : vector<2x128xf32>, vector<2x128xf32>, vector<2x128xf32>, vector<2x128xf32>, vector<2x128xf32> -> vector<2x640xf32>
    %c0_64 = arith.constant 0 : index
    %c0_65 = arith.constant 0 : index
    %163 = vector.load %arg15[%c0_64, %c0_65] : memref<640x128xbf16, #tpu.memory_space<vmem>>, vector<640x128xbf16>
    %164 = arith.truncf %162 : vector<2x640xf32> to vector<2x640xbf16>
    %cst_66 = arith.constant dense<0.000000e+00> : vector<2x128xf32>
    %165 = tpu.matmul %164, %163, %cst_66 {dimension_numbers = #tpu.dot_dimension_numbers<[1], [0], [0], [1], [0, 0, 1, 1], [], []>} : vector<2x640xbf16>, vector<640x128xbf16>, vector<2x128xf32> -> vector<2x128xf32>
    %cst_67 = arith.constant 0.000000e+00 : f32
    %166 = vector.broadcast %cst_67 : f32 to vector<2x128xf32>
    %167 = arith.maximumf %165, %166 : vector<2x128xf32>
    %cst_68 = arith.constant 0.000000e+00 : f32
    %168 = vector.broadcast %cst_68 : f32 to vector<2x128xf32>
    %169 = tpu.concatenate %168, %167, %168 in 0 : vector<2x128xf32>, vector<2x128xf32>, vector<2x128xf32> -> vector<6x128xf32>
    %170 = vector.extract_strided_slice %169 {offsets = [0, 0], sizes = [2, 128], strides = [1, 1]} : vector<6x128xf32> to vector<2x128xf32>
    %171 = vector.extract_strided_slice %169 {offsets = [1, 0], sizes = [2, 128], strides = [1, 1]} : vector<6x128xf32> to vector<2x128xf32>
    %172 = vector.extract_strided_slice %169 {offsets = [2, 0], sizes = [2, 128], strides = [1, 1]} : vector<6x128xf32> to vector<2x128xf32>
    %173 = vector.extract_strided_slice %169 {offsets = [3, 0], sizes = [2, 128], strides = [1, 1]} : vector<6x128xf32> to vector<2x128xf32>
    %174 = vector.extract_strided_slice %169 {offsets = [4, 0], sizes = [2, 128], strides = [1, 1]} : vector<6x128xf32> to vector<2x128xf32>
    %175 = tpu.concatenate %170, %171, %172, %173, %174 in 1 : vector<2x128xf32>, vector<2x128xf32>, vector<2x128xf32>, vector<2x128xf32>, vector<2x128xf32> -> vector<2x640xf32>
    %c0_69 = arith.constant 0 : index
    %c0_70 = arith.constant 0 : index
    %176 = vector.load %arg16[%c0_69, %c0_70] : memref<640x128xbf16, #tpu.memory_space<vmem>>, vector<640x128xbf16>
    %177 = arith.truncf %175 : vector<2x640xf32> to vector<2x640xbf16>
    %cst_71 = arith.constant dense<0.000000e+00> : vector<2x128xf32>
    %178 = tpu.matmul %177, %176, %cst_71 {dimension_numbers = #tpu.dot_dimension_numbers<[1], [0], [0], [1], [0, 0, 1, 1], [], []>} : vector<2x640xbf16>, vector<640x128xbf16>, vector<2x128xf32> -> vector<2x128xf32>
    %cst_72 = arith.constant 0.000000e+00 : f32
    %179 = vector.broadcast %cst_72 : f32 to vector<2x128xf32>
    %180 = arith.maximumf %178, %179 : vector<2x128xf32>
    %181 = arith.addf %180, %154 : vector<2x128xf32>
    %cst_73 = arith.constant 0.000000e+00 : f32
    %182 = vector.broadcast %cst_73 : f32 to vector<2x128xf32>
    %183 = arith.maximumf %181, %182 : vector<2x128xf32>
    %c0_74 = arith.constant 0 : index
    %c0_75 = arith.constant 0 : index
    %184 = vector.load %arg17[%c0_74, %c0_75] : memref<128x1536xbf16, #tpu.memory_space<vmem>>, vector<128x1536xbf16>
    %185 = arith.truncf %183 : vector<2x128xf32> to vector<2x128xbf16>
    %cst_76 = arith.constant dense<0.000000e+00> : vector<2x1536xf32>
    %186 = tpu.matmul %185, %184, %cst_76 {dimension_numbers = #tpu.dot_dimension_numbers<[1], [0], [0], [1], [0, 0, 1, 1], [], []>} : vector<2x128xbf16>, vector<128x1536xbf16>, vector<2x1536xf32> -> vector<2x1536xf32>
    %187 = vector.extract_strided_slice %186 {offsets = [0, 0], sizes = [2, 256], strides = [1, 1]} : vector<2x1536xf32> to vector<2x256xf32>
    %188 = vector.extract_strided_slice %186 {offsets = [0, 256], sizes = [2, 256], strides = [1, 1]} : vector<2x1536xf32> to vector<2x256xf32>
    %189 = vector.extract_strided_slice %186 {offsets = [0, 512], sizes = [2, 256], strides = [1, 1]} : vector<2x1536xf32> to vector<2x256xf32>
    %190 = vector.extract_strided_slice %186 {offsets = [0, 768], sizes = [2, 256], strides = [1, 1]} : vector<2x1536xf32> to vector<2x256xf32>
    %191 = vector.extract_strided_slice %186 {offsets = [0, 1024], sizes = [2, 256], strides = [1, 1]} : vector<2x1536xf32> to vector<2x256xf32>
    %192 = tpu.concatenate %187, %188, %189, %190, %191 in 0 : vector<2x256xf32>, vector<2x256xf32>, vector<2x256xf32>, vector<2x256xf32>, vector<2x256xf32> -> vector<10x256xf32>
    %c0_77 = arith.constant 0 : index
    %c0_78 = arith.constant 0 : index
    %193 = vector.load %arg18[%c0_77, %c0_78] : memref<1x10xbf16, #tpu.memory_space<vmem>>, vector<1x10xbf16>
    %194 = arith.truncf %192 : vector<10x256xf32> to vector<10x256xbf16>
    %cst_79 = arith.constant dense<0.000000e+00> : vector<1x256xf32>
    %195 = tpu.matmul %193, %194, %cst_79 {dimension_numbers = #tpu.dot_dimension_numbers<[1], [0], [0], [1], [0, 0, 1, 1], [], []>} : vector<1x10xbf16>, vector<10x256xbf16>, vector<1x256xf32> -> vector<1x256xf32>
    %cst_80 = arith.constant 0.000000e+00 : f32
    %196 = vector.broadcast %cst_80 : f32 to vector<1x256xf32>
    %197 = arith.maximumf %195, %196 : vector<1x256xf32>
    %cst_81 = arith.constant 0.000000e+00 : f32
    %198 = vector.broadcast %cst_81 : f32 to vector<2x256xf32>
    %199 = tpu.concatenate %198, %197, %198 in 0 : vector<2x256xf32>, vector<1x256xf32>, vector<2x256xf32> -> vector<5x256xf32>
    %200 = vector.extract_strided_slice %199 {offsets = [0, 0], sizes = [1, 256], strides = [1, 1]} : vector<5x256xf32> to vector<1x256xf32>
    %201 = vector.extract_strided_slice %199 {offsets = [1, 0], sizes = [1, 256], strides = [1, 1]} : vector<5x256xf32> to vector<1x256xf32>
    %202 = vector.extract_strided_slice %199 {offsets = [2, 0], sizes = [1, 256], strides = [1, 1]} : vector<5x256xf32> to vector<1x256xf32>
    %203 = vector.extract_strided_slice %199 {offsets = [3, 0], sizes = [1, 256], strides = [1, 1]} : vector<5x256xf32> to vector<1x256xf32>
    %204 = vector.extract_strided_slice %199 {offsets = [4, 0], sizes = [1, 256], strides = [1, 1]} : vector<5x256xf32> to vector<1x256xf32>
    %205 = tpu.concatenate %200, %201, %202, %203, %204 in 1 : vector<1x256xf32>, vector<1x256xf32>, vector<1x256xf32>, vector<1x256xf32>, vector<1x256xf32> -> vector<1x1280xf32>
    %c0_82 = arith.constant 0 : index
    %c0_83 = arith.constant 0 : index
    %206 = vector.load %arg19[%c0_82, %c0_83] : memref<1280x256xbf16, #tpu.memory_space<vmem>>, vector<1280x256xbf16>
    %207 = arith.truncf %205 : vector<1x1280xf32> to vector<1x1280xbf16>
    %cst_84 = arith.constant dense<0.000000e+00> : vector<1x256xf32>
    %208 = tpu.matmul %207, %206, %cst_84 {dimension_numbers = #tpu.dot_dimension_numbers<[1], [0], [0], [1], [0, 0, 1, 1], [], []>} : vector<1x1280xbf16>, vector<1280x256xbf16>, vector<1x256xf32> -> vector<1x256xf32>
    %cst_85 = arith.constant 0.000000e+00 : f32
    %209 = vector.broadcast %cst_85 : f32 to vector<1x256xf32>
    %210 = arith.maximumf %208, %209 : vector<1x256xf32>
    %211 = vector.extract_strided_slice %193 {offsets = [0, 4], sizes = [1, 2], strides = [1, 1]} : vector<1x10xbf16> to vector<1x2xbf16>
    %212 = vector.extract_strided_slice %186 {offsets = [0, 1280], sizes = [2, 256], strides = [1, 1]} : vector<2x1536xf32> to vector<2x256xf32>
    %213 = arith.truncf %212 : vector<2x256xf32> to vector<2x256xbf16>
    %cst_86 = arith.constant dense<0.000000e+00> : vector<1x256xf32>
    %214 = tpu.matmul %211, %213, %cst_86 {dimension_numbers = #tpu.dot_dimension_numbers<[1], [0], [0], [1], [0, 0, 1, 1], [], []>} : vector<1x2xbf16>, vector<2x256xbf16>, vector<1x256xf32> -> vector<1x256xf32>
    %215 = arith.addf %210, %214 : vector<1x256xf32>
    %cst_87 = arith.constant 0.000000e+00 : f32
    %216 = vector.broadcast %cst_87 : f32 to vector<1x256xf32>
    %217 = arith.maximumf %215, %216 : vector<1x256xf32>
    %cst_88 = arith.constant 0.000000e+00 : f32
    %218 = vector.broadcast %cst_88 : f32 to vector<2x256xf32>
    %219 = tpu.concatenate %218, %217, %218 in 0 : vector<2x256xf32>, vector<1x256xf32>, vector<2x256xf32> -> vector<5x256xf32>
    %220 = vector.extract_strided_slice %219 {offsets = [0, 0], sizes = [1, 256], strides = [1, 1]} : vector<5x256xf32> to vector<1x256xf32>
    %221 = vector.extract_strided_slice %219 {offsets = [1, 0], sizes = [1, 256], strides = [1, 1]} : vector<5x256xf32> to vector<1x256xf32>
    %222 = vector.extract_strided_slice %219 {offsets = [2, 0], sizes = [1, 256], strides = [1, 1]} : vector<5x256xf32> to vector<1x256xf32>
    %223 = vector.extract_strided_slice %219 {offsets = [3, 0], sizes = [1, 256], strides = [1, 1]} : vector<5x256xf32> to vector<1x256xf32>
    %224 = vector.extract_strided_slice %219 {offsets = [4, 0], sizes = [1, 256], strides = [1, 1]} : vector<5x256xf32> to vector<1x256xf32>
    %225 = tpu.concatenate %220, %221, %222, %223, %224 in 1 : vector<1x256xf32>, vector<1x256xf32>, vector<1x256xf32>, vector<1x256xf32>, vector<1x256xf32> -> vector<1x1280xf32>
    %c0_89 = arith.constant 0 : index
    %c0_90 = arith.constant 0 : index
    %226 = vector.load %arg20[%c0_89, %c0_90] : memref<1280x256xbf16, #tpu.memory_space<vmem>>, vector<1280x256xbf16>
    %227 = arith.truncf %225 : vector<1x1280xf32> to vector<1x1280xbf16>
    %cst_91 = arith.constant dense<0.000000e+00> : vector<1x256xf32>
    %228 = tpu.matmul %227, %226, %cst_91 {dimension_numbers = #tpu.dot_dimension_numbers<[1], [0], [0], [1], [0, 0, 1, 1], [], []>} : vector<1x1280xbf16>, vector<1280x256xbf16>, vector<1x256xf32> -> vector<1x256xf32>
    %cst_92 = arith.constant 0.000000e+00 : f32
    %229 = vector.broadcast %cst_92 : f32 to vector<1x256xf32>
    %230 = arith.maximumf %228, %229 : vector<1x256xf32>
    %cst_93 = arith.constant 0.000000e+00 : f32
    %231 = vector.broadcast %cst_93 : f32 to vector<2x256xf32>
    %232 = tpu.concatenate %231, %230, %231 in 0 : vector<2x256xf32>, vector<1x256xf32>, vector<2x256xf32> -> vector<5x256xf32>
    %233 = vector.extract_strided_slice %232 {offsets = [0, 0], sizes = [1, 256], strides = [1, 1]} : vector<5x256xf32> to vector<1x256xf32>
    %234 = vector.extract_strided_slice %232 {offsets = [1, 0], sizes = [1, 256], strides = [1, 1]} : vector<5x256xf32> to vector<1x256xf32>
    %235 = vector.extract_strided_slice %232 {offsets = [2, 0], sizes = [1, 256], strides = [1, 1]} : vector<5x256xf32> to vector<1x256xf32>
    %236 = vector.extract_strided_slice %232 {offsets = [3, 0], sizes = [1, 256], strides = [1, 1]} : vector<5x256xf32> to vector<1x256xf32>
    %237 = vector.extract_strided_slice %232 {offsets = [4, 0], sizes = [1, 256], strides = [1, 1]} : vector<5x256xf32> to vector<1x256xf32>
    %238 = tpu.concatenate %233, %234, %235, %236, %237 in 1 : vector<1x256xf32>, vector<1x256xf32>, vector<1x256xf32>, vector<1x256xf32>, vector<1x256xf32> -> vector<1x1280xf32>
    %c0_94 = arith.constant 0 : index
    %c0_95 = arith.constant 0 : index
    %239 = vector.load %arg21[%c0_94, %c0_95] : memref<1280x256xbf16, #tpu.memory_space<vmem>>, vector<1280x256xbf16>
    %240 = arith.truncf %238 : vector<1x1280xf32> to vector<1x1280xbf16>
    %cst_96 = arith.constant dense<0.000000e+00> : vector<1x256xf32>
    %241 = tpu.matmul %240, %239, %cst_96 {dimension_numbers = #tpu.dot_dimension_numbers<[1], [0], [0], [1], [0, 0, 1, 1], [], []>} : vector<1x1280xbf16>, vector<1280x256xbf16>, vector<1x256xf32> -> vector<1x256xf32>
    %cst_97 = arith.constant 0.000000e+00 : f32
    %242 = vector.broadcast %cst_97 : f32 to vector<1x256xf32>
    %243 = arith.maximumf %241, %242 : vector<1x256xf32>
    %244 = arith.addf %243, %217 : vector<1x256xf32>
    %cst_98 = arith.constant 0.000000e+00 : f32
    %245 = vector.broadcast %cst_98 : f32 to vector<1x256xf32>
    %246 = arith.maximumf %244, %245 : vector<1x256xf32>
    %c0_99 = arith.constant 0 : index
    %c0_100 = arith.constant 0 : index
    %247 = vector.load %arg22[%c0_99, %c0_100] : memref<256x512xbf16, #tpu.memory_space<vmem>>, vector<256x512xbf16>
    %248 = arith.truncf %246 : vector<1x256xf32> to vector<1x256xbf16>
    %cst_101 = arith.constant dense<0.000000e+00> : vector<1x512xf32>
    %249 = tpu.matmul %248, %247, %cst_101 {dimension_numbers = #tpu.dot_dimension_numbers<[1], [0], [0], [1], [0, 0, 1, 1], [], []>} : vector<1x256xbf16>, vector<256x512xbf16>, vector<1x512xf32> -> vector<1x512xf32>
    %250 = vector.extract_strided_slice %249 {offsets = [0, 0], sizes = [1, 128], strides = [1, 1]} : vector<1x512xf32> to vector<1x128xf32>
    %251 = vector.extract_strided_slice %249 {offsets = [0, 128], sizes = [1, 128], strides = [1, 1]} : vector<1x512xf32> to vector<1x128xf32>
    %252 = vector.extract_strided_slice %249 {offsets = [0, 256], sizes = [1, 128], strides = [1, 1]} : vector<1x512xf32> to vector<1x128xf32>
    %253 = vector.extract_strided_slice %249 {offsets = [0, 384], sizes = [1, 128], strides = [1, 1]} : vector<1x512xf32> to vector<1x128xf32>
    %254 = tpu.concatenate %250, %251, %252, %253 in 0 : vector<1x128xf32>, vector<1x128xf32>, vector<1x128xf32>, vector<1x128xf32> -> vector<4x128xf32>
    %c0_102 = arith.constant 0 : index
    %c0_103 = arith.constant 0 : index
    %255 = vector.load %arg23[%c0_102, %c0_103] : memref<2x4xbf16, #tpu.memory_space<vmem>>, vector<2x4xbf16>
    %256 = arith.truncf %254 : vector<4x128xf32> to vector<4x128xbf16>
    %cst_104 = arith.constant dense<0.000000e+00> : vector<2x128xf32>
    %257 = tpu.matmul %255, %256, %cst_104 {dimension_numbers = #tpu.dot_dimension_numbers<[1], [0], [0], [1], [0, 0, 1, 1], [], []>} : vector<2x4xbf16>, vector<4x128xbf16>, vector<2x128xf32> -> vector<2x128xf32>
    %258 = tpu.concatenate %257, %183 in 1 : vector<2x128xf32>, vector<2x128xf32> -> vector<2x256xf32>
    %cst_105 = arith.constant 0.000000e+00 : f32
    %259 = vector.broadcast %cst_105 : f32 to vector<2x256xf32>
    %260 = tpu.concatenate %259, %258, %259 in 0 : vector<2x256xf32>, vector<2x256xf32>, vector<2x256xf32> -> vector<6x256xf32>
    %261 = vector.extract_strided_slice %260 {offsets = [0, 0], sizes = [2, 256], strides = [1, 1]} : vector<6x256xf32> to vector<2x256xf32>
    %262 = vector.extract_strided_slice %260 {offsets = [1, 0], sizes = [2, 256], strides = [1, 1]} : vector<6x256xf32> to vector<2x256xf32>
    %263 = vector.extract_strided_slice %260 {offsets = [2, 0], sizes = [2, 256], strides = [1, 1]} : vector<6x256xf32> to vector<2x256xf32>
    %264 = vector.extract_strided_slice %260 {offsets = [3, 0], sizes = [2, 256], strides = [1, 1]} : vector<6x256xf32> to vector<2x256xf32>
    %265 = vector.extract_strided_slice %260 {offsets = [4, 0], sizes = [2, 256], strides = [1, 1]} : vector<6x256xf32> to vector<2x256xf32>
    %266 = tpu.concatenate %261, %262, %263, %264, %265 in 1 : vector<2x256xf32>, vector<2x256xf32>, vector<2x256xf32>, vector<2x256xf32>, vector<2x256xf32> -> vector<2x1280xf32>
    %c0_106 = arith.constant 0 : index
    %c0_107 = arith.constant 0 : index
    %267 = vector.load %arg24[%c0_106, %c0_107] : memref<1280x128xbf16, #tpu.memory_space<vmem>>, vector<1280x128xbf16>
    %268 = arith.truncf %266 : vector<2x1280xf32> to vector<2x1280xbf16>
    %cst_108 = arith.constant dense<0.000000e+00> : vector<2x128xf32>
    %269 = tpu.matmul %268, %267, %cst_108 {dimension_numbers = #tpu.dot_dimension_numbers<[1], [0], [0], [1], [0, 0, 1, 1], [], []>} : vector<2x1280xbf16>, vector<1280x128xbf16>, vector<2x128xf32> -> vector<2x128xf32>
    %cst_109 = arith.constant 0.000000e+00 : f32
    %270 = vector.broadcast %cst_109 : f32 to vector<2x128xf32>
    %271 = arith.maximumf %269, %270 : vector<2x128xf32>
    %cst_110 = arith.constant 0.000000e+00 : f32
    %272 = vector.broadcast %cst_110 : f32 to vector<2x128xf32>
    %273 = tpu.concatenate %272, %271, %272 in 0 : vector<2x128xf32>, vector<2x128xf32>, vector<2x128xf32> -> vector<6x128xf32>
    %274 = vector.extract_strided_slice %273 {offsets = [0, 0], sizes = [2, 128], strides = [1, 1]} : vector<6x128xf32> to vector<2x128xf32>
    %275 = vector.extract_strided_slice %273 {offsets = [1, 0], sizes = [2, 128], strides = [1, 1]} : vector<6x128xf32> to vector<2x128xf32>
    %276 = vector.extract_strided_slice %273 {offsets = [2, 0], sizes = [2, 128], strides = [1, 1]} : vector<6x128xf32> to vector<2x128xf32>
    %277 = vector.extract_strided_slice %273 {offsets = [3, 0], sizes = [2, 128], strides = [1, 1]} : vector<6x128xf32> to vector<2x128xf32>
    %278 = vector.extract_strided_slice %273 {offsets = [4, 0], sizes = [2, 128], strides = [1, 1]} : vector<6x128xf32> to vector<2x128xf32>
    %279 = tpu.concatenate %274, %275, %276, %277, %278 in 1 : vector<2x128xf32>, vector<2x128xf32>, vector<2x128xf32>, vector<2x128xf32>, vector<2x128xf32> -> vector<2x640xf32>
    %c0_111 = arith.constant 0 : index
    %c0_112 = arith.constant 0 : index
    %280 = vector.load %arg25[%c0_111, %c0_112] : memref<640x128xbf16, #tpu.memory_space<vmem>>, vector<640x128xbf16>
    %281 = arith.truncf %279 : vector<2x640xf32> to vector<2x640xbf16>
    %cst_113 = arith.constant dense<0.000000e+00> : vector<2x128xf32>
    %282 = tpu.matmul %281, %280, %cst_113 {dimension_numbers = #tpu.dot_dimension_numbers<[1], [0], [0], [1], [0, 0, 1, 1], [], []>} : vector<2x640xbf16>, vector<640x128xbf16>, vector<2x128xf32> -> vector<2x128xf32>
    %cst_114 = arith.constant 0.000000e+00 : f32
    %283 = vector.broadcast %cst_114 : f32 to vector<2x128xf32>
    %284 = arith.maximumf %282, %283 : vector<2x128xf32>
    %c0_115 = arith.constant 0 : index
    %c0_116 = arith.constant 0 : index
    %285 = vector.load %arg26[%c0_115, %c0_116] : memref<128x320xbf16, #tpu.memory_space<vmem>>, vector<128x320xbf16>
    %286 = arith.truncf %284 : vector<2x128xf32> to vector<2x128xbf16>
    %cst_117 = arith.constant dense<0.000000e+00> : vector<2x320xf32>
    %287 = tpu.matmul %286, %285, %cst_117 {dimension_numbers = #tpu.dot_dimension_numbers<[1], [0], [0], [1], [0, 0, 1, 1], [], []>} : vector<2x128xbf16>, vector<128x320xbf16>, vector<2x320xf32> -> vector<2x320xf32>
    %288 = vector.extract_strided_slice %287 {offsets = [0, 0], sizes = [2, 64], strides = [1, 1]} : vector<2x320xf32> to vector<2x64xf32>
    %289 = vector.extract_strided_slice %287 {offsets = [0, 64], sizes = [2, 64], strides = [1, 1]} : vector<2x320xf32> to vector<2x64xf32>
    %290 = vector.extract_strided_slice %287 {offsets = [0, 128], sizes = [2, 64], strides = [1, 1]} : vector<2x320xf32> to vector<2x64xf32>
    %291 = vector.extract_strided_slice %287 {offsets = [0, 192], sizes = [2, 64], strides = [1, 1]} : vector<2x320xf32> to vector<2x64xf32>
    %292 = vector.extract_strided_slice %287 {offsets = [0, 256], sizes = [2, 64], strides = [1, 1]} : vector<2x320xf32> to vector<2x64xf32>
    %293 = tpu.concatenate %288, %289, %290, %291, %292 in 0 : vector<2x64xf32>, vector<2x64xf32>, vector<2x64xf32>, vector<2x64xf32>, vector<2x64xf32> -> vector<10x64xf32>
    %c0_118 = arith.constant 0 : index
    %c0_119 = arith.constant 0 : index
    %294 = vector.load %arg27[%c0_118, %c0_119] : memref<8x10xbf16, #tpu.memory_space<vmem>>, vector<8x10xbf16>
    %295 = arith.truncf %293 : vector<10x64xf32> to vector<10x64xbf16>
    %cst_120 = arith.constant dense<0.000000e+00> : vector<8x64xf32>
    %296 = tpu.matmul %294, %295, %cst_120 {dimension_numbers = #tpu.dot_dimension_numbers<[1], [0], [0], [1], [0, 0, 1, 1], [], []>} : vector<8x10xbf16>, vector<10x64xbf16>, vector<8x64xf32> -> vector<8x64xf32>
    %297 = tpu.concatenate %296, %120 in 1 : vector<8x64xf32>, vector<8x64xf32> -> vector<8x128xf32>
    %cst_121 = arith.constant 0.000000e+00 : f32
    %298 = vector.broadcast %cst_121 : f32 to vector<2x128xf32>
    %299 = tpu.concatenate %298, %297, %298 in 0 : vector<2x128xf32>, vector<8x128xf32>, vector<2x128xf32> -> vector<12x128xf32>
    %300 = vector.extract_strided_slice %299 {offsets = [0, 0], sizes = [8, 128], strides = [1, 1]} : vector<12x128xf32> to vector<8x128xf32>
    %301 = vector.extract_strided_slice %299 {offsets = [1, 0], sizes = [8, 128], strides = [1, 1]} : vector<12x128xf32> to vector<8x128xf32>
    %302 = vector.extract_strided_slice %299 {offsets = [2, 0], sizes = [8, 128], strides = [1, 1]} : vector<12x128xf32> to vector<8x128xf32>
    %303 = vector.extract_strided_slice %299 {offsets = [3, 0], sizes = [8, 128], strides = [1, 1]} : vector<12x128xf32> to vector<8x128xf32>
    %304 = vector.extract_strided_slice %299 {offsets = [4, 0], sizes = [8, 128], strides = [1, 1]} : vector<12x128xf32> to vector<8x128xf32>
    %305 = tpu.concatenate %300, %301, %302, %303, %304 in 1 : vector<8x128xf32>, vector<8x128xf32>, vector<8x128xf32>, vector<8x128xf32>, vector<8x128xf32> -> vector<8x640xf32>
    %c0_122 = arith.constant 0 : index
    %c0_123 = arith.constant 0 : index
    %306 = vector.load %arg28[%c0_122, %c0_123] : memref<640x64xbf16, #tpu.memory_space<vmem>>, vector<640x64xbf16>
    %307 = arith.truncf %305 : vector<8x640xf32> to vector<8x640xbf16>
    %cst_124 = arith.constant dense<0.000000e+00> : vector<8x64xf32>
    %308 = tpu.matmul %307, %306, %cst_124 {dimension_numbers = #tpu.dot_dimension_numbers<[1], [0], [0], [1], [0, 0, 1, 1], [], []>} : vector<8x640xbf16>, vector<640x64xbf16>, vector<8x64xf32> -> vector<8x64xf32>
    %cst_125 = arith.constant 0.000000e+00 : f32
    %309 = vector.broadcast %cst_125 : f32 to vector<8x64xf32>
    %310 = arith.maximumf %308, %309 : vector<8x64xf32>
    %cst_126 = arith.constant 0.000000e+00 : f32
    %311 = vector.broadcast %cst_126 : f32 to vector<2x64xf32>
    %312 = tpu.concatenate %311, %310, %311 in 0 : vector<2x64xf32>, vector<8x64xf32>, vector<2x64xf32> -> vector<12x64xf32>
    %313 = vector.extract_strided_slice %312 {offsets = [0, 0], sizes = [8, 64], strides = [1, 1]} : vector<12x64xf32> to vector<8x64xf32>
    %314 = vector.extract_strided_slice %312 {offsets = [1, 0], sizes = [8, 64], strides = [1, 1]} : vector<12x64xf32> to vector<8x64xf32>
    %315 = vector.extract_strided_slice %312 {offsets = [2, 0], sizes = [8, 64], strides = [1, 1]} : vector<12x64xf32> to vector<8x64xf32>
    %316 = vector.extract_strided_slice %312 {offsets = [3, 0], sizes = [8, 64], strides = [1, 1]} : vector<12x64xf32> to vector<8x64xf32>
    %317 = vector.extract_strided_slice %312 {offsets = [4, 0], sizes = [8, 64], strides = [1, 1]} : vector<12x64xf32> to vector<8x64xf32>
    %318 = tpu.concatenate %313, %314, %315, %316, %317 in 1 : vector<8x64xf32>, vector<8x64xf32>, vector<8x64xf32>, vector<8x64xf32>, vector<8x64xf32> -> vector<8x320xf32>
    %c0_127 = arith.constant 0 : index
    %c0_128 = arith.constant 0 : index
    %319 = vector.load %arg29[%c0_127, %c0_128] : memref<320x64xbf16, #tpu.memory_space<vmem>>, vector<320x64xbf16>
    %320 = arith.truncf %318 : vector<8x320xf32> to vector<8x320xbf16>
    %cst_129 = arith.constant dense<0.000000e+00> : vector<8x64xf32>
    %321 = tpu.matmul %320, %319, %cst_129 {dimension_numbers = #tpu.dot_dimension_numbers<[1], [0], [0], [1], [0, 0, 1, 1], [], []>} : vector<8x320xbf16>, vector<320x64xbf16>, vector<8x64xf32> -> vector<8x64xf32>
    %cst_130 = arith.constant 0.000000e+00 : f32
    %322 = vector.broadcast %cst_130 : f32 to vector<8x64xf32>
    %323 = arith.maximumf %321, %322 : vector<8x64xf32>
    %c0_131 = arith.constant 0 : index
    %c0_132 = arith.constant 0 : index
    %324 = vector.load %arg30[%c0_131, %c0_132] : memref<64x160xbf16, #tpu.memory_space<vmem>>, vector<64x160xbf16>
    %325 = arith.truncf %323 : vector<8x64xf32> to vector<8x64xbf16>
    %cst_133 = arith.constant dense<0.000000e+00> : vector<8x160xf32>
    %326 = tpu.matmul %325, %324, %cst_133 {dimension_numbers = #tpu.dot_dimension_numbers<[1], [0], [0], [1], [0, 0, 1, 1], [], []>} : vector<8x64xbf16>, vector<64x160xbf16>, vector<8x160xf32> -> vector<8x160xf32>
    %327 = vector.extract_strided_slice %326 {offsets = [0, 0], sizes = [8, 32], strides = [1, 1]} : vector<8x160xf32> to vector<8x32xf32>
    %328 = vector.extract_strided_slice %326 {offsets = [0, 32], sizes = [8, 32], strides = [1, 1]} : vector<8x160xf32> to vector<8x32xf32>
    %329 = vector.extract_strided_slice %326 {offsets = [0, 64], sizes = [8, 32], strides = [1, 1]} : vector<8x160xf32> to vector<8x32xf32>
    %330 = vector.extract_strided_slice %326 {offsets = [0, 96], sizes = [8, 32], strides = [1, 1]} : vector<8x160xf32> to vector<8x32xf32>
    %331 = vector.extract_strided_slice %326 {offsets = [0, 128], sizes = [8, 32], strides = [1, 1]} : vector<8x160xf32> to vector<8x32xf32>
    %332 = tpu.concatenate %327, %328, %329, %330, %331 in 0 : vector<8x32xf32>, vector<8x32xf32>, vector<8x32xf32>, vector<8x32xf32>, vector<8x32xf32> -> vector<40x32xf32>
    %c0_134 = arith.constant 0 : index
    %c0_135 = arith.constant 0 : index
    %333 = vector.load %arg31[%c0_134, %c0_135] : memref<40x40xbf16, #tpu.memory_space<vmem>>, vector<40x40xbf16>
    %334 = arith.truncf %332 : vector<40x32xf32> to vector<40x32xbf16>
    %cst_136 = arith.constant dense<0.000000e+00> : vector<40x32xf32>
    %335 = tpu.matmul %333, %334, %cst_136 {dimension_numbers = #tpu.dot_dimension_numbers<[1], [0], [0], [1], [0, 0, 1, 1], [], []>} : vector<40x40xbf16>, vector<40x32xbf16>, vector<40x32xf32> -> vector<40x32xf32>
    %336 = tpu.concatenate %335, %57 in 1 : vector<40x32xf32>, vector<40x32xf32> -> vector<40x64xf32>
    %cst_137 = arith.constant 0.000000e+00 : f32
    %337 = vector.broadcast %cst_137 : f32 to vector<2x64xf32>
    %338 = tpu.concatenate %337, %336, %337 in 0 : vector<2x64xf32>, vector<40x64xf32>, vector<2x64xf32> -> vector<44x64xf32>
    %339 = vector.extract_strided_slice %338 {offsets = [0, 0], sizes = [40, 64], strides = [1, 1]} : vector<44x64xf32> to vector<40x64xf32>
    %340 = vector.extract_strided_slice %338 {offsets = [1, 0], sizes = [40, 64], strides = [1, 1]} : vector<44x64xf32> to vector<40x64xf32>
    %341 = vector.extract_strided_slice %338 {offsets = [2, 0], sizes = [40, 64], strides = [1, 1]} : vector<44x64xf32> to vector<40x64xf32>
    %342 = vector.extract_strided_slice %338 {offsets = [3, 0], sizes = [40, 64], strides = [1, 1]} : vector<44x64xf32> to vector<40x64xf32>
    %343 = vector.extract_strided_slice %338 {offsets = [4, 0], sizes = [40, 64], strides = [1, 1]} : vector<44x64xf32> to vector<40x64xf32>
    %344 = tpu.concatenate %339, %340, %341, %342, %343 in 1 : vector<40x64xf32>, vector<40x64xf32>, vector<40x64xf32>, vector<40x64xf32>, vector<40x64xf32> -> vector<40x320xf32>
    %c0_138 = arith.constant 0 : index
    %c0_139 = arith.constant 0 : index
    %345 = vector.load %arg32[%c0_138, %c0_139] : memref<320x32xbf16, #tpu.memory_space<vmem>>, vector<320x32xbf16>
    %346 = arith.truncf %344 : vector<40x320xf32> to vector<40x320xbf16>
    %cst_140 = arith.constant dense<0.000000e+00> : vector<40x32xf32>
    %347 = tpu.matmul %346, %345, %cst_140 {dimension_numbers = #tpu.dot_dimension_numbers<[1], [0], [0], [1], [0, 0, 1, 1], [], []>} : vector<40x320xbf16>, vector<320x32xbf16>, vector<40x32xf32> -> vector<40x32xf32>
    %cst_141 = arith.constant 0.000000e+00 : f32
    %348 = vector.broadcast %cst_141 : f32 to vector<40x32xf32>
    %349 = arith.maximumf %347, %348 : vector<40x32xf32>
    %cst_142 = arith.constant 0.000000e+00 : f32
    %350 = vector.broadcast %cst_142 : f32 to vector<2x32xf32>
    %351 = tpu.concatenate %350, %349, %350 in 0 : vector<2x32xf32>, vector<40x32xf32>, vector<2x32xf32> -> vector<44x32xf32>
    %352 = vector.extract_strided_slice %351 {offsets = [0, 0], sizes = [40, 32], strides = [1, 1]} : vector<44x32xf32> to vector<40x32xf32>
    %353 = vector.extract_strided_slice %351 {offsets = [1, 0], sizes = [40, 32], strides = [1, 1]} : vector<44x32xf32> to vector<40x32xf32>
    %354 = vector.extract_strided_slice %351 {offsets = [2, 0], sizes = [40, 32], strides = [1, 1]} : vector<44x32xf32> to vector<40x32xf32>
    %355 = vector.extract_strided_slice %351 {offsets = [3, 0], sizes = [40, 32], strides = [1, 1]} : vector<44x32xf32> to vector<40x32xf32>
    %356 = vector.extract_strided_slice %351 {offsets = [4, 0], sizes = [40, 32], strides = [1, 1]} : vector<44x32xf32> to vector<40x32xf32>
    %357 = tpu.concatenate %352, %353, %354, %355, %356 in 1 : vector<40x32xf32>, vector<40x32xf32>, vector<40x32xf32>, vector<40x32xf32>, vector<40x32xf32> -> vector<40x160xf32>
    %c0_143 = arith.constant 0 : index
    %c0_144 = arith.constant 0 : index
    %358 = vector.load %arg33[%c0_143, %c0_144] : memref<160x32xbf16, #tpu.memory_space<vmem>>, vector<160x32xbf16>
    %359 = arith.truncf %357 : vector<40x160xf32> to vector<40x160xbf16>
    %cst_145 = arith.constant dense<0.000000e+00> : vector<40x32xf32>
    %360 = tpu.matmul %359, %358, %cst_145 {dimension_numbers = #tpu.dot_dimension_numbers<[1], [0], [0], [1], [0, 0, 1, 1], [], []>} : vector<40x160xbf16>, vector<160x32xbf16>, vector<40x32xf32> -> vector<40x32xf32>
    %cst_146 = arith.constant 0.000000e+00 : f32
    %361 = vector.broadcast %cst_146 : f32 to vector<40x32xf32>
    %362 = arith.maximumf %360, %361 : vector<40x32xf32>
    %c0_147 = arith.constant 0 : index
    %c0_148 = arith.constant 0 : index
    %363 = vector.load %arg34[%c0_147, %c0_148] : memref<3x32xbf16, #tpu.memory_space<vmem>>, vector<3x32xbf16>
    %364 = arith.truncf %362 : vector<40x32xf32> to vector<40x32xbf16>
    %cst_149 = arith.constant dense<0.000000e+00> : vector<3x40xf32>
    %365 = tpu.matmul %363, %364, %cst_149 {dimension_numbers = #tpu.dot_dimension_numbers<[1], [1], [0], [0], [0, 0, 1, 0], [], []>} : vector<3x32xbf16>, vector<40x32xbf16>, vector<3x40xf32> -> vector<3x40xf32>
    %366 = vector.extract_strided_slice %365 {offsets = [0, 0], sizes = [1, 40], strides = [1, 1]} : vector<3x40xf32> to vector<1x40xf32>
    %367 = vector.extract_strided_slice %365 {offsets = [1, 0], sizes = [1, 40], strides = [1, 1]} : vector<3x40xf32> to vector<1x40xf32>
    %368 = vector.extract_strided_slice %365 {offsets = [2, 0], sizes = [1, 40], strides = [1, 1]} : vector<3x40xf32> to vector<1x40xf32>
    %369 = tpu.concatenate %366, %367, %368 in 1 : vector<1x40xf32>, vector<1x40xf32>, vector<1x40xf32> -> vector<1x120xf32>
    %c0_150 = arith.constant 0 : index
    %c0_151 = arith.constant 0 : index
    %370 = vector.load %arg35[%c0_150, %c0_151] : memref<120x64xbf16, #tpu.memory_space<vmem>>, vector<120x64xbf16>
    %371 = arith.truncf %369 : vector<1x120xf32> to vector<1x120xbf16>
    %cst_152 = arith.constant dense<0.000000e+00> : vector<1x64xf32>
    %372 = tpu.matmul %371, %370, %cst_152 {dimension_numbers = #tpu.dot_dimension_numbers<[1], [0], [0], [1], [0, 0, 1, 1], [], []>} : vector<1x120xbf16>, vector<120x64xbf16>, vector<1x64xf32> -> vector<1x64xf32>
    %c0_153 = arith.constant 0 : index
    %c0_154 = arith.constant 0 : index
    %373 = vector.load %arg36[%c0_153, %c0_154] : memref<1x64xf32, #tpu.memory_space<vmem>>, vector<1x64xf32>
    %374 = arith.addf %372, %373 : vector<1x64xf32>
    %cst_155 = arith.constant 0.000000e+00 : f32
    %375 = vector.broadcast %cst_155 : f32 to vector<1x64xf32>
    %376 = arith.maximumf %374, %375 : vector<1x64xf32>
    %c0_156 = arith.constant 0 : index
    %c0_157 = arith.constant 0 : index
    %377 = vector.load %arg37[%c0_156, %c0_157] : memref<64x32xbf16, #tpu.memory_space<vmem>>, vector<64x32xbf16>
    %378 = arith.truncf %376 : vector<1x64xf32> to vector<1x64xbf16>
    %cst_158 = arith.constant dense<0.000000e+00> : vector<1x32xf32>
    %379 = tpu.matmul %378, %377, %cst_158 {dimension_numbers = #tpu.dot_dimension_numbers<[1], [0], [0], [1], [0, 0, 1, 1], [], []>} : vector<1x64xbf16>, vector<64x32xbf16>, vector<1x32xf32> -> vector<1x32xf32>
    %c0_159 = arith.constant 0 : index
    %c0_160 = arith.constant 0 : index
    %380 = vector.load %arg38[%c0_159, %c0_160] : memref<1x32xf32, #tpu.memory_space<vmem>>, vector<1x32xf32>
    %381 = arith.addf %379, %380 : vector<1x32xf32>
    %cst_161 = arith.constant 0.000000e+00 : f32
    %382 = vector.broadcast %cst_161 : f32 to vector<1x32xf32>
    %383 = arith.maximumf %381, %382 : vector<1x32xf32>
    %c0_162 = arith.constant 0 : index
    %c0_163 = arith.constant 0 : index
    %384 = vector.load %arg39[%c0_162, %c0_163] : memref<32x14xbf16, #tpu.memory_space<vmem>>, vector<32x14xbf16>
    %385 = arith.truncf %383 : vector<1x32xf32> to vector<1x32xbf16>
    %cst_164 = arith.constant dense<0.000000e+00> : vector<1x14xf32>
    %386 = tpu.matmul %385, %384, %cst_164 {dimension_numbers = #tpu.dot_dimension_numbers<[1], [0], [0], [1], [0, 0, 1, 1], [], []>} : vector<1x32xbf16>, vector<32x14xbf16>, vector<1x14xf32> -> vector<1x14xf32>
    %c0_165 = arith.constant 0 : index
    %c0_166 = arith.constant 0 : index
    %387 = vector.load %arg40[%c0_165, %c0_166] : memref<1x14xf32, #tpu.memory_space<vmem>>, vector<1x14xf32>
    %388 = arith.addf %386, %387 : vector<1x14xf32>
    %c0_167 = arith.constant 0 : index
    %c0_168 = arith.constant 0 : index
    %c0_169 = arith.constant 0 : index
    %389 = vector.load %arg41[%c0_167, %c0_168, %c0_169] : memref<1x1x14xf32, #tpu.memory_space<vmem>>, vector<1x1x14xf32>
    %390 = vector.shape_cast %389 : vector<1x1x14xf32> to vector<1x14xf32>
    %391 = vector.shape_cast %388 : vector<1x14xf32> to vector<1x1x14xf32>
    tpu.vector_store %arg41[%c0_167, %c0_168, %c0_169], %391 {strides = array<i32>} : memref<1x1x14xf32, #tpu.memory_space<vmem>>, vector<1x1x14xf32>,
    return
  }
  func.func @transform_0(%arg0: i32) -> (i32, i32, i32) {
    %c0_i32 = arith.constant 0 : i32
    %c0_i32_0 = arith.constant 0 : i32
    %c0_i32_1 = arith.constant 0 : i32
    return %arg0, %c0_i32, %c0_i32_0 : i32, i32, i32
  }
  func.func @transform_1(%arg0: i32) -> (i32, i32) {
    %c0_i32 = arith.constant 0 : i32
    %c0_i32_0 = arith.constant 0 : i32
    %c0_i32_1 = arith.constant 0 : i32
    return %c0_i32, %c0_i32_0 : i32, i32
  }
  func.func @transform_2(%arg0: i32) -> (i32, i32) {
    %c0_i32 = arith.constant 0 : i32
    %c0_i32_0 = arith.constant 0 : i32
    %c0_i32_1 = arith.constant 0 : i32
    return %c0_i32, %c0_i32_0 : i32, i32
  }
  func.func @transform_3(%arg0: i32) -> (i32, i32) {
    %c0_i32 = arith.constant 0 : i32
    %c0_i32_0 = arith.constant 0 : i32
    %c0_i32_1 = arith.constant 0 : i32
    return %c0_i32, %c0_i32_0 : i32, i32
  }
  func.func @transform_4(%arg0: i32) -> (i32, i32) {
    %c0_i32 = arith.constant 0 : i32
    %c0_i32_0 = arith.constant 0 : i32
    %c0_i32_1 = arith.constant 0 : i32
    return %c0_i32, %c0_i32_0 : i32, i32
  }
  func.func @transform_5(%arg0: i32) -> (i32, i32) {
    %c0_i32 = arith.constant 0 : i32
    %c0_i32_0 = arith.constant 0 : i32
    %c0_i32_1 = arith.constant 0 : i32
    return %c0_i32, %c0_i32_0 : i32, i32
  }
  func.func @transform_6(%arg0: i32) -> (i32, i32) {
    %c0_i32 = arith.constant 0 : i32
    %c0_i32_0 = arith.constant 0 : i32
    %c0_i32_1 = arith.constant 0 : i32
    return %c0_i32, %c0_i32_0 : i32, i32
  }
  func.func @transform_7(%arg0: i32) -> (i32, i32) {
    %c0_i32 = arith.constant 0 : i32
    %c0_i32_0 = arith.constant 0 : i32
    %c0_i32_1 = arith.constant 0 : i32
    return %c0_i32, %c0_i32_0 : i32, i32
  }
  func.func @transform_8(%arg0: i32) -> (i32, i32) {
    %c0_i32 = arith.constant 0 : i32
    %c0_i32_0 = arith.constant 0 : i32
    %c0_i32_1 = arith.constant 0 : i32
    return %c0_i32, %c0_i32_0 : i32, i32
  }
  func.func @transform_9(%arg0: i32) -> (i32, i32) {
    %c0_i32 = arith.constant 0 : i32
    %c0_i32_0 = arith.constant 0 : i32
    %c0_i32_1 = arith.constant 0 : i32
    return %c0_i32, %c0_i32_0 : i32, i32
  }
  func.func @transform_10(%arg0: i32) -> (i32, i32) {
    %c0_i32 = arith.constant 0 : i32
    %c0_i32_0 = arith.constant 0 : i32
    %c0_i32_1 = arith.constant 0 : i32
    return %c0_i32, %c0_i32_0 : i32, i32
  }
  func.func @transform_11(%arg0: i32) -> (i32, i32) {
    %c0_i32 = arith.constant 0 : i32
    %c0_i32_0 = arith.constant 0 : i32
    %c0_i32_1 = arith.constant 0 : i32
    return %c0_i32, %c0_i32_0 : i32, i32
  }
  func.func @transform_12(%arg0: i32) -> (i32, i32) {
    %c0_i32 = arith.constant 0 : i32
    %c0_i32_0 = arith.constant 0 : i32
    %c0_i32_1 = arith.constant 0 : i32
    return %c0_i32, %c0_i32_0 : i32, i32
  }
  func.func @transform_13(%arg0: i32) -> (i32, i32) {
    %c0_i32 = arith.constant 0 : i32
    %c0_i32_0 = arith.constant 0 : i32
    %c0_i32_1 = arith.constant 0 : i32
    return %c0_i32, %c0_i32_0 : i32, i32
  }
  func.func @transform_14(%arg0: i32) -> (i32, i32) {
    %c0_i32 = arith.constant 0 : i32
    %c0_i32_0 = arith.constant 0 : i32
    %c0_i32_1 = arith.constant 0 : i32
    return %c0_i32, %c0_i32_0 : i32, i32
  }
  func.func @transform_15(%arg0: i32) -> (i32, i32) {
    %c0_i32 = arith.constant 0 : i32
    %c0_i32_0 = arith.constant 0 : i32
    %c0_i32_1 = arith.constant 0 : i32
    return %c0_i32, %c0_i32_0 : i32, i32
  }
  func.func @transform_16(%arg0: i32) -> (i32, i32) {
    %c0_i32 = arith.constant 0 : i32
    %c0_i32_0 = arith.constant 0 : i32
    %c0_i32_1 = arith.constant 0 : i32
    return %c0_i32, %c0_i32_0 : i32, i32
  }
  func.func @transform_17(%arg0: i32) -> (i32, i32) {
    %c0_i32 = arith.constant 0 : i32
    %c0_i32_0 = arith.constant 0 : i32
    %c0_i32_1 = arith.constant 0 : i32
    return %c0_i32, %c0_i32_0 : i32, i32
  }
  func.func @transform_18(%arg0: i32) -> (i32, i32) {
    %c0_i32 = arith.constant 0 : i32
    %c0_i32_0 = arith.constant 0 : i32
    %c0_i32_1 = arith.constant 0 : i32
    return %c0_i32, %c0_i32_0 : i32, i32
  }
  func.func @transform_19(%arg0: i32) -> (i32, i32) {
    %c0_i32 = arith.constant 0 : i32
    %c0_i32_0 = arith.constant 0 : i32
    %c0_i32_1 = arith.constant 0 : i32
    return %c0_i32, %c0_i32_0 : i32, i32
  }
  func.func @transform_20(%arg0: i32) -> (i32, i32) {
    %c0_i32 = arith.constant 0 : i32
    %c0_i32_0 = arith.constant 0 : i32
    %c0_i32_1 = arith.constant 0 : i32
    return %c0_i32, %c0_i32_0 : i32, i32
  }
  func.func @transform_21(%arg0: i32) -> (i32, i32) {
    %c0_i32 = arith.constant 0 : i32
    %c0_i32_0 = arith.constant 0 : i32
    %c0_i32_1 = arith.constant 0 : i32
    return %c0_i32, %c0_i32_0 : i32, i32
  }
  func.func @transform_22(%arg0: i32) -> (i32, i32) {
    %c0_i32 = arith.constant 0 : i32
    %c0_i32_0 = arith.constant 0 : i32
    %c0_i32_1 = arith.constant 0 : i32
    return %c0_i32, %c0_i32_0 : i32, i32
  }
  func.func @transform_23(%arg0: i32) -> (i32, i32) {
    %c0_i32 = arith.constant 0 : i32
    %c0_i32_0 = arith.constant 0 : i32
    %c0_i32_1 = arith.constant 0 : i32
    return %c0_i32, %c0_i32_0 : i32, i32
  }
  func.func @transform_24(%arg0: i32) -> (i32, i32) {
    %c0_i32 = arith.constant 0 : i32
    %c0_i32_0 = arith.constant 0 : i32
    %c0_i32_1 = arith.constant 0 : i32
    return %c0_i32, %c0_i32_0 : i32, i32
  }
  func.func @transform_25(%arg0: i32) -> (i32, i32) {
    %c0_i32 = arith.constant 0 : i32
    %c0_i32_0 = arith.constant 0 : i32
    %c0_i32_1 = arith.constant 0 : i32
    return %c0_i32, %c0_i32_0 : i32, i32
  }
  func.func @transform_26(%arg0: i32) -> (i32, i32) {
    %c0_i32 = arith.constant 0 : i32
    %c0_i32_0 = arith.constant 0 : i32
    %c0_i32_1 = arith.constant 0 : i32
    return %c0_i32, %c0_i32_0 : i32, i32
  }
  func.func @transform_27(%arg0: i32) -> (i32, i32) {
    %c0_i32 = arith.constant 0 : i32
    %c0_i32_0 = arith.constant 0 : i32
    %c0_i32_1 = arith.constant 0 : i32
    return %c0_i32, %c0_i32_0 : i32, i32
  }
  func.func @transform_28(%arg0: i32) -> (i32, i32) {
    %c0_i32 = arith.constant 0 : i32
    %c0_i32_0 = arith.constant 0 : i32
    %c0_i32_1 = arith.constant 0 : i32
    return %c0_i32, %c0_i32_0 : i32, i32
  }
  func.func @transform_29(%arg0: i32) -> (i32, i32) {
    %c0_i32 = arith.constant 0 : i32
    %c0_i32_0 = arith.constant 0 : i32
    %c0_i32_1 = arith.constant 0 : i32
    return %c0_i32, %c0_i32_0 : i32, i32
  }
  func.func @transform_30(%arg0: i32) -> (i32, i32) {
    %c0_i32 = arith.constant 0 : i32
    %c0_i32_0 = arith.constant 0 : i32
    %c0_i32_1 = arith.constant 0 : i32
    return %c0_i32, %c0_i32_0 : i32, i32
  }
  func.func @transform_31(%arg0: i32) -> (i32, i32) {
    %c0_i32 = arith.constant 0 : i32
    %c0_i32_0 = arith.constant 0 : i32
    %c0_i32_1 = arith.constant 0 : i32
    return %c0_i32, %c0_i32_0 : i32, i32
  }
  func.func @transform_32(%arg0: i32) -> (i32, i32) {
    %c0_i32 = arith.constant 0 : i32
    %c0_i32_0 = arith.constant 0 : i32
    %c0_i32_1 = arith.constant 0 : i32
    return %c0_i32, %c0_i32_0 : i32, i32
  }
  func.func @transform_33(%arg0: i32) -> (i32, i32) {
    %c0_i32 = arith.constant 0 : i32
    %c0_i32_0 = arith.constant 0 : i32
    %c0_i32_1 = arith.constant 0 : i32
    return %c0_i32, %c0_i32_0 : i32, i32
  }
  func.func @transform_34(%arg0: i32) -> (i32, i32) {
    %c0_i32 = arith.constant 0 : i32
    %c0_i32_0 = arith.constant 0 : i32
    %c0_i32_1 = arith.constant 0 : i32
    return %c0_i32, %c0_i32_0 : i32, i32
  }
  func.func @transform_35(%arg0: i32) -> (i32, i32) {
    %c0_i32 = arith.constant 0 : i32
    %c0_i32_0 = arith.constant 0 : i32
    %c0_i32_1 = arith.constant 0 : i32
    return %c0_i32, %c0_i32_0 : i32, i32
  }
  func.func @transform_36(%arg0: i32) -> (i32, i32) {
    %c0_i32 = arith.constant 0 : i32
    %c0_i32_0 = arith.constant 0 : i32
    %c0_i32_1 = arith.constant 0 : i32
    return %c0_i32, %c0_i32_0 : i32, i32
  }
  func.func @transform_37(%arg0: i32) -> (i32, i32) {
    %c0_i32 = arith.constant 0 : i32
    %c0_i32_0 = arith.constant 0 : i32
    %c0_i32_1 = arith.constant 0 : i32
    return %c0_i32, %c0_i32_0 : i32, i32
  }
  func.func @transform_38(%arg0: i32) -> (i32, i32) {
    %c0_i32 = arith.constant 0 : i32
    %c0_i32_0 = arith.constant 0 : i32
    %c0_i32_1 = arith.constant 0 : i32
    return %c0_i32, %c0_i32_0 : i32, i32
  }
  func.func @transform_39(%arg0: i32) -> (i32, i32) {
    %c0_i32 = arith.constant 0 : i32
    %c0_i32_0 = arith.constant 0 : i32
    %c0_i32_1 = arith.constant 0 : i32
    return %c0_i32, %c0_i32_0 : i32, i32
  }
  func.func @transform_40(%arg0: i32) -> (i32, i32, i32) {
    %c0_i32 = arith.constant 0 : i32
    %c0_i32_0 = arith.constant 0 : i32
    %c0_i32_1 = arith.constant 0 : i32
    return %arg0, %c0_i32, %c0_i32_0 : i32, i32, i32
  }
}

</mosaic_0001>

<bundles_post_ra>
// kernel: forward.1
= control target key start
LH: loop header
LB: loop body
LE: loop exit
PB: predicated region body
PF: predicated region fallthrough
CT: control target
= control target key end

     0   :  { %s18073_s6 = smov 1   ;;  %s18074_s10 = smov 2   ;;  %s20671_s0 = inlined_call_operand.smem [shape: u32[41], index: -1, kind: input, shape index: {}] }
   0x1   :  { %s18136_s5 = sld [smem:[%s20671_s0]]   ;;  %s18075_s14 = smov 3  }
   0x2   :  { %s18141_s9 = sld [smem:[%s20671_s0 + %s18073_s6]]   ;;  %s18076_s18 = smov 4  }
   0x3   :  { %s18146_s13 = sld [smem:[%s20671_s0 + %s18074_s10]]   ;;  %s18077_s22 = smov 5  }
   0x4   :  { %s18151_s17 = sld [smem:[%s20671_s0 + %s18075_s14]]   ;;  %s18078_s26 = smov 6  }
   0x5   :  { %s18156_s21 = sld [smem:[%s20671_s0 + %s18076_s18]]   ;;  %s18079_s30 = smov 7  }
   0x6   :  { %s18161_s25 = sld [smem:[%s20671_s0 + %s18077_s22]]   ;;  %s18080_s4 = smov 8  }
   0x7   :  { %20714 = sst [smem:[#allocation5_spill]] %s18136_s5  ;;  %s18081_s10 = smov 9  }
   0x8   :  { %20715 = sst [smem:[#allocation6_spill]] %s18141_s9  ;;  %s18082_s15 = smov 10  }
   0x9   :  { %20716 = sst [smem:[#allocation7_spill]] %s18146_s13  ;;  %s18083_s20 = smov 11  }
   0xa   :  { %s18166_s29 = sld [smem:[%s20671_s0 + %s18078_s26]]   ;;  %s18084_s26 = smov 12  }
   0xb   :  { %s18171_s3 = sld [smem:[%s20671_s0 + %s18079_s30]]   ;;  %s18085_s1 = smov 13  }
   0xc   :  { %s18176_s8 = sld [smem:[%s20671_s0 + %s18080_s4]]   ;;  %s18086_s7 = smov 14  }
   0xd   :  { %s18181_s14 = sld [smem:[%s20671_s0 + %s18081_s10]]   ;;  %s18088_s22 = smov 16  }
   0xe   :  { %s18186_s19 = sld [smem:[%s20671_s0 + %s18082_s15]]   ;;  %s18087_s15 = smov 15  }
   0xf   :  { %s18191_s24 = sld [smem:[%s20671_s0 + %s18083_s20]]   ;;  %s18089_s28 = smov 17  }
  0x10   :  { %s18196_s30 = sld [smem:[%s20671_s0 + %s18084_s26]]  }
  0x11   :  { %20717 = sst [smem:[#allocation8_spill]] %s18171_s3 }
  0x12   :  { %20718 = sst [smem:[#allocation9_spill]] %s18176_s8 }
  0x13   :  { %s18201_s6 = sld [smem:[%s20671_s0 + %s18085_s1]]  }
  0x14   :  { %s18206_s12 = sld [smem:[%s20671_s0 + %s18086_s7]]   ;;  %s18090_s7 = smov 18  }
  0x15   :  { %s18211_s20 = sld [smem:[%s20671_s0 + %s18087_s15]]   ;;  %s18091_s15 = smov 19  }
  0x16   :  { %s18216_s27 = sld [smem:[%s20671_s0 + %s18088_s22]]   ;;  %s18092_s22 = smov 20  }
  0x17   :  { %s18221_s4 = sld [smem:[%s20671_s0 + %s18089_s28]]   ;;  %s18093_s28 = smov 21  }
  0x19   :  { %20719 = sst [smem:[#allocation10_spill]] %s18201_s6 }
  0x1a   :  { %20720 = sst [smem:[#allocation11_spill]] %s18206_s12 }
  0x1b   :  { %20721 = sst [smem:[#allocation12_spill]] %s18211_s20 }
  0x1c   :  { %20722 = sst [smem:[#allocation13_spill]] %s18216_s27 }
  0x1d   :  { %20723 = sst [smem:[#allocation14_spill]] %s18221_s4 }
  0x1e   :  { %s18226_s12 = sld [smem:[%s20671_s0 + %s18090_s7]]   ;;  %s18094_s7 = smov 22  }
  0x1f   :  { %s18231_s20 = sld [smem:[%s20671_s0 + %s18091_s15]]   ;;  %s18095_s15 = smov 23  }
  0x20   :  { %s18236_s27 = sld [smem:[%s20671_s0 + %s18092_s22]]   ;;  %s18096_s22 = smov 24  }
  0x21   :  { %s18241_s4 = sld [smem:[%s20671_s0 + %s18093_s28]]   ;;  %s18097_s28 = smov 25  }
  0x24   :  { %20724 = sst [smem:[#allocation15_spill]] %s18226_s12 }
  0x25   :  { %20725 = sst [smem:[#allocation16_spill]] %s18231_s20 }
  0x26   :  { %20726 = sst [smem:[#allocation17_spill]] %s18236_s27 }
  0x27   :  { %20727 = sst [smem:[#allocation18_spill]] %s18241_s4 }
  0x28   :  { %s18246_s12 = sld [smem:[%s20671_s0 + %s18094_s7]]   ;;  %s18098_s7 = smov 26  }
  0x29   :  { %s18251_s20 = sld [smem:[%s20671_s0 + %s18095_s15]]   ;;  %s18099_s15 = smov 27  }
  0x2a   :  { %s18256_s27 = sld [smem:[%s20671_s0 + %s18096_s22]]   ;;  %s18100_s22 = smov 28  }
  0x2b   :  { %s18261_s4 = sld [smem:[%s20671_s0 + %s18097_s28]]   ;;  %s18101_s28 = smov 29  }
  0x2e   :  { %20728 = sst [smem:[#allocation19_spill]] %s18246_s12 }
  0x2f   :  { %20729 = sst [smem:[#allocation20_spill]] %s18251_s20 }
  0x30   :  { %20730 = sst [smem:[#allocation21_spill]] %s18256_s27 }
  0x31   :  { %20731 = sst [smem:[#allocation22_spill]] %s18261_s4 }
  0x32   :  { %s18266_s12 = sld [smem:[%s20671_s0 + %s18098_s7]]   ;;  %s18102_s7 = smov 30  }
  0x33   :  { %s18271_s20 = sld [smem:[%s20671_s0 + %s18099_s15]]   ;;  %s18103_s15 = smov 31  }
  0x34   :  { %s18276_s27 = sld [smem:[%s20671_s0 + %s18100_s22]]   ;;  %s18104_s22 = smov 32  }
  0x35   :  { %s18281_s4 = sld [smem:[%s20671_s0 + %s18101_s28]]   ;;  %s18105_s28 = smov 33  }
  0x38   :  { %20732 = sst [smem:[#allocation23_spill]] %s18266_s12 }
  0x39   :  { %20733 = sst [smem:[#allocation24_spill]] %s18271_s20 }
  0x3a   :  { %20734 = sst [smem:[#allocation25_spill]] %s18276_s27 }
  0x3b   :  { %20735 = sst [smem:[#allocation26_spill]] %s18281_s4 }
  0x3c   :  { %s18286_s12 = sld [smem:[%s20671_s0 + %s18102_s7]]   ;;  %s18106_s7 = smov 34  }
  0x3d   :  { %s18291_s20 = sld [smem:[%s20671_s0 + %s18103_s15]]   ;;  %s18107_s15 = smov 35  }
  0x3e   :  { %s18296_s27 = sld [smem:[%s20671_s0 + %s18104_s22]]   ;;  %s18108_s22 = smov 36  }
  0x3f   :  { %s18301_s4 = sld [smem:[%s20671_s0 + %s18105_s28]]   ;;  %s18109_s28 = smov 37  }
  0x42   :  { %20736 = sst [smem:[#allocation27_spill]] %s18286_s12 }
  0x43   :  { %20737 = sst [smem:[#allocation28_spill]] %s18291_s20 }
  0x44   :  { %20738 = sst [smem:[#allocation29_spill]] %s18296_s27 }
  0x45   :  { %20739 = sst [smem:[#allocation30_spill]] %s18301_s4 }
  0x46   :  { %s18306_s12 = sld [smem:[%s20671_s0 + %s18106_s7]]   ;;  %s18110_s7 = smov 38  }
  0x47   :  { %s18311_s20 = sld [smem:[%s20671_s0 + %s18107_s15]]   ;;  %s18111_s15 = smov 39  }
  0x48   :  { %s18316_s27 = sld [smem:[%s20671_s0 + %s18108_s22]]   ;;  %s18112_s22 = smov 40  }
  0x49   :  { %s18321_s4 = sld [smem:[%s20671_s0 + %s18109_s28]]  }
  0x4c   :  { %20740 = sst [smem:[#allocation31_spill]] %s18306_s12 }
  0x4d   :  { %20741 = sst [smem:[#allocation32_spill]] %s18311_s20 }
  0x4e   :  { %20742 = sst [smem:[#allocation33_spill]] %s18316_s27 }
  0x4f   :  { %20743 = sst [smem:[#allocation34_spill]] %s18321_s4 }
  0x50   :  { %s18326_s12 = sld [smem:[%s20671_s0 + %s18110_s7]]  }
  0x51   :  { %s18331_s20 = sld [smem:[%s20671_s0 + %s18111_s15]]  }
  0x52   :  { %s18336_s27 = sld [smem:[%s20671_s0 + %s18112_s22]]  }
  0x56   :  { %20744 = sst [smem:[#allocation35_spill]] %s18326_s12 }
  0x57   :  { %86 = vsyncpa [#allocation3], 0 }
  0x58   :  { %88 = vsyncpa [#allocation3 + $0x1], 0  ;;  %s18338_s28 = smov 0   ;;  %s18340_s1 = smov 0  }
  0x59   :  { %s18342_s2 = smov 0   ;;  %s18344_s7 = smov 0  }
  0x5a LB: > { %s20745_s12 = sld [smem:[#allocation35_spill]]  ;;  %s20746_s8 = sld [smem:[#allocation9_spill]]  ;;  %s18067_s2 = sphi %s18342_s2, %s20787_s2   ;;  %s18063_s1 = sphi %s18340_s1, %s20786_s1   ;;  %s18059_s28 = sphi %s18338_s28, %s20785_s28   ;;  %s18071_s7 = sphi %s18344_s7, %s20788_s7  }
  0x5b   : > { %s20747_s6 = sld [smem:[#allocation10_spill]]  ;;  %s18359_s0 = sadd.s32 4294967295, %s18071_s7  }
  0x5c   : > { %s14032_s10 = sadd.s32 4294967294, %s18071_s7   ;;  %s18363_s11 = sadd.s32 1, %s18071_s7  }
  0x5d   : > { %s946_s15 = sadd.s32 1, %s18067_s2  ;;  %s943_s16 = ssub.s32 %s18071_s7, %s18363_s11 }
  0x5e   : > { %p956_p0 = scmp.ne.s32.totalorder %s18067_s2, %s18063_s1  ;;  %p944_p1 = scmp.eq.s32.totalorder %s943_s16, 0 }
  0x5f   : > { %p957_p2 = scmp.eq.s32.totalorder %s18359_s0, 1  ;;  %p962_p3 = scmp.ne.s32.totalorder %s18063_s1, %s18059_s28 }
  0x60   : > { %p963_p4 = scmp.eq.s32.totalorder %s14032_s10, 1  ;;  %p14035_p7 = scmp.ge.s32.totalorder %s18071_s7, 1 }
  0x61   : > { %s18374_s18 = scalar_select %p944_p1, %s18067_s2, %s946_s15  }
  0x62   : > { %p18376_p5 = por %p957_p2, %p956_p0  ;;  %p18380_p6 = por %p963_p4, %p962_p3 }
  0x63   : > { %p1106_p8 = scmp.lt.s32.totalorder %s18071_s7, 3 }
  0x65   : > { %p1107_p9 = pnand %p14035_p7, %p1106_p8 }
  0x66   : > { %s20750_s9 = sld [smem:[#allocation6_spill]] (!%p1107_p9)  ;;  %s20751_s5 = sld [smem:[#allocation5_spill]] (!%p1107_p9)  ;;  %vm1228_vm0 = vcmask (!%p1107_p9), 1041408   ;;  %vm1229_vm1 = vcmask (!%p1107_p9), 1042432   ;;  %v18113_v1 = vmov (!%p1107_p9), 0.0   ;;  %v18114_v2 = vmov (!%p1107_p9), 65535  }
  0x67   : > { %1110 = sbr.rel (%p1107_p9) target bundleno = 10803 (0x2a33), region = 180  ;;  %15854 = vmatprep.subr.bf16.mxu0 (!%p1107_p9), %v18113_v1  ;;  %v1230_v3 = vsel (!%p1107_p9), %vm1228_vm0, 4294967295, %v18114_v2  ;;  %p1203_p10 = scmp.lt.s32.totalorder (!%p1107_p9), %s18359_s0, 1  ;;  %vm18115_vm2 = vmmov (!%p1107_p9), 0   ;;  %vm1218_vm3 = vcmask (!%p1107_p9), 39936   ;;  %v16517_v14 = vld [vmem:[%s18151_s17] sm:$0xff] (!%p1107_p9)  }
  0x68   : > { %v1231_v4 = vsel (!%p1107_p9), %vm1229_vm1, %v1230_v3, 0  ;;  %15856 = vmatprep.mubr.msk.bf16.mxu0 (!%p1107_p9), %vm18115_vm2, %v18113_v1  ;;  %v18116_v15 = vmov (!%p1107_p9), 0   ;;  %v16518_v16 = vld [vmem:[%s18151_s17 + $0x8] sm:$0xff] (!%p1107_p9)   ;;  %v16519_v17 = vld [vmem:[%s18151_s17 + $0x10] sm:$0xff] (!%p1107_p9)   ;;  %v16520_v18 = vld [vmem:[%s18151_s17 + $0x18] sm:$0xff] (!%p1107_p9)   ;;  %vm1401_vm4 = vcmask (!%p1107_p9), 1043456  }
  0x69   : > { %1531 = vmatprep.subr.bf16.mxu1 (!%p1107_p9), %v18116_v15  ;;  %v16521_v19 = vld [vmem:[%s18151_s17 + $0x20] sm:$0xff] (!%p1107_p9)   ;;  %v16522_v20 = vld [vmem:[%s18151_s17 + $0x28] sm:$0xff] (!%p1107_p9)   ;;  %v16523_v21 = vld [vmem:[%s18151_s17 + $0x30] sm:$0xff] (!%p1107_p9)   ;;  %vm1374_vm5 = vcmask (!%p1107_p9), 1044480   ;;  %vm1320_vm6 = vcmask (!%p1107_p9), 1046528   ;;  %vm1418_vm7 = vcmask (!%p1107_p9), 261120  }
  0x6a   : > { %1532 = vmatpush1.bf16.msra.mxu1 (!%p1107_p9), %v16517_v14  ;;  %v16524_v22 = vld [vmem:[%s18151_s17 + $0x38] sm:$0xff] (!%p1107_p9)   ;;  %v16525_v36 = vld [vmem:[%s18151_s17 + $0x40] sm:$0xff] (!%p1107_p9)   ;;  %v16526_v49 = vld [vmem:[%s18151_s17 + $0x48] sm:$0xff] (!%p1107_p9)   ;;  %vm1347_vm8 = vcmask (!%p1107_p9), 1045504   ;;  %s20692_s16 = smov (!%p1107_p9), 96   ;;  %vm1424_vm9 = vcmask (!%p1107_p9), 523264  }
  0x6b   : > { %1533 = vmatprep.subr.bf16.mxu1 (!%p1107_p9), %v18116_v15  ;;  %vm1430_vm10 = vcmask (!%p1107_p9), 785408   ;;  %s20752_s13 = sld [smem:[#allocation7_spill]] (!%p1107_p9)  ;;  %s20753_s3 = sld [smem:[#allocation8_spill]] (!%p1107_p9)  ;;  %vm2455_vm11 = vcmask (!%p1107_p9), 588800   ;;  %vm2792_vm12 = vcmask (!%p1107_p9), 326656   ;;  %vm19079_vm13 = vmpackc.low (!%p1107_p9), %vm1401_vm4, %vm1401_vm4  ;;  %vm4195_vm14 = vcmask (!%p1107_p9), 64512  }
  0x6c   : > { %v1214_v0 = vld [vmem:[%s20750_s9] sm:$0x7] (!%p1107_p9)  ;;  %vm7297_vm15 = vcmask (!%p1107_p9), 1040384   ;;  %s20778_s9 = sld [smem:[#allocation28_spill]] (!%p1107_p9)  ;;  %s20784_s4 = sld [smem:[#allocation34_spill]] (!%p1107_p9) }
  0x6d   : > { %v1233_v5 = vand.u32 (!%p1107_p9), %v1231_v4, %v1214_v0 }
  0x6e   : > { %s1204_s26 = scalar_select %p1203_p10, %s18359_s0, 1  ;;  %1534 = vmatpush1.bf16.msra.mxu1 %v16518_v16 }
  0x6f   : > { %15855 = vmatpush3.bf16.msra.mxu0 %v1233_v5  ;;  %1535 = vmatprep.subr.bf16.mxu1 %v18116_v15 }
  0x70   : > { %s16226_s10 = smul.u32 40, %s1204_s26  ;;  %1866 = vmatprep.subr.bf16.mxu0 %v18116_v15  ;;  %s20690_s26 = smov 32  }
  0x72   : > { %s18395_s15 = scalar_lea.vmem %s20751_s5, %s16226_s10  ;;  %1536 = vmatpush1.bf16.msra.mxu1 %v16519_v17  ;;  %s20694_s10 = smov 64  }
  0x73   : > { %v1209_v6 = vld [vmem:[%s18395_s15] sm:$0xff]  ;;  %v1210_v7 = vld [vmem:[%s18395_s15 + $0x8] sm:$0xff]  ;;  %v1211_v9 = vld [vmem:[%s18395_s15 + $0x10] sm:$0xff]  ;;  %1537 = vmatprep.subr.bf16.mxu1 %v18116_v15  ;;  %s20764_s5 = sld [smem:[#allocation17_spill]] }
  0x74   : > { %v1215_v8 = vpack.c.bf16 %v1210_v7, %v1209_v6  ;;  %v1212_v10 = vld [vmem:[%s18395_s15 + $0x18] sm:$0xff]  ;;  %v1213_v12 = vld [vmem:[%s18395_s15 + $0x20] sm:$0xff] }
  0x75   : > { %v1216_v11 = vpack.c.bf16 %v1212_v10, %v1211_v9  ;;  %v1217_v13 = vpack.c.bf16 %v1213_v12, %v1213_v12 }
  0x76   : > { %15857 = vmatmul.mubr.msk.bf16.vlgmr.msra.gmra.mrb[0].mxu0 %vm1218_vm3, %v1215_v8  ;;  %1538 = vmatpush1.bf16.msra.mxu1 %v16520_v18 }
  0x77   : > { %15860 = vmatprep.mubr.msk.bf16.mxu0 %vm18115_vm2, %v18113_v1  ;;  %1539 = vmatprep.subr.bf16.mxu1 %v18116_v15 }
  0x7a   : > { %1540 = vmatpush1.bf16.msra.mxu1 %v16521_v19 }
  0x7b   : > { %1541 = vmatprep.subr.bf16.mxu1 %v18116_v15 }
  0x7e   : > { %15861 = vmatmul.mubr.msk.bf16.gmra.mrb[4].mxu0 %vm1218_vm3, %v1216_v11  ;;  %1542 = vmatpush1.bf16.msra.mxu1 %v16522_v20 }
  0x7f   : > { %15864 = vmatprep.mubr.msk.bf16.mxu0 %vm18115_vm2, %v18113_v1  ;;  %1543 = vmatprep.subr.bf16.mxu1 %v18116_v15 }
  0x82   : > { %1544 = vmatpush1.bf16.msra.mxu1 %v16523_v21 }
  0x83   : > { %1545 = vmatprep.subr.bf16.mxu1 %v18116_v15 }
  0x86   : > { %15865 = vmatmul.mubr.msk.bf16.gmra.mrb[8].mxu0 %vm1218_vm3, %v1217_v13  ;;  %1546 = vmatpush1.bf16.msra.mxu1 %v16524_v22  ;;  %vm6016_vm3 = vcmask 80896  }
  0x87   : > { %1547 = vmatprep.subr.bf16.mxu1 %v18116_v15 }
  0x8a   : > { %1548 = vmatpush1.bf16.msra.mxu1 %v16525_v36 }
  0x8b   : > { %1549 = vmatprep.subr.bf16.mxu1 %v18116_v15 }
  0x8e   : > { %1550 = vmatpush1.bf16.msra.mxu1 %v16526_v49 }
  0x8f   : > { %2155 = vmatprep.subr.bf16.mxu1 %v18116_v15 }
 0x149   : > { %v1269_v23 = vpop.f32.mrb[0].mxu0 }
 0x14a   : > { %v1291_v24 = vmax.f32 %v1269_v23, 0.0  ;;  %v15858_v25 = vpop.f32.mrb[1].mxu0 }
 0x14b   : > { %v1272_v26 = vpop.f32.mrb[2].mxu0 }
 0x14c   : > { %v1292_v27 = vmax.f32 %v1272_v26, 0.0  ;;  %v15859_v28 = vpop.f32.mrb[3].mxu0  ;;  %v1301_v29 = vrot.slane %v1291_v24, 6 }
 0x14e   : > { %v1302_v30 = vrot.slane %v1292_v27, 6  ;;  %v18428_v33 = vsel %vm1228_vm0, 0.0, %v1301_v29 }
 0x14f   : > { %v1402_v43 = vrot.slane %v18428_v33, 4  ;;  %v1375_v47 = vrot.slane %v18428_v33, 3  ;;  %v1321_v48 = vrot.slane %v18428_v33, 1  ;;  %v1348_v5 = vrot.slane %v18428_v33, 2 }
 0x150   : > { %v18425_v31 = vsel %vm1228_vm0, %v1301_v29, %v1302_v30 }
 0x151   : > { %v1277_v32 = vpop.f32.mrb[4].mxu0  ;;  %v1403_v38 = vrot.slane %v18425_v31, 4  ;;  %v1376_v39 = vrot.slane %v18425_v31, 3  ;;  %v1322_v44 = vrot.slane %v18425_v31, 1  ;;  %v1349_v53 = vrot.slane %v18425_v31, 2 }
 0x152   : > { %v1293_v34 = vmax.f32 %v1277_v32, 0.0  ;;  %v15862_v35 = vpop.f32.mrb[5].mxu0 }
 0x153   : > { %v1280_v37 = vpop.f32.mrb[6].mxu0  ;;  %v1404_v55 = vsel %vm1401_vm4, %v1402_v43, %v1403_v38  ;;  %v1377_v56 = vsel %vm1374_vm5, %v1375_v47, %v1376_v39  ;;  %v1323_v61 = vsel %vm1320_vm6, %v1321_v48, %v1322_v44  ;;  %v1350_v13 = vsel %vm1347_vm8, %v1348_v5, %v1349_v53  ;;  %v18008_v43 = vld [vmem:[%s18395_s15 + $0x18] sm:$0xff] }
 0x154   : > { %v1304_v40 = vrot.slane %v1293_v34, 6  ;;  %v1294_v41 = vmax.f32 %v1280_v37, 0.0  ;;  %v15863_v42 = vpop.f32.mrb[7].mxu0  ;;  %v18120_v37 = vmov 2  }
 0x155   : > { %16350 = vset.pattern.permute.xlu1 %v18120_v37  ;;  %16351 = vset.pattern.permute.xlu0 %v18120_v37  ;;  %v18007_v42 = vld [vmem:[%s18395_s15 + $0x20] sm:$0xff]  ;;  %v1619_v37 = vlaneseq }
 0x156   : > { %v18437_v45 = vsel %vm1228_vm0, %v1302_v30, %v1304_v40  ;;  %v1306_v46 = vrot.slane %v1294_v41, 6  ;;  %v18006_v41 = vld [vmem:[%s18395_s15 + $0x10] sm:$0xff] }
 0x157   : > { %v1405_v50 = vrot.slane %v18437_v45, 4  ;;  %v1378_v51 = vrot.slane %v18437_v45, 3  ;;  %v1324_v52 = vrot.slane %v18437_v45, 1  ;;  %v1351_v57 = vrot.slane %v18437_v45, 2 }
 0x158   : > { %v18447_v54 = vsel %vm1228_vm0, %v1304_v40, %v1306_v46  ;;  %v18005_v40 = vld [vmem:[%s18395_s15 + $0x8] sm:$0xff] }
 0x159   : > { %v1285_v58 = vpop.f32.mrb[8].mxu0  ;;  %v1406_v59 = vsel %vm1401_vm4, %v1403_v38, %v1405_v50  ;;  %v1379_v60 = vsel %vm1374_vm5, %v1376_v39, %v1378_v51  ;;  %v1325_v62 = vsel %vm1320_vm6, %v1322_v44, %v1324_v52  ;;  %v1352_v9 = vsel %vm1347_vm8, %v1349_v53, %v1351_v57  ;;  %v18004_v39 = vld [vmem:[%s18395_s15] sm:$0xff]  ;;  %s18121_s15 = smov 48  }
 0x15a   : > { %v1295_v63 = vmax.f32 %v1285_v58, 0.0  ;;  %v15866_v0 = vpop.f32.mrb[9].mxu0  ;;  %v1457_v2 = vpack.c.bf16 %v1406_v59, %v1404_v55  ;;  %v16330_v3 = vpack.i.bf16 %v1379_v60, %v1377_v56  ;;  %v16320_v4 = vpack.i.bf16 %v1325_v62, %v1323_v61 }
 0x15b   : > { %v1288_v6 = vpop.f32.mrb[10].mxu0  ;;  %v1353_v10 = vrot.slane %v18447_v54, 2  ;;  %v1326_v11 = vrot.slane %v18447_v54, 1  ;;  %v16325_v14 = vpack.i.bf16 %v1352_v9, %v1350_v13  ;;  %v1380_v19 = vrot.slane %v18447_v54, 3 }
 0x15c   : > { %v1308_v7 = vrot.slane %v1295_v63, 6  ;;  %14050 = vmatprep.mubr.msk.bf16.mxu1 %vm1418_vm7, %v1457_v2  ;;  %16331 = vrot.lane.b32.xlu1 %v16330_v3, %s20692_s16  ;;  %v15867_v8 = vpop.f32.mrb[11].mxu0 }
 0x15d   : > { %16321 = vrot.lane.b32.xlu0 %v16320_v4, %s20690_s26  ;;  %v1354_v18 = vsel %vm1347_vm8, %v1351_v57, %v1353_v10  ;;  %v1327_v23 = vsel %vm1320_vm6, %v1324_v52, %v1326_v11  ;;  %v1381_v29 = vsel %vm1374_vm5, %v1378_v51, %v1380_v19  ;;  %v1407_v52 = vrot.slane %v18447_v54, 4 }
 0x15e   : > { %v18467_v12 = vsel %vm1228_vm0, %v1306_v46, %v1308_v7  ;;  %v18476_v21 = vsel %vm1228_vm0, %v1308_v7, 0.0 }
 0x15f   : > { %v1355_v16 = vrot.slane %v18467_v12, 2  ;;  %v1328_v17 = vrot.slane %v18467_v12, 1  ;;  %v1382_v20 = vrot.slane %v18467_v12, 3  ;;  %v1330_v28 = vrot.slane %v18476_v21, 1 }
 0x160   : > { %v1357_v32 = vrot.slane %v18476_v21, 2  ;;  %v1384_v35 = vrot.slane %v18476_v21, 3  ;;  %v1409_v48 = vrot.slane %v18467_v12, 4 }
 0x161   : > { %16326 = vrot.lane.b32.xlu0 %v16325_v14, %s20694_s10  ;;  %v1356_v22 = vsel %vm1347_vm8, %v1353_v10, %v1355_v16  ;;  %v1329_v24 = vsel %vm1320_vm6, %v1326_v11, %v1328_v17  ;;  %v1383_v27 = vsel %vm1374_vm5, %v1380_v19, %v1382_v20  ;;  %v1331_v34 = vsel %vm1320_vm6, %v1328_v17, %v1330_v28  ;;  %v16527_v28 = vld [vmem:[%s18156_s21] sm:$0xff]  }
 0x162   : > { %v16340_v25 = vpack.i.bf16 %v1356_v22, %v1354_v18  ;;  %v16335_v26 = vpack.i.bf16 %v1329_v24, %v1327_v23  ;;  %v16345_v30 = vpack.i.bf16 %v1383_v27, %v1381_v29  ;;  %v1358_v36 = vsel %vm1347_vm8, %v1355_v16, %v1357_v32  ;;  %1867 = vmatpush1.bf16.msra.mxu0 %v16527_v28  ;;  %v16528_v29 = vld [vmem:[%s18156_s21 + $0x8] sm:$0xff]   ;;  %v16531_v32 = vld [vmem:[%s18156_s21 + $0x20] sm:$0xff]  }
 0x163   : > { %v1385_v38 = vsel %vm1374_vm5, %v1382_v20, %v1384_v35  ;;  %v1410_v63 = vsel %vm1401_vm4, %v1407_v52, %v1409_v48  ;;  %v1411_v11 = vrot.slane %v18476_v21, 4  ;;  %1868 = vmatprep.subr.bf16.mxu0 %v18116_v15  ;;  %v16533_v35 = vld [vmem:[%s18156_s21 + $0x30] sm:$0xff]  }
 0x164   : > { %16336 = vrot.lane.b32.xlu1 %v16335_v26, %s20690_s26 }
 0x165   : > { %16341 = vrot.lane.b32.xlu0 %v16340_v25, %s20694_s10  ;;  %v1412_v20 = vsel %vm1401_vm4, %v1409_v48, %v1411_v11 }
 0x166   : > { %v1461_v23 = vpack.c.bf16 %v1412_v20, %v1412_v20  ;;  %1869 = vmatpush1.bf16.msra.mxu0 %v16528_v29 }
 0x167   : > { %1870 = vmatprep.subr.bf16.mxu0 %v18116_v15 }
 0x168   : > { %16346 = vrot.lane.b32.xlu1 %v16345_v30, %s20692_s16  ;;  %v16530_v30 = vld [vmem:[%s18156_s21 + $0x18] sm:$0xff]  }
 0x169   : > { %1340 = vrot.lane.b32.xlu0 %v1331_v34, %s20690_s26  ;;  %v16532_v34 = vld [vmem:[%s18156_s21 + $0x28] sm:$0xff]  }
 0x16c   : > { %1367 = vrot.lane.b32.xlu1 %v1358_v36, %s20694_s10  ;;  %v16534_v36 = vld [vmem:[%s18156_s21 + $0x38] sm:$0xff]  }
 0x16d   : > { %1394 = vrot.lane.b32.xlu0 %v1385_v38, %s20692_s16  ;;  %v18547_v38 = vshrl.u32 %v1619_v37, 7 }
 0x170   : > { %1596 = vperm.xlu1 %16350, %v18004_v39   ;;  %v1592_v39 = vld [vmem:[%s20752_s13] sm:$0x1] }
 0x171   : > { %1601 = vperm.xlu0 %16351, %v18005_v40   ;;  %v1593_v40 = vunpack.c.l.bf16 %v1592_v39 }
 0x174   : > { %1606 = vperm.xlu1 %16350, %v18006_v41   ;;  %v1621_v41 = vsub.s32 0, %v18547_v38 }
 0x175   : > { %1616 = vperm.xlu0 %16351, %v18007_v42  }
 0x176   : > { %v1622_v42 = vrot.slane %v1593_v40, %v1621_v41 }
 0x178   : > { %1611 = vperm.xlu1 %16350, %v18008_v43  }
 0x1ce   : > { %v16332_v49 = vpop.permute.xlu1 %16331 }
 0x1cf   : > { %v16322_v44 = vpop.permute.xlu0 %16321  ;;  %v16334_v56 = vunpack.i.h.bf16 %v16332_v49  ;;  %v16333_v57 = vunpack.i.l.bf16 %v16332_v49 }
 0x1d0   : > { %v16324_v46 = vunpack.i.h.bf16 %v16322_v44  ;;  %v16323_v47 = vunpack.i.l.bf16 %v16322_v44 }
 0x1d2   : > { %v1420_v58 = vsel %vm1418_vm7, %v18425_v31, %v16324_v46  ;;  %v1419_v59 = vsel %vm1418_vm7, %v18428_v33, %v16323_v47  ;;  %v1408_v33 = vsel %vm1401_vm4, %v1405_v50, %v1407_v52 }
 0x1d3   : > { %v16327_v51 = vpop.permute.xlu0 %16326  ;;  %v1459_v10 = vpack.c.bf16 %v1410_v63, %v1408_v33 }
 0x1d4   : > { %v16329_v53 = vunpack.i.h.bf16 %v16327_v51  ;;  %v16328_v55 = vunpack.i.l.bf16 %v16327_v51 }
 0x1d6   : > { %v1425_v60 = vsel %vm1424_vm9, %v1419_v59, %v16328_v55  ;;  %v1426_v61 = vsel %vm1424_vm9, %v1420_v58, %v16329_v53  ;;  %v16337_v62 = vpop.permute.xlu1 %16336 }
 0x1d7   : > { %v16342_v0 = vpop.permute.xlu0 %16341  ;;  %v16339_v2 = vunpack.i.h.bf16 %v16337_v62  ;;  %v16338_v3 = vunpack.i.l.bf16 %v16337_v62  ;;  %v1431_v4 = vsel %vm1430_vm10, %v1425_v60, %v16333_v57  ;;  %v1432_v5 = vsel %vm1430_vm10, %v1426_v61, %v16334_v56 }
 0x1d8   : > { %v16344_v6 = vunpack.i.h.bf16 %v16342_v0  ;;  %v16343_v7 = vunpack.i.l.bf16 %v16342_v0  ;;  %v1456_v31 = vpack.c.bf16 %v1432_v5, %v1431_v4 }
 0x1d9   : > { %v1422_v8 = vsel %vm1418_vm7, %v18447_v54, %v16339_v2  ;;  %v1421_v9 = vsel %vm1418_vm7, %v18437_v45, %v16338_v3 }
 0x1da   : > { %1564 = vmatmul.mubr.bf16.vlgmr.msra.gmra.mrb[0].mxu1 %v1456_v31  ;;  %v16347_v13 = vpop.permute.xlu1 %16346  ;;  %v1427_v18 = vsel %vm1424_vm9, %v1421_v9, %v16343_v7  ;;  %v1428_v50 = vsel %vm1424_vm9, %v1422_v8, %v16344_v6  ;;  %v16535_v9 = vld [vmem:[%s18156_s21 + $0x40] sm:$0xff]  }
 0x1db   : > { %14051 = vmatprep.mubr.msk.bf16.mxu1 %vm1418_vm7, %v1459_v10  ;;  %v16349_v14 = vunpack.i.h.bf16 %v16347_v13  ;;  %v16348_v16 = vunpack.i.l.bf16 %v16347_v13  ;;  %v1341_v17 = vpop.permute.xlu0 %1340 }
 0x1dc   : > { %v1423_v22 = vsel %vm1418_vm7, %v18467_v12, %v1341_v17  ;;  %v16529_v12 = vld [vmem:[%s18156_s21 + $0x10] sm:$0xff]  }
 0x1dd   : > { %v1433_v54 = vsel %vm1430_vm10, %v1427_v18, %v16348_v16  ;;  %v1434_v45 = vsel %vm1430_vm10, %v1428_v50, %v16349_v14  ;;  %1871 = vmatpush1.bf16.msra.mxu0 %v16529_v12 }
 0x1de   : > { %v1458_v19 = vpack.c.bf16 %v1434_v45, %v1433_v54  ;;  %v1368_v21 = vpop.permute.xlu1 %1367  ;;  %1872 = vmatprep.subr.bf16.mxu0 %v18116_v15 }
 0x1df   : > { %v1395_v24 = vpop.permute.xlu0 %1394  ;;  %v1429_v25 = vsel %vm1424_vm9, %v1423_v22, %v1368_v21 }
 0x1e0   : > { %v1435_v26 = vsel %vm1430_vm10, %v1429_v25, %v1395_v24 }
 0x1e1   : > { %v1460_v27 = vpack.c.bf16 %v1435_v26, %v1435_v26  ;;  %1873 = vmatpush1.bf16.msra.mxu0 %v16530_v30 }
 0x1e2   : > { %1572 = vmatmul.mubr.bf16.gmra.mrb[4].mxu1 %v1458_v19  ;;  %1874 = vmatprep.subr.bf16.mxu0 %v18116_v15 }
 0x1e3   : > { %14052 = vmatprep.mubr.msk.bf16.mxu1 %vm1418_vm7, %v1461_v23  ;;  %v16536_v23 = vld [vmem:[%s18156_s21 + $0x48] sm:$0xff]  }
 0x1e5   : > { %1875 = vmatpush1.bf16.msra.mxu0 %v16531_v32 }
 0x1e6   : > { %1876 = vmatprep.subr.bf16.mxu0 %v18116_v15 }
 0x1e9   : > { %1877 = vmatpush1.bf16.msra.mxu0 %v16532_v34 }
 0x1ea   : > { %1580 = vmatmul.mubr.bf16.gmra.mrb[8].mxu1 %v1460_v27  ;;  %1878 = vmatprep.subr.bf16.mxu0 %v18116_v15 }
 0x1ed   : > { %1879 = vmatpush1.bf16.msra.mxu0 %v16533_v35 }
 0x1ee   : > { %1880 = vmatprep.subr.bf16.mxu0 %v18116_v15 }
 0x1ef   : > { %v1597_v43 = vpop.permute.xlu1 %1596 }
 0x1f0   : > { %v1602_v44 = vpop.permute.xlu0 %1601  ;;  %v1623_v46 = vmul.f32 %v1622_v42, %v1597_v43 }
 0x1f1   : > { %1881 = vmatpush1.bf16.msra.mxu0 %v16534_v36  ;;  %v1624_v51 = vmul.f32 %v1622_v42, %v1602_v44 }
 0x1f2   : > { %1882 = vmatprep.subr.bf16.mxu0 %v18116_v15 }
 0x1f3   : > { %v1607_v52 = vpop.permute.xlu1 %1606 }
 0x1f4   : > { %v1625_v0 = vmul.f32 %v1622_v42, %v1607_v52  ;;  %v1617_v11 = vpop.permute.xlu0 %1616 }
 0x1f5   : > { %1883 = vmatpush1.bf16.msra.mxu0 %v16535_v9  ;;  %v1627_v45 = vmul.f32 %v1622_v42, %v1617_v11 }
 0x1f6   : > { %1884 = vmatprep.subr.bf16.mxu0 %v18116_v15 }
 0x1f7   : > { %v1612_v61 = vpop.permute.xlu1 %1611 }
 0x1f8   : > { %v1626_v7 = vmul.f32 %v1622_v42, %v1612_v61 }
 0x1f9   : > { %1885 = vmatpush1.bf16.msra.mxu0 %v16536_v23 }
 0x2ad   : > { %v1565_v47 = vpop.f32.mrb[0].mxu1 }
 0x2ae   : > { %v1587_v48 = vmax.f32 %v1565_v47, 0.0  ;;  %v1567_v49 = vpop.f32.mrb[1].mxu1 }
 0x2af   : > { %v1568_v53 = vpop.f32.mrb[2].mxu1 }
 0x2b0   : > { %v18551_v55 = vadd.f32 %v1623_v46, %v1587_v48  ;;  %v1588_v56 = vmax.f32 %v1568_v53, 0.0  ;;  %v1570_v57 = vpop.f32.mrb[3].mxu1 }
 0x2b2   : > { %v1633_v58 = vmax.f32 %v18551_v55, 0.0  ;;  %v18554_v59 = vadd.f32 %v1624_v51, %v1588_v56 }
 0x2b4   : > { %v1634_v60 = vmax.f32 %v18554_v59, 0.0  ;;  %v1643_v63 = vrot.slane %v1633_v58, 6  ;;  %v16554_v59 = vld [vmem:[%s18166_s29 + $0x20] ss:$12 sps:$4 sm:$0xff]  }
 0x2b5   : > { %v1573_v62 = vpop.f32.mrb[4].mxu1 }
 0x2b6   : > { %v1644_v2 = vrot.slane %v1634_v60, 6  ;;  %v1589_v3 = vmax.f32 %v1573_v62, 0.0  ;;  %v1575_v4 = vpop.f32.mrb[5].mxu1  ;;  %v18568_v10 = vsel %vm1228_vm0, 0.0, %v1643_v63 }
 0x2b7   : > { %v1576_v5 = vpop.f32.mrb[6].mxu1  ;;  %v1740_v20 = vrot.slane %v18568_v10, 4  ;;  %v1688_v21 = vrot.slane %v18568_v10, 2  ;;  %v1662_v22 = vrot.slane %v18568_v10, 1  ;;  %v1714_v52 = vrot.slane %v18568_v10, 3 }
 0x2b8   : > { %v18562_v6 = vsel %vm1228_vm0, %v1643_v63, %v1644_v2  ;;  %v18564_v31 = vadd.f32 %v1625_v0, %v1589_v3  ;;  %v1590_v33 = vmax.f32 %v1576_v5, 0.0  ;;  %v1578_v8 = vpop.f32.mrb[7].mxu1 }
 0x2b9   : > { %v1741_v16 = vrot.slane %v18562_v6, 4  ;;  %v1689_v50 = vrot.slane %v18562_v6, 2  ;;  %v1663_v54 = vrot.slane %v18562_v6, 1  ;;  %v1715_v28 = vrot.slane %v18562_v6, 3 }
 0x2ba   : > { %v1635_v13 = vmax.f32 %v18564_v31, 0.0  ;;  %v18571_v14 = vadd.f32 %v1626_v7, %v1590_v33 }
 0x2bb   : > { %v1742_v12 = vsel %vm1401_vm4, %v1740_v20, %v1741_v16  ;;  %v1690_v37 = vsel %vm1347_vm8, %v1688_v21, %v1689_v50  ;;  %v1664_v39 = vsel %vm1320_vm6, %v1662_v22, %v1663_v54  ;;  %v1716_v62 = vsel %vm1374_vm5, %v1714_v52, %v1715_v28 }
 0x2bc   : > { %v1646_v17 = vrot.slane %v1635_v13, 6  ;;  %v1636_v18 = vmax.f32 %v18571_v14, 0.0 }
 0x2bd   : > { %v1581_v19 = vpop.f32.mrb[8].mxu1 }
 0x2be   : > { %v18585_v24 = vsel %vm1228_vm0, %v1644_v2, %v1646_v17  ;;  %v1648_v25 = vrot.slane %v1636_v18, 6  ;;  %v1591_v26 = vmax.f32 %v1581_v19, 0.0  ;;  %v1583_v27 = vpop.f32.mrb[9].mxu1 }
 0x2bf   : > { %v1584_v29 = vpop.f32.mrb[10].mxu1  ;;  %v1743_v30 = vrot.slane %v18585_v24, 4  ;;  %v1691_v32 = vrot.slane %v18585_v24, 2  ;;  %v1665_v34 = vrot.slane %v18585_v24, 1  ;;  %v1717_v40 = vrot.slane %v18585_v24, 3 }
 0x2c0   : > { %v18594_v35 = vadd.f32 %v1627_v45, %v1591_v26  ;;  %v1585_v36 = vpop.f32.mrb[11].mxu1  ;;  %v18600_v41 = vsel %vm1228_vm0, %v1646_v17, %v1648_v25 }
 0x2c1   : > { %v1744_v42 = vsel %vm1401_vm4, %v1741_v16, %v1743_v30  ;;  %v1692_v43 = vsel %vm1347_vm8, %v1689_v50, %v1691_v32  ;;  %v1666_v44 = vsel %vm1320_vm6, %v1663_v54, %v1665_v34  ;;  %v1718_v53 = vsel %vm1374_vm5, %v1715_v28, %v1717_v40 }
 0x2c2   : > { %v1637_v46 = vmax.f32 %v18594_v35, 0.0  ;;  %v1792_v47 = vpack.c.bf16 %v1744_v42, %v1742_v12  ;;  %v16357_v48 = vpack.i.bf16 %v1692_v43, %v1690_v37  ;;  %v16352_v49 = vpack.i.bf16 %v1666_v44, %v1664_v39 }
 0x2c3   : > { %v1693_v56 = vrot.slane %v18600_v41, 2  ;;  %v1667_v57 = vrot.slane %v18600_v41, 1  ;;  %v16362_v63 = vpack.i.bf16 %v1718_v53, %v1716_v62  ;;  %v1719_v4 = vrot.slane %v18600_v41, 3 }
 0x2c4   : > { %v1650_v51 = vrot.slane %v1637_v46, 6  ;;  %14063 = vmatprep.mubr.msk.bf16.mxu0 %vm1418_vm7, %v1792_v47  ;;  %16358 = vrot.lane.b32.xlu0 %v16357_v48, %s20694_s10  ;;  %v1745_v39 = vrot.slane %v18600_v41, 4 }
 0x2c5   : > { %16353 = vrot.lane.b32.xlu1 %v16352_v49, %s20690_s26  ;;  %v1694_v3 = vsel %vm1347_vm8, %v1691_v32, %v1693_v56  ;;  %v1668_v8 = vsel %vm1320_vm6, %v1665_v34, %v1667_v57  ;;  %v1720_v54 = vsel %vm1374_vm5, %v1717_v40, %v1719_v4 }
 0x2c6   : > { %v18618_v61 = vsel %vm1228_vm0, %v1648_v25, %v1650_v51  ;;  %v18627_v7 = vsel %vm1228_vm0, %v1650_v51, 0.0 }
 0x2c7   : > { %v1695_v0 = vrot.slane %v18618_v61, 2  ;;  %v1669_v2 = vrot.slane %v18618_v61, 1  ;;  %v1721_v5 = vrot.slane %v18618_v61, 3  ;;  %v1671_v50 = vrot.slane %v18627_v7, 1 }
 0x2c8   : > { %v1697_v19 = vrot.slane %v18627_v7, 2  ;;  %v1723_v21 = vrot.slane %v18627_v7, 3  ;;  %v1747_v32 = vrot.slane %v18618_v61, 4 }
 0x2c9   : > { %16363 = vrot.lane.b32.xlu1 %v16362_v63, %s20692_s16  ;;  %v1696_v33 = vsel %vm1347_vm8, %v1693_v56, %v1695_v0  ;;  %v1670_v9 = vsel %vm1320_vm6, %v1667_v57, %v1669_v2  ;;  %v1722_v17 = vsel %vm1374_vm5, %v1719_v4, %v1721_v5  ;;  %v1672_v20 = vsel %vm1320_vm6, %v1669_v2, %v1671_v50 }
 0x2ca   : > { %v16372_v11 = vpack.i.bf16 %v1696_v33, %v1694_v3  ;;  %v16367_v16 = vpack.i.bf16 %v1670_v9, %v1668_v8  ;;  %v16377_v45 = vpack.i.bf16 %v1722_v17, %v1720_v54  ;;  %v1698_v22 = vsel %vm1347_vm8, %v1695_v0, %v1697_v19 }
 0x2cb   : > { %v1724_v23 = vsel %vm1374_vm5, %v1721_v5, %v1723_v21  ;;  %v1748_v47 = vsel %vm1401_vm4, %v1745_v39, %v1747_v32  ;;  %v1746_v56 = vsel %vm1401_vm4, %v1743_v30, %v1745_v39  ;;  %v1749_v0 = vrot.slane %v18627_v7, 4  ;;  %v16537_v21 = vld [vmem:[%s18161_s25] sm:$0xff]  }
 0x2cc   : > { %16368 = vrot.lane.b32.xlu0 %v16367_v16, %s20690_s26  ;;  %v1794_v63 = vpack.c.bf16 %v1748_v47, %v1746_v56  ;;  %2156 = vmatpush1.bf16.msra.mxu1 %v16537_v21 }
 0x2cd   : > { %16373 = vrot.lane.b32.xlu1 %v16372_v11, %s20694_s10  ;;  %2157 = vmatprep.subr.bf16.mxu1 %v18116_v15 }
 0x2d0   : > { %16378 = vrot.lane.b32.xlu0 %v16377_v45, %s20692_s16 }
 0x2d1   : > { %1681 = vrot.lane.b32.xlu1 %v1672_v20, %s20690_s26 }
 0x2d4   : > { %1707 = vrot.lane.b32.xlu0 %v1698_v22, %s20694_s10  ;;  %v16539_v22 = vld [vmem:[%s18161_s25 + $0x10] sm:$0xff]  }
 0x2d5   : > { %1733 = vrot.lane.b32.xlu1 %v1724_v23, %s20692_s16  ;;  %v16540_v23 = vld [vmem:[%s18161_s25 + $0x18] sm:$0xff]  }
 0x336   : > { %v16359_v25 = vpop.permute.xlu0 %16358 }
 0x337   : > { %v16354_v26 = vpop.permute.xlu1 %16353  ;;  %v16361_v29 = vunpack.i.h.bf16 %v16359_v25  ;;  %v16360_v12 = vunpack.i.l.bf16 %v16359_v25  ;;  %v16541_v25 = vld [vmem:[%s18161_s25 + $0x20] sm:$0xff]  }
 0x338   : > { %v16356_v27 = vunpack.i.h.bf16 %v16354_v26  ;;  %v16355_v28 = vunpack.i.l.bf16 %v16354_v26  ;;  %v16542_v26 = vld [vmem:[%s18161_s25 + $0x28] sm:$0xff]  }
 0x33a   : > { %v1757_v34 = vsel %vm1418_vm7, %v18562_v6, %v16356_v27  ;;  %v1756_v36 = vsel %vm1418_vm7, %v18568_v10, %v16355_v28  ;;  %v16543_v27 = vld [vmem:[%s18161_s25 + $0x30] sm:$0xff]   ;;  %v16544_v28 = vld [vmem:[%s18161_s25 + $0x38] sm:$0xff]  }
 0x33b   : > { %v16364_v37 = vpop.permute.xlu1 %16363  ;;  %v1761_v43 = vsel %vm1424_vm9, %v1756_v36, %v16360_v12  ;;  %v1762_v44 = vsel %vm1424_vm9, %v1757_v34, %v16361_v29 }
 0x33c   : > { %v16366_v40 = vunpack.i.h.bf16 %v16364_v37  ;;  %v16365_v42 = vunpack.i.l.bf16 %v16364_v37 }
 0x33e   : > { %v1766_v48 = vsel %vm1430_vm10, %v1761_v43, %v16365_v42  ;;  %v1767_v49 = vsel %vm1430_vm10, %v1762_v44, %v16366_v40  ;;  %v16369_v51 = vpop.permute.xlu0 %16368  ;;  %v16545_v44 = vld [vmem:[%s18161_s25 + $0x40] sm:$0xff]  }
 0x33f   : > { %v1791_v6 = vpack.c.bf16 %v1767_v49, %v1766_v48  ;;  %v16374_v52 = vpop.permute.xlu1 %16373  ;;  %v16371_v53 = vunpack.i.h.bf16 %v16369_v51  ;;  %v16370_v10 = vunpack.i.l.bf16 %v16369_v51 }
 0x340   : > { %v16376_v57 = vunpack.i.h.bf16 %v16374_v52  ;;  %v16375_v62 = vunpack.i.l.bf16 %v16374_v52 }
 0x341   : > { %v1759_v2 = vsel %vm1418_vm7, %v18600_v41, %v16371_v53  ;;  %v1758_v3 = vsel %vm1418_vm7, %v18585_v24, %v16370_v10  ;;  %1899 = vmatmul.mubr.bf16.vlgmr.msra.gmra.mrb[12].mxu0 %v1791_v6  ;;  %v1750_v41 = vsel %vm1401_vm4, %v1747_v32, %v1749_v0 }
 0x342   : > { %14064 = vmatprep.mubr.msk.bf16.mxu0 %vm1418_vm7, %v1794_v63  ;;  %v16379_v4 = vpop.permute.xlu0 %16378  ;;  %v1763_v30 = vsel %vm1424_vm9, %v1758_v3, %v16375_v62  ;;  %v1764_v9 = vsel %vm1424_vm9, %v1759_v2, %v16376_v57  ;;  %v1796_v50 = vpack.c.bf16 %v1750_v41, %v1750_v41  ;;  %v16546_v63 = vld [vmem:[%s18161_s25 + $0x48] sm:$0xff]  }
 0x343   : > { %v1682_v5 = vpop.permute.xlu1 %1681  ;;  %v16381_v33 = vunpack.i.h.bf16 %v16379_v4  ;;  %v16380_v8 = vunpack.i.l.bf16 %v16379_v4 }
 0x344   : > { %v1760_v17 = vsel %vm1418_vm7, %v18618_v61, %v1682_v5  ;;  %v16538_v61 = vld [vmem:[%s18161_s25 + $0x8] sm:$0xff]  }
 0x345   : > { %v1768_v7 = vsel %vm1430_vm10, %v1763_v30, %v16380_v8  ;;  %v1769_v11 = vsel %vm1430_vm10, %v1764_v9, %v16381_v33  ;;  %2158 = vmatpush1.bf16.msra.mxu1 %v16538_v61 }
 0x346   : > { %v1708_v24 = vpop.permute.xlu0 %1707  ;;  %v1793_v16 = vpack.c.bf16 %v1769_v11, %v1768_v7  ;;  %2159 = vmatprep.subr.bf16.mxu1 %v18116_v15 }
 0x347   : > { %v1734_v54 = vpop.permute.xlu1 %1733  ;;  %v1765_v45 = vsel %vm1424_vm9, %v1760_v17, %v1708_v24 }
 0x348   : > { %v1770_v19 = vsel %vm1430_vm10, %v1765_v45, %v1734_v54 }
 0x349   : > { %1907 = vmatmul.mubr.bf16.gmra.mrb[16].mxu0 %v1793_v16  ;;  %v1795_v20 = vpack.c.bf16 %v1770_v19, %v1770_v19  ;;  %2160 = vmatpush1.bf16.msra.mxu1 %v16539_v22 }
 0x34a   : > { %14065 = vmatprep.mubr.msk.bf16.mxu0 %vm1418_vm7, %v1796_v50  ;;  %2161 = vmatprep.subr.bf16.mxu1 %v18116_v15 }
 0x34d   : > { %2162 = vmatpush1.bf16.msra.mxu1 %v16540_v23 }
 0x34e   : > { %2163 = vmatprep.subr.bf16.mxu1 %v18116_v15 }
 0x351   : > { %1915 = vmatmul.mubr.bf16.gmra.mrb[20].mxu0 %v1795_v20  ;;  %2164 = vmatpush1.bf16.msra.mxu1 %v16541_v25 }
 0x352   : > { %2310 = vmatprep.mubr.bf16.mxu0 %v18116_v15  ;;  %2165 = vmatprep.subr.bf16.mxu1 %v18116_v15 }
 0x355   : > { %2166 = vmatpush1.bf16.msra.mxu1 %v16542_v26 }
 0x356   : > { %2167 = vmatprep.subr.bf16.mxu1 %v18116_v15 }
 0x359   : > { %2168 = vmatpush1.bf16.msra.mxu1 %v16543_v27 }
 0x35a   : > { %2169 = vmatprep.subr.bf16.mxu1 %v18116_v15 }
 0x35d   : > { %2170 = vmatpush1.bf16.msra.mxu1 %v16544_v28 }
 0x35e   : > { %2171 = vmatprep.subr.bf16.mxu1 %v18116_v15 }
 0x361   : > { %2172 = vmatpush1.bf16.msra.mxu1 %v16545_v44 }
 0x362   : > { %2173 = vmatprep.subr.bf16.mxu1 %v18116_v15 }
 0x365   : > { %2174 = vmatpush1.bf16.msra.mxu1 %v16546_v63 }
 0x366   : > { %2462 = vmatprep.subr.bf16.mxu1 %v18116_v15 }
 0x414   : > { %v1900_v29 = vpop.f32.mrb[12].mxu0 }
 0x415   : > { %v1922_v12 = vmax.f32 %v1900_v29, 0.0  ;;  %v1902_v32 = vpop.f32.mrb[13].mxu0 }
 0x416   : > { %v1903_v34 = vpop.f32.mrb[14].mxu0 }
 0x417   : > { %v1923_v36 = vmax.f32 %v1903_v34, 0.0  ;;  %v1905_v37 = vpop.f32.mrb[15].mxu0  ;;  %v1932_v39 = vrot.slane %v1922_v12, 6 }
 0x419   : > { %v1933_v40 = vrot.slane %v1923_v36, 6  ;;  %v18699_v47 = vsel %vm1228_vm0, 0.0, %v1932_v39 }
 0x41a   : > { %v1951_v57 = vrot.slane %v18699_v47, 1  ;;  %v1977_v0 = vrot.slane %v18699_v47, 2  ;;  %v2029_v2 = vrot.slane %v18699_v47, 4  ;;  %v2003_v23 = vrot.slane %v18699_v47, 3 }
 0x41b   : > { %v18695_v42 = vsel %vm1228_vm0, %v1932_v39, %v1933_v40 }
 0x41c   : > { %v1908_v43 = vpop.f32.mrb[16].mxu0  ;;  %v2030_v6 = vrot.slane %v18695_v42, 4  ;;  %v1978_v56 = vrot.slane %v18695_v42, 2  ;;  %v1952_v62 = vrot.slane %v18695_v42, 1  ;;  %v2004_v30 = vrot.slane %v18695_v42, 3 }
 0x41d   : > { %v1924_v48 = vmax.f32 %v1908_v43, 0.0  ;;  %v1910_v49 = vpop.f32.mrb[17].mxu0 }
 0x41e   : > { %v1911_v51 = vpop.f32.mrb[18].mxu0  ;;  %v2031_v7 = vsel %vm1401_vm4, %v2029_v2, %v2030_v6  ;;  %v1979_v11 = vsel %vm1347_vm8, %v1977_v0, %v1978_v56  ;;  %v1953_v50 = vsel %vm1320_vm6, %v1951_v57, %v1952_v62  ;;  %v2005_v32 = vsel %vm1374_vm5, %v2003_v23, %v2004_v30  ;;  %v16547_v2 = vld [vmem:[%s18166_s29] ss:$12 sps:$4 sm:$0xff]  }
 0x41f   : > { %v1935_v52 = vrot.slane %v1924_v48, 6  ;;  %v1925_v53 = vmax.f32 %v1911_v51, 0.0  ;;  %v1913_v10 = vpop.f32.mrb[19].mxu0 }
 0x421   : > { %v18710_v3 = vsel %vm1228_vm0, %v1933_v40, %v1935_v52  ;;  %v1937_v4 = vrot.slane %v1925_v53, 6 }
 0x422   : > { %v2032_v5 = vrot.slane %v18710_v3, 4  ;;  %v1980_v33 = vrot.slane %v18710_v3, 2  ;;  %v1954_v8 = vrot.slane %v18710_v3, 1  ;;  %v2006_v41 = vrot.slane %v18710_v3, 3 }
 0x423   : > { %v18717_v9 = vsel %vm1228_vm0, %v1935_v52, %v1937_v4 }
 0x424   : > { %v1916_v24 = vpop.f32.mrb[20].mxu0  ;;  %v2033_v16 = vsel %vm1401_vm4, %v2030_v6, %v2032_v5  ;;  %v1981_v17 = vsel %vm1347_vm8, %v1978_v56, %v1980_v33  ;;  %v1955_v54 = vsel %vm1320_vm6, %v1952_v62, %v1954_v8  ;;  %v2007_v27 = vsel %vm1374_vm5, %v2004_v30, %v2006_v41 }
 0x425   : > { %v1926_v45 = vmax.f32 %v1916_v24, 0.0  ;;  %v1918_v19 = vpop.f32.mrb[21].mxu0  ;;  %v2081_v20 = vpack.c.bf16 %v2033_v16, %v2031_v7  ;;  %v16387_v21 = vpack.i.bf16 %v1981_v17, %v1979_v11  ;;  %v16382_v61 = vpack.i.bf16 %v1955_v54, %v1953_v50 }
 0x426   : > { %v1919_v22 = vpop.f32.mrb[22].mxu0  ;;  %v1982_v28 = vrot.slane %v18717_v9, 2  ;;  %v1956_v29 = vrot.slane %v18717_v9, 1  ;;  %v16392_v34 = vpack.i.bf16 %v2007_v27, %v2005_v32  ;;  %v2008_v40 = vrot.slane %v18717_v9, 3 }
 0x427   : > { %v1939_v25 = vrot.slane %v1926_v45, 6  ;;  %14076 = vmatprep.mubr.msk.bf16.mxu1 %vm1418_vm7, %v2081_v20  ;;  %16388 = vrot.lane.b32.xlu1 %v16387_v21, %s20694_s10  ;;  %v1920_v26 = vpop.f32.mrb[23].mxu0  ;;  %v2034_v45 = vrot.slane %v18717_v9, 4 }
 0x428   : > { %16383 = vrot.lane.b32.xlu0 %v16382_v61, %s20690_s26  ;;  %v1983_v39 = vsel %vm1347_vm8, %v1980_v33, %v1982_v28  ;;  %v1957_v49 = vsel %vm1320_vm6, %v1954_v8, %v1956_v29  ;;  %v2009_v56 = vsel %vm1374_vm5, %v2006_v41, %v2008_v40 }
 0x429   : > { %v18737_v12 = vsel %vm1228_vm0, %v1937_v4, %v1939_v25  ;;  %v18746_v44 = vsel %vm1228_vm0, %v1939_v25, 0.0  ;;  %v16549_v4 = vld [vmem:[%s18166_s29 + $0x4] ss:$12 sps:$4 sm:$0xff]   ;;  %v2035_v32 = vsel %vm1401_vm4, %v2032_v5, %v2034_v45 }
 0x42a   : > { %v1984_v36 = vrot.slane %v18737_v12, 2  ;;  %v1958_v37 = vrot.slane %v18737_v12, 1  ;;  %v2010_v43 = vrot.slane %v18737_v12, 3  ;;  %v1960_v10 = vrot.slane %v18746_v44, 1  ;;  %2278 = vmatprep.subr.bf16.mxu0 %v16549_v4  ;;  %v16552_v4 = vld [vmem:[%s18166_s29 + $0x1c] ss:$12 sps:$4 sm:$0xff]  }
 0x42b   : > { %v1986_v62 = vrot.slane %v18746_v44, 2  ;;  %v2012_v0 = vrot.slane %v18746_v44, 3  ;;  %2279 = vmatpush1.bf16.msra.mxu0 %v16547_v2  ;;  %v2036_v24 = vrot.slane %v18737_v12, 4 }
 0x42c   : > { %16393 = vrot.lane.b32.xlu0 %v16392_v34, %s20692_s16  ;;  %v1985_v48 = vsel %vm1347_vm8, %v1982_v28, %v1984_v36  ;;  %v1959_v51 = vsel %vm1320_vm6, %v1956_v29, %v1958_v37  ;;  %v2011_v53 = vsel %vm1374_vm5, %v2008_v40, %v2010_v43  ;;  %v1961_v63 = vsel %vm1320_vm6, %v1958_v37, %v1960_v10 }
 0x42d   : > { %v16402_v6 = vpack.i.bf16 %v1985_v48, %v1983_v39  ;;  %v16397_v52 = vpack.i.bf16 %v1959_v51, %v1957_v49  ;;  %v16407_v57 = vpack.i.bf16 %v2011_v53, %v2009_v56  ;;  %v1987_v33 = vsel %vm1347_vm8, %v1984_v36, %v1986_v62  ;;  %2280 = vmatprep.subr.bf16.mxu0 %v16552_v4 }
 0x42e   : > { %v2013_v8 = vsel %vm1374_vm5, %v2010_v43, %v2012_v0  ;;  %v2037_v23 = vsel %vm1401_vm4, %v2034_v45, %v2036_v24  ;;  %v2038_v39 = vrot.slane %v18746_v44, 4  ;;  %v16553_v45 = vld [vmem:[%s18166_s29 + $0x8] ss:$12 sps:$4 sm:$0xff]  }
 0x42f   : > { %16398 = vrot.lane.b32.xlu1 %v16397_v52, %s20690_s26  ;;  %v2083_v37 = vpack.c.bf16 %v2037_v23, %v2035_v32 }
 0x430   : > { %16403 = vrot.lane.b32.xlu0 %v16402_v6, %s20694_s10  ;;  %v2039_v53 = vsel %vm1401_vm4, %v2036_v24, %v2038_v39 }
 0x433   : > { %16408 = vrot.lane.b32.xlu1 %v16407_v57, %s20692_s16  ;;  %v2085_v57 = vpack.c.bf16 %v2039_v53, %v2039_v53 }
 0x434   : > { %1970 = vrot.lane.b32.xlu0 %v1961_v63, %s20690_s26  ;;  %s20757_s26 = sld [smem:[#allocation12_spill]] }
 0x437   : > { %1996 = vrot.lane.b32.xlu1 %v1987_v33, %s20694_s10  ;;  %v16550_v33 = vld [vmem:[%s18166_s29 + $0x18] ss:$12 sps:$4 sm:$0xff]  }
 0x438   : > { %2022 = vrot.lane.b32.xlu0 %v2013_v8, %s20692_s16  ;;  %2281 = vmatpush1.bf16.msra.mxu0 %v16550_v33  ;;  %s20758_s16 = sld [smem:[#allocation13_spill]] }
 0x439   : > { %15868 = vmatprep.subr.bf16.mxu0 %v18113_v1 }
 0x499   : > { %v16389_v30 = vpop.permute.xlu1 %16388 }
 0x49a   : > { %v16384_v7 = vpop.permute.xlu0 %16383  ;;  %v16391_v16 = vunpack.i.h.bf16 %v16389_v30  ;;  %v16390_v17 = vunpack.i.l.bf16 %v16389_v30 }
 0x49b   : > { %v16386_v11 = vunpack.i.h.bf16 %v16384_v7  ;;  %v16385_v41 = vunpack.i.l.bf16 %v16384_v7 }
 0x49d   : > { %v2046_v50 = vsel %vm1418_vm7, %v18695_v42, %v16386_v11  ;;  %v2045_v54 = vsel %vm1418_vm7, %v18699_v47, %v16385_v41 }
 0x49e   : > { %v16394_v19 = vpop.permute.xlu0 %16393  ;;  %v2050_v61 = vsel %vm1424_vm9, %v2045_v54, %v16390_v17  ;;  %v2051_v22 = vsel %vm1424_vm9, %v2046_v50, %v16391_v16 }
 0x49f   : > { %v16396_v20 = vunpack.i.h.bf16 %v16394_v19  ;;  %v16395_v21 = vunpack.i.l.bf16 %v16394_v19 }
 0x4a1   : > { %v2055_v25 = vsel %vm1430_vm10, %v2050_v61, %v16395_v21  ;;  %v2056_v26 = vsel %vm1430_vm10, %v2051_v22, %v16396_v20  ;;  %v16399_v27 = vpop.permute.xlu1 %16398 }
 0x4a2   : > { %v2080_v42 = vpack.c.bf16 %v2056_v26, %v2055_v25  ;;  %v16404_v28 = vpop.permute.xlu0 %16403  ;;  %v16401_v29 = vunpack.i.h.bf16 %v16399_v27  ;;  %v16400_v47 = vunpack.i.l.bf16 %v16399_v27 }
 0x4a3   : > { %v16406_v34 = vunpack.i.h.bf16 %v16404_v28  ;;  %v16405_v36 = vunpack.i.l.bf16 %v16404_v28 }
 0x4a4   : > { %v2048_v40 = vsel %vm1418_vm7, %v18717_v9, %v16401_v29  ;;  %v2047_v43 = vsel %vm1418_vm7, %v18710_v3, %v16400_v47  ;;  %2188 = vmatmul.mubr.bf16.vlgmr.msra.gmra.mrb[12].mxu1 %v2080_v42 }
 0x4a5   : > { %14077 = vmatprep.mubr.msk.bf16.mxu1 %vm1418_vm7, %v2083_v37  ;;  %v16409_v48 = vpop.permute.xlu1 %16408  ;;  %v2052_v5 = vsel %vm1424_vm9, %v2047_v43, %v16405_v36  ;;  %v2053_v52 = vsel %vm1424_vm9, %v2048_v40, %v16406_v34 }
 0x4a6   : > { %v1971_v49 = vpop.permute.xlu0 %1970  ;;  %v16411_v51 = vunpack.i.h.bf16 %v16409_v48  ;;  %v16410_v6 = vunpack.i.l.bf16 %v16409_v48 }
 0x4a7   : > { %v2049_v56 = vsel %vm1418_vm7, %v18737_v12, %v1971_v49 }
 0x4a8   : > { %v2057_v44 = vsel %vm1430_vm10, %v2052_v5, %v16410_v6  ;;  %v2058_v9 = vsel %vm1430_vm10, %v2053_v52, %v16411_v51 }
 0x4a9   : > { %v1997_v3 = vpop.permute.xlu1 %1996  ;;  %v2082_v10 = vpack.c.bf16 %v2058_v9, %v2057_v44 }
 0x4aa   : > { %v2023_v62 = vpop.permute.xlu0 %2022  ;;  %v2054_v63 = vsel %vm1424_vm9, %v2049_v56, %v1997_v3 }
 0x4ab   : > { %v2059_v0 = vsel %vm1430_vm10, %v2054_v63, %v2023_v62 }
 0x4ac   : > { %2196 = vmatmul.mubr.bf16.gmra.mrb[16].mxu1 %v2082_v10  ;;  %v2084_v2 = vpack.c.bf16 %v2059_v0, %v2059_v0 }
 0x4ad   : > { %14078 = vmatprep.mubr.msk.bf16.mxu1 %vm1418_vm7, %v2085_v57 }
 0x4b4   : > { %2204 = vmatmul.mubr.bf16.gmra.mrb[20].mxu1 %v2084_v2 }
 0x577   : > { %v2189_v8 = vpop.f32.mrb[12].mxu1 }
 0x578   : > { %v2211_v12 = vmax.f32 %v2189_v8, 0.0  ;;  %v2191_v30 = vpop.f32.mrb[13].mxu1 }
 0x579   : > { %v2192_v7 = vpop.f32.mrb[14].mxu1 }
 0x57a   : > { %v2216_v11 = vadd.f32 %v2211_v12, %v1633_v58  ;;  %v2212_v41 = vmax.f32 %v2192_v7, 0.0  ;;  %v2194_v24 = vpop.f32.mrb[15].mxu1 }
 0x57c   : > { %v2217_v16 = vadd.f32 %v2212_v41, %v1634_v60  ;;  %v2221_v17 = vmax.f32 %v2216_v11, 0.0 }
 0x57e   : > { %v2222_v50 = vmax.f32 %v2217_v16, 0.0  ;;  %v2435_v16 = vld [vmem:[%s20753_s3] sm:$0xff]  ;;  %s20760_s3 = sld [smem:[#allocation14_spill]] }
 0x57f   : > { %v2197_v54 = vpop.f32.mrb[16].mxu1 }
 0x580   : > { %v2234_v19 = vpack.c.bf16 %v2222_v50, %v2221_v17  ;;  %v2213_v20 = vmax.f32 %v2197_v54, 0.0  ;;  %v2199_v21 = vpop.f32.mrb[17].mxu1  ;;  %v18806_v61 = vpack.i.bf16 %v2222_v50, %v2221_v17  ;;  %v14092_v50 = vcombine.high %v2435_v16, %v2435_v16 }
 0x581   : > { %v2200_v22 = vpop.f32.mrb[18].mxu1 }
 0x582   : > { %v18810_v55 = vadd.f32 %v2213_v20, %v1635_v13  ;;  %v2214_v58 = vmax.f32 %v2200_v22, 0.0  ;;  %v2202_v23 = vpop.f32.mrb[19].mxu1  ;;  %14085 = vmatmul.mubr.msk.bf16.vlgmr.msra.gmra.mrb[24].mxu0 %vm1418_vm7, %v2234_v19  ;;  %14093 = vmatprep.mubr.msk.bf16.mxu1 %vm2455_vm11, %v14092_v50  ;;  %vm19390_vm11 = vmpackc.low %vm1229_vm1, %vm1229_vm1 }
 0x583   : > { %2320 = vmatprep.mubr.bf16.mxu0 %v18116_v15  ;;  %15869 = vmatpush3.bf16.msra.mxu0 %v16553_v45 }
 0x584   : > { %v2219_v60 = vadd.f32 %v2214_v58, %v1636_v18  ;;  %15870 = vmatprep.subr.bf16.mxu0 %v18113_v1  ;;  %v2223_v25 = vmax.f32 %v18810_v55, 0.0 }
 0x586   : > { %v2224_v26 = vmax.f32 %v2219_v60, 0.0 }
 0x587   : > { %v2205_v27 = vpop.f32.mrb[20].mxu1  ;;  %15871 = vmatpush3.bf16.msra.mxu0 %v16554_v59 }
 0x588   : > { %v2235_v31 = vpack.c.bf16 %v2224_v26, %v2223_v25  ;;  %v2215_v13 = vmax.f32 %v2205_v27, 0.0  ;;  %v2207_v42 = vpop.f32.mrb[21].mxu1 }
 0x589   : > { %v2208_v28 = vpop.f32.mrb[22].mxu1 }
 0x58a   : > { %v2220_v29 = vadd.f32 %v2215_v13, %v1637_v46  ;;  %v2209_v47 = vpop.f32.mrb[23].mxu1  ;;  %14086 = vmatmul.mubr.msk.bf16.gmra.mrb[28].mxu0 %vm1418_vm7, %v2235_v31 }
 0x58b   : > { %2330 = vmatprep.mubr.bf16.mxu0 %v18116_v15 }
 0x58c   : > { %v2225_v14 = vmax.f32 %v2220_v29, 0.0 }
 0x58e   : > { %v18825_v18 = vpack.i.bf16 %v2225_v14, %v2224_v26  ;;  %v2236_v32 = vpack.c.bf16 %v2225_v14, %v2225_v14 }
 0x592   : > { %14087 = vmatmul.mubr.msk.bf16.gmra.mrb[32].mxu0 %vm1418_vm7, %v2236_v32 }
 0x593   : > { %15872 = vmatprep.mubr.msk.bf16.mxu0 %vm18115_vm2, %v18113_v1 }
 0x59a   : > { %15873 = vmatmul.mubr.msk.bf16.vlgmr.msra.gmra.mrb[36].mxu0 %vm1418_vm7, %v2234_v19 }
 0x59b   : > { %15876 = vmatprep.mubr.msk.bf16.mxu0 %vm18115_vm2, %v18113_v1 }
 0x5a2   : > { %15877 = vmatmul.mubr.msk.bf16.gmra.mrb[40].mxu0 %vm1418_vm7, %v2235_v31 }
 0x5a3   : > { %15880 = vmatprep.mubr.msk.bf16.mxu0 %vm18115_vm2, %v18113_v1 }
 0x5aa   : > { %15881 = vmatmul.mubr.msk.bf16.gmra.mrb[44].mxu0 %vm1418_vm7, %v2236_v32 }
 0x655   : > { %v2312_v35 = vpop.f32.mrb[24].mxu0 }
 0x656   : > { %2400 = vrot.lane.b32.xlu1 %v2312_v35, %s20694_s10  ;;  %v18838_v46 = vpop.f32.mrb[25].mxu0 }
 0x657   : > { %v2316_v34 = vpop.f32.mrb[26].mxu0 }
 0x658   : > { %v2436_v36 = vpack.c.bf16 %v2316_v34, %v2312_v35  ;;  %v2318_v37 = vpop.f32.mrb[27].mxu0 }
 0x659   : > { %v2441_v39 = vpack.c.bf16 %v2318_v37, %v18838_v46 }
 0x65a   : > { %2463 = vmatpush1.bf16.msra.mxu1 %v2436_v36  ;;  %v16557_v36 = vld [vmem:[%s20746_s8 + $0x40] sm:$0xff]  }
 0x65b   : > { %2464 = vmatprep.subr.bf16.mxu1 %v18116_v15  ;;  %15280 = vmatprep.subr.bf16.mxu0 %v16557_v36  ;;  %v16581_v36 = vld [vmem:[%s18181_s14 + $0x40] sm:$0xff]  }
 0x65d   : > { %v2322_v40 = vpop.f32.mrb[28].mxu0 }
 0x65e   : > { %v16412_v43 = vpack.i.bf16 %v2322_v40, %v2316_v34  ;;  %v2324_v48 = vpop.f32.mrb[29].mxu0 }
 0x65f   : > { %v16422_v49 = vpack.i.bf16 %v2324_v48, %v2318_v37  ;;  %v2326_v51 = vpop.f32.mrb[30].mxu0  ;;  %v16558_v37 = vld [vmem:[%s20746_s8] sm:$0xff]  }
 0x660   : > { %v2437_v6 = vpack.c.bf16 %v2326_v51, %v2322_v40  ;;  %16413 = vrot.lane.b32.xlu0 %v16412_v43, %s20694_s10  ;;  %v2328_v5 = vpop.f32.mrb[31].mxu0  ;;  %15281 = vmatpush3.bf16.msra.mxu0 %v16558_v37  ;;  %v16560_v40 = vld [vmem:[%s20746_s8 + $0x8] sm:$0xff]   ;;  %v16561_v43 = vld [vmem:[%s20746_s8 + $0x50] sm:$0xff]   ;;  %v16582_v37 = vld [vmem:[%s18181_s14] sm:$0xff]  }
 0x661   : > { %v2442_v52 = vpack.c.bf16 %v2328_v5, %v2324_v48  ;;  %v16562_v48 = vld [vmem:[%s20746_s8 + $0x10] sm:$0xff]  }
 0x662   : > { %2465 = vmatpush1.bf16.msra.mxu1 %v2437_v6  ;;  %v16565_v6 = vld [vmem:[%s20746_s8 + $0x60] sm:$0xff]  }
 0x663   : > { %2466 = vmatprep.subr.bf16.mxu1 %v18116_v15 }
 0x664   : > { %2420 = vrot.lane.b32.xlu0 %v18838_v46, %s20694_s10  ;;  %v14091_v46 = vcombine.low %v2435_v16, %v2435_v16 }
 0x665   : > { %v2332_v44 = vpop.f32.mrb[32].mxu0 }
 0x666   : > { %v16417_v9 = vpack.i.bf16 %v2332_v44, %v2326_v51  ;;  %v2334_v53 = vpop.f32.mrb[33].mxu0  ;;  %v16564_v51 = vld [vmem:[%s20746_s8 + $0x18] sm:$0xff]  }
 0x667   : > { %v16427_v3 = vpack.i.bf16 %v2334_v53, %v2328_v5  ;;  %v2336_v10 = vpop.f32.mrb[34].mxu0  ;;  %v16566_v5 = vld [vmem:[%s20746_s8 + $0x20] sm:$0xff]  }
 0x668   : > { %16418 = vrot.lane.b32.xlu1 %v16417_v9, %s20694_s10  ;;  %v2337_v56 = vpop.f32.mrb[35].mxu0  ;;  %v16569_v9 = vld [vmem:[%s20746_s8 + $0x70] sm:$0xff]   ;;  %v16572_v10 = vld [vmem:[%s20746_s8 + $0x38] sm:$0xff]  }
 0x669   : > { %16428 = vrot.lane.b32.xlu0 %v16427_v3, %s20694_s10  ;;  %v16571_v3 = vld [vmem:[%s20746_s8 + $0x78] sm:$0xff]  }
 0x66c   : > { %16423 = vrot.lane.b32.xlu1 %v16422_v49, %s20694_s10  ;;  %v16563_v49 = vld [vmem:[%s20746_s8 + $0x58] sm:$0xff]  }
 0x66d   : > { %v2373_v57 = vpop.f32.mrb[36].mxu0 }
 0x66e   : > { %v15874_v62 = vpop.f32.mrb[37].mxu0 }
 0x66f   : > { %v2376_v63 = vpop.f32.mrb[38].mxu0 }
 0x670   : > { %v2446_v0 = vpack.c.bf16 %v2376_v63, %v2373_v57  ;;  %v15875_v2 = vpop.f32.mrb[39].mxu0 }
 0x672   : > { %2784 = vrot.lane.b32.xlu0 %v2446_v0, %s20694_s10 }
 0x675   : > { %v2381_v4 = vpop.f32.mrb[40].mxu0 }
 0x676   : > { %v15878_v33 = vpop.f32.mrb[41].mxu0 }
 0x677   : > { %v2384_v8 = vpop.f32.mrb[42].mxu0 }
 0x678   : > { %v18850_v12 = vpack.c.bf16 %v2384_v8, %v2381_v4  ;;  %v15879_v30 = vpop.f32.mrb[43].mxu0 }
 0x67d   : > { %v2389_v7 = vpop.f32.mrb[44].mxu0 }
 0x67e   : > { %v2448_v11 = vpack.c.bf16 %v2389_v7, %v2389_v7  ;;  %v15882_v41 = vpop.f32.mrb[45].mxu0 }
 0x67f   : > { %v2392_v24 = vpop.f32.mrb[46].mxu0 }
 0x680   : > { %2788 = vrot.lane.b32.xlu0 %v2448_v11, %s20694_s10  ;;  %v15883_v17 = vpop.f32.mrb[47].mxu0  ;;  %v2460_v35 = vsel %vm1401_vm4, %v2448_v11, 0 }
 0x6c8   : > { %v2401_v54 = vpop.permute.xlu1 %2400 }
 0x6c9   : > { %v2438_v45 = vpack.c.bf16 %v2401_v54, %v2332_v44  ;;  %v16568_v44 = vld [vmem:[%s20746_s8 + $0x28] sm:$0xff]  }
 0x6cb   : > { %2467 = vmatpush1.bf16.msra.mxu1 %v2438_v45 }
 0x6cc   : > { %2468 = vmatprep.subr.bf16.mxu1 %v18116_v15 }
 0x6d2   : > { %v16414_v19 = vpop.permute.xlu0 %16413 }
 0x6d3   : > { %v16416_v20 = vunpack.i.h.bf16 %v16414_v19  ;;  %v16415_v21 = vunpack.i.l.bf16 %v16414_v19 }
 0x6d5   : > { %v2439_v22 = vpack.c.bf16 %v16416_v20, %v16415_v21 }
 0x6d6   : > { %v2421_v26 = vpop.permute.xlu0 %2420 }
 0x6d7   : > { %2469 = vmatpush1.bf16.msra.mxu1 %v2439_v22  ;;  %v2443_v31 = vpack.c.bf16 %v2421_v26, %v2334_v53  ;;  %v16570_v53 = vld [vmem:[%s20746_s8 + $0x30] sm:$0xff]  }
 0x6d8   : > { %2470 = vmatprep.subr.bf16.mxu1 %v18116_v15 }
 0x6da   : > { %v16419_v58 = vpop.permute.xlu1 %16418 }
 0x6db   : > { %v16421_v23 = vunpack.i.h.bf16 %v16419_v58  ;;  %v16420_v59 = vunpack.i.l.bf16 %v16419_v58  ;;  %v16429_v28 = vpop.permute.xlu0 %16428 }
 0x6dc   : > { %v16431_v29 = vunpack.i.h.bf16 %v16429_v28  ;;  %v16430_v47 = vunpack.i.l.bf16 %v16429_v28 }
 0x6dd   : > { %v2440_v60 = vpack.c.bf16 %v16421_v23, %v16420_v59 }
 0x6de   : > { %v16424_v27 = vpop.permute.xlu1 %16423  ;;  %v2445_v32 = vpack.c.bf16 %v16431_v29, %v16430_v47  ;;  %v16576_v29 = vld [vmem:[%s20746_s8 + $0x98] sm:$0xff]  }
 0x6df   : > { %2471 = vmatpush1.bf16.msra.mxu1 %v2440_v60  ;;  %v16426_v13 = vunpack.i.h.bf16 %v16424_v27  ;;  %v16425_v42 = vunpack.i.l.bf16 %v16424_v27  ;;  %v16573_v60 = vld [vmem:[%s20746_s8 + $0x80] sm:$0xff]   ;;  %v16574_v27 = vld [vmem:[%s20746_s8 + $0x88] sm:$0xff]  }
 0x6e0   : > { %2472 = vmatprep.subr.bf16.mxu1 %v18116_v15 }
 0x6e1   : > { %v2444_v14 = vpack.c.bf16 %v16426_v13, %v16425_v42  ;;  %v16575_v13 = vld [vmem:[%s20746_s8 + $0x90] sm:$0xff]  }
 0x6e3   : > { %2473 = vmatpush1.bf16.msra.mxu1 %v2441_v39  ;;  %v16559_v39 = vld [vmem:[%s20746_s8 + $0x48] sm:$0xff]  }
 0x6e4   : > { %2474 = vmatprep.subr.bf16.mxu1 %v18116_v15  ;;  %v2785_v34 = vpop.permute.xlu0 %2784  ;;  %15282 = vmatprep.subr.bf16.mxu0 %v16559_v39  ;;  %v16583_v39 = vld [vmem:[%s18181_s14 + $0x48] sm:$0xff]  }
 0x6e5   : > { %15283 = vmatpush3.bf16.msra.mxu0 %v16560_v40  ;;  %v16584_v40 = vld [vmem:[%s18181_s14 + $0x8] sm:$0xff]  }
 0x6e6   : > { %15284 = vmatprep.subr.bf16.mxu0 %v16561_v43  ;;  %v16585_v43 = vld [vmem:[%s18181_s14 + $0x50] sm:$0xff]  }
 0x6e7   : > { %2475 = vmatpush1.bf16.msra.mxu1 %v2442_v52  ;;  %v16567_v52 = vld [vmem:[%s20746_s8 + $0x68] sm:$0xff]   ;;  %s20777_s8 = sld [smem:[#allocation27_spill]] }
 0x6e8   : > { %2476 = vmatprep.subr.bf16.mxu1 %v18116_v15 }
 0x6e9   : > { %15285 = vmatpush3.bf16.msra.mxu0 %v16562_v48  ;;  %v16586_v48 = vld [vmem:[%s18181_s14 + $0x10] sm:$0xff]  }
 0x6ea   : > { %15286 = vmatprep.subr.bf16.mxu0 %v16563_v49  ;;  %v16587_v49 = vld [vmem:[%s18181_s14 + $0x58] sm:$0xff]  }
 0x6eb   : > { %2477 = vmatpush1.bf16.msra.mxu1 %v2443_v31 }
 0x6ec   : > { %2478 = vmatprep.subr.bf16.mxu1 %v18116_v15 }
 0x6ed   : > { %15287 = vmatpush3.bf16.msra.mxu0 %v16564_v51  ;;  %v16588_v51 = vld [vmem:[%s18181_s14 + $0x18] sm:$0xff]   ;;  %v17957_v55 = vld [vmem:[%s20777_s8] sm:$0xff]  }
 0x6ee   : > { %15288 = vmatprep.subr.bf16.mxu0 %v16565_v6  ;;  %v16589_v6 = vld [vmem:[%s18181_s14 + $0x60] sm:$0xff]  }
 0x6ef   : > { %2479 = vmatpush1.bf16.msra.mxu1 %v2444_v14 }
 0x6f0   : > { %2480 = vmatprep.subr.bf16.mxu1 %v18116_v15 }
 0x6f1   : > { %15289 = vmatpush3.bf16.msra.mxu0 %v16566_v5  ;;  %v16590_v5 = vld [vmem:[%s18181_s14 + $0x20] sm:$0xff]  }
 0x6f2   : > { %15290 = vmatprep.subr.bf16.mxu0 %v16567_v52  ;;  %v16591_v52 = vld [vmem:[%s18181_s14 + $0x68] sm:$0xff]  }
 0x6f3   : > { %2481 = vmatpush1.bf16.msra.mxu1 %v2445_v32  ;;  %v16577_v32 = vld [vmem:[%s18181_s14 + $0x80] sm:$0xff]  }
 0x6f4   : > { %2482 = vmatprep.subr.bf16.mxu1 %v18116_v15 }
 0x6f5   : > { %15291 = vmatpush3.bf16.msra.mxu0 %v16568_v44  ;;  %v16592_v44 = vld [vmem:[%s18181_s14 + $0x28] sm:$0xff]  }
 0x6f6   : > { %15292 = vmatprep.subr.bf16.mxu0 %v16569_v9  ;;  %v16593_v9 = vld [vmem:[%s18181_s14 + $0x70] sm:$0xff]  }
 0x6f7   : > { %2483 = vmatpush1.bf16.msra.mxu1 %v2446_v0 }
 0x6f8   : > { %2484 = vmatprep.subr.bf16.mxu1 %v18116_v15 }
 0x6f9   : > { %15293 = vmatpush3.bf16.msra.mxu0 %v16570_v53  ;;  %v16594_v53 = vld [vmem:[%s18181_s14 + $0x30] sm:$0xff]  }
 0x6fa   : > { %15294 = vmatprep.subr.bf16.mxu0 %v16571_v3 }
 0x6fb   : > { %2485 = vmatpush1.bf16.msra.mxu1 %v18850_v12 }
 0x6fc   : > { %2486 = vmatprep.subr.bf16.mxu1 %v18116_v15 }
 0x6fd   : > { %15295 = vmatpush3.bf16.msra.mxu0 %v16572_v10 }
 0x6fe   : > { %15884 = vmatprep.subr.bf16.mxu0 %v18113_v1 }
 0x6ff   : > { %2487 = vmatpush1.bf16.msra.mxu1 %v2460_v35  ;;  %v16578_v35 = vld [vmem:[%s18181_s14 + $0x88] sm:$0xff]  }
 0x700   : > { %15896 = vmatprep.subr.bf16.mxu1 %v18113_v1 }
 0x702   : > { %2495 = vmatmul.mubr.bf16.vlgmr.msra.gmra.mrb[24].mxu1 %v14091_v46 }
 0x703   : > { %15897 = vmatpush3.bf16.msra.mxu1 %v2785_v34  ;;  %15902 = vmatprep.mubr.msk.bf16.mxu1 %vm18115_vm2, %v18113_v1  ;;  %v16580_v34 = vld [vmem:[%s18181_s14 + $0x98] sm:$0xff]  }
 0x704   : > { %15898 = vmatprep.subr.bf16.mxu1 %v18113_v1 }
 0x7d5   : > { %v2496_v56 = vpop.f32.mrb[24].mxu1 }
 0x7d6   : > { %v2502_v57 = vmax.f32 %v2496_v56, 0.0  ;;  %v2498_v62 = vpop.f32.mrb[25].mxu1 }
 0x7d7   : > { %v2499_v63 = vpop.f32.mrb[26].mxu1 }
 0x7d8   : > { %v2504_v0 = vrot.slane %v2502_v57, 6  ;;  %v2500_v2 = vpop.f32.mrb[27].mxu1 }
 0x7da   : > { %v2506_v4 = vsel %vm1228_vm0, 0.0, %v2504_v0  ;;  %v2507_v33 = vsel %vm1228_vm0, %v2504_v0, 0.0 }
 0x7db   : > { %v2510_v8 = vrot.slane %v2506_v4, 1  ;;  %v2511_v30 = vrot.slane %v2507_v33, 1  ;;  %v2520_v7 = vrot.slane %v2506_v4, 3  ;;  %v2521_v11 = vrot.slane %v2507_v33, 3 }
 0x7dc   : > { %v2516_v17 = vrot.slane %v2506_v4, 2  ;;  %v2517_v50 = vrot.slane %v2507_v33, 2  ;;  %v2526_v42 = vrot.slane %v2506_v4, 4  ;;  %v2527_v28 = vrot.slane %v2507_v33, 4 }
 0x7dd   : > { %v2512_v41 = vsel %vm1320_vm6, %v2510_v8, %v2511_v30  ;;  %v2522_v24 = vsel %vm1374_vm5, %v2520_v7, %v2521_v11 }
 0x7de   : > { %v16432_v16 = vpack.i.bf16 %v2512_v41, %v2522_v24  ;;  %v2518_v20 = vsel %vm1347_vm8, %v2516_v17, %v2517_v50  ;;  %v2528_v47 = vsel %vm1401_vm4, %v2526_v42, %v2527_v28  ;;  %v16596_v17 = vld [vmem:[%s18181_s14 + $0x38] sm:$0xff]  }
 0x7df   : > { %v2574_v14 = vpack.c.bf16 %v2528_v47, %v2528_v47 }
 0x7e0   : > { %16433 = vrot.lane.b32.xlu1 %v16432_v16, %s20694_s10  ;;  %v16595_v16 = vld [vmem:[%s18181_s14 + $0x78] sm:$0xff]  }
 0x7e4   : > { %2786 = vrot.lane.b32.xlu1 %v18850_v12, %s20694_s10  ;;  %v2789_v12 = vpop.permute.xlu0 %2788 }
 0x7e5   : > { %v2797_v26 = vsel %vm1401_vm4, %v2789_v12, 0 }
 0x7e8   : > { %2779 = vrot.lane.b32.xlu1 %v14091_v46, %s18121_s15  ;;  %v16579_v46 = vld [vmem:[%s18181_s14 + $0x90] sm:$0xff]   ;;  %s18123_s15 = smov 112  }
 0x852   : > { %v16434_v54 = vpop.permute.xlu1 %16433 }
 0x853   : > { %v16436_v45 = vunpack.i.h.bf16 %v16434_v54  ;;  %v16435_v19 = vunpack.i.l.bf16 %v16434_v54 }
 0x855   : > { %v2530_v21 = vsel %vm1424_vm9, %v2506_v4, %v16436_v45  ;;  %v2531_v22 = vsel %vm1424_vm9, %v2518_v20, %v16435_v19 }
 0x856   : > { %v2572_v58 = vpack.c.bf16 %v2530_v21, %v2530_v21  ;;  %v2787_v23 = vpop.permute.xlu1 %2786  ;;  %v2573_v59 = vpack.c.bf16 %v2531_v22, %v2531_v22 }
 0x857   : > { %15899 = vmatpush3.bf16.msra.mxu1 %v2787_v23 }
 0x858   : > { %2730 = vmatprep.mubr.bf16.mxu0 %v2573_v59  ;;  %15900 = vmatprep.subr.bf16.mxu1 %v18113_v1 }
 0x859   : > { %2731 = vmatmul.mubr.bf16.vlgmr.msra.gmra.mrb[48].mxu0 %v2572_v58 }
 0x85a   : > { %15885 = vmatpush3.bf16.msra.mxu0 %v16573_v60  ;;  %15892 = vmatprep.mubr.msk.bf16.mxu0 %vm18115_vm2, %v18113_v1  ;;  %v2780_v31 = vpop.permute.xlu1 %2779 }
 0x85b   : > { %15901 = vmatpush3.bf16.msra.mxu1 %v2797_v26  ;;  %15886 = vmatprep.subr.bf16.mxu0 %v18113_v1 }
 0x85c   : > { %15906 = vmatprep.subr.bf16.mxu1 %v18113_v1 }
 0x85e   : > { %15887 = vmatpush3.bf16.msra.mxu0 %v16574_v27  ;;  %15903 = vmatmul.mubr.msk.bf16.vlgmr.msra.gmra.mrb[28].mxu1 %vm2792_vm12, %v2780_v31 }
 0x85f   : > { %15888 = vmatprep.subr.bf16.mxu0 %v18113_v1  ;;  %15914 = vmatprep.mubr.msk.bf16.mxu1 %vm18115_vm2, %v18113_v1 }
 0x860   : > { %15907 = vmatpush3.bf16.msra.mxu1 %v16577_v32 }
 0x861   : > { %15908 = vmatprep.subr.bf16.mxu1 %v18113_v1 }
 0x862   : > { %15889 = vmatpush3.bf16.msra.mxu0 %v16575_v13 }
 0x863   : > { %15890 = vmatprep.subr.bf16.mxu0 %v18113_v1 }
 0x864   : > { %15909 = vmatpush3.bf16.msra.mxu1 %v16578_v35 }
 0x865   : > { %15910 = vmatprep.subr.bf16.mxu1 %v18113_v1 }
 0x866   : > { %15891 = vmatpush3.bf16.msra.mxu0 %v16576_v29 }
 0x867   : > { %15311 = vmatprep.subr.bf16.mxu0 %v16581_v36  ;;  %v16597_v36 = vld [vmem:[%s18186_s19 + $0x80] sm:$0xff]  }
 0x868   : > { %15911 = vmatpush3.bf16.msra.mxu1 %v16579_v46 }
 0x869   : > { %15893 = vmatmul.mubr.msk.bf16.vlgmr.msra.gmra.mrb[52].mxu0 %vm1424_vm9, %v2574_v14  ;;  %15912 = vmatprep.subr.bf16.mxu1 %v18113_v1 }
 0x86a   : > { %15312 = vmatpush3.bf16.msra.mxu0 %v16582_v37  ;;  %v16598_v37 = vld [vmem:[%s18186_s19 + $0x88] sm:$0xff]  }
 0x86b   : > { %15313 = vmatprep.subr.bf16.mxu0 %v16583_v39 }
 0x86c   : > { %15913 = vmatpush3.bf16.msra.mxu1 %v16580_v34 }
 0x86e   : > { %15314 = vmatpush3.bf16.msra.mxu0 %v16584_v40  ;;  %v16599_v40 = vld [vmem:[%s18186_s19 + $0x90] sm:$0xff]  }
 0x86f   : > { %15315 = vmatprep.subr.bf16.mxu0 %v16585_v43 }
 0x872   : > { %15316 = vmatpush3.bf16.msra.mxu0 %v16586_v48 }
 0x873   : > { %15317 = vmatprep.subr.bf16.mxu0 %v16587_v49 }
 0x876   : > { %15318 = vmatpush3.bf16.msra.mxu0 %v16588_v51  ;;  %v16600_v51 = vld [vmem:[%s18186_s19 + $0x98] sm:$0xff]  }
 0x877   : > { %15319 = vmatprep.subr.bf16.mxu0 %v16589_v6  ;;  %v16601_v6 = vld [vmem:[%s18186_s19 + $0x40] sm:$0xff]  }
 0x878   : > { %15338 = vmatprep.subr.bf16.mxu1 %v16601_v6  ;;  %v16631_v6 = vld [vmem:[%s18191_s24 + $0x64] ss:$24 sps:$4 sm:$0xff]  }
 0x87a   : > { %15320 = vmatpush3.bf16.msra.mxu0 %v16590_v5  ;;  %v16602_v5 = vld [vmem:[%s18186_s19] sm:$0xff]  }
 0x87b   : > { %15321 = vmatprep.subr.bf16.mxu0 %v16591_v52  ;;  %v16603_v52 = vld [vmem:[%s18186_s19 + $0x48] sm:$0xff]  }
 0x87e   : > { %15322 = vmatpush3.bf16.msra.mxu0 %v16592_v44  ;;  %v16604_v44 = vld [vmem:[%s18186_s19 + $0x8] sm:$0xff]  }
 0x87f   : > { %15323 = vmatprep.subr.bf16.mxu0 %v16593_v9  ;;  %v16605_v9 = vld [vmem:[%s18186_s19 + $0x50] sm:$0xff]  }
 0x882   : > { %15324 = vmatpush3.bf16.msra.mxu0 %v16594_v53  ;;  %v16606_v53 = vld [vmem:[%s18186_s19 + $0x10] sm:$0xff]  }
 0x883   : > { %15325 = vmatprep.subr.bf16.mxu0 %v16595_v16  ;;  %v16616_v16 = vld [vmem:[%s18186_s19 + $0x38] sm:$0xff]  }
 0x886   : > { %15326 = vmatpush3.bf16.msra.mxu0 %v16596_v17 }
 0x887   : > { %15918 = vmatprep.subr.bf16.mxu0 %v18113_v1 }
 0x92c   : > { %v15296_v3 = vpop.f32.mrb[48].mxu0 }
 0x92d   : > { %v15297_v10 = vpop.f32.mrb[49].mxu0 }
 0x92e   : > { %v15298_v56 = vadd.f32 %v15297_v10, %v15296_v3  ;;  %v15299_v57 = vpop.f32.mrb[50].mxu0  ;;  %v16607_v3 = vld [vmem:[%s18186_s19 + $0x58] sm:$0xff]  }
 0x92f   : > { %v15300_v62 = vpop.f32.mrb[51].mxu0  ;;  %v16608_v10 = vld [vmem:[%s18186_s19 + $0x18] sm:$0xff]   ;;  %v16610_v57 = vld [vmem:[%s18186_s19 + $0x20] sm:$0xff]  }
 0x930   : > { %v16611_v62 = vld [vmem:[%s18186_s19 + $0x68] sm:$0xff]  }
 0x931   : > { %v2833_v63 = vpop.f32.mrb[28].mxu1 }
 0x932   : > { %v15904_v0 = vpop.f32.mrb[29].mxu1 }
 0x933   : > { %v2836_v2 = vpop.f32.mrb[30].mxu1  ;;  %v16613_v0 = vld [vmem:[%s18186_s19 + $0x70] sm:$0xff]  }
 0x934   : > { %v15905_v4 = vpop.f32.mrb[31].mxu1  ;;  %v16614_v2 = vld [vmem:[%s18186_s19 + $0x30] sm:$0xff]  }
 0x93c   : > { %v2772_v33 = vpop.f32.mrb[52].mxu0 }
 0x93d   : > { %v2773_v8 = vadd.f32 %v15298_v56, %v2772_v33  ;;  %v15894_v30 = vpop.f32.mrb[53].mxu0  ;;  %v16609_v56 = vld [vmem:[%s18186_s19 + $0x60] sm:$0xff]  }
 0x93e   : > { %v2775_v7 = vpop.f32.mrb[54].mxu0 }
 0x93f   : > { %v2778_v11 = vmax.f32 %v2773_v8, 0.0  ;;  %v15895_v41 = vpop.f32.mrb[55].mxu0 }
 0x940   : > { %v16615_v41 = vld [vmem:[%s18186_s19 + $0x78] sm:$0xff]  }
 0x941   : > { %v18935_v24 = vadd.f32 %v2833_v63, %v2778_v11  ;;  %v16612_v63 = vld [vmem:[%s18186_s19 + $0x28] sm:$0xff]  }
 0x943   : > { %v2840_v50 = vmax.f32 %v18935_v24, 0.0  ;;  %v16649_v24 = vld [vmem:[%s18191_s24 + $0x74] ss:$24 sps:$4 sm:$0xff]  }
 0x945   : > { %v2842_v54 = vrot.slane %v2840_v50, 6 }
 0x947   : > { %v2844_v45 = vsel %vm1228_vm0, 0.0, %v2842_v54  ;;  %v2845_v19 = vsel %vm1228_vm0, %v2842_v54, 0.0 }
 0x948   : > { %v2849_v20 = vrot.slane %v2845_v19, 1  ;;  %v2859_v21 = vrot.slane %v2845_v19, 3  ;;  %v2864_v22 = vrot.slane %v2844_v45, 4  ;;  %v2865_v58 = vrot.slane %v2845_v19, 4 }
 0x949   : > { %v2848_v23 = vrot.slane %v2844_v45, 1  ;;  %v2858_v59 = vrot.slane %v2844_v45, 3  ;;  %v2855_v13 = vrot.slane %v2845_v19, 2  ;;  %v2854_v42 = vrot.slane %v2844_v45, 2 }
 0x94a   : > { %v2866_v60 = vsel %vm1401_vm4, %v2864_v22, %v2865_v58 }
 0x94b   : > { %v2850_v12 = vsel %vm1320_vm6, %v2848_v23, %v2849_v20  ;;  %v2860_v26 = vsel %vm1374_vm5, %v2858_v59, %v2859_v21  ;;  %v2912_v27 = vpack.c.bf16 %v2866_v60, %v2866_v60  ;;  %v2856_v14 = vsel %vm1347_vm8, %v2854_v42, %v2855_v13  ;;  %v16617_v13 = vld [vmem:[%s18191_s24] ss:$24 sps:$4 sm:$0xff]   ;;  %v16619_v42 = vld [vmem:[%s18191_s24 + $0x4] ss:$24 sps:$4 sm:$0xff]  }
 0x94c   : > { %v16437_v31 = vpack.i.bf16 %v2850_v12, %v2860_v26 }
 0x94d   : > { %15915 = vmatmul.mubr.msk.bf16.vlgmr.msra.gmra.mrb[32].mxu1 %vm1424_vm9, %v2912_v27 }
 0x94e   : > { %16438 = vrot.lane.b32.xlu0 %v16437_v31, %s20694_s10  ;;  %15339 = vmatpush3.bf16.msra.mxu1 %v16602_v5  ;;  %v16629_v5 = vld [vmem:[%s18191_s24 + $0x60] ss:$24 sps:$4 sm:$0xff]  }
 0x94f   : > { %15340 = vmatprep.subr.bf16.mxu1 %v16603_v52  ;;  %v16634_v52 = vld [vmem:[%s18191_s24 + $0x6c] ss:$24 sps:$4 sm:$0xff]  }
 0x952   : > { %15341 = vmatpush3.bf16.msra.mxu1 %v16604_v44  ;;  %v16632_v44 = vld [vmem:[%s18191_s24 + $0x68] ss:$24 sps:$4 sm:$0xff]  }
 0x953   : > { %15342 = vmatprep.subr.bf16.mxu1 %v16605_v9 }
 0x956   : > { %15343 = vmatpush3.bf16.msra.mxu1 %v16606_v53 }
 0x957   : > { %15344 = vmatprep.subr.bf16.mxu1 %v16607_v3  ;;  %v16637_v3 = vld [vmem:[%s18191_s24 + $0x94] ss:$24 sps:$4 sm:$0xff]  }
 0x95a   : > { %15345 = vmatpush3.bf16.msra.mxu1 %v16608_v10 }
 0x95b   : > { %15346 = vmatprep.subr.bf16.mxu1 %v16609_v56  ;;  %v16635_v56 = vld [vmem:[%s18191_s24 + $0x90] ss:$24 sps:$4 sm:$0xff]  }
 0x95e   : > { %15347 = vmatpush3.bf16.msra.mxu1 %v16610_v57  ;;  %v16640_v57 = vld [vmem:[%s18191_s24 + $0x9c] ss:$24 sps:$4 sm:$0xff]  }
 0x95f   : > { %15348 = vmatprep.subr.bf16.mxu1 %v16611_v62 }
 0x962   : > { %15349 = vmatpush3.bf16.msra.mxu1 %v16612_v63  ;;  %v16638_v63 = vld [vmem:[%s18191_s24 + $0x98] ss:$24 sps:$4 sm:$0xff]  }
 0x963   : > { %15350 = vmatprep.subr.bf16.mxu1 %v16613_v0  ;;  %v16643_v0 = vld [vmem:[%s18191_s24 + $0x14] ss:$24 sps:$4 sm:$0xff]  }
 0x966   : > { %15351 = vmatpush3.bf16.msra.mxu1 %v16614_v2 }
 0x967   : > { %15352 = vmatprep.subr.bf16.mxu1 %v16615_v41 }
 0x96a   : > { %15353 = vmatpush3.bf16.msra.mxu1 %v16616_v16 }
 0x9c0   : > { %v16439_v28 = vpop.permute.xlu0 %16438 }
 0x9c1   : > { %v16441_v29 = vunpack.i.h.bf16 %v16439_v28  ;;  %v16440_v47 = vunpack.i.l.bf16 %v16439_v28  ;;  %v16622_v28 = vld [vmem:[%s18191_s24 + $0xc] ss:$24 sps:$4 sm:$0xff]  }
 0x9c2   : > { %3584 = vmatprep.subr.bf16.mxu1 %v16622_v28  ;;  %v16663_v28 = vld [vmem:[%s20747_s6 + $0x10] sm:$0xff]  }
 0x9c3   : > { %v2868_v32 = vsel %vm1424_vm9, %v2844_v45, %v16441_v29  ;;  %v2869_v35 = vsel %vm1424_vm9, %v2856_v14, %v16440_v47 }
 0x9c4   : > { %v2910_v46 = vpack.c.bf16 %v2868_v32, %v2868_v32  ;;  %v2911_v34 = vpack.c.bf16 %v2869_v35, %v2869_v35 }
 0x9c6   : > { %3068 = vmatprep.mubr.bf16.mxu0 %v2911_v34 }
 0x9c7   : > { %3069 = vmatmul.mubr.bf16.vlgmr.msra.gmra.mrb[56].mxu0 %v2910_v46 }
 0x9c8   : > { %15926 = vmatprep.mubr.msk.bf16.mxu0 %vm18115_vm2, %v18113_v1  ;;  %15919 = vmatpush3.bf16.msra.mxu0 %v16597_v36 }
 0x9c9   : > { %15920 = vmatprep.subr.bf16.mxu0 %v18113_v1 }
 0x9cc   : > { %15921 = vmatpush3.bf16.msra.mxu0 %v16598_v37 }
 0x9cd   : > { %15922 = vmatprep.subr.bf16.mxu0 %v18113_v1 }
 0x9d0   : > { %15923 = vmatpush3.bf16.msra.mxu0 %v16599_v40  ;;  %v16620_v40 = vld [vmem:[%s18191_s24 + $0x8] ss:$24 sps:$4 sm:$0xff]  }
 0x9d1   : > { %15924 = vmatprep.subr.bf16.mxu0 %v18113_v1 }
 0x9d4   : > { %15925 = vmatpush3.bf16.msra.mxu0 %v16600_v51  ;;  %v16626_v51 = vld [vmem:[%s18191_s24 + $0x38] ss:$24 sps:$4 sm:$0xff]  }
 0x9d5   : > { %3543 = vmatprep.subr.bf16.mxu0 %v16619_v42 }
 0xa20   : > { %v3110_v39 = vpop.f32.mrb[32].mxu1 }
 0xa21   : > { %v15916_v43 = vpop.f32.mrb[33].mxu1 }
 0xa22   : > { %v3113_v48 = vpop.f32.mrb[34].mxu1  ;;  %v16625_v43 = vld [vmem:[%s18191_s24 + $0x34] ss:$24 sps:$4 sm:$0xff]  }
 0xa23   : > { %v15917_v49 = vpop.f32.mrb[35].mxu1  ;;  %v16623_v48 = vld [vmem:[%s18191_s24 + $0x30] ss:$24 sps:$4 sm:$0xff]  }
 0xa24   : > { %v16628_v49 = vld [vmem:[%s18191_s24 + $0x3c] ss:$24 sps:$4 sm:$0xff]  }
 0xa9a   : > { %v15327_v4 = vpop.f32.mrb[56].mxu0 }
 0xa9b   : > { %v15328_v33 = vpop.f32.mrb[57].mxu0 }
 0xa9c   : > { %v15329_v8 = vadd.f32 %v15328_v33, %v15327_v4  ;;  %v15330_v30 = vpop.f32.mrb[58].mxu0 }
 0xa9d   : > { %v15331_v7 = vpop.f32.mrb[59].mxu0 }
 0xa9e   : > { %v3111_v11 = vadd.f32 %v15329_v8, %v3110_v39 }
 0xaa0   : > { %v3116_v17 = vmax.f32 %v3111_v11, 0.0 }
 0xaa2   : > { %v3118_v54 = vrot.slane %v3116_v17, 6  ;;  %v16641_v17 = vld [vmem:[%s18191_s24 + $0x10] ss:$24 sps:$4 sm:$0xff]  }
 0xaa4   : > { %v3120_v45 = vsel %vm1228_vm0, 0.0, %v3118_v54  ;;  %v3121_v19 = vsel %vm1228_vm0, %v3118_v54, 0.0 }
 0xaa5   : > { %v3140_v20 = vrot.slane %v3120_v45, 4  ;;  %v3141_v21 = vrot.slane %v3121_v19, 4  ;;  %v3124_v22 = vrot.slane %v3120_v45, 1  ;;  %v3125_v58 = vrot.slane %v3121_v19, 1 }
 0xaa6   : > { %v3134_v23 = vrot.slane %v3120_v45, 3  ;;  %v3135_v59 = vrot.slane %v3121_v19, 3  ;;  %v3131_v29 = vrot.slane %v3121_v19, 2  ;;  %v3130_v47 = vrot.slane %v3120_v45, 2  ;;  %v16644_v19 = vld [vmem:[%s18191_s24 + $0x40] ss:$24 sps:$4 sm:$0xff]  }
 0xaa7   : > { %v3142_v60 = vsel %vm1401_vm4, %v3140_v20, %v3141_v21  ;;  %v3126_v26 = vsel %vm1320_vm6, %v3124_v22, %v3125_v58  ;;  %v16652_v20 = vld [vmem:[%s18191_s24 + $0xa4] ss:$24 sps:$4 sm:$0xff]   ;;  %v16650_v21 = vld [vmem:[%s18191_s24 + $0xa0] ss:$24 sps:$4 sm:$0xff]  }
 0xaa8   : > { %v3188_v12 = vpack.c.bf16 %v3142_v60, %v3142_v60  ;;  %v3136_v27 = vsel %vm1374_vm5, %v3134_v23, %v3135_v59  ;;  %v3132_v46 = vsel %vm1347_vm8, %v3130_v47, %v3131_v29  ;;  %v16653_v22 = vld [vmem:[%s20747_s6 + $0x40] sm:$0xff]   ;;  %v18122_v23 = vmov 1966171168   ;;  %v16657_v60 = vld [vmem:[%s20747_s6 + $0x48] sm:$0xff]   ;;  %v16665_v47 = vld [vmem:[%s20747_s6 + $0x58] sm:$0xff]  }
 0xaa9   : > { %v16442_v31 = vpack.i.bf16 %v3126_v26, %v3136_v27  ;;  %v16655_v58 = vld [vmem:[%s20747_s6] sm:$0xff]   ;;  %v4180_v59 = vunpack.c.l.s4 %v18122_v23  ;;  %v16659_v26 = vld [vmem:[%s20747_s6 + $0x8] sm:$0xff]  }
 0xaaa   : > { %15927 = vmatmul.mubr.msk.bf16.vlgmr.msra.gmra.mrb[60].mxu0 %vm1424_vm9, %v3188_v12 }
 0xaab   : > { %16443 = vrot.lane.b32.xlu1 %v16442_v31, %s20694_s10  ;;  %3575 = vmatprep.mubr.bf16.mxu0 %v18116_v15  ;;  %v4181_v12 = vunpack.c.0.s8 %v4180_v59  ;;  %v16661_v31 = vld [vmem:[%s20747_s6 + $0x50] sm:$0xff]   ;;  %s20759_s10 = sld [smem:[#allocation15_spill]] }
 0xaac   : > { %3544 = vmatpush1.bf16.msra.mxu0 %v16617_v13  ;;  %v3666_v13 = vld [vmem:[%s18196_s30] sm:$0x1] }
 0xaad   : > { %3545 = vmatprep.subr.bf16.mxu0 %v16625_v43  ;;  %v19032_v27 = vsub.s32 %v4181_v12, %v18547_v38  ;;  %v16671_v38 = vld [vmem:[%s20747_s6 + $0x20] sm:$0xff]  }
 0xaaf   : > { %v4185_v42 = vrot.slane %v3666_v13, %v19032_v27 }
 0xab0   : > { %3546 = vmatpush1.bf16.msra.mxu0 %v16623_v48 }
 0xab1   : > { %3547 = vmatprep.subr.bf16.mxu0 %v16631_v6  ;;  %v4192_v29 = vrot.slane %v4185_v42, %v19032_v27 }
 0xab3   : > { %4193 = vrot.lane.b32.xlu0 %v4192_v29, %s18123_s15  ;;  %s20756_s15 = sld [smem:[#allocation11_spill]] }
 0xab4   : > { %3548 = vmatpush1.bf16.msra.mxu0 %v16629_v5 }
 0xab5   : > { %3549 = vmatprep.subr.bf16.mxu0 %v16637_v3 }
 0xab8   : > { %3550 = vmatpush1.bf16.msra.mxu0 %v16635_v56  ;;  %v16658_v56 = vld [vmem:[%s20747_s6 + $0xc8] sm:$0xff]  }
 0xab9   : > { %3625 = vmatprep.subr.bf16.mxu0 %v16643_v0  ;;  %v16666_v0 = vld [vmem:[%s20747_s6 + $0xd8] sm:$0xff]  }
 0xb1d   : > { %v16444_v14 = vpop.permute.xlu1 %16443 }
 0xb1e   : > { %v16446_v32 = vunpack.i.h.bf16 %v16444_v14  ;;  %v16445_v35 = vunpack.i.l.bf16 %v16444_v14  ;;  %v16667_v14 = vld [vmem:[%s20747_s6 + $0x18] sm:$0xff]  }
 0xb20   : > { %v3144_v34 = vsel %vm1424_vm9, %v3120_v45, %v16446_v32  ;;  %v3145_v36 = vsel %vm1424_vm9, %v3132_v46, %v16445_v35  ;;  %v16646_v45 = vld [vmem:[%s18191_s24 + $0x44] ss:$24 sps:$4 sm:$0xff]   ;;  %v16673_v35 = vld [vmem:[%s20747_s6 + $0x68] sm:$0xff]  }
 0xb21   : > { %v3186_v37 = vpack.c.bf16 %v3144_v34, %v3144_v34  ;;  %v3187_v39 = vpack.c.bf16 %v3145_v36, %v3145_v36  ;;  %v16669_v32 = vld [vmem:[%s20747_s6 + $0x60] sm:$0xff]  }
 0xb23   : > { %3344 = vmatprep.mubr.bf16.mxu1 %v3187_v39 }
 0xb24   : > { %3345 = vmatmul.mubr.bf16.vlgmr.msra.gmra.mrb[36].mxu1 %v3186_v37 }
 0xb25   : > { %3585 = vmatpush1.bf16.msra.mxu1 %v16620_v40  ;;  %3616 = vmatprep.mubr.bf16.mxu1 %v18116_v15 }
 0xb26   : > { %3586 = vmatprep.subr.bf16.mxu1 %v16628_v49 }
 0xb29   : > { %3587 = vmatpush1.bf16.msra.mxu1 %v16626_v51 }
 0xb2a   : > { %3588 = vmatprep.subr.bf16.mxu1 %v16634_v52 }
 0xb2d   : > { %3589 = vmatpush1.bf16.msra.mxu1 %v16632_v44  ;;  %v16654_v44 = vld [vmem:[%s20747_s6 + $0xc0] sm:$0xff]  }
 0xb2e   : > { %3590 = vmatprep.subr.bf16.mxu1 %v16640_v57  ;;  %v16660_v57 = vld [vmem:[%s20747_s6 + $0x88] sm:$0xff]  }
 0xb31   : > { %3591 = vmatpush1.bf16.msra.mxu1 %v16638_v63  ;;  %v16664_v63 = vld [vmem:[%s20747_s6 + $0x90] sm:$0xff]  }
 0xb32   : > { %15930 = vmatprep.subr.bf16.mxu1 %v18113_v1 }
 0xb7d   : > { %v3386_v9 = vpop.f32.mrb[60].mxu0 }
 0xb7e   : > { %v15928_v53 = vpop.f32.mrb[61].mxu0 }
 0xb7f   : > { %v3389_v10 = vpop.f32.mrb[62].mxu0 }
 0xb80   : > { %v15929_v62 = vpop.f32.mrb[63].mxu0  ;;  %v16656_v10 = vld [vmem:[%s20747_s6 + $0x80] sm:$0xff]  }
 0xb81   : > { %v16662_v62 = vld [vmem:[%s20747_s6 + $0xd0] sm:$0xff]  }
 0xbf7   : > { %v15354_v2 = vpop.f32.mrb[36].mxu1 }
 0xbf8   : > { %v15355_v4 = vpop.f32.mrb[37].mxu1 }
 0xbf9   : > { %v15356_v33 = vadd.f32 %v15355_v4, %v15354_v2  ;;  %v15357_v8 = vpop.f32.mrb[38].mxu1  ;;  %v16668_v2 = vld [vmem:[%s20747_s6 + $0x98] sm:$0xff]   ;;  %v16670_v4 = vld [vmem:[%s20747_s6 + $0xe0] sm:$0xff]  }
 0xbfa   : > { %v15358_v30 = vpop.f32.mrb[39].mxu1  ;;  %v16674_v8 = vld [vmem:[%s20747_s6 + $0xe8] sm:$0xff]  }
 0xbfb   : > { %v3387_v7 = vadd.f32 %v15356_v33, %v3386_v9  ;;  %v16672_v33 = vld [vmem:[%s20747_s6 + $0xa0] sm:$0xff]   ;;  %v16675_v30 = vld [vmem:[%s20747_s6 + $0x28] sm:$0xff]  }
 0xbfd   : > { %v3392_v11 = vmax.f32 %v3387_v7, 0.0  ;;  %v16676_v7 = vld [vmem:[%s20747_s6 + $0xa8] sm:$0xff]  }
 0xbff   : > { %v3393_v41 = vadd.f32 %v3392_v11, %v2840_v50  ;;  %v16647_v50 = vld [vmem:[%s18191_s24 + $0x70] ss:$24 sps:$4 sm:$0xff]  }
 0xc00   : > { %v16677_v11 = vld [vmem:[%s20747_s6 + $0x70] sm:$0xff]  }
 0xc01   : > { %v19010_v16 = vmax.f32 %v3393_v41, 0.0  ;;  %v16678_v41 = vld [vmem:[%s20747_s6 + $0xf0] sm:$0xff]  }
 0xc03   : > { %v3419_v54 = vpack.c.bf16 %v19010_v16, %v19010_v16 }
 0xc05   : > { %14182 = vmatmul.mubr.msk.bf16.vlgmr.msra.gmra.mrb[64].mxu0 %vm1424_vm9, %v3419_v54  ;;  %14183 = vmatmul.mubr.msk.bf16.vlgmr.msra.gmra.mrb[40].mxu1 %vm1424_vm9, %v3419_v54 }
 0xc06   : > { %3626 = vmatpush1.bf16.msra.mxu0 %v16641_v17  ;;  %3657 = vmatprep.mubr.bf16.mxu0 %v18116_v15  ;;  %v16679_v17 = vld [vmem:[%s20747_s6 + $0x30] sm:$0xff]  }
 0xc07   : > { %3627 = vmatprep.subr.bf16.mxu0 %v16646_v45  ;;  %15936 = vmatprep.mubr.msk.bf16.mxu1 %vm18115_vm2, %v18113_v1  ;;  %v16681_v45 = vld [vmem:[%s20747_s6 + $0x78] sm:$0xff]  }
 0xc0a   : > { %3628 = vmatpush1.bf16.msra.mxu0 %v16644_v19  ;;  %v16682_v19 = vld [vmem:[%s20747_s6 + $0xf8] sm:$0xff]  }
 0xc0b   : > { %3629 = vmatprep.subr.bf16.mxu0 %v16649_v24  ;;  %v16683_v24 = vld [vmem:[%s20747_s6 + $0x38] sm:$0xff]  }
 0xc0e   : > { %3630 = vmatpush1.bf16.msra.mxu0 %v16647_v50  ;;  %v16684_v50 = vld [vmem:[%s20747_s6 + $0xb8] sm:$0xff]  }
 0xc0f   : > { %3631 = vmatprep.subr.bf16.mxu0 %v16652_v20 }
 0xc12   : > { %3632 = vmatpush1.bf16.msra.mxu0 %v16650_v21 }
 0xc13   : > { %15369 = vmatprep.subr.bf16.mxu0 %v16653_v22 }
 0xc15   : > { %14184 = vmatmul.mubr.msk.bf16.vlgmr.msra.gmra.mrb[68].mxu0 %vm1424_vm9, %v3419_v54  ;;  %v16680_v54 = vld [vmem:[%s20747_s6 + $0xb0] sm:$0xff]  }
 0xc16   : > { %15370 = vmatpush3.bf16.msra.mxu0 %v16655_v58 }
 0xc17   : > { %15371 = vmatprep.subr.bf16.mxu0 %v16657_v60 }
 0xc1a   : > { %15372 = vmatpush3.bf16.msra.mxu0 %v16659_v26 }
 0xc1b   : > { %15373 = vmatprep.subr.bf16.mxu0 %v16661_v31 }
 0xc1e   : > { %15374 = vmatpush3.bf16.msra.mxu0 %v16663_v28 }
 0xc1f   : > { %15375 = vmatprep.subr.bf16.mxu0 %v16665_v47 }
 0xc22   : > { %15376 = vmatpush3.bf16.msra.mxu0 %v16667_v14 }
 0xc23   : > { %15377 = vmatprep.subr.bf16.mxu0 %v16669_v32  ;;  %v16685_v32 = vld [vmem:[%s20747_s6 + $0x100] sm:$0xff]  }
 0xc26   : > { %15378 = vmatpush3.bf16.msra.mxu0 %v16671_v38 }
 0xc27   : > { %15379 = vmatprep.subr.bf16.mxu0 %v16673_v35 }
 0xc2a   : > { %15380 = vmatpush3.bf16.msra.mxu0 %v16675_v30  ;;  %v16710_v30 = vld [vmem:[%s20756_s15 + $0x20] sm:$0xff]  }
 0xc2b   : > { %15381 = vmatprep.subr.bf16.mxu0 %v16677_v11  ;;  %v16712_v11 = vld [vmem:[%s20756_s15 + $0xa0] sm:$0xff]  }
 0xc2e   : > { %15382 = vmatpush3.bf16.msra.mxu0 %v16679_v17  ;;  %v16714_v17 = vld [vmem:[%s20756_s15 + $0x28] sm:$0xff]  }
 0xc2f   : > { %15383 = vmatprep.subr.bf16.mxu0 %v16681_v45  ;;  %v16716_v45 = vld [vmem:[%s20756_s15 + $0xa8] sm:$0xff]  }
 0xc32   : > { %15384 = vmatpush3.bf16.msra.mxu0 %v16683_v24  ;;  %v16718_v24 = vld [vmem:[%s20756_s15 + $0x30] sm:$0xff]  }
 0xc33   : > { %15940 = vmatprep.subr.bf16.mxu0 %v18113_v1 }
 0xcd8   : > { %v3577_v46 = vpop.f32.mrb[64].mxu0  ;;  %v3618_v34 = vpop.f32.mrb[40].mxu1 }
 0xcd9   : > { %v3579_v36 = vpop.f32.mrb[65].mxu0  ;;  %v3620_v37 = vpop.f32.mrb[41].mxu1 }
 0xcda   : > { %v3667_v39 = vpack.c.bf16 %v3579_v36, %v3577_v46  ;;  %v3668_v40 = vpack.c.bf16 %v3620_v37, %v3618_v34  ;;  %v3581_v43 = vpop.f32.mrb[66].mxu0  ;;  %v3622_v48 = vpop.f32.mrb[42].mxu1  ;;  %v16686_v46 = vld [vmem:[%s20747_s6 + $0x108] sm:$0xff]   ;;  %v16687_v34 = vld [vmem:[%s20747_s6 + $0x110] sm:$0xff]   ;;  %v16688_v37 = vld [vmem:[%s20747_s6 + $0x118] sm:$0xff]  }
 0xcdb   : > { %v3582_v49 = vpop.f32.mrb[67].mxu0  ;;  %v3623_v51 = vpop.f32.mrb[43].mxu1  ;;  %v16691_v43 = vld [vmem:[%s20747_s6 + $0x130] sm:$0xff]   ;;  %v16692_v48 = vld [vmem:[%s20747_s6 + $0x138] sm:$0xff]  }
 0xcdc   : > { %15931 = vmatpush3.bf16.msra.mxu1 %v3667_v39  ;;  %v4194_v36 = vpop.permute.xlu0 %4193  ;;  %v16689_v39 = vld [vmem:[%s20747_s6 + $0x120] sm:$0xff]  }
 0xcdd   : > { %15932 = vmatprep.subr.bf16.mxu1 %v18113_v1 }
 0xce0   : > { %15933 = vmatpush3.bf16.msra.mxu1 %v3668_v40  ;;  %v16690_v40 = vld [vmem:[%s20747_s6 + $0x128] sm:$0xff]   ;;  %s20767_s6 = sld [smem:[#allocation19_spill]] }
 0xce1   : > { %15934 = vmatprep.subr.bf16.mxu1 %v18113_v1 }
 0xce8   : > { %v3659_v6 = vpop.f32.mrb[68].mxu0 }
 0xce9   : > { %v3669_v5 = vpack.c.bf16 %v3659_v6, %v3659_v6  ;;  %v19046_v52 = vpop.f32.mrb[69].mxu0  ;;  %v16693_v6 = vld [vmem:[%s20756_s15 + $0x40] sm:$0xff]  }
 0xcea   : > { %v3663_v9 = vpop.f32.mrb[70].mxu0  ;;  %v4177_v42 = vpack.c.bf16 %v19046_v52, %v19046_v52  ;;  %v16695_v52 = vld [vmem:[%s20756_s15 + $0xc0] sm:$0xff]  }
 0xceb   : > { %v3674_v53 = vsel %vm1401_vm4, %v3669_v5, 0  ;;  %v3664_v3 = vpop.f32.mrb[71].mxu0  ;;  %v16694_v5 = vld [vmem:[%s20756_s15] sm:$0xff]   ;;  %v16697_v9 = vld [vmem:[%s20756_s15 + $0x48] sm:$0xff]  }
 0xcec   : > { %15935 = vmatpush3.bf16.msra.mxu1 %v3674_v53  ;;  %v4200_v35 = vsel %vm1401_vm4, %v4177_v42, 0  ;;  %v16699_v53 = vld [vmem:[%s20756_s15 + $0xc8] sm:$0xff]  }
 0xced   : > { %15391 = vmatprep.subr.bf16.mxu1 %v16654_v44  ;;  %v16696_v44 = vld [vmem:[%s20756_s15 + $0x80] sm:$0xff]   ;;  %v16698_v3 = vld [vmem:[%s20756_s15 + $0x8] sm:$0xff]  }
 0xcef   : > { %15937 = vmatmul.mubr.msk.bf16.vlgmr.msra.gmra.mrb[44].mxu1 %vm2792_vm12, %v3666_v13 }
 0xcf0   : > { %15392 = vmatpush3.bf16.msra.mxu1 %v16656_v10  ;;  %v16700_v10 = vld [vmem:[%s20756_s15 + $0x88] sm:$0xff]  }
 0xcf1   : > { %15393 = vmatprep.subr.bf16.mxu1 %v16658_v56  ;;  %v16701_v56 = vld [vmem:[%s20756_s15 + $0x50] sm:$0xff]  }
 0xcf4   : > { %15394 = vmatpush3.bf16.msra.mxu1 %v16660_v57  ;;  %v16703_v57 = vld [vmem:[%s20756_s15 + $0xd0] sm:$0xff]  }
 0xcf5   : > { %15395 = vmatprep.subr.bf16.mxu1 %v16662_v62  ;;  %v16702_v62 = vld [vmem:[%s20756_s15 + $0x10] sm:$0xff]  }
 0xcf8   : > { %15396 = vmatpush3.bf16.msra.mxu1 %v16664_v63  ;;  %v16704_v63 = vld [vmem:[%s20756_s15 + $0x90] sm:$0xff]  }
 0xcf9   : > { %15397 = vmatprep.subr.bf16.mxu1 %v16666_v0  ;;  %v16705_v0 = vld [vmem:[%s20756_s15 + $0x58] sm:$0xff]  }
 0xcfc   : > { %15398 = vmatpush3.bf16.msra.mxu1 %v16668_v2  ;;  %v16707_v2 = vld [vmem:[%s20756_s15 + $0xd8] sm:$0xff]  }
 0xcfd   : > { %15399 = vmatprep.subr.bf16.mxu1 %v16670_v4  ;;  %v16706_v4 = vld [vmem:[%s20756_s15 + $0x18] sm:$0xff]  }
 0xd00   : > { %15400 = vmatpush3.bf16.msra.mxu1 %v16672_v33  ;;  %v16708_v33 = vld [vmem:[%s20756_s15 + $0x98] sm:$0xff]  }
 0xd01   : > { %15401 = vmatprep.subr.bf16.mxu1 %v16674_v8  ;;  %v16709_v8 = vld [vmem:[%s20756_s15 + $0x60] sm:$0xff]  }
 0xd04   : > { %15402 = vmatpush3.bf16.msra.mxu1 %v16676_v7  ;;  %v16711_v7 = vld [vmem:[%s20756_s15 + $0xe0] sm:$0xff]  }
 0xd05   : > { %15403 = vmatprep.subr.bf16.mxu1 %v16678_v41  ;;  %v16713_v41 = vld [vmem:[%s20756_s15 + $0x68] sm:$0xff]  }
 0xd08   : > { %15404 = vmatpush3.bf16.msra.mxu1 %v16680_v54  ;;  %v16715_v54 = vld [vmem:[%s20756_s15 + $0xe8] sm:$0xff]  }
 0xd09   : > { %15405 = vmatprep.subr.bf16.mxu1 %v16682_v19  ;;  %v16717_v19 = vld [vmem:[%s20756_s15 + $0x70] sm:$0xff]  }
 0xd0c   : > { %15406 = vmatpush3.bf16.msra.mxu1 %v16684_v50  ;;  %v16719_v50 = vld [vmem:[%s20756_s15 + $0xf0] sm:$0xff]  }
 0xd0d   : > { %15960 = vmatprep.subr.bf16.mxu1 %v18113_v1 }
 0xdc2   : > { %v3710_v20 = vpop.f32.mrb[44].mxu1 }
 0xdc3   : > { %v3716_v21 = vmax.f32 %v3710_v20, 0.0  ;;  %v15938_v22 = vpop.f32.mrb[45].mxu1  ;;  %v16720_v20 = vld [vmem:[%s20756_s15 + $0xb0] sm:$0xff]  }
 0xdc4   : > { %v3713_v58 = vpop.f32.mrb[46].mxu1  ;;  %v16722_v22 = vld [vmem:[%s20756_s15 + $0x38] sm:$0xff]  }
 0xdc5   : > { %v3718_v23 = vrot.slane %v3716_v21, 6  ;;  %v15939_v59 = vpop.f32.mrb[47].mxu1  ;;  %v16721_v21 = vld [vmem:[%s20756_s15 + $0x78] sm:$0xff]  }
 0xdc6   : > { %v16723_v58 = vld [vmem:[%s20756_s15 + $0xf8] sm:$0xff]  }
 0xdc7   : > { %v3720_v60 = vsel %vm1228_vm0, 0.0, %v3718_v23  ;;  %v16724_v23 = vld [vmem:[%s20756_s15 + $0xb8] sm:$0xff]  }
 0xdc8   : > { %v3721_v12 = vsel %vm1401_vm4, %v3720_v60, 0.0  ;;  %v14227_v38 = vpack.c.bf16 %v3720_v60, %v3720_v60 }
 0xdc9   : > { %v3723_v26 = vrot.slane %v3721_v12, 1  ;;  %v3727_v31 = vrot.slane %v3721_v12, 3  ;;  %v3725_v13 = vrot.slane %v3721_v12, 2  ;;  %v3729_v49 = vrot.slane %v3721_v12, 4 }
 0xdcb   : > { %v3812_v28 = vpack.c.bf16 %v3723_v26, %v3723_v26  ;;  %v3814_v29 = vpack.c.bf16 %v3727_v31, %v3727_v31  ;;  %v3813_v14 = vpack.c.bf16 %v3725_v13, %v3725_v13  ;;  %v3815_v51 = vpack.c.bf16 %v3729_v49, %v3729_v49 }
 0xdcd   : > { %4088 = vmatprep.mubr.bf16.mxu0 %v3812_v28  ;;  %4128 = vmatprep.mubr.bf16.mxu1 %v3814_v29 }
 0xdce   : > { %14228 = vmatmul.mubr.msk.bf16.vlgmr.msra.gmra.mrb[72].mxu0 %vm19079_vm13, %v14227_v38  ;;  %4129 = vmatmul.mubr.bf16.vlgmr.msra.gmra.mrb[48].mxu1 %v3813_v14 }
 0xdcf   : > { %15941 = vmatpush3.bf16.msra.mxu0 %v16685_v32  ;;  %15961 = vmatpush3.bf16.msra.mxu1 %v4200_v35 }
 0xdd0   : > { %15942 = vmatprep.subr.bf16.mxu0 %v18113_v1  ;;  %15956 = vmatprep.mubr.msk.bf16.mxu0 %vm18115_vm2, %v18113_v1 }
 0xdd1   : > { %15962 = vmatprep.mubr.msk.bf16.mxu1 %vm18115_vm2, %v18113_v1  ;;  %15424 = vmatprep.subr.bf16.mxu1 %v16693_v6 }
 0xdd3   : > { %15943 = vmatpush3.bf16.msra.mxu0 %v16686_v46 }
 0xdd4   : > { %15944 = vmatprep.subr.bf16.mxu0 %v18113_v1 }
 0xdd6   : > { %15963 = vmatmul.mubr.msk.bf16.vlgmr.msra.gmra.mrb[52].mxu1 %vm4195_vm14, %v4194_v36  ;;  %vm7293_vm14 = vcmask 15360  }
 0xdd7   : > { %15945 = vmatpush3.bf16.msra.mxu0 %v16687_v34  ;;  %15425 = vmatpush3.bf16.msra.mxu1 %v16694_v5 }
 0xdd8   : > { %15946 = vmatprep.subr.bf16.mxu0 %v18113_v1  ;;  %15426 = vmatprep.subr.bf16.mxu1 %v16697_v9 }
 0xddb   : > { %15947 = vmatpush3.bf16.msra.mxu0 %v16688_v37  ;;  %15427 = vmatpush3.bf16.msra.mxu1 %v16698_v3 }
 0xddc   : > { %15948 = vmatprep.subr.bf16.mxu0 %v18113_v1  ;;  %15428 = vmatprep.subr.bf16.mxu1 %v16701_v56 }
 0xddf   : > { %15949 = vmatpush3.bf16.msra.mxu0 %v16689_v39  ;;  %15429 = vmatpush3.bf16.msra.mxu1 %v16702_v62 }
 0xde0   : > { %15950 = vmatprep.subr.bf16.mxu0 %v18113_v1  ;;  %15430 = vmatprep.subr.bf16.mxu1 %v16705_v0  ;;  %v16727_v0 = vld [vmem:[%s20756_s15 + $0x110] sm:$0xff]  }
 0xde3   : > { %15951 = vmatpush3.bf16.msra.mxu0 %v16690_v40  ;;  %15431 = vmatpush3.bf16.msra.mxu1 %v16706_v4  ;;  %v16729_v4 = vld [vmem:[%s20756_s15 + $0x120] sm:$0xff]  }
 0xde4   : > { %15952 = vmatprep.subr.bf16.mxu0 %v18113_v1  ;;  %15432 = vmatprep.subr.bf16.mxu1 %v16709_v8  ;;  %v16731_v8 = vld [vmem:[%s20756_s15 + $0x130] sm:$0xff]  }
 0xde7   : > { %15953 = vmatpush3.bf16.msra.mxu0 %v16691_v43  ;;  %15433 = vmatpush3.bf16.msra.mxu1 %v16710_v30  ;;  %v16732_v30 = vld [vmem:[%s20756_s15 + $0x138] sm:$0xff]  }
 0xde8   : > { %15954 = vmatprep.subr.bf16.mxu0 %v18113_v1  ;;  %15434 = vmatprep.subr.bf16.mxu1 %v16713_v41  ;;  %v16733_v41 = vld [vmem:[%s20757_s26 + $0x40] sm:$0xff]  }
 0xdeb   : > { %15955 = vmatpush3.bf16.msra.mxu0 %v16692_v48  ;;  %15435 = vmatpush3.bf16.msra.mxu1 %v16714_v17  ;;  %v16734_v17 = vld [vmem:[%s20757_s26] sm:$0xff]  }
 0xdec   : > { %15446 = vmatprep.subr.bf16.mxu0 %v16695_v52  ;;  %15436 = vmatprep.subr.bf16.mxu1 %v16717_v19  ;;  %v16737_v19 = vld [vmem:[%s20757_s26 + $0x48] sm:$0xff]  }
 0xdee   : > { %15957 = vmatmul.mubr.bf16.vlgmr.msra.gmra.mrb[76].mxu0 %v3815_v51 }
 0xdef   : > { %15447 = vmatpush3.bf16.msra.mxu0 %v16696_v44  ;;  %15437 = vmatpush3.bf16.msra.mxu1 %v16718_v24  ;;  %v16739_v24 = vld [vmem:[%s20757_s26 + $0xc8] sm:$0xff]  }
 0xdf0   : > { %15448 = vmatprep.subr.bf16.mxu0 %v16699_v53  ;;  %15438 = vmatprep.subr.bf16.mxu1 %v16721_v21  ;;  %v16741_v21 = vld [vmem:[%s20757_s26 + $0x50] sm:$0xff]  }
 0xdf3   : > { %15449 = vmatpush3.bf16.msra.mxu0 %v16700_v10  ;;  %15439 = vmatpush3.bf16.msra.mxu1 %v16722_v22  ;;  %v16743_v22 = vld [vmem:[%s20757_s26 + $0xd0] sm:$0xff]  }
 0xdf4   : > { %15450 = vmatprep.subr.bf16.mxu0 %v16703_v57  ;;  %15966 = vmatprep.subr.bf16.mxu1 %v18113_v1  ;;  %v16725_v57 = vld [vmem:[%s20756_s15 + $0x100] sm:$0xff]  }
 0xdf7   : > { %15451 = vmatpush3.bf16.msra.mxu0 %v16704_v63  ;;  %v16726_v63 = vld [vmem:[%s20756_s15 + $0x108] sm:$0xff]  }
 0xdf8   : > { %15452 = vmatprep.subr.bf16.mxu0 %v16707_v2  ;;  %v16728_v2 = vld [vmem:[%s20756_s15 + $0x118] sm:$0xff]  }
 0xdfb   : > { %15453 = vmatpush3.bf16.msra.mxu0 %v16708_v33  ;;  %v16730_v33 = vld [vmem:[%s20756_s15 + $0x128] sm:$0xff]  }
 0xdfc   : > { %15454 = vmatprep.subr.bf16.mxu0 %v16711_v7 }
 0xdff   : > { %15455 = vmatpush3.bf16.msra.mxu0 %v16712_v11 }
 0xe00   : > { %15456 = vmatprep.subr.bf16.mxu0 %v16715_v54  ;;  %v16735_v54 = vld [vmem:[%s20757_s26 + $0xc0] sm:$0xff]  }
 0xe03   : > { %15457 = vmatpush3.bf16.msra.mxu0 %v16716_v45  ;;  %v16736_v45 = vld [vmem:[%s20757_s26 + $0x80] sm:$0xff]  }
 0xe04   : > { %15458 = vmatprep.subr.bf16.mxu0 %v16719_v50  ;;  %v16738_v50 = vld [vmem:[%s20757_s26 + $0x8] sm:$0xff]  }
 0xe07   : > { %15459 = vmatpush3.bf16.msra.mxu0 %v16720_v20  ;;  %v16740_v20 = vld [vmem:[%s20757_s26 + $0x88] sm:$0xff]  }
 0xe08   : > { %15460 = vmatprep.subr.bf16.mxu0 %v16723_v58  ;;  %v16742_v58 = vld [vmem:[%s20757_s26 + $0x10] sm:$0xff]  }
 0xe0b   : > { %15461 = vmatpush3.bf16.msra.mxu0 %v16724_v23  ;;  %v16744_v23 = vld [vmem:[%s20757_s26 + $0x90] sm:$0xff]  }
 0xe0c   : > { %15477 = vmatprep.subr.bf16.mxu0 %v16733_v41 }
 0xea1   : > { %v15385_v59 = vpop.f32.mrb[72].mxu0  ;;  %v15407_v60 = vpop.f32.mrb[48].mxu1 }
 0xea2   : > { %v15386_v12 = vpop.f32.mrb[73].mxu0  ;;  %v15408_v26 = vpop.f32.mrb[49].mxu1 }
 0xea3   : > { %v15387_v31 = vadd.f32 %v15386_v12, %v15385_v59  ;;  %v15409_v13 = vadd.f32 %v15408_v26, %v15407_v60  ;;  %v15388_v42 = vpop.f32.mrb[74].mxu0  ;;  %v15410_v28 = vpop.f32.mrb[50].mxu1  ;;  %v16745_v59 = vld [vmem:[%s20757_s26 + $0x58] sm:$0xff]  }
 0xea4   : > { %v15389_v29 = vpop.f32.mrb[75].mxu0  ;;  %v15411_v14 = vpop.f32.mrb[51].mxu1  ;;  %v16747_v60 = vld [vmem:[%s20757_s26 + $0xd8] sm:$0xff]   ;;  %v16750_v42 = vld [vmem:[%s20757_s26 + $0x20] sm:$0xff]  }
 0xea5   : > { %v4131_v32 = vadd.f32 %v15409_v13, %v15387_v31  ;;  %v16746_v12 = vld [vmem:[%s20757_s26 + $0x18] sm:$0xff]   ;;  %v16749_v31 = vld [vmem:[%s20757_s26 + $0x60] sm:$0xff]   ;;  %v16753_v29 = vld [vmem:[%s20757_s26 + $0x68] sm:$0xff]  }
 0xea6   : > { %v16748_v26 = vld [vmem:[%s20757_s26 + $0x98] sm:$0xff]   ;;  %v16751_v13 = vld [vmem:[%s20757_s26 + $0xe0] sm:$0xff]   ;;  %v16754_v14 = vld [vmem:[%s20757_s26 + $0x28] sm:$0xff]  }
 0xea7   : > { %v16752_v28 = vld [vmem:[%s20757_s26 + $0xa0] sm:$0xff]  }
 0xea9   : > { %v4236_v38 = vpop.f32.mrb[52].mxu1 }
 0xeaa   : > { %v15964_v35 = vpop.f32.mrb[53].mxu1 }
 0xeab   : > { %v4239_v46 = vpop.f32.mrb[54].mxu1  ;;  %v16757_v35 = vld [vmem:[%s20757_s26 + $0x70] sm:$0xff]  }
 0xeac   : > { %v15965_v34 = vpop.f32.mrb[55].mxu1  ;;  %v16758_v46 = vld [vmem:[%s20757_s26 + $0x30] sm:$0xff]  }
 0xead   : > { %v16759_v34 = vld [vmem:[%s20757_s26 + $0xf0] sm:$0xff]  }
 0xec1   : > { %v4170_v36 = vpop.f32.mrb[76].mxu0 }
 0xec2   : > { %v4171_v37 = vadd.f32 %v4170_v36, %v4131_v32  ;;  %v15958_v39 = vpop.f32.mrb[77].mxu0  ;;  %v16755_v32 = vld [vmem:[%s20757_s26 + $0xe8] sm:$0xff]   ;;  %v16760_v36 = vld [vmem:[%s20757_s26 + $0xb0] sm:$0xff]  }
 0xec3   : > { %v4173_v40 = vpop.f32.mrb[78].mxu0  ;;  %v16762_v39 = vld [vmem:[%s20757_s26 + $0x38] sm:$0xff]  }
 0xec4   : > { %v4176_v43 = vmax.f32 %v4171_v37, 0.0  ;;  %v15959_v48 = vpop.f32.mrb[79].mxu0  ;;  %v16761_v37 = vld [vmem:[%s20757_s26 + $0x78] sm:$0xff]  }
 0xec5   : > { %v16763_v40 = vld [vmem:[%s20757_s26 + $0xf8] sm:$0xff]  }
 0xec6   : > { %v19138_v49 = vadd.f32 %v4236_v38, %v4176_v43  ;;  %v16756_v38 = vld [vmem:[%s20757_s26 + $0xa8] sm:$0xff]   ;;  %v16764_v43 = vld [vmem:[%s20757_s26 + $0xb8] sm:$0xff]  }
 0xec8   : > { %v4243_v51 = vmax.f32 %v19138_v49, 0.0  ;;  %v16827_v49 = vld [vmem:[%s20758_s16 + $0x70] ss:$48 sps:$4 sm:$0xff]  }
 0xeca   : > { %v4245_v6 = vrot.slane %v4243_v51, 6 }
 0xecc   : > { %v4247_v5 = vsel %vm1228_vm0, 0.0, %v4245_v6 }
 0xecd   : > { %v4248_v52 = vsel %vm1401_vm4, %v4247_v5, 0.0  ;;  %v14271_v62 = vpack.c.bf16 %v4247_v5, %v4247_v5 }
 0xece   : > { %v4250_v44 = vrot.slane %v4248_v52, 1  ;;  %v4254_v9 = vrot.slane %v4248_v52, 3  ;;  %v4252_v53 = vrot.slane %v4248_v52, 2  ;;  %v4256_v7 = vrot.slane %v4248_v52, 4 }
 0xed0   : > { %v4339_v3 = vpack.c.bf16 %v4250_v44, %v4250_v44  ;;  %v4341_v10 = vpack.c.bf16 %v4254_v9, %v4254_v9  ;;  %v4340_v56 = vpack.c.bf16 %v4252_v53, %v4252_v53  ;;  %v4342_v11 = vpack.c.bf16 %v4256_v7, %v4256_v7 }
 0xed2   : > { %4615 = vmatprep.mubr.bf16.mxu1 %v4339_v3  ;;  %4655 = vmatprep.mubr.bf16.mxu0 %v4341_v10 }
 0xed3   : > { %14272 = vmatmul.mubr.msk.bf16.vlgmr.msra.gmra.mrb[56].mxu1 %vm19079_vm13, %v14271_v62  ;;  %4656 = vmatmul.mubr.bf16.vlgmr.msra.gmra.mrb[80].mxu0 %v4340_v56 }
 0xed4   : > { %15967 = vmatpush3.bf16.msra.mxu1 %v16725_v57  ;;  %15982 = vmatprep.mubr.msk.bf16.mxu1 %vm18115_vm2, %v18113_v1 }
 0xed5   : > { %15968 = vmatprep.subr.bf16.mxu1 %v18113_v1  ;;  %15478 = vmatpush3.bf16.msra.mxu0 %v16734_v17 }
 0xed6   : > { %15479 = vmatprep.subr.bf16.mxu0 %v16737_v19 }
 0xed8   : > { %15969 = vmatpush3.bf16.msra.mxu1 %v16726_v63 }
 0xed9   : > { %15970 = vmatprep.subr.bf16.mxu1 %v18113_v1  ;;  %15480 = vmatpush3.bf16.msra.mxu0 %v16738_v50 }
 0xeda   : > { %15481 = vmatprep.subr.bf16.mxu0 %v16741_v21  ;;  %v16767_v21 = vld [vmem:[%s20757_s26 + $0x110] sm:$0xff]  }
 0xedc   : > { %15971 = vmatpush3.bf16.msra.mxu1 %v16727_v0 }
 0xedd   : > { %15972 = vmatprep.subr.bf16.mxu1 %v18113_v1  ;;  %15482 = vmatpush3.bf16.msra.mxu0 %v16742_v58  ;;  %v16769_v58 = vld [vmem:[%s20757_s26 + $0x120] sm:$0xff]  }
 0xede   : > { %15483 = vmatprep.subr.bf16.mxu0 %v16745_v59  ;;  %v16771_v59 = vld [vmem:[%s20757_s26 + $0x130] sm:$0xff]  }
 0xee0   : > { %15973 = vmatpush3.bf16.msra.mxu1 %v16728_v2 }
 0xee1   : > { %15974 = vmatprep.subr.bf16.mxu1 %v18113_v1  ;;  %15484 = vmatpush3.bf16.msra.mxu0 %v16746_v12 }
 0xee2   : > { %15485 = vmatprep.subr.bf16.mxu0 %v16749_v31  ;;  %v16773_v31 = vld [vmem:[%s20758_s16] ss:$48 sps:$4 sm:$0xff]  }
 0xee4   : > { %15975 = vmatpush3.bf16.msra.mxu1 %v16729_v4 }
 0xee5   : > { %15976 = vmatprep.subr.bf16.mxu1 %v18113_v1  ;;  %15486 = vmatpush3.bf16.msra.mxu0 %v16750_v42  ;;  %v16776_v42 = vld [vmem:[%s20758_s16 + $0x8] ss:$48 sps:$4 sm:$0xff]  }
 0xee6   : > { %15487 = vmatprep.subr.bf16.mxu0 %v16753_v29  ;;  %v16781_v29 = vld [vmem:[%s20758_s16 + $0x64] ss:$48 sps:$4 sm:$0xff]  }
 0xee8   : > { %15977 = vmatpush3.bf16.msra.mxu1 %v16730_v33 }
 0xee9   : > { %15978 = vmatprep.subr.bf16.mxu1 %v18113_v1  ;;  %15488 = vmatpush3.bf16.msra.mxu0 %v16754_v14  ;;  %v16784_v14 = vld [vmem:[%s20758_s16 + $0x6c] ss:$48 sps:$4 sm:$0xff]  }
 0xeea   : > { %15489 = vmatprep.subr.bf16.mxu0 %v16757_v35  ;;  %v16787_v35 = vld [vmem:[%s20758_s16 + $0xc4] ss:$48 sps:$4 sm:$0xff]  }
 0xeec   : > { %15979 = vmatpush3.bf16.msra.mxu1 %v16731_v8 }
 0xeed   : > { %15980 = vmatprep.subr.bf16.mxu1 %v18113_v1  ;;  %15490 = vmatpush3.bf16.msra.mxu0 %v16758_v46  ;;  %v16790_v46 = vld [vmem:[%s20758_s16 + $0xcc] ss:$48 sps:$4 sm:$0xff]  }
 0xeee   : > { %15491 = vmatprep.subr.bf16.mxu0 %v16761_v37  ;;  %v16793_v37 = vld [vmem:[%s20758_s16 + $0x124] ss:$48 sps:$4 sm:$0xff]  }
 0xef0   : > { %15981 = vmatpush3.bf16.msra.mxu1 %v16732_v30 }
 0xef1   : > { %15499 = vmatprep.subr.bf16.mxu1 %v16735_v54  ;;  %15492 = vmatpush3.bf16.msra.mxu0 %v16762_v39  ;;  %v16796_v39 = vld [vmem:[%s20758_s16 + $0x12c] ss:$48 sps:$4 sm:$0xff]  }
 0xef2   : > { %15986 = vmatprep.subr.bf16.mxu0 %v18113_v1 }
 0xef3   : > { %15983 = vmatmul.mubr.bf16.vlgmr.msra.gmra.mrb[60].mxu1 %v4342_v11 }
 0xef4   : > { %15500 = vmatpush3.bf16.msra.mxu1 %v16736_v45 }
 0xef5   : > { %15501 = vmatprep.subr.bf16.mxu1 %v16739_v24  ;;  %v16765_v24 = vld [vmem:[%s20757_s26 + $0x100] sm:$0xff]  }
 0xef8   : > { %15502 = vmatpush3.bf16.msra.mxu1 %v16740_v20  ;;  %v16766_v20 = vld [vmem:[%s20757_s26 + $0x108] sm:$0xff]  }
 0xef9   : > { %15503 = vmatprep.subr.bf16.mxu1 %v16743_v22  ;;  %v16768_v22 = vld [vmem:[%s20757_s26 + $0x118] sm:$0xff]  }
 0xefc   : > { %15504 = vmatpush3.bf16.msra.mxu1 %v16744_v23  ;;  %v16770_v23 = vld [vmem:[%s20757_s26 + $0x128] sm:$0xff]  }
 0xefd   : > { %15505 = vmatprep.subr.bf16.mxu1 %v16747_v60  ;;  %v16772_v60 = vld [vmem:[%s20757_s26 + $0x138] sm:$0xff]  }
 0xf00   : > { %15506 = vmatpush3.bf16.msra.mxu1 %v16748_v26 }
 0xf01   : > { %15507 = vmatprep.subr.bf16.mxu1 %v16751_v13  ;;  %v16775_v13 = vld [vmem:[%s20758_s16 + $0x4] ss:$48 sps:$4 sm:$0xff]  }
 0xf04   : > { %15508 = vmatpush3.bf16.msra.mxu1 %v16752_v28  ;;  %v16778_v28 = vld [vmem:[%s20758_s16 + $0xc] ss:$48 sps:$4 sm:$0xff]  }
 0xf05   : > { %15509 = vmatprep.subr.bf16.mxu1 %v16755_v32  ;;  %v16779_v32 = vld [vmem:[%s20758_s16 + $0x60] ss:$48 sps:$4 sm:$0xff]  }
 0xf08   : > { %15510 = vmatpush3.bf16.msra.mxu1 %v16756_v38  ;;  %v16782_v38 = vld [vmem:[%s20758_s16 + $0x68] ss:$48 sps:$4 sm:$0xff]  }
 0xf09   : > { %15511 = vmatprep.subr.bf16.mxu1 %v16759_v34  ;;  %v16785_v34 = vld [vmem:[%s20758_s16 + $0xc0] ss:$48 sps:$4 sm:$0xff]  }
 0xf0c   : > { %15512 = vmatpush3.bf16.msra.mxu1 %v16760_v36  ;;  %v16788_v36 = vld [vmem:[%s20758_s16 + $0xc8] ss:$48 sps:$4 sm:$0xff]  }
 0xf0d   : > { %15513 = vmatprep.subr.bf16.mxu1 %v16763_v40  ;;  %v16791_v40 = vld [vmem:[%s20758_s16 + $0x120] ss:$48 sps:$4 sm:$0xff]  }
 0xf10   : > { %15514 = vmatpush3.bf16.msra.mxu1 %v16764_v43  ;;  %v16794_v43 = vld [vmem:[%s20758_s16 + $0x128] ss:$48 sps:$4 sm:$0xff]  }
 0xf11   : > { %5743 = vmatprep.subr.bf16.mxu1 %v16775_v13  ;;  %v16824_v13 = vld [vmem:[%s20758_s16 + $0x18] ss:$48 sps:$4 sm:$0xff]  }
 0xfa6   : > { %v15440_v48 = vpop.f32.mrb[56].mxu1  ;;  %v15462_v6 = vpop.f32.mrb[80].mxu0 }
 0xfa7   : > { %v15441_v5 = vpop.f32.mrb[57].mxu1  ;;  %v15463_v52 = vpop.f32.mrb[81].mxu0 }
 0xfa8   : > { %v15442_v44 = vadd.f32 %v15441_v5, %v15440_v48  ;;  %v15464_v9 = vadd.f32 %v15463_v52, %v15462_v6  ;;  %v15443_v53 = vpop.f32.mrb[58].mxu1  ;;  %v15465_v3 = vpop.f32.mrb[82].mxu0  ;;  %v16799_v48 = vld [vmem:[%s20758_s16 + $0x184] ss:$48 sps:$4 sm:$0xff]   ;;  %v16802_v6 = vld [vmem:[%s20758_s16 + $0x18c] ss:$48 sps:$4 sm:$0xff]  }
 0xfa9   : > { %v15444_v10 = vpop.f32.mrb[59].mxu1  ;;  %v15466_v56 = vpop.f32.mrb[83].mxu0  ;;  %v16797_v5 = vld [vmem:[%s20758_s16 + $0x180] ss:$48 sps:$4 sm:$0xff]   ;;  %v16800_v52 = vld [vmem:[%s20758_s16 + $0x188] ss:$48 sps:$4 sm:$0xff]  }
 0xfaa   : > { %v4658_v57 = vadd.f32 %v15464_v9, %v15442_v44  ;;  %v16805_v44 = vld [vmem:[%s20758_s16 + $0x1e4] ss:$48 sps:$4 sm:$0xff]   ;;  %v16808_v9 = vld [vmem:[%s20758_s16 + $0x1ec] ss:$48 sps:$4 sm:$0xff]   ;;  %v16803_v53 = vld [vmem:[%s20758_s16 + $0x1e0] ss:$48 sps:$4 sm:$0xff]  }
 0xfab   : > { %v16806_v3 = vld [vmem:[%s20758_s16 + $0x1e8] ss:$48 sps:$4 sm:$0xff]   ;;  %v16811_v10 = vld [vmem:[%s20758_s16 + $0x244] ss:$48 sps:$4 sm:$0xff]   ;;  %v16814_v56 = vld [vmem:[%s20758_s16 + $0x24c] ss:$48 sps:$4 sm:$0xff]  }
 0xfc6   : > { %v4697_v62 = vpop.f32.mrb[60].mxu1 }
 0xfc7   : > { %v4698_v63 = vadd.f32 %v4697_v62, %v4658_v57  ;;  %v15984_v0 = vpop.f32.mrb[61].mxu1  ;;  %v16809_v57 = vld [vmem:[%s20758_s16 + $0x240] ss:$48 sps:$4 sm:$0xff]   ;;  %v16812_v62 = vld [vmem:[%s20758_s16 + $0x248] ss:$48 sps:$4 sm:$0xff]  }
 0xfc8   : > { %v4700_v2 = vpop.f32.mrb[62].mxu1  ;;  %v16820_v0 = vld [vmem:[%s20758_s16 + $0x2ac] ss:$48 sps:$4 sm:$0xff]  }
 0xfc9   : > { %v4703_v4 = vmax.f32 %v4698_v63, 0.0  ;;  %v15985_v33 = vpop.f32.mrb[63].mxu1  ;;  %v16817_v63 = vld [vmem:[%s20758_s16 + $0x2a4] ss:$48 sps:$4 sm:$0xff]   ;;  %v16815_v2 = vld [vmem:[%s20758_s16 + $0x2a0] ss:$48 sps:$4 sm:$0xff]  }
 0xfca   : > { %v16823_v33 = vld [vmem:[%s20758_s16 + $0x14] ss:$48 sps:$4 sm:$0xff]  }
 0xfcb   : > { %v4705_v8 = vrot.slane %v4703_v4, 6  ;;  %v16818_v4 = vld [vmem:[%s20758_s16 + $0x2a8] ss:$48 sps:$4 sm:$0xff]  }
 0xfcd   : > { %v4707_v30 = vsel %vm1228_vm0, 0.0, %v4705_v8  ;;  %v16826_v8 = vld [vmem:[%s20758_s16 + $0x1c] ss:$48 sps:$4 sm:$0xff]  }
 0xfce   : > { %v4708_v7 = vsel %vm1401_vm4, %v4707_v30, 0.0  ;;  %v14314_v50 = vpack.c.bf16 %v4707_v30, %v4707_v30 }
 0xfcf   : > { %v4710_v11 = vrot.slane %v4708_v7, 1  ;;  %v4714_v41 = vrot.slane %v4708_v7, 3  ;;  %v4712_v17 = vrot.slane %v4708_v7, 2  ;;  %v4716_v12 = vrot.slane %v4708_v7, 4 }
 0xfd1   : > { %v4799_v54 = vpack.c.bf16 %v4710_v11, %v4710_v11  ;;  %v4801_v45 = vpack.c.bf16 %v4714_v41, %v4714_v41  ;;  %v4800_v19 = vpack.c.bf16 %v4712_v17, %v4712_v17  ;;  %v4802_v26 = vpack.c.bf16 %v4716_v12, %v4716_v12 }
 0xfd3   : > { %5075 = vmatprep.mubr.bf16.mxu0 %v4799_v54  ;;  %5115 = vmatprep.mubr.bf16.mxu1 %v4801_v45 }
 0xfd4   : > { %14315 = vmatmul.mubr.msk.bf16.vlgmr.msra.gmra.mrb[84].mxu0 %vm19079_vm13, %v14314_v50  ;;  %5116 = vmatmul.mubr.bf16.vlgmr.msra.gmra.mrb[64].mxu1 %v4800_v19 }
 0xfd5   : > { %15987 = vmatpush3.bf16.msra.mxu0 %v16765_v24  ;;  %16002 = vmatprep.mubr.msk.bf16.mxu0 %vm18115_vm2, %v18113_v1 }
 0xfd6   : > { %15988 = vmatprep.subr.bf16.mxu0 %v18113_v1  ;;  %5775 = vmatprep.mubr.bf16.mxu1 %v18116_v15 }
 0xfd7   : > { %5744 = vmatpush1.bf16.msra.mxu1 %v16773_v31  ;;  %v16821_v31 = vld [vmem:[%s20758_s16 + $0x10] ss:$48 sps:$4 sm:$0xff]  }
 0xfd8   : > { %5745 = vmatprep.subr.bf16.mxu1 %v16781_v29  ;;  %v16832_v29 = vld [vmem:[%s20758_s16 + $0x7c] ss:$48 sps:$4 sm:$0xff]  }
 0xfd9   : > { %15989 = vmatpush3.bf16.msra.mxu0 %v16766_v20 }
 0xfda   : > { %15990 = vmatprep.subr.bf16.mxu0 %v18113_v1 }
 0xfdb   : > { %5746 = vmatpush1.bf16.msra.mxu1 %v16779_v32  ;;  %v16838_v32 = vld [vmem:[%s20758_s16 + $0xdc] ss:$48 sps:$4 sm:$0xff]  }
 0xfdc   : > { %5747 = vmatprep.subr.bf16.mxu1 %v16787_v35  ;;  %v16836_v35 = vld [vmem:[%s20758_s16 + $0xd8] ss:$48 sps:$4 sm:$0xff]  }
 0xfdd   : > { %15991 = vmatpush3.bf16.msra.mxu0 %v16767_v21 }
 0xfde   : > { %15992 = vmatprep.subr.bf16.mxu0 %v18113_v1 }
 0xfdf   : > { %5748 = vmatpush1.bf16.msra.mxu1 %v16785_v34  ;;  %v16844_v34 = vld [vmem:[%s20758_s16 + $0x13c] ss:$48 sps:$4 sm:$0xff]  }
 0xfe0   : > { %5749 = vmatprep.subr.bf16.mxu1 %v16793_v37  ;;  %v16842_v37 = vld [vmem:[%s20758_s16 + $0x138] ss:$48 sps:$4 sm:$0xff]  }
 0xfe1   : > { %15993 = vmatpush3.bf16.msra.mxu0 %v16768_v22 }
 0xfe2   : > { %15994 = vmatprep.subr.bf16.mxu0 %v18113_v1 }
 0xfe3   : > { %5750 = vmatpush1.bf16.msra.mxu1 %v16791_v40  ;;  %v16850_v40 = vld [vmem:[%s20758_s16 + $0x19c] ss:$48 sps:$4 sm:$0xff]  }
 0xfe4   : > { %5751 = vmatprep.subr.bf16.mxu1 %v16799_v48  ;;  %v16848_v48 = vld [vmem:[%s20758_s16 + $0x198] ss:$48 sps:$4 sm:$0xff]  }
 0xfe5   : > { %15995 = vmatpush3.bf16.msra.mxu0 %v16769_v58 }
 0xfe6   : > { %15996 = vmatprep.subr.bf16.mxu0 %v18113_v1 }
 0xfe7   : > { %5752 = vmatpush1.bf16.msra.mxu1 %v16797_v5  ;;  %v16856_v5 = vld [vmem:[%s20758_s16 + $0x1fc] ss:$48 sps:$4 sm:$0xff]  }
 0xfe8   : > { %5753 = vmatprep.subr.bf16.mxu1 %v16805_v44  ;;  %v16854_v44 = vld [vmem:[%s20758_s16 + $0x1f8] ss:$48 sps:$4 sm:$0xff]  }
 0xfe9   : > { %15997 = vmatpush3.bf16.msra.mxu0 %v16770_v23 }
 0xfea   : > { %15998 = vmatprep.subr.bf16.mxu0 %v18113_v1 }
 0xfeb   : > { %5754 = vmatpush1.bf16.msra.mxu1 %v16803_v53  ;;  %v16862_v53 = vld [vmem:[%s20758_s16 + $0x25c] ss:$48 sps:$4 sm:$0xff]  }
 0xfec   : > { %5755 = vmatprep.subr.bf16.mxu1 %v16811_v10  ;;  %v16860_v10 = vld [vmem:[%s20758_s16 + $0x258] ss:$48 sps:$4 sm:$0xff]  }
 0xfed   : > { %15999 = vmatpush3.bf16.msra.mxu0 %v16771_v59 }
 0xfee   : > { %16000 = vmatprep.subr.bf16.mxu0 %v18113_v1 }
 0xfef   : > { %5756 = vmatpush1.bf16.msra.mxu1 %v16809_v57  ;;  %v16868_v57 = vld [vmem:[%s20758_s16 + $0x2bc] ss:$48 sps:$4 sm:$0xff]  }
 0xff0   : > { %5757 = vmatprep.subr.bf16.mxu1 %v16817_v63  ;;  %v16866_v63 = vld [vmem:[%s20758_s16 + $0x2b8] ss:$48 sps:$4 sm:$0xff]  }
 0xff1   : > { %16001 = vmatpush3.bf16.msra.mxu0 %v16772_v60 }
 0xff2   : > { %5784 = vmatprep.subr.bf16.mxu0 %v16778_v28  ;;  %v16829_v28 = vld [vmem:[%s20758_s16 + $0x74] ss:$48 sps:$4 sm:$0xff]  }
 0xff3   : > { %5758 = vmatpush1.bf16.msra.mxu1 %v16815_v2  ;;  %v16874_v2 = vld [vmem:[%s20758_s16 + $0x2c] ss:$48 sps:$4 sm:$0xff]  }
 0xff4   : > { %16003 = vmatmul.mubr.bf16.vlgmr.msra.gmra.mrb[88].mxu0 %v4802_v26  ;;  %5825 = vmatprep.subr.bf16.mxu1 %v16823_v33  ;;  %v16872_v33 = vld [vmem:[%s20758_s16 + $0x28] ss:$48 sps:$4 sm:$0xff]  }
 0xff5   : > { %5816 = vmatprep.mubr.bf16.mxu0 %v18116_v15  ;;  %5785 = vmatpush1.bf16.msra.mxu0 %v16776_v42 }
 0xff6   : > { %5786 = vmatprep.subr.bf16.mxu0 %v16784_v14  ;;  %v16835_v14 = vld [vmem:[%s20758_s16 + $0xd4] ss:$48 sps:$4 sm:$0xff]  }
 0xff9   : > { %5787 = vmatpush1.bf16.msra.mxu0 %v16782_v38  ;;  %v16833_v38 = vld [vmem:[%s20758_s16 + $0xd0] ss:$48 sps:$4 sm:$0xff]  }
 0xffa   : > { %5788 = vmatprep.subr.bf16.mxu0 %v16790_v46  ;;  %v16841_v46 = vld [vmem:[%s20758_s16 + $0x134] ss:$48 sps:$4 sm:$0xff]  }
 0xffd   : > { %5789 = vmatpush1.bf16.msra.mxu0 %v16788_v36  ;;  %v16839_v36 = vld [vmem:[%s20758_s16 + $0x130] ss:$48 sps:$4 sm:$0xff]  }
 0xffe   : > { %5790 = vmatprep.subr.bf16.mxu0 %v16796_v39  ;;  %v16847_v39 = vld [vmem:[%s20758_s16 + $0x194] ss:$48 sps:$4 sm:$0xff]  }
0x1001   : > { %5791 = vmatpush1.bf16.msra.mxu0 %v16794_v43  ;;  %v16845_v43 = vld [vmem:[%s20758_s16 + $0x190] ss:$48 sps:$4 sm:$0xff]  }
0x1002   : > { %5792 = vmatprep.subr.bf16.mxu0 %v16802_v6  ;;  %v16853_v6 = vld [vmem:[%s20758_s16 + $0x1f4] ss:$48 sps:$4 sm:$0xff]  }
0x1005   : > { %5793 = vmatpush1.bf16.msra.mxu0 %v16800_v52  ;;  %v16851_v52 = vld [vmem:[%s20758_s16 + $0x1f0] ss:$48 sps:$4 sm:$0xff]  }
0x1006   : > { %5794 = vmatprep.subr.bf16.mxu0 %v16808_v9  ;;  %v16859_v9 = vld [vmem:[%s20758_s16 + $0x254] ss:$48 sps:$4 sm:$0xff]  }
0x1009   : > { %5795 = vmatpush1.bf16.msra.mxu0 %v16806_v3  ;;  %v16857_v3 = vld [vmem:[%s20758_s16 + $0x250] ss:$48 sps:$4 sm:$0xff]  }
0x100a   : > { %5796 = vmatprep.subr.bf16.mxu0 %v16814_v56  ;;  %v16865_v56 = vld [vmem:[%s20758_s16 + $0x2b4] ss:$48 sps:$4 sm:$0xff]  }
0x100d   : > { %5797 = vmatpush1.bf16.msra.mxu0 %v16812_v62  ;;  %v16863_v62 = vld [vmem:[%s20758_s16 + $0x2b0] ss:$48 sps:$4 sm:$0xff]  }
0x100e   : > { %5798 = vmatprep.subr.bf16.mxu0 %v16820_v0  ;;  %v16871_v0 = vld [vmem:[%s20758_s16 + $0x24] ss:$48 sps:$4 sm:$0xff]  }
0x1011   : > { %5799 = vmatpush1.bf16.msra.mxu0 %v16818_v4  ;;  %v16869_v4 = vld [vmem:[%s20758_s16 + $0x20] ss:$48 sps:$4 sm:$0xff]  }
0x1012   : > { %5866 = vmatprep.subr.bf16.mxu0 %v16826_v8  ;;  %v16877_v8 = vld [vmem:[%s20758_s16 + $0x84] ss:$48 sps:$4 sm:$0xff]  }
0x10a7   : > { %v15493_v30 = vpop.f32.mrb[84].mxu0  ;;  %v15515_v7 = vpop.f32.mrb[64].mxu1 }
0x10a8   : > { %v15494_v11 = vpop.f32.mrb[85].mxu0  ;;  %v15516_v41 = vpop.f32.mrb[65].mxu1 }
0x10a9   : > { %v15495_v17 = vadd.f32 %v15494_v11, %v15493_v30  ;;  %v15517_v54 = vadd.f32 %v15516_v41, %v15515_v7  ;;  %v15496_v45 = vpop.f32.mrb[86].mxu0  ;;  %v15518_v19 = vpop.f32.mrb[66].mxu1  ;;  %v16880_v30 = vld [vmem:[%s20758_s16 + $0x8c] ss:$48 sps:$4 sm:$0xff]   ;;  %v16875_v7 = vld [vmem:[%s20758_s16 + $0x80] ss:$48 sps:$4 sm:$0xff]  }
0x10aa   : > { %v15497_v24 = vpop.f32.mrb[87].mxu0  ;;  %v15519_v50 = vpop.f32.mrb[67].mxu1  ;;  %v16878_v11 = vld [vmem:[%s20758_s16 + $0x88] ss:$48 sps:$4 sm:$0xff]   ;;  %v16883_v41 = vld [vmem:[%s20758_s16 + $0xe4] ss:$48 sps:$4 sm:$0xff]  }
0x10ab   : > { %v5118_v20 = vadd.f32 %v15517_v54, %v15495_v17  ;;  %v16886_v17 = vld [vmem:[%s20758_s16 + $0xec] ss:$48 sps:$4 sm:$0xff]   ;;  %v16881_v54 = vld [vmem:[%s20758_s16 + $0xe0] ss:$48 sps:$4 sm:$0xff]   ;;  %v16884_v45 = vld [vmem:[%s20758_s16 + $0xe8] ss:$48 sps:$4 sm:$0xff]  }
0x10ac   : > { %v16889_v19 = vld [vmem:[%s20758_s16 + $0x144] ss:$48 sps:$4 sm:$0xff]   ;;  %v16892_v24 = vld [vmem:[%s20758_s16 + $0x14c] ss:$48 sps:$4 sm:$0xff]   ;;  %v16887_v50 = vld [vmem:[%s20758_s16 + $0x140] ss:$48 sps:$4 sm:$0xff]  }
0x10c7   : > { %v5157_v21 = vpop.f32.mrb[88].mxu0 }
0x10c8   : > { %v5158_v22 = vadd.f32 %v5157_v21, %v5118_v20  ;;  %v16004_v58 = vpop.f32.mrb[89].mxu0  ;;  %v16890_v20 = vld [vmem:[%s20758_s16 + $0x148] ss:$48 sps:$4 sm:$0xff]   ;;  %v16895_v21 = vld [vmem:[%s20758_s16 + $0x1a4] ss:$48 sps:$4 sm:$0xff]  }
0x10c9   : > { %v5160_v23 = vpop.f32.mrb[90].mxu0  ;;  %v16893_v58 = vld [vmem:[%s20758_s16 + $0x1a0] ss:$48 sps:$4 sm:$0xff]  }
0x10ca   : > { %v5163_v59 = vmax.f32 %v5158_v22, 0.0  ;;  %v16005_v60 = vpop.f32.mrb[91].mxu0  ;;  %v16898_v22 = vld [vmem:[%s20758_s16 + $0x1ac] ss:$48 sps:$4 sm:$0xff]   ;;  %v16896_v23 = vld [vmem:[%s20758_s16 + $0x1a8] ss:$48 sps:$4 sm:$0xff]  }
0x10cb   : > { %v16904_v60 = vld [vmem:[%s20758_s16 + $0x20c] ss:$48 sps:$4 sm:$0xff]  }
0x10cc   : > { %v5164_v12 = vadd.f32 %v5163_v59, %v4243_v51  ;;  %v16830_v51 = vld [vmem:[%s20758_s16 + $0x78] ss:$48 sps:$4 sm:$0xff]   ;;  %v16901_v59 = vld [vmem:[%s20758_s16 + $0x204] ss:$48 sps:$4 sm:$0xff]  }
0x10ce   : > { %v19256_v26 = vmax.f32 %v5164_v12, 0.0  ;;  %v16899_v12 = vld [vmem:[%s20758_s16 + $0x200] ss:$48 sps:$4 sm:$0xff]  }
0x10d0   : > { %v19262_v42 = vpack.c.bf16 %v19256_v26, %v19256_v26 }
0x10d2   : > { %5776 = vmatmul.mubr.bf16.vlgmr.msra.gmra.mrb[68].mxu1 %v19262_v42  ;;  %5817 = vmatmul.mubr.bf16.vlgmr.msra.gmra.mrb[92].mxu0 %v19262_v42 }
0x10d3   : > { %5826 = vmatpush1.bf16.msra.mxu1 %v16821_v31  ;;  %5867 = vmatpush1.bf16.msra.mxu0 %v16824_v13  ;;  %v16902_v31 = vld [vmem:[%s20758_s16 + $0x208] ss:$48 sps:$4 sm:$0xff]   ;;  %v16907_v13 = vld [vmem:[%s20758_s16 + $0x264] ss:$48 sps:$4 sm:$0xff]  }
0x10d4   : > { %5827 = vmatprep.subr.bf16.mxu1 %v16829_v28  ;;  %5868 = vmatprep.subr.bf16.mxu0 %v16832_v29  ;;  %v16910_v28 = vld [vmem:[%s20758_s16 + $0x26c] ss:$48 sps:$4 sm:$0xff]   ;;  %v16905_v29 = vld [vmem:[%s20758_s16 + $0x260] ss:$48 sps:$4 sm:$0xff]  }
0x10d5   : > { %5857 = vmatprep.mubr.bf16.mxu1 %v18116_v15  ;;  %5898 = vmatprep.mubr.bf16.mxu0 %v18116_v15 }
0x10d7   : > { %5828 = vmatpush1.bf16.msra.mxu1 %v16827_v49  ;;  %5869 = vmatpush1.bf16.msra.mxu0 %v16830_v51  ;;  %v16908_v49 = vld [vmem:[%s20758_s16 + $0x268] ss:$48 sps:$4 sm:$0xff]   ;;  %v16913_v51 = vld [vmem:[%s20758_s16 + $0x2c4] ss:$48 sps:$4 sm:$0xff]  }
0x10d8   : > { %5829 = vmatprep.subr.bf16.mxu1 %v16835_v14  ;;  %5870 = vmatprep.subr.bf16.mxu0 %v16838_v32  ;;  %v16916_v14 = vld [vmem:[%s20758_s16 + $0x2cc] ss:$48 sps:$4 sm:$0xff]   ;;  %v16911_v32 = vld [vmem:[%s20758_s16 + $0x2c0] ss:$48 sps:$4 sm:$0xff]  }
0x10db   : > { %5830 = vmatpush1.bf16.msra.mxu1 %v16833_v38  ;;  %5871 = vmatpush1.bf16.msra.mxu0 %v16836_v35  ;;  %v16914_v38 = vld [vmem:[%s20758_s16 + $0x2c8] ss:$48 sps:$4 sm:$0xff]  }
0x10dc   : > { %5831 = vmatprep.subr.bf16.mxu1 %v16841_v46  ;;  %5872 = vmatprep.subr.bf16.mxu0 %v16844_v34 }
0x10df   : > { %5832 = vmatpush1.bf16.msra.mxu1 %v16839_v36  ;;  %5873 = vmatpush1.bf16.msra.mxu0 %v16842_v37 }
0x10e0   : > { %5833 = vmatprep.subr.bf16.mxu1 %v16847_v39  ;;  %5874 = vmatprep.subr.bf16.mxu0 %v16850_v40 }
0x10e3   : > { %5834 = vmatpush1.bf16.msra.mxu1 %v16845_v43  ;;  %5875 = vmatpush1.bf16.msra.mxu0 %v16848_v48 }
0x10e4   : > { %5835 = vmatprep.subr.bf16.mxu1 %v16853_v6  ;;  %5876 = vmatprep.subr.bf16.mxu0 %v16856_v5 }
0x10e7   : > { %5836 = vmatpush1.bf16.msra.mxu1 %v16851_v52  ;;  %5877 = vmatpush1.bf16.msra.mxu0 %v16854_v44 }
0x10e8   : > { %5837 = vmatprep.subr.bf16.mxu1 %v16859_v9  ;;  %5878 = vmatprep.subr.bf16.mxu0 %v16862_v53 }
0x10eb   : > { %5838 = vmatpush1.bf16.msra.mxu1 %v16857_v3  ;;  %5879 = vmatpush1.bf16.msra.mxu0 %v16860_v10 }
0x10ec   : > { %5839 = vmatprep.subr.bf16.mxu1 %v16865_v56  ;;  %5880 = vmatprep.subr.bf16.mxu0 %v16868_v57 }
0x10ef   : > { %5840 = vmatpush1.bf16.msra.mxu1 %v16863_v62  ;;  %5881 = vmatpush1.bf16.msra.mxu0 %v16866_v63 }
0x10f0   : > { %5907 = vmatprep.subr.bf16.mxu1 %v16871_v0  ;;  %5948 = vmatprep.subr.bf16.mxu0 %v16874_v2 }
0x10f2   : > { %5858 = vmatmul.mubr.bf16.vlgmr.msra.gmra.mrb[72].mxu1 %v19262_v42  ;;  %5899 = vmatmul.mubr.bf16.vlgmr.msra.gmra.mrb[96].mxu0 %v19262_v42 }
0x10f3   : > { %5908 = vmatpush1.bf16.msra.mxu1 %v16869_v4  ;;  %5949 = vmatpush1.bf16.msra.mxu0 %v16872_v33 }
0x10f4   : > { %5909 = vmatprep.subr.bf16.mxu1 %v16877_v8  ;;  %5950 = vmatprep.subr.bf16.mxu0 %v16880_v30 }
0x10f5   : > { %5939 = vmatprep.mubr.bf16.mxu1 %v18116_v15  ;;  %5980 = vmatprep.mubr.bf16.mxu0 %v18116_v15 }
0x10f7   : > { %5910 = vmatpush1.bf16.msra.mxu1 %v16875_v7  ;;  %5951 = vmatpush1.bf16.msra.mxu0 %v16878_v11 }
0x10f8   : > { %5911 = vmatprep.subr.bf16.mxu1 %v16883_v41  ;;  %5952 = vmatprep.subr.bf16.mxu0 %v16886_v17 }
0x10fb   : > { %5912 = vmatpush1.bf16.msra.mxu1 %v16881_v54  ;;  %5953 = vmatpush1.bf16.msra.mxu0 %v16884_v45 }
0x10fc   : > { %5913 = vmatprep.subr.bf16.mxu1 %v16889_v19  ;;  %5954 = vmatprep.subr.bf16.mxu0 %v16892_v24 }
0x10ff   : > { %5914 = vmatpush1.bf16.msra.mxu1 %v16887_v50  ;;  %5955 = vmatpush1.bf16.msra.mxu0 %v16890_v20 }
0x1100   : > { %5915 = vmatprep.subr.bf16.mxu1 %v16895_v21  ;;  %5956 = vmatprep.subr.bf16.mxu0 %v16898_v22  ;;  %v16919_v21 = vld [vmem:[%s20759_s10 + $0x4] ss:$8 sps:$4 sm:$0xff]  }
0x1103   : > { %5916 = vmatpush1.bf16.msra.mxu1 %v16893_v58  ;;  %5957 = vmatpush1.bf16.msra.mxu0 %v16896_v23 }
0x1104   : > { %5917 = vmatprep.subr.bf16.mxu1 %v16901_v59  ;;  %5958 = vmatprep.subr.bf16.mxu0 %v16904_v60  ;;  %v19348_v60 = vld [vmem:[%s20760_s3] sm:$0x1]  ;;  %s18124_s3 = smov 124  }
0x1107   : > { %5918 = vmatpush1.bf16.msra.mxu1 %v16899_v12  ;;  %5959 = vmatpush1.bf16.msra.mxu0 %v16902_v31  ;;  %v16917_v12 = vld [vmem:[%s20759_s10] ss:$8 sps:$4 sm:$0xff]   ;;  %v16922_v31 = vld [vmem:[%s20759_s10 + $0x14] ss:$8 sps:$4 sm:$0xff]  }
0x1108   : > { %5919 = vmatprep.subr.bf16.mxu1 %v16907_v13  ;;  %5960 = vmatprep.subr.bf16.mxu0 %v16910_v28  ;;  %v16920_v13 = vld [vmem:[%s20759_s10 + $0x10] ss:$8 sps:$4 sm:$0xff]   ;;  %v16925_v28 = vld [vmem:[%s20759_s10 + $0x24] ss:$8 sps:$4 sm:$0xff]  }
0x110b   : > { %5920 = vmatpush1.bf16.msra.mxu1 %v16905_v29  ;;  %5961 = vmatpush1.bf16.msra.mxu0 %v16908_v49  ;;  %v16923_v29 = vld [vmem:[%s20759_s10 + $0x20] ss:$8 sps:$4 sm:$0xff]   ;;  %v16928_v49 = vld [vmem:[%s20759_s10 + $0x34] ss:$8 sps:$4 sm:$0xff]  }
0x110c   : > { %5921 = vmatprep.subr.bf16.mxu1 %v16913_v51  ;;  %5962 = vmatprep.subr.bf16.mxu0 %v16916_v14  ;;  %v16926_v51 = vld [vmem:[%s20759_s10 + $0x30] ss:$8 sps:$4 sm:$0xff]   ;;  %v16931_v14 = vld [vmem:[%s20759_s10 + $0x44] ss:$8 sps:$4 sm:$0xff]  }
0x110f   : > { %5922 = vmatpush1.bf16.msra.mxu1 %v16911_v32  ;;  %5963 = vmatpush1.bf16.msra.mxu0 %v16914_v38  ;;  %v16929_v32 = vld [vmem:[%s20759_s10 + $0x40] ss:$8 sps:$4 sm:$0xff]   ;;  %v16934_v38 = vld [vmem:[%s20759_s10 + $0x54] ss:$8 sps:$4 sm:$0xff]  }
0x1112   : > { %5940 = vmatmul.mubr.bf16.vlgmr.msra.gmra.mrb[76].mxu1 %v19262_v42  ;;  %5981 = vmatmul.mubr.bf16.vlgmr.msra.gmra.mrb[100].mxu0 %v19262_v42 }
0x1113   : > { %6058 = vmatprep.mubr.bf16.mxu1 %v18116_v15  ;;  %7336 = vmatprep.mubr.bf16.mxu0 %v18116_v15 }
0x11a5   : > { %v5777_v35 = vpop.f32.mrb[68].mxu1  ;;  %v5818_v46 = vpop.f32.mrb[92].mxu0 }
0x11a6   : > { %v5991_v34 = vrot.slane %v5818_v46, 6  ;;  %v5779_v36 = vpop.f32.mrb[69].mxu1  ;;  %v5820_v37 = vpop.f32.mrb[93].mxu0  ;;  %v16937_v46 = vld [vmem:[%s20759_s10 + $0x64] ss:$8 sps:$4 sm:$0xff]  }
0x11a7   : > { %v5992_v39 = vrot.slane %v5820_v37, 6  ;;  %v5781_v40 = vpop.f32.mrb[70].mxu1  ;;  %v5822_v43 = vpop.f32.mrb[94].mxu0  ;;  %v16938_v37 = vld [vmem:[%s20759_s10 + $0x70] ss:$8 sps:$4 sm:$0xff]  }
0x11a8   : > { %v6007_v48 = vsel %vm1228_vm0, %v5777_v35, %v5991_v34  ;;  %v5782_v6 = vpop.f32.mrb[71].mxu1  ;;  %v5823_v5 = vpop.f32.mrb[95].mxu0  ;;  %v16932_v35 = vld [vmem:[%s20759_s10 + $0x50] ss:$8 sps:$4 sm:$0xff]   ;;  %v16935_v34 = vld [vmem:[%s20759_s10 + $0x60] ss:$8 sps:$4 sm:$0xff]  }
0x11a9   : > { %v6008_v52 = vsel %vm1228_vm0, %v5779_v36, %v5992_v39  ;;  %v16940_v36 = vld [vmem:[%s20759_s10 + $0x74] ss:$8 sps:$4 sm:$0xff]   ;;  %v16943_v39 = vld [vmem:[%s20759_s10 + $0x84] ss:$8 sps:$4 sm:$0xff]   ;;  %v16941_v40 = vld [vmem:[%s20759_s10 + $0x80] ss:$8 sps:$4 sm:$0xff]  }
0x11aa   : > { %v16946_v43 = vld [vmem:[%s20759_s10 + $0x94] ss:$8 sps:$4 sm:$0xff]   ;;  %v16949_v6 = vld [vmem:[%s20759_s10 + $0xa4] ss:$8 sps:$4 sm:$0xff]   ;;  %v16947_v5 = vld [vmem:[%s20759_s10 + $0xa0] ss:$8 sps:$4 sm:$0xff]  }
0x11c5   : > { %v5859_v44 = vpop.f32.mrb[72].mxu1  ;;  %v5900_v42 = vpop.f32.mrb[96].mxu0 }
0x11c6   : > { %v5997_v9 = vrot.slane %v5859_v44, 4  ;;  %v6003_v53 = vrot.slane %v5900_v42, 2  ;;  %v5861_v3 = vpop.f32.mrb[73].mxu1  ;;  %v5902_v10 = vpop.f32.mrb[97].mxu0  ;;  %v16950_v44 = vld [vmem:[%s20759_s10 + $0xb0] ss:$8 sps:$4 sm:$0xff]  }
0x11c7   : > { %v5998_v56 = vrot.slane %v5861_v3, 4  ;;  %v6004_v57 = vrot.slane %v5902_v10, 2  ;;  %v5863_v62 = vpop.f32.mrb[74].mxu1  ;;  %v5904_v63 = vpop.f32.mrb[98].mxu0  ;;  %v16955_v42 = vld [vmem:[%s20759_s10 + $0xc4] ss:$8 sps:$4 sm:$0xff]  }
0x11c8   : > { %v5864_v0 = vpop.f32.mrb[75].mxu1  ;;  %v5905_v2 = vpop.f32.mrb[99].mxu0  ;;  %v6009_v4 = vsel %vm1401_vm4, %v6007_v48, %v5997_v9  ;;  %v16944_v48 = vld [vmem:[%s20759_s10 + $0x90] ss:$8 sps:$4 sm:$0xff]   ;;  %v16953_v9 = vld [vmem:[%s20759_s10 + $0xc0] ss:$8 sps:$4 sm:$0xff]  }
0x11c9   : > { %v6011_v33 = vsel %vm1347_vm8, %v6009_v4, %v6003_v53  ;;  %v6010_v8 = vsel %vm1401_vm4, %v6008_v52, %v5998_v56  ;;  %v16952_v52 = vld [vmem:[%s20759_s10 + $0xb4] ss:$8 sps:$4 sm:$0xff]   ;;  %v16956_v3 = vld [vmem:[%s20759_s10 + $0xd0] ss:$8 sps:$4 sm:$0xff]   ;;  %v16961_v10 = vld [vmem:[%s20759_s10 + $0xe4] ss:$8 sps:$4 sm:$0xff]  }
0x11ca   : > { %v6012_v30 = vsel %vm1347_vm8, %v6010_v8, %v6004_v57  ;;  %v16958_v53 = vld [vmem:[%s20759_s10 + $0xd4] ss:$8 sps:$4 sm:$0xff]   ;;  %v16959_v56 = vld [vmem:[%s20759_s10 + $0xe0] ss:$8 sps:$4 sm:$0xff]   ;;  %v16962_v62 = vld [vmem:[%s20759_s10 + $0xf0] ss:$8 sps:$4 sm:$0xff]  }
0x11cb   : > { %v16964_v57 = vld [vmem:[%s20759_s10 + $0xf4] ss:$8 sps:$4 sm:$0xff]   ;;  %v16967_v63 = vld [vmem:[%s20759_s10 + $0x104] ss:$8 sps:$4 sm:$0xff]  }
0x11e5   : > { %v5941_v7 = vpop.f32.mrb[76].mxu1  ;;  %v5982_v11 = vpop.f32.mrb[100].mxu0 }
0x11e6   : > { %v6014_v41 = vpack.c.bf16 %v5941_v7, %v6011_v33  ;;  %v7274_v17 = vpack.c.bf16 %v5982_v11, %v5982_v11  ;;  %v5943_v54 = vpop.f32.mrb[77].mxu1  ;;  %v5984_v45 = vpop.f32.mrb[101].mxu0 }
0x11e7   : > { %v6015_v19 = vpack.c.bf16 %v5943_v54, %v6012_v30  ;;  %v7275_v24 = vpack.c.bf16 %v5984_v45, %v5984_v45  ;;  %v5945_v50 = vpop.f32.mrb[78].mxu1  ;;  %v5986_v20 = vpop.f32.mrb[102].mxu0  ;;  %v17459_v54 = vld [vmem:[%s20764_s5 + $0x144] ss:$8 sps:$4 sm:$0xff]  }
0x11e8   : > { %v6021_v22 = vsel %vm1374_vm5, %v6014_v41, 0  ;;  %v7299_v58 = vsel %vm7297_vm15, %v7274_v17, 0  ;;  %v5946_v23 = vpop.f32.mrb[79].mxu1  ;;  %v5987_v59 = vpop.f32.mrb[103].mxu0 }
0x11e9   : > { %14412 = vmatprep.subr.msk.bf16.mxu1 %vm1374_vm5, %v6015_v19  ;;  %14580 = vmatprep.subr.msk.bf16.mxu0 %vm7297_vm15, %v7275_v24  ;;  %v16965_v24 = vld [vmem:[%s20759_s10 + $0x100] ss:$8 sps:$4 sm:$0xff]   ;;  %v16973_v23 = vld [vmem:[%s20759_s10 + $0x124] ss:$8 sps:$4 sm:$0xff]  }
0x11ea   : > { %6027 = vmatpush1.bf16.msra.mxu1 %v6021_v22  ;;  %7305 = vmatpush1.bf16.msra.mxu0 %v7299_v58  ;;  %v16968_v58 = vld [vmem:[%s20759_s10 + $0x110] ss:$8 sps:$4 sm:$0xff]   ;;  %v16971_v59 = vld [vmem:[%s20759_s10 + $0x120] ss:$8 sps:$4 sm:$0xff]  }
0x11eb   : > { %7067 = vmatprep.subr.bf16.mxu1 %v16919_v21  ;;  %v16970_v21 = vld [vmem:[%s20759_s10 + $0x114] ss:$8 sps:$4 sm:$0xff]  }
0x11ed   : > { %14413 = vmatmul.mubr.msk.bf16.vlgmr.msra.gmra.mrb[80].mxu1 %vm6016_vm3, %v19348_v60 }
0x11ee   : > { %7068 = vmatpush1.bf16.msra.mxu1 %v16917_v12  ;;  %v16976_v12 = vld [vmem:[%s20759_s10 + $0x134] ss:$8 sps:$4 sm:$0xff]  }
0x11ef   : > { %7069 = vmatprep.subr.bf16.mxu1 %v16922_v31  ;;  %v7283_v31 = vrot.slane %v19348_v60, %v19032_v27  ;;  %v16980_v60 = vld [vmem:[%s20759_s10 + $0x150] ss:$8 sps:$4 sm:$0xff]  }
0x11f2   : > { %7070 = vmatpush1.bf16.msra.mxu1 %v16920_v13  ;;  %v16974_v13 = vld [vmem:[%s20759_s10 + $0x130] ss:$8 sps:$4 sm:$0xff]  }
0x11f3   : > { %7071 = vmatprep.subr.bf16.mxu1 %v16925_v28  ;;  %v16979_v28 = vld [vmem:[%s20759_s10 + $0x144] ss:$8 sps:$4 sm:$0xff]  }
0x11f6   : > { %7072 = vmatpush1.bf16.msra.mxu1 %v16923_v29  ;;  %v7290_v29 = vrot.slane %v7283_v31, %v19032_v27  ;;  %v16988_v27 = vld [vmem:[%s20759_s10 + $0x174] ss:$8 sps:$4 sm:$0xff]   ;;  %v17043_v31 = vld [vmem:[%s20759_s10 + $0x2a0] ss:$8 sps:$4 sm:$0xff]  }
0x11f7   : > { %7073 = vmatprep.subr.bf16.mxu1 %v16928_v49  ;;  %v16977_v49 = vld [vmem:[%s20759_s10 + $0x140] ss:$8 sps:$4 sm:$0xff]  }
0x11f8   : > { %7291 = vrot.lane.b32.xlu1 %v7290_v29, %s18124_s3  ;;  %v17051_v29 = vld [vmem:[%s20759_s10 + $0x2c4] ss:$8 sps:$4 sm:$0xff]   ;;  %s20763_s3 = sld [smem:[#allocation16_spill]] }
0x11fa   : > { %7074 = vmatpush1.bf16.msra.mxu1 %v16926_v51  ;;  %v16982_v51 = vld [vmem:[%s20759_s10 + $0x154] ss:$8 sps:$4 sm:$0xff]  }
0x11fb   : > { %7075 = vmatprep.subr.bf16.mxu1 %v16931_v14  ;;  %v16985_v14 = vld [vmem:[%s20759_s10 + $0x164] ss:$8 sps:$4 sm:$0xff]  }
0x11fe   : > { %7076 = vmatpush1.bf16.msra.mxu1 %v16929_v32  ;;  %v16983_v32 = vld [vmem:[%s20759_s10 + $0x160] ss:$8 sps:$4 sm:$0xff]  }
0x11ff   : > { %7077 = vmatprep.subr.bf16.mxu1 %v16934_v38  ;;  %v16986_v38 = vld [vmem:[%s20759_s10 + $0x170] ss:$8 sps:$4 sm:$0xff]  }
0x1202   : > { %7078 = vmatpush1.bf16.msra.mxu1 %v16932_v35  ;;  %v16991_v35 = vld [vmem:[%s20759_s10 + $0x184] ss:$8 sps:$4 sm:$0xff]  }
0x1203   : > { %7079 = vmatprep.subr.bf16.mxu1 %v16937_v46  ;;  %v16989_v46 = vld [vmem:[%s20759_s10 + $0x180] ss:$8 sps:$4 sm:$0xff]  }
0x1206   : > { %7080 = vmatpush1.bf16.msra.mxu1 %v16935_v34  ;;  %v16994_v34 = vld [vmem:[%s20759_s10 + $0x194] ss:$8 sps:$4 sm:$0xff]  }
0x1207   : > { %7081 = vmatprep.subr.bf16.mxu1 %v16940_v36  ;;  %v16992_v36 = vld [vmem:[%s20759_s10 + $0x190] ss:$8 sps:$4 sm:$0xff]  }
0x120a   : > { %7082 = vmatpush1.bf16.msra.mxu1 %v16938_v37  ;;  %v16997_v37 = vld [vmem:[%s20759_s10 + $0x1a4] ss:$8 sps:$4 sm:$0xff]  }
0x120b   : > { %7083 = vmatprep.subr.bf16.mxu1 %v16943_v39  ;;  %v16995_v39 = vld [vmem:[%s20759_s10 + $0x1a0] ss:$8 sps:$4 sm:$0xff]  }
0x120e   : > { %7084 = vmatpush1.bf16.msra.mxu1 %v16941_v40  ;;  %v17000_v40 = vld [vmem:[%s20759_s10 + $0x1b4] ss:$8 sps:$4 sm:$0xff]  }
0x120f   : > { %7085 = vmatprep.subr.bf16.mxu1 %v16946_v43  ;;  %v16998_v43 = vld [vmem:[%s20759_s10 + $0x1b0] ss:$8 sps:$4 sm:$0xff]  }
0x1212   : > { %7086 = vmatpush1.bf16.msra.mxu1 %v16944_v48  ;;  %v17003_v48 = vld [vmem:[%s20759_s10 + $0x1c4] ss:$8 sps:$4 sm:$0xff]  }
0x1213   : > { %7087 = vmatprep.subr.bf16.mxu1 %v16949_v6  ;;  %v17001_v6 = vld [vmem:[%s20759_s10 + $0x1c0] ss:$8 sps:$4 sm:$0xff]  }
0x1216   : > { %7088 = vmatpush1.bf16.msra.mxu1 %v16947_v5  ;;  %v17006_v5 = vld [vmem:[%s20759_s10 + $0x1d4] ss:$8 sps:$4 sm:$0xff]  }
0x1217   : > { %7089 = vmatprep.subr.bf16.mxu1 %v16952_v52  ;;  %v17004_v52 = vld [vmem:[%s20759_s10 + $0x1d0] ss:$8 sps:$4 sm:$0xff]  }
0x121a   : > { %7090 = vmatpush1.bf16.msra.mxu1 %v16950_v44  ;;  %v17009_v44 = vld [vmem:[%s20759_s10 + $0x1e4] ss:$8 sps:$4 sm:$0xff]  }
0x121b   : > { %7091 = vmatprep.subr.bf16.mxu1 %v16955_v42  ;;  %v17007_v42 = vld [vmem:[%s20759_s10 + $0x1e0] ss:$8 sps:$4 sm:$0xff]  }
0x121e   : > { %7092 = vmatpush1.bf16.msra.mxu1 %v16953_v9  ;;  %v17012_v9 = vld [vmem:[%s20759_s10 + $0x1f4] ss:$8 sps:$4 sm:$0xff]  }
0x121f   : > { %7093 = vmatprep.subr.bf16.mxu1 %v16958_v53 }
0x1222   : > { %7094 = vmatpush1.bf16.msra.mxu1 %v16956_v3  ;;  %v17010_v3 = vld [vmem:[%s20759_s10 + $0x1f0] ss:$8 sps:$4 sm:$0xff]  }
0x1223   : > { %7095 = vmatprep.subr.bf16.mxu1 %v16961_v10 }
0x1226   : > { %7096 = vmatpush1.bf16.msra.mxu1 %v16959_v56  ;;  %v17015_v56 = vld [vmem:[%s20759_s10 + $0x204] ss:$8 sps:$4 sm:$0xff]  }
0x1227   : > { %7097 = vmatprep.subr.bf16.mxu1 %v16964_v57 }
0x122a   : > { %7098 = vmatpush1.bf16.msra.mxu1 %v16962_v62  ;;  %v17013_v62 = vld [vmem:[%s20759_s10 + $0x200] ss:$8 sps:$4 sm:$0xff]  }
0x122b   : > { %7108 = vmatprep.subr.bf16.mxu1 %v16967_v63 }
0x12c0   : > { %v6060_v0 = vpop.f32.mrb[80].mxu1 }
0x12c1   : > { %v6067_v2 = vmax.f32 %v6060_v0, 0.0  ;;  %v6062_v4 = vpop.f32.mrb[81].mxu1  ;;  %v17018_v0 = vld [vmem:[%s20759_s10 + $0x214] ss:$8 sps:$4 sm:$0xff]  }
0x12c2   : > { %v6068_v33 = vmax.f32 %v6062_v4, 0.0  ;;  %v6064_v8 = vpop.f32.mrb[82].mxu1  ;;  %v17016_v4 = vld [vmem:[%s20759_s10 + $0x210] ss:$8 sps:$4 sm:$0xff]  }
0x12c3   : > { %v6071_v30 = vrot.slane %v6067_v2, 6  ;;  %v6065_v7 = vpop.f32.mrb[83].mxu1  ;;  %v17019_v8 = vld [vmem:[%s20759_s10 + $0x220] ss:$8 sps:$4 sm:$0xff]  }
0x12c4   : > { %v6072_v11 = vrot.slane %v6068_v33, 6  ;;  %v17021_v33 = vld [vmem:[%s20759_s10 + $0x224] ss:$8 sps:$4 sm:$0xff]   ;;  %v17022_v7 = vld [vmem:[%s20759_s10 + $0x230] ss:$8 sps:$4 sm:$0xff]  }
0x12c5   : > { %v19385_v41 = vsel %vm1228_vm0, 0.0, %v6071_v30  ;;  %v17024_v30 = vld [vmem:[%s20759_s10 + $0x234] ss:$8 sps:$4 sm:$0xff]  }
0x12c6   : > { %v6076_v17 = vsel %vm1228_vm0, 0.0, %v6072_v11  ;;  %v14578_v50 = vpack.c.bf16 %v19385_v41, %v19385_v41  ;;  %v19439_v53 = vsel %vm1229_vm1, %v19385_v41, 0.0  ;;  %v17027_v11 = vld [vmem:[%s20759_s10 + $0x244] ss:$8 sps:$4 sm:$0xff]   ;;  %v17025_v41 = vld [vmem:[%s20759_s10 + $0x240] ss:$8 sps:$4 sm:$0xff]  }
0x12c7   : > { %v19395_v45 = vsel %vm1229_vm1, %v6076_v17, 0.0  ;;  %v14575_v19 = vpack.c.bf16 %v6076_v17, %v6076_v17  ;;  %v6081_v10 = vrot.slane %v19439_v53, 1  ;;  %v17030_v17 = vld [vmem:[%s20759_s10 + $0x254] ss:$8 sps:$4 sm:$0xff]  }
0x12c8   : > { %v6082_v20 = vrot.slane %v19395_v45, 1  ;;  %v6086_v57 = vrot.slane %v19395_v45, 2 }
0x12c9   : > { %14576 = vmatprep.mubr.msk.bf16.mxu1 %vm19390_vm11, %v14575_v19  ;;  %v6259_v63 = vpack.c.bf16 %v6081_v10, %v6081_v10  ;;  %v17028_v19 = vld [vmem:[%s20759_s10 + $0x250] ss:$8 sps:$4 sm:$0xff]   ;;  %v17072_v10 = vld [vmem:[%s20759_s10 + $0x334] ss:$8 sps:$4 sm:$0xff]  }
0x12ca   : > { %14579 = vmatmul.mubr.msk.bf16.vlgmr.msra.gmra.mrb[84].mxu1 %vm19390_vm11, %v14578_v50  ;;  %v6260_v22 = vpack.c.bf16 %v6082_v20, %v6082_v20  ;;  %v6262_v2 = vpack.c.bf16 %v6086_v57, %v6086_v57  ;;  %v17031_v50 = vld [vmem:[%s20759_s10 + $0x260] ss:$8 sps:$4 sm:$0xff]   ;;  %v17036_v20 = vld [vmem:[%s20759_s10 + $0x274] ss:$8 sps:$4 sm:$0xff]  }
0x12cb   : > { %7109 = vmatpush1.bf16.msra.mxu1 %v16965_v24  ;;  %v17033_v24 = vld [vmem:[%s20759_s10 + $0x264] ss:$8 sps:$4 sm:$0xff]   ;;  %v17168_v57 = vld [vmem:[%s20763_s3 + $0x34] ss:$8 sps:$4 sm:$0xff]  }
0x12cc   : > { %7140 = vmatprep.mubr.bf16.mxu1 %v6260_v22  ;;  %7110 = vmatprep.subr.bf16.mxu1 %v16970_v21  ;;  %v17034_v21 = vld [vmem:[%s20759_s10 + $0x270] ss:$8 sps:$4 sm:$0xff]   ;;  %v17039_v22 = vld [vmem:[%s20759_s10 + $0x284] ss:$8 sps:$4 sm:$0xff]  }
0x12cf   : > { %7111 = vmatpush1.bf16.msra.mxu1 %v16968_v58  ;;  %v17037_v58 = vld [vmem:[%s20759_s10 + $0x280] ss:$8 sps:$4 sm:$0xff]  }
0x12d0   : > { %7112 = vmatprep.subr.bf16.mxu1 %v16973_v23  ;;  %v17042_v23 = vld [vmem:[%s20759_s10 + $0x294] ss:$8 sps:$4 sm:$0xff]  }
0x12d3   : > { %7113 = vmatpush1.bf16.msra.mxu1 %v16971_v59  ;;  %v17040_v59 = vld [vmem:[%s20759_s10 + $0x290] ss:$8 sps:$4 sm:$0xff]  }
0x12d4   : > { %7114 = vmatprep.subr.bf16.mxu1 %v16976_v12  ;;  %v17045_v12 = vld [vmem:[%s20759_s10 + $0x2a4] ss:$8 sps:$4 sm:$0xff]  }
0x12d7   : > { %7115 = vmatpush1.bf16.msra.mxu1 %v16974_v13  ;;  %v17048_v13 = vld [vmem:[%s20759_s10 + $0x2b4] ss:$8 sps:$4 sm:$0xff]  }
0x12d8   : > { %7116 = vmatprep.subr.bf16.mxu1 %v16979_v28  ;;  %v17046_v28 = vld [vmem:[%s20759_s10 + $0x2b0] ss:$8 sps:$4 sm:$0xff]  }
0x12db   : > { %7117 = vmatpush1.bf16.msra.mxu1 %v16977_v49  ;;  %v17049_v49 = vld [vmem:[%s20759_s10 + $0x2c0] ss:$8 sps:$4 sm:$0xff]  }
0x12dc   : > { %7118 = vmatprep.subr.bf16.mxu1 %v16982_v51  ;;  %v17054_v51 = vld [vmem:[%s20759_s10 + $0x2d4] ss:$8 sps:$4 sm:$0xff]  }
0x12df   : > { %7119 = vmatpush1.bf16.msra.mxu1 %v16980_v60  ;;  %v17052_v60 = vld [vmem:[%s20759_s10 + $0x2d0] ss:$8 sps:$4 sm:$0xff]  }
0x12e0   : > { %7120 = vmatprep.subr.bf16.mxu1 %v16985_v14  ;;  %v17057_v14 = vld [vmem:[%s20759_s10 + $0x2e4] ss:$8 sps:$4 sm:$0xff]  }
0x12e3   : > { %7121 = vmatpush1.bf16.msra.mxu1 %v16983_v32  ;;  %v17055_v32 = vld [vmem:[%s20759_s10 + $0x2e0] ss:$8 sps:$4 sm:$0xff]  }
0x12e4   : > { %7122 = vmatprep.subr.bf16.mxu1 %v16988_v27  ;;  %v17060_v27 = vld [vmem:[%s20759_s10 + $0x2f4] ss:$8 sps:$4 sm:$0xff]  }
0x12e7   : > { %7123 = vmatpush1.bf16.msra.mxu1 %v16986_v38  ;;  %v17058_v38 = vld [vmem:[%s20759_s10 + $0x2f0] ss:$8 sps:$4 sm:$0xff]  }
0x12e8   : > { %7124 = vmatprep.subr.bf16.mxu1 %v16991_v35  ;;  %v6085_v35 = vrot.slane %v19439_v53, 2 }
0x12eb   : > { %7125 = vmatpush1.bf16.msra.mxu1 %v16989_v46  ;;  %v17063_v46 = vld [vmem:[%s20759_s10 + $0x304] ss:$8 sps:$4 sm:$0xff]  }
0x12ec   : > { %7126 = vmatprep.subr.bf16.mxu1 %v16994_v34  ;;  %v6090_v34 = vrot.slane %v19395_v45, 3 }
0x12ef   : > { %7127 = vmatpush1.bf16.msra.mxu1 %v16992_v36  ;;  %v17061_v36 = vld [vmem:[%s20759_s10 + $0x300] ss:$8 sps:$4 sm:$0xff]  }
0x12f0   : > { %7128 = vmatprep.subr.bf16.mxu1 %v16997_v37  ;;  %v6261_v37 = vpack.c.bf16 %v6085_v35, %v6085_v35  ;;  %v17099_v35 = vld [vmem:[%s20759_s10 + $0x3c4] ss:$8 sps:$4 sm:$0xff]  }
0x12f3   : > { %7129 = vmatpush1.bf16.msra.mxu1 %v16995_v39  ;;  %v17066_v39 = vld [vmem:[%s20759_s10 + $0x314] ss:$8 sps:$4 sm:$0xff]  }
0x12f4   : > { %7130 = vmatprep.subr.bf16.mxu1 %v17000_v40  ;;  %v7292_v40 = vpop.permute.xlu1 %7291 }
0x12f5   : > { %14581 = vmatmul.mubr.msk.bf16.vlgmr.msra.gmra.mrb[104].mxu0 %vm7293_vm14, %v7292_v40  ;;  %v17100_v40 = vld [vmem:[%s20759_s10 + $0x3d0] ss:$8 sps:$4 sm:$0xff]  }
0x12f7   : > { %7131 = vmatpush1.bf16.msra.mxu1 %v16998_v43  ;;  %v6264_v43 = vpack.c.bf16 %v6090_v34, %v6090_v34  ;;  %v17195_v34 = vld [vmem:[%s20763_s3 + $0xc4] ss:$8 sps:$4 sm:$0xff]  }
0x12f8   : > { %7132 = vmatprep.subr.bf16.mxu1 %v17003_v48  ;;  %v17157_v48 = vld [vmem:[%s20763_s3] ss:$8 sps:$4 sm:$0xff]  }
0x12fb   : > { %7133 = vmatpush1.bf16.msra.mxu1 %v17001_v6  ;;  %v17159_v6 = vld [vmem:[%s20763_s3 + $0x4] ss:$8 sps:$4 sm:$0xff]  }
0x12fc   : > { %7134 = vmatprep.subr.bf16.mxu1 %v17006_v5  ;;  %v17064_v5 = vld [vmem:[%s20759_s10 + $0x310] ss:$8 sps:$4 sm:$0xff]   ;;  %8347 = vmatprep.subr.bf16.mxu0 %v17159_v6  ;;  %v17108_v6 = vld [vmem:[%s20759_s10 + $0x3f4] ss:$8 sps:$4 sm:$0xff]  }
0x12fd   : > { %8348 = vmatpush1.bf16.msra.mxu0 %v17157_v48  ;;  %v17103_v48 = vld [vmem:[%s20759_s10 + $0x3e0] ss:$8 sps:$4 sm:$0xff]  }
0x12ff   : > { %7135 = vmatpush1.bf16.msra.mxu1 %v17004_v52  ;;  %v17162_v52 = vld [vmem:[%s20763_s3 + $0x14] ss:$8 sps:$4 sm:$0xff]  }
0x1300   : > { %7136 = vmatprep.subr.bf16.mxu1 %v17009_v44  ;;  %v17069_v44 = vld [vmem:[%s20759_s10 + $0x324] ss:$8 sps:$4 sm:$0xff]   ;;  %8349 = vmatprep.subr.bf16.mxu0 %v17162_v52  ;;  %v6089_v52 = vrot.slane %v19439_v53, 3 }
0x1303   : > { %7137 = vmatpush1.bf16.msra.mxu1 %v17007_v42  ;;  %v17160_v42 = vld [vmem:[%s20763_s3 + $0x10] ss:$8 sps:$4 sm:$0xff]  }
0x1304   : > { %7138 = vmatprep.subr.bf16.mxu1 %v17012_v9  ;;  %v17165_v9 = vld [vmem:[%s20763_s3 + $0x24] ss:$8 sps:$4 sm:$0xff]   ;;  %8350 = vmatpush1.bf16.msra.mxu0 %v17160_v42  ;;  %v6094_v42 = vrot.slane %v19395_v45, 4  ;;  %v17115_v45 = vld [vmem:[%s20759_s10 + $0x420] ss:$8 sps:$4 sm:$0xff]  }
0x1305   : > { %8351 = vmatprep.subr.bf16.mxu0 %v17165_v9  ;;  %v17109_v9 = vld [vmem:[%s20759_s10 + $0x400] ss:$8 sps:$4 sm:$0xff]  }
0x1307   : > { %7139 = vmatpush1.bf16.msra.mxu1 %v17010_v3  ;;  %v17067_v3 = vld [vmem:[%s20759_s10 + $0x320] ss:$8 sps:$4 sm:$0xff]  }
0x1308   : > { %7149 = vmatprep.subr.bf16.mxu1 %v17015_v56  ;;  %v17163_v56 = vld [vmem:[%s20763_s3 + $0x20] ss:$8 sps:$4 sm:$0xff]  }
0x1309   : > { %8352 = vmatpush1.bf16.msra.mxu0 %v17163_v56  ;;  %v6266_v56 = vpack.c.bf16 %v6094_v42, %v6094_v42 }
0x130a   : > { %7141 = vmatmul.mubr.bf16.vlgmr.msra.gmra.mrb[84].mxu1 %v6259_v63  ;;  %v17075_v63 = vld [vmem:[%s20759_s10 + $0x344] ss:$8 sps:$4 sm:$0xff]   ;;  %8353 = vmatprep.subr.bf16.mxu0 %v17168_v57  ;;  %v17112_v57 = vld [vmem:[%s20759_s10 + $0x410] ss:$8 sps:$4 sm:$0xff]  }
0x130b   : > { %7150 = vmatpush1.bf16.msra.mxu1 %v17013_v62  ;;  %7181 = vmatprep.mubr.bf16.mxu1 %v6262_v2  ;;  %v17070_v62 = vld [vmem:[%s20759_s10 + $0x330] ss:$8 sps:$4 sm:$0xff]   ;;  %v17171_v2 = vld [vmem:[%s20763_s3 + $0x44] ss:$8 sps:$4 sm:$0xff]  }
0x130c   : > { %7151 = vmatprep.subr.bf16.mxu1 %v17018_v0  ;;  %v17166_v0 = vld [vmem:[%s20763_s3 + $0x30] ss:$8 sps:$4 sm:$0xff]  }
0x130d   : > { %8354 = vmatpush1.bf16.msra.mxu0 %v17166_v0  ;;  %v17118_v0 = vld [vmem:[%s20759_s10 + $0x430] ss:$8 sps:$4 sm:$0xff]  }
0x130e   : > { %8355 = vmatprep.subr.bf16.mxu0 %v17171_v2  ;;  %v17123_v2 = vld [vmem:[%s20759_s10 + $0x444] ss:$8 sps:$4 sm:$0xff]  }
0x130f   : > { %7152 = vmatpush1.bf16.msra.mxu1 %v17016_v4  ;;  %v17073_v4 = vld [vmem:[%s20759_s10 + $0x340] ss:$8 sps:$4 sm:$0xff]  }
0x1310   : > { %7153 = vmatprep.subr.bf16.mxu1 %v17021_v33  ;;  %v17078_v33 = vld [vmem:[%s20759_s10 + $0x354] ss:$8 sps:$4 sm:$0xff]  }
0x1313   : > { %7154 = vmatpush1.bf16.msra.mxu1 %v17019_v8  ;;  %v17169_v8 = vld [vmem:[%s20763_s3 + $0x40] ss:$8 sps:$4 sm:$0xff]  }
0x1314   : > { %7155 = vmatprep.subr.bf16.mxu1 %v17024_v30  ;;  %v17174_v30 = vld [vmem:[%s20763_s3 + $0x54] ss:$8 sps:$4 sm:$0xff]   ;;  %8356 = vmatpush1.bf16.msra.mxu0 %v17169_v8  ;;  %v17124_v8 = vld [vmem:[%s20759_s10 + $0x450] ss:$8 sps:$4 sm:$0xff]  }
0x1315   : > { %8357 = vmatprep.subr.bf16.mxu0 %v17174_v30  ;;  %v17129_v30 = vld [vmem:[%s20759_s10 + $0x464] ss:$8 sps:$4 sm:$0xff]  }
0x1317   : > { %7156 = vmatpush1.bf16.msra.mxu1 %v17022_v7  ;;  %v17076_v7 = vld [vmem:[%s20759_s10 + $0x350] ss:$8 sps:$4 sm:$0xff]  }
0x1318   : > { %7157 = vmatprep.subr.bf16.mxu1 %v17027_v11  ;;  %v17081_v11 = vld [vmem:[%s20759_s10 + $0x364] ss:$8 sps:$4 sm:$0xff]  }
0x131b   : > { %7158 = vmatpush1.bf16.msra.mxu1 %v17025_v41  ;;  %v17172_v41 = vld [vmem:[%s20763_s3 + $0x50] ss:$8 sps:$4 sm:$0xff]  }
0x131c   : > { %7159 = vmatprep.subr.bf16.mxu1 %v17030_v17  ;;  %v17177_v17 = vld [vmem:[%s20763_s3 + $0x64] ss:$8 sps:$4 sm:$0xff]   ;;  %8358 = vmatpush1.bf16.msra.mxu0 %v17172_v41  ;;  %v17130_v41 = vld [vmem:[%s20759_s10 + $0x470] ss:$8 sps:$4 sm:$0xff]  }
0x131d   : > { %8359 = vmatprep.subr.bf16.mxu0 %v17177_v17  ;;  %v17135_v17 = vld [vmem:[%s20759_s10 + $0x484] ss:$8 sps:$4 sm:$0xff]  }
0x131f   : > { %7160 = vmatpush1.bf16.msra.mxu1 %v17028_v19  ;;  %v17079_v19 = vld [vmem:[%s20759_s10 + $0x360] ss:$8 sps:$4 sm:$0xff]  }
0x1320   : > { %7161 = vmatprep.subr.bf16.mxu1 %v17033_v24  ;;  %v17084_v24 = vld [vmem:[%s20759_s10 + $0x374] ss:$8 sps:$4 sm:$0xff]  }
0x1323   : > { %7162 = vmatpush1.bf16.msra.mxu1 %v17031_v50  ;;  %v17175_v50 = vld [vmem:[%s20763_s3 + $0x60] ss:$8 sps:$4 sm:$0xff]  }
0x1324   : > { %7163 = vmatprep.subr.bf16.mxu1 %v17036_v20  ;;  %v17180_v20 = vld [vmem:[%s20763_s3 + $0x74] ss:$8 sps:$4 sm:$0xff]   ;;  %8360 = vmatpush1.bf16.msra.mxu0 %v17175_v50  ;;  %v17136_v50 = vld [vmem:[%s20759_s10 + $0x490] ss:$8 sps:$4 sm:$0xff]  }
0x1325   : > { %8361 = vmatprep.subr.bf16.mxu0 %v17180_v20  ;;  %v17141_v20 = vld [vmem:[%s20759_s10 + $0x4a4] ss:$8 sps:$4 sm:$0xff]  }
0x1327   : > { %7164 = vmatpush1.bf16.msra.mxu1 %v17034_v21  ;;  %v17082_v21 = vld [vmem:[%s20759_s10 + $0x370] ss:$8 sps:$4 sm:$0xff]  }
0x1328   : > { %7165 = vmatprep.subr.bf16.mxu1 %v17039_v22  ;;  %v17087_v22 = vld [vmem:[%s20759_s10 + $0x384] ss:$8 sps:$4 sm:$0xff]  }
0x132b   : > { %7166 = vmatpush1.bf16.msra.mxu1 %v17037_v58  ;;  %v17178_v58 = vld [vmem:[%s20763_s3 + $0x70] ss:$8 sps:$4 sm:$0xff]  }
0x132c   : > { %7167 = vmatprep.subr.bf16.mxu1 %v17042_v23  ;;  %v17183_v23 = vld [vmem:[%s20763_s3 + $0x84] ss:$8 sps:$4 sm:$0xff]   ;;  %8362 = vmatpush1.bf16.msra.mxu0 %v17178_v58  ;;  %v17142_v58 = vld [vmem:[%s20759_s10 + $0x4b0] ss:$8 sps:$4 sm:$0xff]  }
0x132d   : > { %8363 = vmatprep.subr.bf16.mxu0 %v17183_v23  ;;  %v17147_v23 = vld [vmem:[%s20759_s10 + $0x4c4] ss:$8 sps:$4 sm:$0xff]  }
0x132f   : > { %7168 = vmatpush1.bf16.msra.mxu1 %v17040_v59  ;;  %v17085_v59 = vld [vmem:[%s20759_s10 + $0x380] ss:$8 sps:$4 sm:$0xff]  }
0x1330   : > { %7169 = vmatprep.subr.bf16.mxu1 %v17045_v12  ;;  %v17090_v12 = vld [vmem:[%s20759_s10 + $0x394] ss:$8 sps:$4 sm:$0xff]  }
0x1333   : > { %7170 = vmatpush1.bf16.msra.mxu1 %v17043_v31  ;;  %v17181_v31 = vld [vmem:[%s20763_s3 + $0x80] ss:$8 sps:$4 sm:$0xff]  }
0x1334   : > { %7171 = vmatprep.subr.bf16.mxu1 %v17048_v13  ;;  %v17186_v13 = vld [vmem:[%s20763_s3 + $0x94] ss:$8 sps:$4 sm:$0xff]   ;;  %8364 = vmatpush1.bf16.msra.mxu0 %v17181_v31  ;;  %v17148_v31 = vld [vmem:[%s20759_s10 + $0x4d0] ss:$8 sps:$4 sm:$0xff]  }
0x1335   : > { %8365 = vmatprep.subr.bf16.mxu0 %v17186_v13  ;;  %v17153_v13 = vld [vmem:[%s20759_s10 + $0x4e4] ss:$8 sps:$4 sm:$0xff]  }
0x1337   : > { %7172 = vmatpush1.bf16.msra.mxu1 %v17046_v28  ;;  %v17088_v28 = vld [vmem:[%s20759_s10 + $0x390] ss:$8 sps:$4 sm:$0xff]  }
0x1338   : > { %7173 = vmatprep.subr.bf16.mxu1 %v17051_v29  ;;  %v17093_v29 = vld [vmem:[%s20759_s10 + $0x3a4] ss:$8 sps:$4 sm:$0xff]  }
0x133b   : > { %7174 = vmatpush1.bf16.msra.mxu1 %v17049_v49  ;;  %v17184_v49 = vld [vmem:[%s20763_s3 + $0x90] ss:$8 sps:$4 sm:$0xff]  }
0x133c   : > { %7175 = vmatprep.subr.bf16.mxu1 %v17054_v51  ;;  %v17189_v51 = vld [vmem:[%s20763_s3 + $0xa4] ss:$8 sps:$4 sm:$0xff]   ;;  %8366 = vmatpush1.bf16.msra.mxu0 %v17184_v49  ;;  %v17154_v49 = vld [vmem:[%s20759_s10 + $0x4f0] ss:$8 sps:$4 sm:$0xff]  }
0x133d   : > { %8367 = vmatprep.subr.bf16.mxu0 %v17189_v51  ;;  %v6093_v51 = vrot.slane %v19439_v53, 4  ;;  %v17202_v53 = vld [vmem:[%s20763_s3 + $0xf0] ss:$8 sps:$4 sm:$0xff]  }
0x133f   : > { %7176 = vmatpush1.bf16.msra.mxu1 %v17052_v60  ;;  %v17091_v60 = vld [vmem:[%s20759_s10 + $0x3a0] ss:$8 sps:$4 sm:$0xff]  }
0x1340   : > { %7177 = vmatprep.subr.bf16.mxu1 %v17057_v14  ;;  %v17096_v14 = vld [vmem:[%s20759_s10 + $0x3b4] ss:$8 sps:$4 sm:$0xff]  }
0x1343   : > { %7178 = vmatpush1.bf16.msra.mxu1 %v17055_v32  ;;  %v17187_v32 = vld [vmem:[%s20763_s3 + $0xa0] ss:$8 sps:$4 sm:$0xff]  }
0x1344   : > { %7179 = vmatprep.subr.bf16.mxu1 %v17060_v27  ;;  %v17192_v27 = vld [vmem:[%s20763_s3 + $0xb4] ss:$8 sps:$4 sm:$0xff]   ;;  %8368 = vmatpush1.bf16.msra.mxu0 %v17187_v32 }
0x1345   : > { %8369 = vmatprep.subr.bf16.mxu0 %v17192_v27  ;;  %v17198_v32 = vld [vmem:[%s20763_s3 + $0xd4] ss:$8 sps:$4 sm:$0xff]  }
0x1347   : > { %7180 = vmatpush1.bf16.msra.mxu1 %v17058_v38  ;;  %v17094_v38 = vld [vmem:[%s20759_s10 + $0x3b0] ss:$8 sps:$4 sm:$0xff]  }
0x1348   : > { %7190 = vmatprep.subr.bf16.mxu1 %v17063_v46  ;;  %v17190_v46 = vld [vmem:[%s20763_s3 + $0xb0] ss:$8 sps:$4 sm:$0xff]  }
0x1349   : > { %8370 = vmatpush1.bf16.msra.mxu0 %v17190_v46 }
0x134a   : > { %7182 = vmatmul.mubr.bf16.vlgmr.msra.gmra.mrb[84].mxu1 %v6261_v37  ;;  %v17102_v37 = vld [vmem:[%s20759_s10 + $0x3d4] ss:$8 sps:$4 sm:$0xff]   ;;  %8371 = vmatprep.subr.bf16.mxu0 %v17195_v34  ;;  %v17201_v34 = vld [vmem:[%s20763_s3 + $0xe4] ss:$8 sps:$4 sm:$0xff]  }
0x134b   : > { %7191 = vmatpush1.bf16.msra.mxu1 %v17061_v36  ;;  %7222 = vmatprep.mubr.bf16.mxu1 %v6264_v43  ;;  %v17097_v36 = vld [vmem:[%s20759_s10 + $0x3c0] ss:$8 sps:$4 sm:$0xff]   ;;  %v17105_v43 = vld [vmem:[%s20759_s10 + $0x3e4] ss:$8 sps:$4 sm:$0xff]  }
0x134c   : > { %7192 = vmatprep.subr.bf16.mxu1 %v17066_v39  ;;  %v17193_v39 = vld [vmem:[%s20763_s3 + $0xc0] ss:$8 sps:$4 sm:$0xff]  }
0x134d   : > { %8372 = vmatpush1.bf16.msra.mxu0 %v17193_v39  ;;  %v17207_v39 = vld [vmem:[%s20763_s3 + $0x104] ss:$8 sps:$4 sm:$0xff]  }
0x134e   : > { %8373 = vmatprep.subr.bf16.mxu0 %v17198_v32  ;;  %v17246_v32 = vld [vmem:[%s20763_s3 + $0x1d4] ss:$8 sps:$4 sm:$0xff]  }
0x134f   : > { %7193 = vmatpush1.bf16.msra.mxu1 %v17064_v5  ;;  %v17106_v5 = vld [vmem:[%s20759_s10 + $0x3f0] ss:$8 sps:$4 sm:$0xff]  }
0x1350   : > { %7194 = vmatprep.subr.bf16.mxu1 %v17069_v44  ;;  %v17111_v44 = vld [vmem:[%s20759_s10 + $0x404] ss:$8 sps:$4 sm:$0xff]  }
0x1353   : > { %7195 = vmatpush1.bf16.msra.mxu1 %v17067_v3  ;;  %v6263_v3 = vpack.c.bf16 %v6089_v52, %v6089_v52 }
0x1354   : > { %7196 = vmatprep.subr.bf16.mxu1 %v17072_v10  ;;  %v17114_v10 = vld [vmem:[%s20759_s10 + $0x414] ss:$8 sps:$4 sm:$0xff]  }
0x1357   : > { %7197 = vmatpush1.bf16.msra.mxu1 %v17070_v62  ;;  %v17117_v62 = vld [vmem:[%s20759_s10 + $0x424] ss:$8 sps:$4 sm:$0xff]  }
0x1358   : > { %7198 = vmatprep.subr.bf16.mxu1 %v17075_v63  ;;  %v17120_v63 = vld [vmem:[%s20759_s10 + $0x434] ss:$8 sps:$4 sm:$0xff]  }
0x135b   : > { %7199 = vmatpush1.bf16.msra.mxu1 %v17073_v4  ;;  %v17121_v4 = vld [vmem:[%s20759_s10 + $0x440] ss:$8 sps:$4 sm:$0xff]  }
0x135c   : > { %7200 = vmatprep.subr.bf16.mxu1 %v17078_v33  ;;  %v17126_v33 = vld [vmem:[%s20759_s10 + $0x454] ss:$8 sps:$4 sm:$0xff]  }
0x135f   : > { %7201 = vmatpush1.bf16.msra.mxu1 %v17076_v7  ;;  %v17127_v7 = vld [vmem:[%s20759_s10 + $0x460] ss:$8 sps:$4 sm:$0xff]  }
0x1360   : > { %7202 = vmatprep.subr.bf16.mxu1 %v17081_v11  ;;  %v17132_v11 = vld [vmem:[%s20759_s10 + $0x474] ss:$8 sps:$4 sm:$0xff]  }
0x1363   : > { %7203 = vmatpush1.bf16.msra.mxu1 %v17079_v19  ;;  %v17133_v19 = vld [vmem:[%s20759_s10 + $0x480] ss:$8 sps:$4 sm:$0xff]  }
0x1364   : > { %7204 = vmatprep.subr.bf16.mxu1 %v17084_v24  ;;  %v17138_v24 = vld [vmem:[%s20759_s10 + $0x494] ss:$8 sps:$4 sm:$0xff]  }
0x1367   : > { %7205 = vmatpush1.bf16.msra.mxu1 %v17082_v21  ;;  %v17139_v21 = vld [vmem:[%s20759_s10 + $0x4a0] ss:$8 sps:$4 sm:$0xff]  }
0x1368   : > { %7206 = vmatprep.subr.bf16.mxu1 %v17087_v22  ;;  %v17144_v22 = vld [vmem:[%s20759_s10 + $0x4b4] ss:$8 sps:$4 sm:$0xff]  }
0x136b   : > { %7207 = vmatpush1.bf16.msra.mxu1 %v17085_v59  ;;  %v17145_v59 = vld [vmem:[%s20759_s10 + $0x4c0] ss:$8 sps:$4 sm:$0xff]  }
0x136c   : > { %7208 = vmatprep.subr.bf16.mxu1 %v17090_v12  ;;  %v17150_v12 = vld [vmem:[%s20759_s10 + $0x4d4] ss:$8 sps:$4 sm:$0xff]  }
0x136f   : > { %7209 = vmatpush1.bf16.msra.mxu1 %v17088_v28  ;;  %v17151_v28 = vld [vmem:[%s20759_s10 + $0x4e0] ss:$8 sps:$4 sm:$0xff]  }
0x1370   : > { %7210 = vmatprep.subr.bf16.mxu1 %v17093_v29  ;;  %v17156_v29 = vld [vmem:[%s20759_s10 + $0x4f4] ss:$8 sps:$4 sm:$0xff]  }
0x1373   : > { %7211 = vmatpush1.bf16.msra.mxu1 %v17091_v60  ;;  %v6265_v60 = vpack.c.bf16 %v6093_v51, %v6093_v51  ;;  %v17238_v51 = vld [vmem:[%s20763_s3 + $0x1b0] ss:$8 sps:$4 sm:$0xff]  }
0x1374   : > { %7212 = vmatprep.subr.bf16.mxu1 %v17096_v14 }
0x1377   : > { %7213 = vmatpush1.bf16.msra.mxu1 %v17094_v38  ;;  %v17196_v38 = vld [vmem:[%s20763_s3 + $0xd0] ss:$8 sps:$4 sm:$0xff]  }
0x1378   : > { %7214 = vmatprep.subr.bf16.mxu1 %v17099_v35  ;;  %8374 = vmatpush1.bf16.msra.mxu0 %v17196_v38  ;;  %v17249_v38 = vld [vmem:[%s20763_s3 + $0x1e4] ss:$8 sps:$4 sm:$0xff]  }
0x1379   : > { %8375 = vmatprep.subr.bf16.mxu0 %v17201_v34 }
0x137b   : > { %7215 = vmatpush1.bf16.msra.mxu1 %v17097_v36  ;;  %v17199_v36 = vld [vmem:[%s20763_s3 + $0xe0] ss:$8 sps:$4 sm:$0xff]  }
0x137c   : > { %7216 = vmatprep.subr.bf16.mxu1 %v17102_v37  ;;  %8376 = vmatpush1.bf16.msra.mxu0 %v17199_v36  ;;  %v17204_v37 = vld [vmem:[%s20763_s3 + $0xf4] ss:$8 sps:$4 sm:$0xff]   ;;  %v17250_v36 = vld [vmem:[%s20763_s3 + $0x1f0] ss:$8 sps:$4 sm:$0xff]  }
0x137d   : > { %8377 = vmatprep.subr.bf16.mxu0 %v17204_v37 }
0x137f   : > { %7217 = vmatpush1.bf16.msra.mxu1 %v17100_v40 }
0x1380   : > { %7218 = vmatprep.subr.bf16.mxu1 %v17105_v43  ;;  %8378 = vmatpush1.bf16.msra.mxu0 %v17202_v53  ;;  %v17255_v53 = vld [vmem:[%s20763_s3 + $0x204] ss:$8 sps:$4 sm:$0xff]  }
0x1381   : > { %8388 = vmatprep.subr.bf16.mxu0 %v17207_v39 }
0x1383   : > { %7219 = vmatpush1.bf16.msra.mxu1 %v17103_v48 }
0x1384   : > { %7220 = vmatprep.subr.bf16.mxu1 %v17108_v6 }
0x1387   : > { %7221 = vmatpush1.bf16.msra.mxu1 %v17106_v5 }
0x1388   : > { %7231 = vmatprep.subr.bf16.mxu1 %v17111_v44 }
0x138a   : > { %7223 = vmatmul.mubr.bf16.vlgmr.msra.gmra.mrb[84].mxu1 %v6263_v3 }
0x138b   : > { %7232 = vmatpush1.bf16.msra.mxu1 %v17109_v9  ;;  %7263 = vmatprep.mubr.bf16.mxu1 %v6266_v56 }
0x138c   : > { %7233 = vmatprep.subr.bf16.mxu1 %v17114_v10 }
0x138f   : > { %7234 = vmatpush1.bf16.msra.mxu1 %v17112_v57 }
0x1390   : > { %7235 = vmatprep.subr.bf16.mxu1 %v17117_v62 }
0x1393   : > { %7236 = vmatpush1.bf16.msra.mxu1 %v17115_v45 }
0x1394   : > { %7237 = vmatprep.subr.bf16.mxu1 %v17120_v63 }
0x1397   : > { %7238 = vmatpush1.bf16.msra.mxu1 %v17118_v0  ;;  %v17205_v0 = vld [vmem:[%s20763_s3 + $0x100] ss:$8 sps:$4 sm:$0xff]  }
0x1398   : > { %7239 = vmatprep.subr.bf16.mxu1 %v17123_v2 }
0x139b   : > { %7240 = vmatpush1.bf16.msra.mxu1 %v17121_v4 }
0x139c   : > { %7241 = vmatprep.subr.bf16.mxu1 %v17126_v33  ;;  %v17210_v33 = vld [vmem:[%s20763_s3 + $0x114] ss:$8 sps:$4 sm:$0xff]  }
0x139f   : > { %7242 = vmatpush1.bf16.msra.mxu1 %v17124_v8 }
0x13a0   : > { %7243 = vmatprep.subr.bf16.mxu1 %v17129_v30  ;;  %v17208_v30 = vld [vmem:[%s20763_s3 + $0x110] ss:$8 sps:$4 sm:$0xff]  }
0x13a3   : > { %7244 = vmatpush1.bf16.msra.mxu1 %v17127_v7  ;;  %v17213_v7 = vld [vmem:[%s20763_s3 + $0x124] ss:$8 sps:$4 sm:$0xff]  }
0x13a4   : > { %7245 = vmatprep.subr.bf16.mxu1 %v17132_v11  ;;  %v17211_v11 = vld [vmem:[%s20763_s3 + $0x120] ss:$8 sps:$4 sm:$0xff]  }
0x13a7   : > { %7246 = vmatpush1.bf16.msra.mxu1 %v17130_v41  ;;  %v17216_v41 = vld [vmem:[%s20763_s3 + $0x134] ss:$8 sps:$4 sm:$0xff]  }
0x13a8   : > { %7247 = vmatprep.subr.bf16.mxu1 %v17135_v17  ;;  %v17214_v17 = vld [vmem:[%s20763_s3 + $0x130] ss:$8 sps:$4 sm:$0xff]  }
0x13ab   : > { %7248 = vmatpush1.bf16.msra.mxu1 %v17133_v19  ;;  %v17219_v19 = vld [vmem:[%s20763_s3 + $0x144] ss:$8 sps:$4 sm:$0xff]  }
0x13ac   : > { %7249 = vmatprep.subr.bf16.mxu1 %v17138_v24  ;;  %v17217_v24 = vld [vmem:[%s20763_s3 + $0x140] ss:$8 sps:$4 sm:$0xff]  }
0x13af   : > { %7250 = vmatpush1.bf16.msra.mxu1 %v17136_v50  ;;  %v17222_v50 = vld [vmem:[%s20763_s3 + $0x154] ss:$8 sps:$4 sm:$0xff]  }
0x13b0   : > { %7251 = vmatprep.subr.bf16.mxu1 %v17141_v20  ;;  %v17220_v20 = vld [vmem:[%s20763_s3 + $0x150] ss:$8 sps:$4 sm:$0xff]  }
0x13b3   : > { %7252 = vmatpush1.bf16.msra.mxu1 %v17139_v21  ;;  %v17225_v21 = vld [vmem:[%s20763_s3 + $0x164] ss:$8 sps:$4 sm:$0xff]  }
0x13b4   : > { %7253 = vmatprep.subr.bf16.mxu1 %v17144_v22  ;;  %v17223_v22 = vld [vmem:[%s20763_s3 + $0x160] ss:$8 sps:$4 sm:$0xff]  }
0x13b7   : > { %7254 = vmatpush1.bf16.msra.mxu1 %v17142_v58  ;;  %v17228_v58 = vld [vmem:[%s20763_s3 + $0x174] ss:$8 sps:$4 sm:$0xff]  }
0x13b8   : > { %7255 = vmatprep.subr.bf16.mxu1 %v17147_v23  ;;  %v17226_v23 = vld [vmem:[%s20763_s3 + $0x170] ss:$8 sps:$4 sm:$0xff]  }
0x13bb   : > { %7256 = vmatpush1.bf16.msra.mxu1 %v17145_v59  ;;  %v17231_v59 = vld [vmem:[%s20763_s3 + $0x184] ss:$8 sps:$4 sm:$0xff]  }
0x13bc   : > { %7257 = vmatprep.subr.bf16.mxu1 %v17150_v12  ;;  %v17229_v12 = vld [vmem:[%s20763_s3 + $0x180] ss:$8 sps:$4 sm:$0xff]  }
0x13bf   : > { %7258 = vmatpush1.bf16.msra.mxu1 %v17148_v31  ;;  %v17234_v31 = vld [vmem:[%s20763_s3 + $0x194] ss:$8 sps:$4 sm:$0xff]  }
0x13c0   : > { %7259 = vmatprep.subr.bf16.mxu1 %v17153_v13  ;;  %v17232_v13 = vld [vmem:[%s20763_s3 + $0x190] ss:$8 sps:$4 sm:$0xff]  }
0x13c3   : > { %7260 = vmatpush1.bf16.msra.mxu1 %v17151_v28  ;;  %v17237_v28 = vld [vmem:[%s20763_s3 + $0x1a4] ss:$8 sps:$4 sm:$0xff]  }
0x13c4   : > { %7261 = vmatprep.subr.bf16.mxu1 %v17156_v29  ;;  %v17235_v29 = vld [vmem:[%s20763_s3 + $0x1a0] ss:$8 sps:$4 sm:$0xff]  }
0x13c7   : > { %7262 = vmatpush1.bf16.msra.mxu1 %v17154_v49  ;;  %v17240_v49 = vld [vmem:[%s20763_s3 + $0x1b4] ss:$8 sps:$4 sm:$0xff]  }
0x13c8   : > { %v7338_v14 = vpop.f32.mrb[104].mxu0 }
0x13c9   : > { %v7340_v27 = vpop.f32.mrb[105].mxu0 }
0x13ca   : > { %7264 = vmatmul.mubr.bf16.vlgmr.msra.gmra.mrb[84].mxu1 %v6265_v60  ;;  %v7342_v35 = vpop.f32.mrb[106].mxu0  ;;  %v17243_v60 = vld [vmem:[%s20763_s3 + $0x1c4] ss:$8 sps:$4 sm:$0xff]  }
0x13cb   : > { %v7343_v46 = vpop.f32.mrb[107].mxu0  ;;  %v17247_v35 = vld [vmem:[%s20763_s3 + $0x1e0] ss:$8 sps:$4 sm:$0xff]  }
0x13cc   : > { %v17252_v46 = vld [vmem:[%s20763_s3 + $0x1f4] ss:$8 sps:$4 sm:$0xff]  }
0x149d   : > { %v7265_v40 = vpop.f32.mrb[84].mxu1 }
0x149e   : > { %v7272_v43 = vmax.f32 %v7265_v40, 0.0  ;;  %v7267_v48 = vpop.f32.mrb[85].mxu1  ;;  %v17253_v40 = vld [vmem:[%s20763_s3 + $0x200] ss:$8 sps:$4 sm:$0xff]  }
0x149f   : > { %v7273_v6 = vmax.f32 %v7267_v48, 0.0  ;;  %v7269_v5 = vpop.f32.mrb[86].mxu1  ;;  %v17258_v48 = vld [vmem:[%s20763_s3 + $0x214] ss:$8 sps:$4 sm:$0xff]  }
0x14a0   : > { %v19578_v52 = vadd.f32 %v7338_v14, %v7272_v43  ;;  %v7270_v44 = vpop.f32.mrb[87].mxu1  ;;  %v17241_v14 = vld [vmem:[%s20763_s3 + $0x1c0] ss:$8 sps:$4 sm:$0xff]   ;;  %v17256_v5 = vld [vmem:[%s20763_s3 + $0x210] ss:$8 sps:$4 sm:$0xff]  }
0x14a1   : > { %v19580_v42 = vadd.f32 %v7340_v27, %v7273_v6  ;;  %v17244_v27 = vld [vmem:[%s20763_s3 + $0x1d0] ss:$8 sps:$4 sm:$0xff]   ;;  %v17261_v44 = vld [vmem:[%s20763_s3 + $0x224] ss:$8 sps:$4 sm:$0xff]  }
0x14a2   : > { %v7347_v9 = vmax.f32 %v19578_v52, 0.0 }
0x14a3   : > { %v7348_v3 = vmax.f32 %v19580_v42, 0.0 }
0x14a4   : > { %v7351_v10 = vrot.slane %v7347_v9, 6 }
0x14a5   : > { %v7352_v56 = vrot.slane %v7348_v3, 6 }
0x14a6   : > { %v19589_v57 = vsel %vm1228_vm0, 0.0, %v7351_v10  ;;  %v17259_v10 = vld [vmem:[%s20763_s3 + $0x220] ss:$8 sps:$4 sm:$0xff]  }
0x14a7   : > { %v7356_v62 = vsel %vm1228_vm0, 0.0, %v7352_v56  ;;  %v14746_v2 = vpack.c.bf16 %v19589_v57, %v19589_v57  ;;  %v19634_v34 = vsel %vm1229_vm1, %v19589_v57, 0.0  ;;  %v17264_v56 = vld [vmem:[%s20763_s3 + $0x234] ss:$8 sps:$4 sm:$0xff]   ;;  %v17262_v57 = vld [vmem:[%s20763_s3 + $0x230] ss:$8 sps:$4 sm:$0xff]  }
0x14a8   : > { %v19593_v45 = vsel %vm1229_vm1, %v7356_v62, 0.0  ;;  %v14743_v63 = vpack.c.bf16 %v7356_v62, %v7356_v62  ;;  %v7361_v37 = vrot.slane %v19634_v34, 1  ;;  %v17267_v62 = vld [vmem:[%s20763_s3 + $0x244] ss:$8 sps:$4 sm:$0xff]  }
0x14a9   : > { %v7362_v4 = vrot.slane %v19593_v45, 1  ;;  %v7366_v39 = vrot.slane %v19593_v45, 2 }
0x14aa   : > { %14744 = vmatprep.mubr.msk.bf16.mxu0 %vm19390_vm11, %v14743_v63  ;;  %v7539_v43 = vpack.c.bf16 %v7361_v37, %v7361_v37  ;;  %v17265_v63 = vld [vmem:[%s20763_s3 + $0x240] ss:$8 sps:$4 sm:$0xff]   ;;  %v17400_v37 = vld [vmem:[%s20764_s5 + $0x10] ss:$8 sps:$4 sm:$0xff]  }
0x14ab   : > { %14747 = vmatmul.mubr.msk.bf16.vlgmr.msra.gmra.mrb[108].mxu0 %vm19390_vm11, %v14746_v2  ;;  %v7540_v8 = vpack.c.bf16 %v7362_v4, %v7362_v4  ;;  %v7542_v6 = vpack.c.bf16 %v7366_v39, %v7366_v39  ;;  %v17268_v2 = vld [vmem:[%s20763_s3 + $0x250] ss:$8 sps:$4 sm:$0xff]   ;;  %v17273_v4 = vld [vmem:[%s20763_s3 + $0x264] ss:$8 sps:$4 sm:$0xff]   ;;  %v17307_v39 = vld [vmem:[%s20763_s3 + $0x320] ss:$8 sps:$4 sm:$0xff]  }
0x14ac   : > { %8389 = vmatpush1.bf16.msra.mxu0 %v17205_v0  ;;  %v17270_v0 = vld [vmem:[%s20763_s3 + $0x254] ss:$8 sps:$4 sm:$0xff]  }
0x14ad   : > { %8420 = vmatprep.mubr.bf16.mxu0 %v7540_v8  ;;  %8390 = vmatprep.subr.bf16.mxu0 %v17210_v33  ;;  %v17271_v33 = vld [vmem:[%s20763_s3 + $0x260] ss:$8 sps:$4 sm:$0xff]   ;;  %v17276_v8 = vld [vmem:[%s20763_s3 + $0x274] ss:$8 sps:$4 sm:$0xff]  }
0x14b0   : > { %8391 = vmatpush1.bf16.msra.mxu0 %v17208_v30  ;;  %v17274_v30 = vld [vmem:[%s20763_s3 + $0x270] ss:$8 sps:$4 sm:$0xff]  }
0x14b1   : > { %8392 = vmatprep.subr.bf16.mxu0 %v17213_v7  ;;  %v17279_v7 = vld [vmem:[%s20763_s3 + $0x284] ss:$8 sps:$4 sm:$0xff]  }
0x14b4   : > { %8393 = vmatpush1.bf16.msra.mxu0 %v17211_v11  ;;  %v17277_v11 = vld [vmem:[%s20763_s3 + $0x280] ss:$8 sps:$4 sm:$0xff]  }
0x14b5   : > { %8394 = vmatprep.subr.bf16.mxu0 %v17216_v41  ;;  %v17282_v41 = vld [vmem:[%s20763_s3 + $0x294] ss:$8 sps:$4 sm:$0xff]  }
0x14b8   : > { %8395 = vmatpush1.bf16.msra.mxu0 %v17214_v17  ;;  %v17280_v17 = vld [vmem:[%s20763_s3 + $0x290] ss:$8 sps:$4 sm:$0xff]  }
0x14b9   : > { %8396 = vmatprep.subr.bf16.mxu0 %v17219_v19  ;;  %v17285_v19 = vld [vmem:[%s20763_s3 + $0x2a4] ss:$8 sps:$4 sm:$0xff]  }
0x14bc   : > { %8397 = vmatpush1.bf16.msra.mxu0 %v17217_v24  ;;  %v17283_v24 = vld [vmem:[%s20763_s3 + $0x2a0] ss:$8 sps:$4 sm:$0xff]  }
0x14bd   : > { %8398 = vmatprep.subr.bf16.mxu0 %v17222_v50  ;;  %v17288_v50 = vld [vmem:[%s20763_s3 + $0x2b4] ss:$8 sps:$4 sm:$0xff]  }
0x14c0   : > { %8399 = vmatpush1.bf16.msra.mxu0 %v17220_v20  ;;  %v17286_v20 = vld [vmem:[%s20763_s3 + $0x2b0] ss:$8 sps:$4 sm:$0xff]  }
0x14c1   : > { %8400 = vmatprep.subr.bf16.mxu0 %v17225_v21  ;;  %v17291_v21 = vld [vmem:[%s20763_s3 + $0x2c4] ss:$8 sps:$4 sm:$0xff]  }
0x14c4   : > { %8401 = vmatpush1.bf16.msra.mxu0 %v17223_v22  ;;  %v17289_v22 = vld [vmem:[%s20763_s3 + $0x2c0] ss:$8 sps:$4 sm:$0xff]  }
0x14c5   : > { %8402 = vmatprep.subr.bf16.mxu0 %v17228_v58  ;;  %v17294_v58 = vld [vmem:[%s20763_s3 + $0x2d4] ss:$8 sps:$4 sm:$0xff]  }
0x14c8   : > { %8403 = vmatpush1.bf16.msra.mxu0 %v17226_v23  ;;  %v17292_v23 = vld [vmem:[%s20763_s3 + $0x2d0] ss:$8 sps:$4 sm:$0xff]  }
0x14c9   : > { %8404 = vmatprep.subr.bf16.mxu0 %v17231_v59  ;;  %v17297_v59 = vld [vmem:[%s20763_s3 + $0x2e4] ss:$8 sps:$4 sm:$0xff]  }
0x14cc   : > { %8405 = vmatpush1.bf16.msra.mxu0 %v17229_v12  ;;  %v17295_v12 = vld [vmem:[%s20763_s3 + $0x2e0] ss:$8 sps:$4 sm:$0xff]  }
0x14cd   : > { %8406 = vmatprep.subr.bf16.mxu0 %v17234_v31  ;;  %v17300_v31 = vld [vmem:[%s20763_s3 + $0x2f4] ss:$8 sps:$4 sm:$0xff]  }
0x14d0   : > { %8407 = vmatpush1.bf16.msra.mxu0 %v17232_v13  ;;  %v17298_v13 = vld [vmem:[%s20763_s3 + $0x2f0] ss:$8 sps:$4 sm:$0xff]  }
0x14d1   : > { %8408 = vmatprep.subr.bf16.mxu0 %v17237_v28  ;;  %v7365_v28 = vrot.slane %v19634_v34, 2 }
0x14d4   : > { %8409 = vmatpush1.bf16.msra.mxu0 %v17235_v29  ;;  %v17303_v29 = vld [vmem:[%s20763_s3 + $0x304] ss:$8 sps:$4 sm:$0xff]  }
0x14d5   : > { %8410 = vmatprep.subr.bf16.mxu0 %v17240_v49  ;;  %v7370_v49 = vrot.slane %v19593_v45, 3 }
0x14d8   : > { %8411 = vmatpush1.bf16.msra.mxu0 %v17238_v51  ;;  %v17301_v51 = vld [vmem:[%s20763_s3 + $0x300] ss:$8 sps:$4 sm:$0xff]  }
0x14d9   : > { %8412 = vmatprep.subr.bf16.mxu0 %v17243_v60  ;;  %v7541_v60 = vpack.c.bf16 %v7365_v28, %v7365_v28  ;;  %v17427_v28 = vld [vmem:[%s20764_s5 + $0xa0] ss:$8 sps:$4 sm:$0xff]  }
0x14dc   : > { %8413 = vmatpush1.bf16.msra.mxu0 %v17241_v14  ;;  %v17306_v14 = vld [vmem:[%s20763_s3 + $0x314] ss:$8 sps:$4 sm:$0xff]  }
0x14dd   : > { %8414 = vmatprep.subr.bf16.mxu0 %v17246_v32  ;;  %v7544_v32 = vpack.c.bf16 %v7370_v49, %v7370_v49  ;;  %v17334_v49 = vld [vmem:[%s20763_s3 + $0x3b0] ss:$8 sps:$4 sm:$0xff]  }
0x14e0   : > { %8415 = vmatpush1.bf16.msra.mxu0 %v17244_v27  ;;  %v17397_v27 = vld [vmem:[%s20764_s5] ss:$8 sps:$4 sm:$0xff]  }
0x14e1   : > { %8416 = vmatprep.subr.bf16.mxu0 %v17249_v38  ;;  %v17399_v38 = vld [vmem:[%s20764_s5 + $0x4] ss:$8 sps:$4 sm:$0xff]  }
0x14e2   : > { %9552 = vmatprep.subr.bf16.mxu1 %v17399_v38  ;;  %v17433_v38 = vld [vmem:[%s20764_s5 + $0xc0] ss:$8 sps:$4 sm:$0xff]  }
0x14e3   : > { %9553 = vmatpush1.bf16.msra.mxu1 %v17397_v27  ;;  %v17342_v27 = vld [vmem:[%s20763_s3 + $0x3d4] ss:$8 sps:$4 sm:$0xff]  }
0x14e4   : > { %8417 = vmatpush1.bf16.msra.mxu0 %v17247_v35  ;;  %v17304_v35 = vld [vmem:[%s20763_s3 + $0x310] ss:$8 sps:$4 sm:$0xff]  }
0x14e5   : > { %8418 = vmatprep.subr.bf16.mxu0 %v17252_v46  ;;  %v17402_v46 = vld [vmem:[%s20764_s5 + $0x14] ss:$8 sps:$4 sm:$0xff]  }
0x14e6   : > { %9554 = vmatprep.subr.bf16.mxu1 %v17402_v46  ;;  %v17340_v46 = vld [vmem:[%s20763_s3 + $0x3d0] ss:$8 sps:$4 sm:$0xff]  }
0x14e7   : > { %9555 = vmatpush1.bf16.msra.mxu1 %v17400_v37  ;;  %v17436_v37 = vld [vmem:[%s20764_s5 + $0xd0] ss:$8 sps:$4 sm:$0xff]  }
0x14e8   : > { %8419 = vmatpush1.bf16.msra.mxu0 %v17250_v36  ;;  %v17309_v36 = vld [vmem:[%s20763_s3 + $0x324] ss:$8 sps:$4 sm:$0xff]  }
0x14e9   : > { %8429 = vmatprep.subr.bf16.mxu0 %v17255_v53  ;;  %v17405_v53 = vld [vmem:[%s20764_s5 + $0x24] ss:$8 sps:$4 sm:$0xff]  }
0x14ea   : > { %9556 = vmatprep.subr.bf16.mxu1 %v17405_v53  ;;  %v17343_v53 = vld [vmem:[%s20763_s3 + $0x3e0] ss:$8 sps:$4 sm:$0xff]  }
0x14eb   : > { %8421 = vmatmul.mubr.bf16.vlgmr.msra.gmra.mrb[108].mxu0 %v7539_v43  ;;  %v17403_v43 = vld [vmem:[%s20764_s5 + $0x20] ss:$8 sps:$4 sm:$0xff]  }
0x14ec   : > { %8430 = vmatpush1.bf16.msra.mxu0 %v17253_v40  ;;  %8461 = vmatprep.mubr.bf16.mxu0 %v7542_v6  ;;  %v17312_v40 = vld [vmem:[%s20763_s3 + $0x334] ss:$8 sps:$4 sm:$0xff]   ;;  %v17310_v6 = vld [vmem:[%s20763_s3 + $0x330] ss:$8 sps:$4 sm:$0xff]  }
0x14ed   : > { %8431 = vmatprep.subr.bf16.mxu0 %v17258_v48  ;;  %v17408_v48 = vld [vmem:[%s20764_s5 + $0x34] ss:$8 sps:$4 sm:$0xff]   ;;  %9557 = vmatpush1.bf16.msra.mxu1 %v17403_v43  ;;  %v7369_v43 = vrot.slane %v19634_v34, 3 }
0x14ee   : > { %9558 = vmatprep.subr.bf16.mxu1 %v17408_v48  ;;  %v17351_v48 = vld [vmem:[%s20763_s3 + $0x404] ss:$8 sps:$4 sm:$0xff]  }
0x14f0   : > { %8432 = vmatpush1.bf16.msra.mxu0 %v17256_v5  ;;  %v17315_v5 = vld [vmem:[%s20763_s3 + $0x344] ss:$8 sps:$4 sm:$0xff]  }
0x14f1   : > { %8433 = vmatprep.subr.bf16.mxu0 %v17261_v44  ;;  %v17406_v44 = vld [vmem:[%s20764_s5 + $0x30] ss:$8 sps:$4 sm:$0xff]  }
0x14f2   : > { %9559 = vmatpush1.bf16.msra.mxu1 %v17406_v44  ;;  %v7543_v44 = vpack.c.bf16 %v7369_v43, %v7369_v43 }
0x14f4   : > { %8434 = vmatpush1.bf16.msra.mxu0 %v17259_v10  ;;  %v17411_v10 = vld [vmem:[%s20764_s5 + $0x44] ss:$8 sps:$4 sm:$0xff]  }
0x14f5   : > { %8435 = vmatprep.subr.bf16.mxu0 %v17264_v56  ;;  %v17313_v56 = vld [vmem:[%s20763_s3 + $0x340] ss:$8 sps:$4 sm:$0xff]   ;;  %9560 = vmatprep.subr.bf16.mxu1 %v17411_v10  ;;  %v17354_v10 = vld [vmem:[%s20763_s3 + $0x414] ss:$8 sps:$4 sm:$0xff]  }
0x14f8   : > { %8436 = vmatpush1.bf16.msra.mxu0 %v17262_v57  ;;  %v17318_v57 = vld [vmem:[%s20763_s3 + $0x354] ss:$8 sps:$4 sm:$0xff]  }
0x14f9   : > { %8437 = vmatprep.subr.bf16.mxu0 %v17267_v62  ;;  %v17409_v62 = vld [vmem:[%s20764_s5 + $0x40] ss:$8 sps:$4 sm:$0xff]  }
0x14fa   : > { %9561 = vmatpush1.bf16.msra.mxu1 %v17409_v62  ;;  %v17357_v62 = vld [vmem:[%s20763_s3 + $0x424] ss:$8 sps:$4 sm:$0xff]  }
0x14fc   : > { %8438 = vmatpush1.bf16.msra.mxu0 %v17265_v63  ;;  %v17414_v63 = vld [vmem:[%s20764_s5 + $0x54] ss:$8 sps:$4 sm:$0xff]  }
0x14fd   : > { %8439 = vmatprep.subr.bf16.mxu0 %v17270_v0  ;;  %v17316_v0 = vld [vmem:[%s20763_s3 + $0x350] ss:$8 sps:$4 sm:$0xff]   ;;  %9562 = vmatprep.subr.bf16.mxu1 %v17414_v63  ;;  %v17360_v63 = vld [vmem:[%s20763_s3 + $0x434] ss:$8 sps:$4 sm:$0xff]  }
0x1500   : > { %8440 = vmatpush1.bf16.msra.mxu0 %v17268_v2  ;;  %v17321_v2 = vld [vmem:[%s20763_s3 + $0x364] ss:$8 sps:$4 sm:$0xff]  }
0x1501   : > { %8441 = vmatprep.subr.bf16.mxu0 %v17273_v4  ;;  %v17412_v4 = vld [vmem:[%s20764_s5 + $0x50] ss:$8 sps:$4 sm:$0xff]  }
0x1502   : > { %9563 = vmatpush1.bf16.msra.mxu1 %v17412_v4  ;;  %v17361_v4 = vld [vmem:[%s20763_s3 + $0x440] ss:$8 sps:$4 sm:$0xff]  }
0x1504   : > { %8442 = vmatpush1.bf16.msra.mxu0 %v17271_v33  ;;  %v17417_v33 = vld [vmem:[%s20764_s5 + $0x64] ss:$8 sps:$4 sm:$0xff]  }
0x1505   : > { %8443 = vmatprep.subr.bf16.mxu0 %v17276_v8  ;;  %v17319_v8 = vld [vmem:[%s20763_s3 + $0x360] ss:$8 sps:$4 sm:$0xff]   ;;  %9564 = vmatprep.subr.bf16.mxu1 %v17417_v33  ;;  %v17366_v33 = vld [vmem:[%s20763_s3 + $0x454] ss:$8 sps:$4 sm:$0xff]  }
0x1508   : > { %8444 = vmatpush1.bf16.msra.mxu0 %v17274_v30  ;;  %v17324_v30 = vld [vmem:[%s20763_s3 + $0x374] ss:$8 sps:$4 sm:$0xff]  }
0x1509   : > { %8445 = vmatprep.subr.bf16.mxu0 %v17279_v7  ;;  %v17415_v7 = vld [vmem:[%s20764_s5 + $0x60] ss:$8 sps:$4 sm:$0xff]  }
0x150a   : > { %9565 = vmatpush1.bf16.msra.mxu1 %v17415_v7  ;;  %v17367_v7 = vld [vmem:[%s20763_s3 + $0x460] ss:$8 sps:$4 sm:$0xff]  }
0x150c   : > { %8446 = vmatpush1.bf16.msra.mxu0 %v17277_v11  ;;  %v17420_v11 = vld [vmem:[%s20764_s5 + $0x74] ss:$8 sps:$4 sm:$0xff]  }
0x150d   : > { %8447 = vmatprep.subr.bf16.mxu0 %v17282_v41  ;;  %v17322_v41 = vld [vmem:[%s20763_s3 + $0x370] ss:$8 sps:$4 sm:$0xff]   ;;  %9566 = vmatprep.subr.bf16.mxu1 %v17420_v11  ;;  %v17372_v11 = vld [vmem:[%s20763_s3 + $0x474] ss:$8 sps:$4 sm:$0xff]  }
0x1510   : > { %8448 = vmatpush1.bf16.msra.mxu0 %v17280_v17  ;;  %v17327_v17 = vld [vmem:[%s20763_s3 + $0x384] ss:$8 sps:$4 sm:$0xff]  }
0x1511   : > { %8449 = vmatprep.subr.bf16.mxu0 %v17285_v19  ;;  %v17418_v19 = vld [vmem:[%s20764_s5 + $0x70] ss:$8 sps:$4 sm:$0xff]  }
0x1512   : > { %9567 = vmatpush1.bf16.msra.mxu1 %v17418_v19  ;;  %v17373_v19 = vld [vmem:[%s20763_s3 + $0x480] ss:$8 sps:$4 sm:$0xff]  }
0x1514   : > { %8450 = vmatpush1.bf16.msra.mxu0 %v17283_v24  ;;  %v17423_v24 = vld [vmem:[%s20764_s5 + $0x84] ss:$8 sps:$4 sm:$0xff]  }
0x1515   : > { %8451 = vmatprep.subr.bf16.mxu0 %v17288_v50  ;;  %v17325_v50 = vld [vmem:[%s20763_s3 + $0x380] ss:$8 sps:$4 sm:$0xff]   ;;  %9568 = vmatprep.subr.bf16.mxu1 %v17423_v24  ;;  %v17378_v24 = vld [vmem:[%s20763_s3 + $0x494] ss:$8 sps:$4 sm:$0xff]  }
0x1518   : > { %8452 = vmatpush1.bf16.msra.mxu0 %v17286_v20  ;;  %v17330_v20 = vld [vmem:[%s20763_s3 + $0x394] ss:$8 sps:$4 sm:$0xff]  }
0x1519   : > { %8453 = vmatprep.subr.bf16.mxu0 %v17291_v21  ;;  %v17421_v21 = vld [vmem:[%s20764_s5 + $0x80] ss:$8 sps:$4 sm:$0xff]  }
0x151a   : > { %9569 = vmatpush1.bf16.msra.mxu1 %v17421_v21  ;;  %v17379_v21 = vld [vmem:[%s20763_s3 + $0x4a0] ss:$8 sps:$4 sm:$0xff]  }
0x151c   : > { %8454 = vmatpush1.bf16.msra.mxu0 %v17289_v22  ;;  %v17426_v22 = vld [vmem:[%s20764_s5 + $0x94] ss:$8 sps:$4 sm:$0xff]  }
0x151d   : > { %8455 = vmatprep.subr.bf16.mxu0 %v17294_v58  ;;  %v17328_v58 = vld [vmem:[%s20763_s3 + $0x390] ss:$8 sps:$4 sm:$0xff]   ;;  %9570 = vmatprep.subr.bf16.mxu1 %v17426_v22  ;;  %v17384_v22 = vld [vmem:[%s20763_s3 + $0x4b4] ss:$8 sps:$4 sm:$0xff]  }
0x1520   : > { %8456 = vmatpush1.bf16.msra.mxu0 %v17292_v23  ;;  %v17333_v23 = vld [vmem:[%s20763_s3 + $0x3a4] ss:$8 sps:$4 sm:$0xff]  }
0x1521   : > { %8457 = vmatprep.subr.bf16.mxu0 %v17297_v59  ;;  %v17424_v59 = vld [vmem:[%s20764_s5 + $0x90] ss:$8 sps:$4 sm:$0xff]  }
0x1522   : > { %9571 = vmatpush1.bf16.msra.mxu1 %v17424_v59  ;;  %v17385_v59 = vld [vmem:[%s20763_s3 + $0x4c0] ss:$8 sps:$4 sm:$0xff]  }
0x1524   : > { %8458 = vmatpush1.bf16.msra.mxu0 %v17295_v12  ;;  %v17429_v12 = vld [vmem:[%s20764_s5 + $0xa4] ss:$8 sps:$4 sm:$0xff]  }
0x1525   : > { %8459 = vmatprep.subr.bf16.mxu0 %v17300_v31  ;;  %v17331_v31 = vld [vmem:[%s20763_s3 + $0x3a0] ss:$8 sps:$4 sm:$0xff]   ;;  %9572 = vmatprep.subr.bf16.mxu1 %v17429_v12  ;;  %v17390_v12 = vld [vmem:[%s20763_s3 + $0x4d4] ss:$8 sps:$4 sm:$0xff]  }
0x1526   : > { %9573 = vmatpush1.bf16.msra.mxu1 %v17427_v28  ;;  %v17391_v28 = vld [vmem:[%s20763_s3 + $0x4e0] ss:$8 sps:$4 sm:$0xff]  }
0x1528   : > { %8460 = vmatpush1.bf16.msra.mxu0 %v17298_v13  ;;  %v17336_v13 = vld [vmem:[%s20763_s3 + $0x3b4] ss:$8 sps:$4 sm:$0xff]  }
0x1529   : > { %8470 = vmatprep.subr.bf16.mxu0 %v17303_v29  ;;  %v17432_v29 = vld [vmem:[%s20764_s5 + $0xb4] ss:$8 sps:$4 sm:$0xff]  }
0x152a   : > { %9574 = vmatprep.subr.bf16.mxu1 %v17432_v29  ;;  %v17396_v29 = vld [vmem:[%s20763_s3 + $0x4f4] ss:$8 sps:$4 sm:$0xff]  }
0x152b   : > { %8462 = vmatmul.mubr.bf16.vlgmr.msra.gmra.mrb[108].mxu0 %v7541_v60  ;;  %v17430_v60 = vld [vmem:[%s20764_s5 + $0xb0] ss:$8 sps:$4 sm:$0xff]  }
0x152c   : > { %8471 = vmatpush1.bf16.msra.mxu0 %v17301_v51  ;;  %8502 = vmatprep.mubr.bf16.mxu0 %v7544_v32  ;;  %v17339_v51 = vld [vmem:[%s20763_s3 + $0x3c4] ss:$8 sps:$4 sm:$0xff]   ;;  %v17337_v32 = vld [vmem:[%s20763_s3 + $0x3c0] ss:$8 sps:$4 sm:$0xff]  }
0x152d   : > { %8472 = vmatprep.subr.bf16.mxu0 %v17306_v14  ;;  %v17435_v14 = vld [vmem:[%s20764_s5 + $0xc4] ss:$8 sps:$4 sm:$0xff]   ;;  %9575 = vmatpush1.bf16.msra.mxu1 %v17430_v60 }
0x152e   : > { %9576 = vmatprep.subr.bf16.mxu1 %v17435_v14  ;;  %v17441_v14 = vld [vmem:[%s20764_s5 + $0xe4] ss:$8 sps:$4 sm:$0xff]  }
0x1530   : > { %8473 = vmatpush1.bf16.msra.mxu0 %v17304_v35  ;;  %v17438_v35 = vld [vmem:[%s20764_s5 + $0xd4] ss:$8 sps:$4 sm:$0xff]  }
0x1531   : > { %8474 = vmatprep.subr.bf16.mxu0 %v17309_v36  ;;  %v17345_v36 = vld [vmem:[%s20763_s3 + $0x3e4] ss:$8 sps:$4 sm:$0xff]   ;;  %9577 = vmatpush1.bf16.msra.mxu1 %v17433_v38  ;;  %v17442_v38 = vld [vmem:[%s20764_s5 + $0xf0] ss:$8 sps:$4 sm:$0xff]  }
0x1532   : > { %9578 = vmatprep.subr.bf16.mxu1 %v17438_v35  ;;  %v17447_v35 = vld [vmem:[%s20764_s5 + $0x104] ss:$8 sps:$4 sm:$0xff]  }
0x1534   : > { %8475 = vmatpush1.bf16.msra.mxu0 %v17307_v39  ;;  %v17348_v39 = vld [vmem:[%s20763_s3 + $0x3f4] ss:$8 sps:$4 sm:$0xff]  }
0x1535   : > { %8476 = vmatprep.subr.bf16.mxu0 %v17312_v40  ;;  %9579 = vmatpush1.bf16.msra.mxu1 %v17436_v37  ;;  %v17346_v40 = vld [vmem:[%s20763_s3 + $0x3f0] ss:$8 sps:$4 sm:$0xff]  }
0x1536   : > { %9580 = vmatprep.subr.bf16.mxu1 %v17441_v14  ;;  %v17490_v14 = vld [vmem:[%s20764_s5 + $0x1f0] ss:$8 sps:$4 sm:$0xff]  }
0x1538   : > { %8477 = vmatpush1.bf16.msra.mxu0 %v17310_v6  ;;  %v7374_v6 = vrot.slane %v19593_v45, 4  ;;  %v17355_v45 = vld [vmem:[%s20763_s3 + $0x420] ss:$8 sps:$4 sm:$0xff]  }
0x1539   : > { %8478 = vmatprep.subr.bf16.mxu0 %v17315_v5  ;;  %v17349_v5 = vld [vmem:[%s20763_s3 + $0x400] ss:$8 sps:$4 sm:$0xff]  }
0x153c   : > { %8479 = vmatpush1.bf16.msra.mxu0 %v17313_v56  ;;  %v7546_v56 = vpack.c.bf16 %v7374_v6, %v7374_v6 }
0x153d   : > { %8480 = vmatprep.subr.bf16.mxu0 %v17318_v57  ;;  %v17352_v57 = vld [vmem:[%s20763_s3 + $0x410] ss:$8 sps:$4 sm:$0xff]  }
0x1540   : > { %8481 = vmatpush1.bf16.msra.mxu0 %v17316_v0  ;;  %v17358_v0 = vld [vmem:[%s20763_s3 + $0x430] ss:$8 sps:$4 sm:$0xff]  }
0x1541   : > { %8482 = vmatprep.subr.bf16.mxu0 %v17321_v2  ;;  %v17363_v2 = vld [vmem:[%s20763_s3 + $0x444] ss:$8 sps:$4 sm:$0xff]  }
0x1544   : > { %8483 = vmatpush1.bf16.msra.mxu0 %v17319_v8  ;;  %v17364_v8 = vld [vmem:[%s20763_s3 + $0x450] ss:$8 sps:$4 sm:$0xff]  }
0x1545   : > { %8484 = vmatprep.subr.bf16.mxu0 %v17324_v30  ;;  %v17369_v30 = vld [vmem:[%s20763_s3 + $0x464] ss:$8 sps:$4 sm:$0xff]  }
0x1548   : > { %8485 = vmatpush1.bf16.msra.mxu0 %v17322_v41  ;;  %v17370_v41 = vld [vmem:[%s20763_s3 + $0x470] ss:$8 sps:$4 sm:$0xff]  }
0x1549   : > { %8486 = vmatprep.subr.bf16.mxu0 %v17327_v17  ;;  %v17375_v17 = vld [vmem:[%s20763_s3 + $0x484] ss:$8 sps:$4 sm:$0xff]  }
0x154c   : > { %8487 = vmatpush1.bf16.msra.mxu0 %v17325_v50  ;;  %v17376_v50 = vld [vmem:[%s20763_s3 + $0x490] ss:$8 sps:$4 sm:$0xff]  }
0x154d   : > { %8488 = vmatprep.subr.bf16.mxu0 %v17330_v20  ;;  %v17381_v20 = vld [vmem:[%s20763_s3 + $0x4a4] ss:$8 sps:$4 sm:$0xff]  }
0x1550   : > { %8489 = vmatpush1.bf16.msra.mxu0 %v17328_v58  ;;  %v17382_v58 = vld [vmem:[%s20763_s3 + $0x4b0] ss:$8 sps:$4 sm:$0xff]  }
0x1551   : > { %8490 = vmatprep.subr.bf16.mxu0 %v17333_v23  ;;  %v17387_v23 = vld [vmem:[%s20763_s3 + $0x4c4] ss:$8 sps:$4 sm:$0xff]  }
0x1554   : > { %8491 = vmatpush1.bf16.msra.mxu0 %v17331_v31  ;;  %v17388_v31 = vld [vmem:[%s20763_s3 + $0x4d0] ss:$8 sps:$4 sm:$0xff]  }
0x1555   : > { %8492 = vmatprep.subr.bf16.mxu0 %v17336_v13  ;;  %v17393_v13 = vld [vmem:[%s20763_s3 + $0x4e4] ss:$8 sps:$4 sm:$0xff]  }
0x1558   : > { %8493 = vmatpush1.bf16.msra.mxu0 %v17334_v49  ;;  %v17394_v49 = vld [vmem:[%s20763_s3 + $0x4f0] ss:$8 sps:$4 sm:$0xff]   ;;  %s20765_s3 = sld [smem:[#allocation18_spill]] }
0x1559   : > { %8494 = vmatprep.subr.bf16.mxu0 %v17339_v51  ;;  %v7373_v51 = vrot.slane %v19634_v34, 4 }
0x155b   : > { %v7545_v60 = vpack.c.bf16 %v7373_v51, %v7373_v51  ;;  %v17492_v51 = vld [vmem:[%s20764_s5 + $0x1f4] ss:$8 sps:$4 sm:$0xff]  }
0x155c   : > { %8495 = vmatpush1.bf16.msra.mxu0 %v17337_v32  ;;  %v17439_v32 = vld [vmem:[%s20764_s5 + $0xe0] ss:$8 sps:$4 sm:$0xff]  }
0x155d   : > { %8496 = vmatprep.subr.bf16.mxu0 %v17342_v27  ;;  %9581 = vmatpush1.bf16.msra.mxu1 %v17439_v32  ;;  %v17444_v27 = vld [vmem:[%s20764_s5 + $0xf4] ss:$8 sps:$4 sm:$0xff]  }
0x155e   : > { %9582 = vmatprep.subr.bf16.mxu1 %v17444_v27  ;;  %v17495_v27 = vld [vmem:[%s20764_s5 + $0x204] ss:$8 sps:$4 sm:$0xff]   ;;  %v17688_v52 = vld [vmem:[%s20765_s3 + $0x28] ss:$16 sps:$4 sm:$0xff]  }
0x155f   : > { %v17693_v42 = vld [vmem:[%s20765_s3 + $0x4c] ss:$16 sps:$4 sm:$0xff]  }
0x1560   : > { %8497 = vmatpush1.bf16.msra.mxu0 %v17340_v46 }
0x1561   : > { %8498 = vmatprep.subr.bf16.mxu0 %v17345_v36  ;;  %9583 = vmatpush1.bf16.msra.mxu1 %v17442_v38 }
0x1562   : > { %9593 = vmatprep.subr.bf16.mxu1 %v17447_v35  ;;  %v17493_v35 = vld [vmem:[%s20764_s5 + $0x200] ss:$8 sps:$4 sm:$0xff]  }
0x1564   : > { %8499 = vmatpush1.bf16.msra.mxu0 %v17343_v53 }
0x1565   : > { %8500 = vmatprep.subr.bf16.mxu0 %v17348_v39 }
0x1568   : > { %8501 = vmatpush1.bf16.msra.mxu0 %v17346_v40 }
0x1569   : > { %8511 = vmatprep.subr.bf16.mxu0 %v17351_v48 }
0x156b   : > { %8503 = vmatmul.mubr.bf16.vlgmr.msra.gmra.mrb[108].mxu0 %v7543_v44 }
0x156c   : > { %8512 = vmatpush1.bf16.msra.mxu0 %v17349_v5  ;;  %8543 = vmatprep.mubr.bf16.mxu0 %v7546_v56 }
0x156d   : > { %8513 = vmatprep.subr.bf16.mxu0 %v17354_v10  ;;  %v17445_v10 = vld [vmem:[%s20764_s5 + $0x100] ss:$8 sps:$4 sm:$0xff]  }
0x1570   : > { %8514 = vmatpush1.bf16.msra.mxu0 %v17352_v57 }
0x1571   : > { %8515 = vmatprep.subr.bf16.mxu0 %v17357_v62  ;;  %v17450_v62 = vld [vmem:[%s20764_s5 + $0x114] ss:$8 sps:$4 sm:$0xff]  }
0x1574   : > { %8516 = vmatpush1.bf16.msra.mxu0 %v17355_v45 }
0x1575   : > { %8517 = vmatprep.subr.bf16.mxu0 %v17360_v63  ;;  %v17448_v63 = vld [vmem:[%s20764_s5 + $0x110] ss:$8 sps:$4 sm:$0xff]  }
0x1578   : > { %8518 = vmatpush1.bf16.msra.mxu0 %v17358_v0  ;;  %v17453_v0 = vld [vmem:[%s20764_s5 + $0x124] ss:$8 sps:$4 sm:$0xff]  }
0x1579   : > { %8519 = vmatprep.subr.bf16.mxu0 %v17363_v2  ;;  %v17451_v2 = vld [vmem:[%s20764_s5 + $0x120] ss:$8 sps:$4 sm:$0xff]  }
0x157c   : > { %8520 = vmatpush1.bf16.msra.mxu0 %v17361_v4  ;;  %v17456_v4 = vld [vmem:[%s20764_s5 + $0x134] ss:$8 sps:$4 sm:$0xff]  }
0x157d   : > { %8521 = vmatprep.subr.bf16.mxu0 %v17366_v33  ;;  %v17454_v33 = vld [vmem:[%s20764_s5 + $0x130] ss:$8 sps:$4 sm:$0xff]  }
0x1580   : > { %8522 = vmatpush1.bf16.msra.mxu0 %v17364_v8  ;;  %v17457_v8 = vld [vmem:[%s20764_s5 + $0x140] ss:$8 sps:$4 sm:$0xff]  }
0x1581   : > { %8523 = vmatprep.subr.bf16.mxu0 %v17369_v30  ;;  %v17462_v30 = vld [vmem:[%s20764_s5 + $0x154] ss:$8 sps:$4 sm:$0xff]  }
0x1584   : > { %8524 = vmatpush1.bf16.msra.mxu0 %v17367_v7  ;;  %v17460_v7 = vld [vmem:[%s20764_s5 + $0x150] ss:$8 sps:$4 sm:$0xff]  }
0x1585   : > { %8525 = vmatprep.subr.bf16.mxu0 %v17372_v11  ;;  %v17465_v11 = vld [vmem:[%s20764_s5 + $0x164] ss:$8 sps:$4 sm:$0xff]  }
0x1588   : > { %8526 = vmatpush1.bf16.msra.mxu0 %v17370_v41  ;;  %v17463_v41 = vld [vmem:[%s20764_s5 + $0x160] ss:$8 sps:$4 sm:$0xff]  }
0x1589   : > { %8527 = vmatprep.subr.bf16.mxu0 %v17375_v17  ;;  %v17468_v17 = vld [vmem:[%s20764_s5 + $0x174] ss:$8 sps:$4 sm:$0xff]  }
0x158c   : > { %8528 = vmatpush1.bf16.msra.mxu0 %v17373_v19  ;;  %v17466_v19 = vld [vmem:[%s20764_s5 + $0x170] ss:$8 sps:$4 sm:$0xff]  }
0x158d   : > { %8529 = vmatprep.subr.bf16.mxu0 %v17378_v24  ;;  %v17471_v24 = vld [vmem:[%s20764_s5 + $0x184] ss:$8 sps:$4 sm:$0xff]  }
0x1590   : > { %8530 = vmatpush1.bf16.msra.mxu0 %v17376_v50  ;;  %v17469_v50 = vld [vmem:[%s20764_s5 + $0x180] ss:$8 sps:$4 sm:$0xff]  }
0x1591   : > { %8531 = vmatprep.subr.bf16.mxu0 %v17381_v20  ;;  %v17474_v20 = vld [vmem:[%s20764_s5 + $0x194] ss:$8 sps:$4 sm:$0xff]  }
0x1594   : > { %8532 = vmatpush1.bf16.msra.mxu0 %v17379_v21  ;;  %v17472_v21 = vld [vmem:[%s20764_s5 + $0x190] ss:$8 sps:$4 sm:$0xff]  }
0x1595   : > { %8533 = vmatprep.subr.bf16.mxu0 %v17384_v22  ;;  %v17477_v22 = vld [vmem:[%s20764_s5 + $0x1a4] ss:$8 sps:$4 sm:$0xff]  }
0x1598   : > { %8534 = vmatpush1.bf16.msra.mxu0 %v17382_v58  ;;  %v17475_v58 = vld [vmem:[%s20764_s5 + $0x1a0] ss:$8 sps:$4 sm:$0xff]  }
0x1599   : > { %8535 = vmatprep.subr.bf16.mxu0 %v17387_v23  ;;  %v17480_v23 = vld [vmem:[%s20764_s5 + $0x1b4] ss:$8 sps:$4 sm:$0xff]  }
0x159c   : > { %8536 = vmatpush1.bf16.msra.mxu0 %v17385_v59  ;;  %v17478_v59 = vld [vmem:[%s20764_s5 + $0x1b0] ss:$8 sps:$4 sm:$0xff]  }
0x159d   : > { %8537 = vmatprep.subr.bf16.mxu0 %v17390_v12  ;;  %v17483_v12 = vld [vmem:[%s20764_s5 + $0x1c4] ss:$8 sps:$4 sm:$0xff]  }
0x15a0   : > { %8538 = vmatpush1.bf16.msra.mxu0 %v17388_v31  ;;  %v17481_v31 = vld [vmem:[%s20764_s5 + $0x1c0] ss:$8 sps:$4 sm:$0xff]  }
0x15a1   : > { %8539 = vmatprep.subr.bf16.mxu0 %v17393_v13  ;;  %v17486_v13 = vld [vmem:[%s20764_s5 + $0x1d4] ss:$8 sps:$4 sm:$0xff]  }
0x15a4   : > { %8540 = vmatpush1.bf16.msra.mxu0 %v17391_v28  ;;  %v17484_v28 = vld [vmem:[%s20764_s5 + $0x1d0] ss:$8 sps:$4 sm:$0xff]  }
0x15a5   : > { %8541 = vmatprep.subr.bf16.mxu0 %v17396_v29  ;;  %v17489_v29 = vld [vmem:[%s20764_s5 + $0x1e4] ss:$8 sps:$4 sm:$0xff]  }
0x15a8   : > { %8542 = vmatpush1.bf16.msra.mxu0 %v17394_v49  ;;  %v17487_v49 = vld [vmem:[%s20764_s5 + $0x1e0] ss:$8 sps:$4 sm:$0xff]  }
0x15ab   : > { %8544 = vmatmul.mubr.bf16.vlgmr.msra.gmra.mrb[108].mxu0 %v7545_v60 }
0x167e   : > { %v8545_v46 = vpop.f32.mrb[108].mxu0 }
0x167f   : > { %v8552_v36 = vmax.f32 %v8545_v46, 0.0  ;;  %v8547_v37 = vpop.f32.mrb[109].mxu0 }
0x1680   : > { %v8553_v53 = vmax.f32 %v8547_v37, 0.0  ;;  %v8549_v34 = vpop.f32.mrb[110].mxu0 }
0x1681   : > { %v8556_v39 = vrot.slane %v8552_v36, 6  ;;  %v8550_v40 = vpop.f32.mrb[111].mxu0  ;;  %v17498_v36 = vld [vmem:[%s20764_s5 + $0x214] ss:$8 sps:$4 sm:$0xff]   ;;  %v17501_v34 = vld [vmem:[%s20764_s5 + $0x224] ss:$8 sps:$4 sm:$0xff]  }
0x1682   : > { %v8557_v43 = vrot.slane %v8553_v53, 6  ;;  %v17496_v53 = vld [vmem:[%s20764_s5 + $0x210] ss:$8 sps:$4 sm:$0xff]   ;;  %v17504_v40 = vld [vmem:[%s20764_s5 + $0x234] ss:$8 sps:$4 sm:$0xff]  }
0x1683   : > { %v19774_v48 = vsel %vm1228_vm0, 0.0, %v8556_v39  ;;  %v17499_v39 = vld [vmem:[%s20764_s5 + $0x220] ss:$8 sps:$4 sm:$0xff]  }
0x1684   : > { %v8561_v6 = vsel %vm1228_vm0, 0.0, %v8557_v43  ;;  %v14912_v56 = vpack.c.bf16 %v19774_v48, %v19774_v48  ;;  %v19819_v60 = vsel %vm1229_vm1, %v19774_v48, 0.0  ;;  %v17502_v43 = vld [vmem:[%s20764_s5 + $0x230] ss:$8 sps:$4 sm:$0xff]   ;;  %v17507_v48 = vld [vmem:[%s20764_s5 + $0x244] ss:$8 sps:$4 sm:$0xff]  }
0x1685   : > { %v19778_v5 = vsel %vm1229_vm1, %v8561_v6, 0.0  ;;  %v14909_v44 = vpack.c.bf16 %v8561_v6, %v8561_v6  ;;  %v8566_v32 = vrot.slane %v19819_v60, 1  ;;  %v17505_v6 = vld [vmem:[%s20764_s5 + $0x240] ss:$8 sps:$4 sm:$0xff]  }
0x1686   : > { %v8567_v57 = vrot.slane %v19778_v5, 1  ;;  %v8571_v38 = vrot.slane %v19778_v5, 2 }
0x1687   : > { %14910 = vmatprep.mubr.msk.bf16.mxu1 %vm19390_vm11, %v14909_v44  ;;  %v8744_v46 = vpack.c.bf16 %v8566_v32, %v8566_v32  ;;  %v17510_v44 = vld [vmem:[%s20764_s5 + $0x254] ss:$8 sps:$4 sm:$0xff]  }
0x1688   : > { %14913 = vmatmul.mubr.msk.bf16.vlgmr.msra.gmra.mrb[88].mxu1 %vm19390_vm11, %v14912_v56  ;;  %v8745_v45 = vpack.c.bf16 %v8567_v57, %v8567_v57  ;;  %v8747_v37 = vpack.c.bf16 %v8571_v38, %v8571_v38  ;;  %v17513_v56 = vld [vmem:[%s20764_s5 + $0x264] ss:$8 sps:$4 sm:$0xff]   ;;  %v17511_v57 = vld [vmem:[%s20764_s5 + $0x260] ss:$8 sps:$4 sm:$0xff]   ;;  %v17552_v38 = vld [vmem:[%s20764_s5 + $0x334] ss:$8 sps:$4 sm:$0xff]  }
0x1689   : > { %9594 = vmatpush1.bf16.msra.mxu1 %v17445_v10  ;;  %v17508_v10 = vld [vmem:[%s20764_s5 + $0x250] ss:$8 sps:$4 sm:$0xff]   ;;  %v17645_v32 = vld [vmem:[%s20765_s3 + $0x44] ss:$16 sps:$4 sm:$0xff]  }
0x168a   : > { %9625 = vmatprep.mubr.bf16.mxu1 %v8745_v45  ;;  %9595 = vmatprep.subr.bf16.mxu1 %v17450_v62  ;;  %v17516_v62 = vld [vmem:[%s20764_s5 + $0x274] ss:$8 sps:$4 sm:$0xff]   ;;  %v17514_v45 = vld [vmem:[%s20764_s5 + $0x270] ss:$8 sps:$4 sm:$0xff]  }
0x168d   : > { %9596 = vmatpush1.bf16.msra.mxu1 %v17448_v63  ;;  %v17519_v63 = vld [vmem:[%s20764_s5 + $0x284] ss:$8 sps:$4 sm:$0xff]  }
0x168e   : > { %9597 = vmatprep.subr.bf16.mxu1 %v17453_v0  ;;  %v17517_v0 = vld [vmem:[%s20764_s5 + $0x280] ss:$8 sps:$4 sm:$0xff]  }
0x1691   : > { %9598 = vmatpush1.bf16.msra.mxu1 %v17451_v2  ;;  %v17522_v2 = vld [vmem:[%s20764_s5 + $0x294] ss:$8 sps:$4 sm:$0xff]  }
0x1692   : > { %9599 = vmatprep.subr.bf16.mxu1 %v17456_v4  ;;  %v17520_v4 = vld [vmem:[%s20764_s5 + $0x290] ss:$8 sps:$4 sm:$0xff]  }
0x1695   : > { %9600 = vmatpush1.bf16.msra.mxu1 %v17454_v33  ;;  %v17525_v33 = vld [vmem:[%s20764_s5 + $0x2a4] ss:$8 sps:$4 sm:$0xff]  }
0x1696   : > { %9601 = vmatprep.subr.bf16.mxu1 %v17459_v54  ;;  %v17523_v54 = vld [vmem:[%s20764_s5 + $0x2a0] ss:$8 sps:$4 sm:$0xff]  }
0x1699   : > { %9602 = vmatpush1.bf16.msra.mxu1 %v17457_v8  ;;  %v17528_v8 = vld [vmem:[%s20764_s5 + $0x2b4] ss:$8 sps:$4 sm:$0xff]  }
0x169a   : > { %9603 = vmatprep.subr.bf16.mxu1 %v17462_v30  ;;  %v17526_v30 = vld [vmem:[%s20764_s5 + $0x2b0] ss:$8 sps:$4 sm:$0xff]  }
0x169d   : > { %9604 = vmatpush1.bf16.msra.mxu1 %v17460_v7  ;;  %v17531_v7 = vld [vmem:[%s20764_s5 + $0x2c4] ss:$8 sps:$4 sm:$0xff]  }
0x169e   : > { %9605 = vmatprep.subr.bf16.mxu1 %v17465_v11  ;;  %v17529_v11 = vld [vmem:[%s20764_s5 + $0x2c0] ss:$8 sps:$4 sm:$0xff]  }
0x16a1   : > { %9606 = vmatpush1.bf16.msra.mxu1 %v17463_v41  ;;  %v17534_v41 = vld [vmem:[%s20764_s5 + $0x2d4] ss:$8 sps:$4 sm:$0xff]  }
0x16a2   : > { %9607 = vmatprep.subr.bf16.mxu1 %v17468_v17  ;;  %v17532_v17 = vld [vmem:[%s20764_s5 + $0x2d0] ss:$8 sps:$4 sm:$0xff]  }
0x16a5   : > { %9608 = vmatpush1.bf16.msra.mxu1 %v17466_v19  ;;  %v17537_v19 = vld [vmem:[%s20764_s5 + $0x2e4] ss:$8 sps:$4 sm:$0xff]  }
0x16a6   : > { %9609 = vmatprep.subr.bf16.mxu1 %v17471_v24  ;;  %v17535_v24 = vld [vmem:[%s20764_s5 + $0x2e0] ss:$8 sps:$4 sm:$0xff]  }
0x16a9   : > { %9610 = vmatpush1.bf16.msra.mxu1 %v17469_v50  ;;  %v17540_v50 = vld [vmem:[%s20764_s5 + $0x2f4] ss:$8 sps:$4 sm:$0xff]  }
0x16aa   : > { %9611 = vmatprep.subr.bf16.mxu1 %v17474_v20  ;;  %v17538_v20 = vld [vmem:[%s20764_s5 + $0x2f0] ss:$8 sps:$4 sm:$0xff]  }
0x16ad   : > { %9612 = vmatpush1.bf16.msra.mxu1 %v17472_v21  ;;  %v8570_v21 = vrot.slane %v19819_v60, 2 }
0x16ae   : > { %9613 = vmatprep.subr.bf16.mxu1 %v17477_v22  ;;  %v17543_v22 = vld [vmem:[%s20764_s5 + $0x304] ss:$8 sps:$4 sm:$0xff]  }
0x16b1   : > { %9614 = vmatpush1.bf16.msra.mxu1 %v17475_v58  ;;  %v8575_v58 = vrot.slane %v19778_v5, 3 }
0x16b2   : > { %9615 = vmatprep.subr.bf16.mxu1 %v17480_v23  ;;  %v17541_v23 = vld [vmem:[%s20764_s5 + $0x300] ss:$8 sps:$4 sm:$0xff]  }
0x16b5   : > { %9616 = vmatpush1.bf16.msra.mxu1 %v17478_v59  ;;  %v8746_v59 = vpack.c.bf16 %v8570_v21, %v8570_v21  ;;  %v17672_v21 = vld [vmem:[%s20765_s3 + $0x164] ss:$16 sps:$4 sm:$0xff]  }
0x16b6   : > { %9617 = vmatprep.subr.bf16.mxu1 %v17483_v12  ;;  %v17546_v12 = vld [vmem:[%s20764_s5 + $0x314] ss:$8 sps:$4 sm:$0xff]  }
0x16b9   : > { %9618 = vmatpush1.bf16.msra.mxu1 %v17481_v31  ;;  %v8749_v31 = vpack.c.bf16 %v8575_v58, %v8575_v58  ;;  %v17579_v58 = vld [vmem:[%s20764_s5 + $0x3c4] ss:$8 sps:$4 sm:$0xff]  }
0x16ba   : > { %9619 = vmatprep.subr.bf16.mxu1 %v17486_v13  ;;  %v17637_v13 = vld [vmem:[%s20765_s3] ss:$16 sps:$4 sm:$0xff]  }
0x16bd   : > { %9620 = vmatpush1.bf16.msra.mxu1 %v17484_v28  ;;  %v17639_v28 = vld [vmem:[%s20765_s3 + $0x4] ss:$16 sps:$4 sm:$0xff]  }
0x16be   : > { %9621 = vmatprep.subr.bf16.mxu1 %v17489_v29  ;;  %v17544_v29 = vld [vmem:[%s20764_s5 + $0x310] ss:$8 sps:$4 sm:$0xff]   ;;  %10149 = vmatprep.subr.bf16.mxu0 %v17639_v28  ;;  %v17678_v28 = vld [vmem:[%s20765_s3 + $0x1a4] ss:$16 sps:$4 sm:$0xff]  }
0x16bf   : > { %10150 = vmatpush1.bf16.msra.mxu0 %v17637_v13  ;;  %v17673_v13 = vld [vmem:[%s20765_s3 + $0x180] ss:$16 sps:$4 sm:$0xff]  }
0x16c1   : > { %9622 = vmatpush1.bf16.msra.mxu1 %v17487_v49  ;;  %v17642_v49 = vld [vmem:[%s20765_s3 + $0x24] ss:$16 sps:$4 sm:$0xff]  }
0x16c2   : > { %9623 = vmatprep.subr.bf16.mxu1 %v17492_v51  ;;  %v17549_v51 = vld [vmem:[%s20764_s5 + $0x324] ss:$8 sps:$4 sm:$0xff]   ;;  %10151 = vmatprep.subr.bf16.mxu0 %v17642_v49 }
0x16c3   : > { %v17585_v49 = vld [vmem:[%s20764_s5 + $0x3e4] ss:$8 sps:$4 sm:$0xff]  }
0x16c5   : > { %9624 = vmatpush1.bf16.msra.mxu1 %v17490_v14  ;;  %v17640_v14 = vld [vmem:[%s20765_s3 + $0x20] ss:$16 sps:$4 sm:$0xff]  }
0x16c6   : > { %9634 = vmatprep.subr.bf16.mxu1 %v17495_v27  ;;  %v17547_v27 = vld [vmem:[%s20764_s5 + $0x320] ss:$8 sps:$4 sm:$0xff]   ;;  %10152 = vmatpush1.bf16.msra.mxu0 %v17640_v14 }
0x16c7   : > { %10153 = vmatprep.subr.bf16.mxu0 %v17645_v32  ;;  %v17583_v14 = vld [vmem:[%s20764_s5 + $0x3e0] ss:$8 sps:$4 sm:$0xff]   ;;  %v17588_v32 = vld [vmem:[%s20764_s5 + $0x3f4] ss:$8 sps:$4 sm:$0xff]  }
0x16c8   : > { %9626 = vmatmul.mubr.bf16.vlgmr.msra.gmra.mrb[88].mxu1 %v8744_v46  ;;  %v17648_v46 = vld [vmem:[%s20765_s3 + $0x64] ss:$16 sps:$4 sm:$0xff]  }
0x16c9   : > { %9635 = vmatpush1.bf16.msra.mxu1 %v17493_v35  ;;  %9666 = vmatprep.mubr.bf16.mxu1 %v8747_v37  ;;  %v17643_v35 = vld [vmem:[%s20765_s3 + $0x40] ss:$16 sps:$4 sm:$0xff]   ;;  %v17555_v37 = vld [vmem:[%s20764_s5 + $0x344] ss:$8 sps:$4 sm:$0xff]  }
0x16ca   : > { %9636 = vmatprep.subr.bf16.mxu1 %v17498_v36  ;;  %v17550_v36 = vld [vmem:[%s20764_s5 + $0x330] ss:$8 sps:$4 sm:$0xff]   ;;  %10154 = vmatpush1.bf16.msra.mxu0 %v17643_v35  ;;  %v17591_v35 = vld [vmem:[%s20764_s5 + $0x404] ss:$8 sps:$4 sm:$0xff]  }
0x16cb   : > { %10155 = vmatprep.subr.bf16.mxu0 %v17648_v46  ;;  %v8579_v46 = vrot.slane %v19778_v5, 4  ;;  %v17595_v5 = vld [vmem:[%s20764_s5 + $0x420] ss:$8 sps:$4 sm:$0xff]  }
0x16cd   : > { %9637 = vmatpush1.bf16.msra.mxu1 %v17496_v53  ;;  %v17646_v53 = vld [vmem:[%s20765_s3 + $0x60] ss:$16 sps:$4 sm:$0xff]  }
0x16ce   : > { %9638 = vmatprep.subr.bf16.mxu1 %v17501_v34  ;;  %v17651_v34 = vld [vmem:[%s20765_s3 + $0x84] ss:$16 sps:$4 sm:$0xff]   ;;  %10156 = vmatpush1.bf16.msra.mxu0 %v17646_v53 }
0x16cf   : > { %10157 = vmatprep.subr.bf16.mxu0 %v17651_v34  ;;  %v17594_v53 = vld [vmem:[%s20764_s5 + $0x414] ss:$8 sps:$4 sm:$0xff]   ;;  %v8751_v34 = vpack.c.bf16 %v8579_v46, %v8579_v46 }
0x16d1   : > { %9639 = vmatpush1.bf16.msra.mxu1 %v17499_v39  ;;  %v17553_v39 = vld [vmem:[%s20764_s5 + $0x340] ss:$8 sps:$4 sm:$0xff]  }
0x16d2   : > { %9640 = vmatprep.subr.bf16.mxu1 %v17504_v40  ;;  %v17558_v40 = vld [vmem:[%s20764_s5 + $0x354] ss:$8 sps:$4 sm:$0xff]  }
0x16d5   : > { %9641 = vmatpush1.bf16.msra.mxu1 %v17502_v43  ;;  %v17649_v43 = vld [vmem:[%s20765_s3 + $0x80] ss:$16 sps:$4 sm:$0xff]  }
0x16d6   : > { %9642 = vmatprep.subr.bf16.mxu1 %v17507_v48  ;;  %v17654_v48 = vld [vmem:[%s20765_s3 + $0xa4] ss:$16 sps:$4 sm:$0xff]   ;;  %10158 = vmatpush1.bf16.msra.mxu0 %v17649_v43 }
0x16d7   : > { %10159 = vmatprep.subr.bf16.mxu0 %v17654_v48  ;;  %v17600_v43 = vld [vmem:[%s20764_s5 + $0x434] ss:$8 sps:$4 sm:$0xff]   ;;  %v17598_v48 = vld [vmem:[%s20764_s5 + $0x430] ss:$8 sps:$4 sm:$0xff]  }
0x16d9   : > { %9643 = vmatpush1.bf16.msra.mxu1 %v17505_v6  ;;  %v17556_v6 = vld [vmem:[%s20764_s5 + $0x350] ss:$8 sps:$4 sm:$0xff]  }
0x16da   : > { %9644 = vmatprep.subr.bf16.mxu1 %v17510_v44  ;;  %v17561_v44 = vld [vmem:[%s20764_s5 + $0x364] ss:$8 sps:$4 sm:$0xff]  }
0x16dd   : > { %9645 = vmatpush1.bf16.msra.mxu1 %v17508_v10  ;;  %v17652_v10 = vld [vmem:[%s20765_s3 + $0xa0] ss:$16 sps:$4 sm:$0xff]  }
0x16de   : > { %9646 = vmatprep.subr.bf16.mxu1 %v17513_v56  ;;  %v17657_v56 = vld [vmem:[%s20765_s3 + $0xc4] ss:$16 sps:$4 sm:$0xff]   ;;  %10160 = vmatpush1.bf16.msra.mxu0 %v17652_v10 }
0x16df   : > { %10161 = vmatprep.subr.bf16.mxu0 %v17657_v56  ;;  %v17606_v10 = vld [vmem:[%s20764_s5 + $0x454] ss:$8 sps:$4 sm:$0xff]   ;;  %v17604_v56 = vld [vmem:[%s20764_s5 + $0x450] ss:$8 sps:$4 sm:$0xff]  }
0x16e1   : > { %9647 = vmatpush1.bf16.msra.mxu1 %v17511_v57  ;;  %v17559_v57 = vld [vmem:[%s20764_s5 + $0x360] ss:$8 sps:$4 sm:$0xff]  }
0x16e2   : > { %9648 = vmatprep.subr.bf16.mxu1 %v17516_v62  ;;  %v17564_v62 = vld [vmem:[%s20764_s5 + $0x374] ss:$8 sps:$4 sm:$0xff]  }
0x16e5   : > { %9649 = vmatpush1.bf16.msra.mxu1 %v17514_v45  ;;  %v17655_v45 = vld [vmem:[%s20765_s3 + $0xc0] ss:$16 sps:$4 sm:$0xff]  }
0x16e6   : > { %9650 = vmatprep.subr.bf16.mxu1 %v17519_v63  ;;  %v17660_v63 = vld [vmem:[%s20765_s3 + $0xe4] ss:$16 sps:$4 sm:$0xff]   ;;  %10162 = vmatpush1.bf16.msra.mxu0 %v17655_v45 }
0x16e7   : > { %10163 = vmatprep.subr.bf16.mxu0 %v17660_v63  ;;  %v17612_v45 = vld [vmem:[%s20764_s5 + $0x474] ss:$8 sps:$4 sm:$0xff]   ;;  %v17610_v63 = vld [vmem:[%s20764_s5 + $0x470] ss:$8 sps:$4 sm:$0xff]  }
0x16e9   : > { %9651 = vmatpush1.bf16.msra.mxu1 %v17517_v0  ;;  %v17562_v0 = vld [vmem:[%s20764_s5 + $0x370] ss:$8 sps:$4 sm:$0xff]  }
0x16ea   : > { %9652 = vmatprep.subr.bf16.mxu1 %v17522_v2  ;;  %v17567_v2 = vld [vmem:[%s20764_s5 + $0x384] ss:$8 sps:$4 sm:$0xff]  }
0x16ed   : > { %9653 = vmatpush1.bf16.msra.mxu1 %v17520_v4  ;;  %v17658_v4 = vld [vmem:[%s20765_s3 + $0xe0] ss:$16 sps:$4 sm:$0xff]  }
0x16ee   : > { %9654 = vmatprep.subr.bf16.mxu1 %v17525_v33  ;;  %v17663_v33 = vld [vmem:[%s20765_s3 + $0x104] ss:$16 sps:$4 sm:$0xff]   ;;  %10164 = vmatpush1.bf16.msra.mxu0 %v17658_v4 }
0x16ef   : > { %10165 = vmatprep.subr.bf16.mxu0 %v17663_v33  ;;  %v17618_v4 = vld [vmem:[%s20764_s5 + $0x494] ss:$8 sps:$4 sm:$0xff]   ;;  %v17616_v33 = vld [vmem:[%s20764_s5 + $0x490] ss:$8 sps:$4 sm:$0xff]  }
0x16f1   : > { %9655 = vmatpush1.bf16.msra.mxu1 %v17523_v54  ;;  %v17565_v54 = vld [vmem:[%s20764_s5 + $0x380] ss:$8 sps:$4 sm:$0xff]  }
0x16f2   : > { %9656 = vmatprep.subr.bf16.mxu1 %v17528_v8  ;;  %v17570_v8 = vld [vmem:[%s20764_s5 + $0x394] ss:$8 sps:$4 sm:$0xff]  }
0x16f5   : > { %9657 = vmatpush1.bf16.msra.mxu1 %v17526_v30  ;;  %v17661_v30 = vld [vmem:[%s20765_s3 + $0x100] ss:$16 sps:$4 sm:$0xff]  }
0x16f6   : > { %9658 = vmatprep.subr.bf16.mxu1 %v17531_v7  ;;  %v17666_v7 = vld [vmem:[%s20765_s3 + $0x124] ss:$16 sps:$4 sm:$0xff]   ;;  %10166 = vmatpush1.bf16.msra.mxu0 %v17661_v30 }
0x16f7   : > { %10167 = vmatprep.subr.bf16.mxu0 %v17666_v7  ;;  %v17624_v30 = vld [vmem:[%s20764_s5 + $0x4b4] ss:$8 sps:$4 sm:$0xff]   ;;  %v17622_v7 = vld [vmem:[%s20764_s5 + $0x4b0] ss:$8 sps:$4 sm:$0xff]  }
0x16f9   : > { %9659 = vmatpush1.bf16.msra.mxu1 %v17529_v11  ;;  %v17568_v11 = vld [vmem:[%s20764_s5 + $0x390] ss:$8 sps:$4 sm:$0xff]  }
0x16fa   : > { %9660 = vmatprep.subr.bf16.mxu1 %v17534_v41  ;;  %v17573_v41 = vld [vmem:[%s20764_s5 + $0x3a4] ss:$8 sps:$4 sm:$0xff]  }
0x16fd   : > { %9661 = vmatpush1.bf16.msra.mxu1 %v17532_v17  ;;  %v17664_v17 = vld [vmem:[%s20765_s3 + $0x120] ss:$16 sps:$4 sm:$0xff]  }
0x16fe   : > { %9662 = vmatprep.subr.bf16.mxu1 %v17537_v19  ;;  %v17669_v19 = vld [vmem:[%s20765_s3 + $0x144] ss:$16 sps:$4 sm:$0xff]   ;;  %10168 = vmatpush1.bf16.msra.mxu0 %v17664_v17 }
0x16ff   : > { %10169 = vmatprep.subr.bf16.mxu0 %v17669_v19  ;;  %v17630_v17 = vld [vmem:[%s20764_s5 + $0x4d4] ss:$8 sps:$4 sm:$0xff]   ;;  %v17628_v19 = vld [vmem:[%s20764_s5 + $0x4d0] ss:$8 sps:$4 sm:$0xff]  }
0x1701   : > { %9663 = vmatpush1.bf16.msra.mxu1 %v17535_v24  ;;  %v17571_v24 = vld [vmem:[%s20764_s5 + $0x3a0] ss:$8 sps:$4 sm:$0xff]  }
0x1702   : > { %9664 = vmatprep.subr.bf16.mxu1 %v17540_v50  ;;  %v17576_v50 = vld [vmem:[%s20764_s5 + $0x3b4] ss:$8 sps:$4 sm:$0xff]  }
0x1705   : > { %9665 = vmatpush1.bf16.msra.mxu1 %v17538_v20  ;;  %v17667_v20 = vld [vmem:[%s20765_s3 + $0x140] ss:$16 sps:$4 sm:$0xff]  }
0x1706   : > { %9675 = vmatprep.subr.bf16.mxu1 %v17543_v22  ;;  %v17574_v22 = vld [vmem:[%s20764_s5 + $0x3b0] ss:$8 sps:$4 sm:$0xff]   ;;  %10170 = vmatpush1.bf16.msra.mxu0 %v17667_v20  ;;  %v17636_v20 = vld [vmem:[%s20764_s5 + $0x4f4] ss:$8 sps:$4 sm:$0xff]  }
0x1707   : > { %10171 = vmatprep.subr.bf16.mxu0 %v17672_v21  ;;  %v17634_v21 = vld [vmem:[%s20764_s5 + $0x4f0] ss:$8 sps:$4 sm:$0xff]  }
0x1708   : > { %9667 = vmatmul.mubr.bf16.vlgmr.msra.gmra.mrb[88].mxu1 %v8746_v59  ;;  %v17675_v59 = vld [vmem:[%s20765_s3 + $0x184] ss:$16 sps:$4 sm:$0xff]  }
0x1709   : > { %9676 = vmatpush1.bf16.msra.mxu1 %v17541_v23  ;;  %9707 = vmatprep.mubr.bf16.mxu1 %v8749_v31  ;;  %v17670_v23 = vld [vmem:[%s20765_s3 + $0x160] ss:$16 sps:$4 sm:$0xff]   ;;  %v17582_v31 = vld [vmem:[%s20764_s5 + $0x3d4] ss:$8 sps:$4 sm:$0xff]  }
0x170a   : > { %9677 = vmatprep.subr.bf16.mxu1 %v17546_v12  ;;  %v17577_v12 = vld [vmem:[%s20764_s5 + $0x3c0] ss:$8 sps:$4 sm:$0xff]   ;;  %10172 = vmatpush1.bf16.msra.mxu0 %v17670_v23  ;;  %v17681_v23 = vld [vmem:[%s20765_s3 + $0x1c4] ss:$16 sps:$4 sm:$0xff]  }
0x170b   : > { %10173 = vmatprep.subr.bf16.mxu0 %v17675_v59  ;;  %v17679_v59 = vld [vmem:[%s20765_s3 + $0x1c0] ss:$16 sps:$4 sm:$0xff]  }
0x170d   : > { %9678 = vmatpush1.bf16.msra.mxu1 %v17544_v29  ;;  %v17580_v29 = vld [vmem:[%s20764_s5 + $0x3d0] ss:$8 sps:$4 sm:$0xff]  }
0x170e   : > { %9679 = vmatprep.subr.bf16.mxu1 %v17549_v51  ;;  %10174 = vmatpush1.bf16.msra.mxu0 %v17673_v13  ;;  %v17676_v51 = vld [vmem:[%s20765_s3 + $0x1a0] ss:$16 sps:$4 sm:$0xff]   ;;  %v17687_v13 = vld [vmem:[%s20765_s3 + $0xc] ss:$16 sps:$4 sm:$0xff]  }
0x170f   : > { %10175 = vmatprep.subr.bf16.mxu0 %v17678_v28 }
0x1711   : > { %9680 = vmatpush1.bf16.msra.mxu1 %v17547_v27  ;;  %v17586_v27 = vld [vmem:[%s20764_s5 + $0x3f0] ss:$8 sps:$4 sm:$0xff]  }
0x1712   : > { %9681 = vmatprep.subr.bf16.mxu1 %v17552_v38  ;;  %10176 = vmatpush1.bf16.msra.mxu0 %v17676_v51  ;;  %v8574_v38 = vrot.slane %v19819_v60, 3 }
0x1713   : > { %10177 = vmatprep.subr.bf16.mxu0 %v17681_v23 }
0x1715   : > { %9682 = vmatpush1.bf16.msra.mxu1 %v17550_v36  ;;  %v17589_v36 = vld [vmem:[%s20764_s5 + $0x400] ss:$8 sps:$4 sm:$0xff]  }
0x1716   : > { %9683 = vmatprep.subr.bf16.mxu1 %v17555_v37  ;;  %v8748_v37 = vpack.c.bf16 %v8574_v38, %v8574_v38  ;;  %10178 = vmatpush1.bf16.msra.mxu0 %v17679_v59 }
0x1719   : > { %9684 = vmatpush1.bf16.msra.mxu1 %v17553_v39  ;;  %v17592_v39 = vld [vmem:[%s20764_s5 + $0x410] ss:$8 sps:$4 sm:$0xff]  }
0x171a   : > { %9685 = vmatprep.subr.bf16.mxu1 %v17558_v40  ;;  %v17597_v40 = vld [vmem:[%s20764_s5 + $0x424] ss:$8 sps:$4 sm:$0xff]  }
0x171d   : > { %9686 = vmatpush1.bf16.msra.mxu1 %v17556_v6  ;;  %v17603_v6 = vld [vmem:[%s20764_s5 + $0x444] ss:$8 sps:$4 sm:$0xff]  }
0x171e   : > { %9687 = vmatprep.subr.bf16.mxu1 %v17561_v44  ;;  %v17601_v44 = vld [vmem:[%s20764_s5 + $0x440] ss:$8 sps:$4 sm:$0xff]  }
0x1721   : > { %9688 = vmatpush1.bf16.msra.mxu1 %v17559_v57  ;;  %v17609_v57 = vld [vmem:[%s20764_s5 + $0x464] ss:$8 sps:$4 sm:$0xff]  }
0x1722   : > { %9689 = vmatprep.subr.bf16.mxu1 %v17564_v62  ;;  %v17607_v62 = vld [vmem:[%s20764_s5 + $0x460] ss:$8 sps:$4 sm:$0xff]  }
0x1725   : > { %9690 = vmatpush1.bf16.msra.mxu1 %v17562_v0  ;;  %v17615_v0 = vld [vmem:[%s20764_s5 + $0x484] ss:$8 sps:$4 sm:$0xff]  }
0x1726   : > { %9691 = vmatprep.subr.bf16.mxu1 %v17567_v2  ;;  %v17613_v2 = vld [vmem:[%s20764_s5 + $0x480] ss:$8 sps:$4 sm:$0xff]  }
0x1729   : > { %9692 = vmatpush1.bf16.msra.mxu1 %v17565_v54  ;;  %v17621_v54 = vld [vmem:[%s20764_s5 + $0x4a4] ss:$8 sps:$4 sm:$0xff]  }
0x172a   : > { %9693 = vmatprep.subr.bf16.mxu1 %v17570_v8  ;;  %v17619_v8 = vld [vmem:[%s20764_s5 + $0x4a0] ss:$8 sps:$4 sm:$0xff]  }
0x172d   : > { %9694 = vmatpush1.bf16.msra.mxu1 %v17568_v11  ;;  %v17627_v11 = vld [vmem:[%s20764_s5 + $0x4c4] ss:$8 sps:$4 sm:$0xff]  }
0x172e   : > { %9695 = vmatprep.subr.bf16.mxu1 %v17573_v41  ;;  %v17625_v41 = vld [vmem:[%s20764_s5 + $0x4c0] ss:$8 sps:$4 sm:$0xff]  }
0x1731   : > { %9696 = vmatpush1.bf16.msra.mxu1 %v17571_v24  ;;  %v17633_v24 = vld [vmem:[%s20764_s5 + $0x4e4] ss:$8 sps:$4 sm:$0xff]  }
0x1732   : > { %9697 = vmatprep.subr.bf16.mxu1 %v17576_v50  ;;  %v17631_v50 = vld [vmem:[%s20764_s5 + $0x4e0] ss:$8 sps:$4 sm:$0xff]   ;;  %s20766_s5 = sld [smem:[#allocation20_spill]] }
0x1735   : > { %9698 = vmatpush1.bf16.msra.mxu1 %v17574_v22  ;;  %v8578_v22 = vrot.slane %v19819_v60, 4 }
0x1736   : > { %9699 = vmatprep.subr.bf16.mxu1 %v17579_v58 }
0x1737   : > { %v8750_v58 = vpack.c.bf16 %v8578_v22, %v8578_v22 }
0x1739   : > { %9700 = vmatpush1.bf16.msra.mxu1 %v17577_v12  ;;  %v17684_v12 = vld [vmem:[%s20765_s3 + $0x1e4] ss:$16 sps:$4 sm:$0xff]  }
0x173a   : > { %9701 = vmatprep.subr.bf16.mxu1 %v17582_v31  ;;  %v17682_v31 = vld [vmem:[%s20765_s3 + $0x1e0] ss:$16 sps:$4 sm:$0xff]   ;;  %10179 = vmatprep.subr.bf16.mxu0 %v17684_v12 }
0x173b   : > { %10180 = vmatpush1.bf16.msra.mxu0 %v17682_v31 }
0x173c   : > { %10190 = vmatprep.subr.bf16.mxu0 %v17687_v13  ;;  %v10295_v13 = vrot.slane %v19256_v26, 6  ;;  %v17734_v26 = vld [vmem:[%s20766_s5] sm:$0xff]  }
0x173d   : > { %9702 = vmatpush1.bf16.msra.mxu1 %v17580_v29 }
0x173e   : > { %9703 = vmatprep.subr.bf16.mxu1 %v17585_v49 }
0x1741   : > { %9704 = vmatpush1.bf16.msra.mxu1 %v17583_v14 }
0x1742   : > { %9705 = vmatprep.subr.bf16.mxu1 %v17588_v32 }
0x1745   : > { %9706 = vmatpush1.bf16.msra.mxu1 %v17586_v27 }
0x1746   : > { %9716 = vmatprep.subr.bf16.mxu1 %v17591_v35 }
0x1748   : > { %9708 = vmatmul.mubr.bf16.vlgmr.msra.gmra.mrb[88].mxu1 %v8748_v37 }
0x1749   : > { %9717 = vmatpush1.bf16.msra.mxu1 %v17589_v36  ;;  %9748 = vmatprep.mubr.bf16.mxu1 %v8751_v34  ;;  %v17685_v36 = vld [vmem:[%s20765_s3 + $0x8] ss:$16 sps:$4 sm:$0xff]  }
0x174a   : > { %9718 = vmatprep.subr.bf16.mxu1 %v17594_v53  ;;  %v17690_v53 = vld [vmem:[%s20765_s3 + $0x2c] ss:$16 sps:$4 sm:$0xff]   ;;  %v17694_v34 = vld [vmem:[%s20765_s3 + $0x68] ss:$16 sps:$4 sm:$0xff]  }
0x174d   : > { %9719 = vmatpush1.bf16.msra.mxu1 %v17592_v39  ;;  %v17699_v39 = vld [vmem:[%s20765_s3 + $0x8c] ss:$16 sps:$4 sm:$0xff]  }
0x174e   : > { %9720 = vmatprep.subr.bf16.mxu1 %v17597_v40  ;;  %v17697_v40 = vld [vmem:[%s20765_s3 + $0x88] ss:$16 sps:$4 sm:$0xff]  }
0x1751   : > { %9721 = vmatpush1.bf16.msra.mxu1 %v17595_v5  ;;  %v17702_v5 = vld [vmem:[%s20765_s3 + $0xac] ss:$16 sps:$4 sm:$0xff]  }
0x1752   : > { %9722 = vmatprep.subr.bf16.mxu1 %v17600_v43  ;;  %v17700_v43 = vld [vmem:[%s20765_s3 + $0xa8] ss:$16 sps:$4 sm:$0xff]  }
0x1755   : > { %9723 = vmatpush1.bf16.msra.mxu1 %v17598_v48  ;;  %v17705_v48 = vld [vmem:[%s20765_s3 + $0xcc] ss:$16 sps:$4 sm:$0xff]  }
0x1756   : > { %9724 = vmatprep.subr.bf16.mxu1 %v17603_v6  ;;  %v17703_v6 = vld [vmem:[%s20765_s3 + $0xc8] ss:$16 sps:$4 sm:$0xff]  }
0x1759   : > { %9725 = vmatpush1.bf16.msra.mxu1 %v17601_v44  ;;  %v17708_v44 = vld [vmem:[%s20765_s3 + $0xec] ss:$16 sps:$4 sm:$0xff]  }
0x175a   : > { %9726 = vmatprep.subr.bf16.mxu1 %v17606_v10  ;;  %v17706_v10 = vld [vmem:[%s20765_s3 + $0xe8] ss:$16 sps:$4 sm:$0xff]  }
0x175d   : > { %9727 = vmatpush1.bf16.msra.mxu1 %v17604_v56  ;;  %v17711_v56 = vld [vmem:[%s20765_s3 + $0x10c] ss:$16 sps:$4 sm:$0xff]  }
0x175e   : > { %9728 = vmatprep.subr.bf16.mxu1 %v17609_v57  ;;  %v17709_v57 = vld [vmem:[%s20765_s3 + $0x108] ss:$16 sps:$4 sm:$0xff]  }
0x1761   : > { %9729 = vmatpush1.bf16.msra.mxu1 %v17607_v62  ;;  %v17714_v62 = vld [vmem:[%s20765_s3 + $0x12c] ss:$16 sps:$4 sm:$0xff]  }
0x1762   : > { %9730 = vmatprep.subr.bf16.mxu1 %v17612_v45  ;;  %v17712_v45 = vld [vmem:[%s20765_s3 + $0x128] ss:$16 sps:$4 sm:$0xff]  }
0x1765   : > { %9731 = vmatpush1.bf16.msra.mxu1 %v17610_v63  ;;  %v17717_v63 = vld [vmem:[%s20765_s3 + $0x14c] ss:$16 sps:$4 sm:$0xff]  }
0x1766   : > { %9732 = vmatprep.subr.bf16.mxu1 %v17615_v0  ;;  %v17715_v0 = vld [vmem:[%s20765_s3 + $0x148] ss:$16 sps:$4 sm:$0xff]  }
0x1769   : > { %9733 = vmatpush1.bf16.msra.mxu1 %v17613_v2  ;;  %v17720_v2 = vld [vmem:[%s20765_s3 + $0x16c] ss:$16 sps:$4 sm:$0xff]  }
0x176a   : > { %9734 = vmatprep.subr.bf16.mxu1 %v17618_v4  ;;  %v17718_v4 = vld [vmem:[%s20765_s3 + $0x168] ss:$16 sps:$4 sm:$0xff]  }
0x176d   : > { %9735 = vmatpush1.bf16.msra.mxu1 %v17616_v33  ;;  %v17723_v33 = vld [vmem:[%s20765_s3 + $0x18c] ss:$16 sps:$4 sm:$0xff]  }
0x176e   : > { %9736 = vmatprep.subr.bf16.mxu1 %v17621_v54  ;;  %v17721_v54 = vld [vmem:[%s20765_s3 + $0x188] ss:$16 sps:$4 sm:$0xff]  }
0x1771   : > { %9737 = vmatpush1.bf16.msra.mxu1 %v17619_v8  ;;  %v17726_v8 = vld [vmem:[%s20765_s3 + $0x1ac] ss:$16 sps:$4 sm:$0xff]  }
0x1772   : > { %9738 = vmatprep.subr.bf16.mxu1 %v17624_v30  ;;  %v17724_v30 = vld [vmem:[%s20765_s3 + $0x1a8] ss:$16 sps:$4 sm:$0xff]  }
0x1775   : > { %9739 = vmatpush1.bf16.msra.mxu1 %v17622_v7  ;;  %v17729_v7 = vld [vmem:[%s20765_s3 + $0x1cc] ss:$16 sps:$4 sm:$0xff]  }
0x1776   : > { %9740 = vmatprep.subr.bf16.mxu1 %v17627_v11  ;;  %v17727_v11 = vld [vmem:[%s20765_s3 + $0x1c8] ss:$16 sps:$4 sm:$0xff]  }
0x1779   : > { %9741 = vmatpush1.bf16.msra.mxu1 %v17625_v41  ;;  %v17732_v41 = vld [vmem:[%s20765_s3 + $0x1ec] ss:$16 sps:$4 sm:$0xff]  }
0x177a   : > { %9742 = vmatprep.subr.bf16.mxu1 %v17630_v17  ;;  %v17730_v17 = vld [vmem:[%s20765_s3 + $0x1e8] ss:$16 sps:$4 sm:$0xff]  }
0x177d   : > { %9743 = vmatpush1.bf16.msra.mxu1 %v17628_v19 }
0x177e   : > { %9744 = vmatprep.subr.bf16.mxu1 %v17633_v24 }
0x1781   : > { %9745 = vmatpush1.bf16.msra.mxu1 %v17631_v50 }
0x1782   : > { %9746 = vmatprep.subr.bf16.mxu1 %v17636_v20 }
0x1785   : > { %9747 = vmatpush1.bf16.msra.mxu1 %v17634_v21 }
0x1788   : > { %9749 = vmatmul.mubr.bf16.vlgmr.msra.gmra.mrb[88].mxu1 %v8750_v58 }
0x185b   : > { %v9750_v28 = vpop.f32.mrb[88].mxu1 }
0x185c   : > { %v9757_v29 = vmax.f32 %v9750_v28, 0.0  ;;  %v9752_v49 = vpop.f32.mrb[89].mxu1 }
0x185d   : > { %v9758_v60 = vmax.f32 %v9752_v49, 0.0  ;;  %v9754_v51 = vpop.f32.mrb[90].mxu1 }
0x185e   : > { %v9759_v14 = vadd.f32 %v9757_v29, %v7347_v9  ;;  %v9755_v32 = vpop.f32.mrb[91].mxu1  ;;  %v17691_v9 = vld [vmem:[%s20765_s3 + $0x48] ss:$16 sps:$4 sm:$0xff]   ;;  %v17733_v51 = vld [vmem:[%s20766_s5 + $0x40] sm:$0xff]  }
0x185f   : > { %v9760_v27 = vadd.f32 %v9758_v60, %v7348_v3  ;;  %v17696_v3 = vld [vmem:[%s20765_s3 + $0x6c] ss:$16 sps:$4 sm:$0xff]   ;;  %s20769_s3 = sld [smem:[#allocation22_spill]] }
0x1860   : > { %v9761_v38 = vmax.f32 %v9759_v14, 0.0  ;;  %v10299_v14 = vsel %vm1228_vm0, 0.0, %v10295_v13 }
0x1861   : > { %v9762_v35 = vmax.f32 %v9760_v27, 0.0  ;;  %v10243_v27 = vld [vmem:[%s20767_s6] sm:$0x1]  ;;  %s20768_s6 = sld [smem:[#allocation21_spill]] }
0x1862   : > { %v19963_v37 = vpack.c.bf16 %v9761_v38, %v9761_v38  ;;  %v17735_v38 = vld [vmem:[%s20766_s5 + $0x48] sm:$0xff]  }
0x1863   : > { %v9828_v46 = vpack.c.bf16 %v9762_v35, %v9762_v35  ;;  %v15060_v35 = vpack.c.bf16 %v10299_v14, %v10299_v14 }
0x1865   : > { %10181 = vmatprep.mubr.bf16.mxu0 %v9828_v46 }
0x1866   : > { %10182 = vmatmul.mubr.bf16.vlgmr.msra.gmra.mrb[112].mxu0 %v19963_v37 }
0x1867   : > { %10191 = vmatpush1.bf16.msra.mxu0 %v17685_v36  ;;  %10222 = vmatprep.mubr.bf16.mxu0 %v9828_v46  ;;  %v17736_v46 = vld [vmem:[%s20766_s5 + $0x8] sm:$0xff]   ;;  %v17737_v36 = vld [vmem:[%s20766_s5 + $0x50] sm:$0xff]   ;;  %v17848_v47 = vld [vmem:[%s20768_s6 + $0x118] sm:$0xff]  }
0x1868   : > { %10192 = vmatprep.subr.bf16.mxu0 %v17690_v53  ;;  %v17739_v53 = vld [vmem:[%s20766_s5 + $0x58] sm:$0xff]  }
0x186b   : > { %10193 = vmatpush1.bf16.msra.mxu0 %v17688_v52  ;;  %v17740_v52 = vld [vmem:[%s20766_s5 + $0x18] sm:$0xff]  }
0x186c   : > { %10194 = vmatprep.subr.bf16.mxu0 %v17693_v42  ;;  %v17741_v42 = vld [vmem:[%s20766_s5 + $0x60] sm:$0xff]  }
0x186f   : > { %10195 = vmatpush1.bf16.msra.mxu0 %v17691_v9  ;;  %v17742_v9 = vld [vmem:[%s20766_s5 + $0x20] sm:$0xff]  }
0x1870   : > { %10196 = vmatprep.subr.bf16.mxu0 %v17696_v3  ;;  %v17743_v3 = vld [vmem:[%s20766_s5 + $0x68] sm:$0xff]  }
0x1873   : > { %10197 = vmatpush1.bf16.msra.mxu0 %v17694_v34  ;;  %v17744_v34 = vld [vmem:[%s20766_s5 + $0x28] sm:$0xff]  }
0x1874   : > { %10198 = vmatprep.subr.bf16.mxu0 %v17699_v39  ;;  %v17745_v39 = vld [vmem:[%s20766_s5 + $0x70] sm:$0xff]  }
0x1877   : > { %10199 = vmatpush1.bf16.msra.mxu0 %v17697_v40  ;;  %v17746_v40 = vld [vmem:[%s20766_s5 + $0x30] sm:$0xff]  }
0x1878   : > { %10200 = vmatprep.subr.bf16.mxu0 %v17702_v5  ;;  %v17747_v5 = vld [vmem:[%s20766_s5 + $0x78] sm:$0xff]  }
0x187b   : > { %10201 = vmatpush1.bf16.msra.mxu0 %v17700_v43  ;;  %v17748_v43 = vld [vmem:[%s20766_s5 + $0x38] sm:$0xff]  }
0x187c   : > { %10202 = vmatprep.subr.bf16.mxu0 %v17705_v48  ;;  %v17749_v48 = vld [vmem:[%s20766_s5 + $0xc0] sm:$0xff]  }
0x187f   : > { %10203 = vmatpush1.bf16.msra.mxu0 %v17703_v6  ;;  %v20027_v6 = vsel %vm1401_vm4, %v10299_v14, 0.0  ;;  %v17771_v14 = vld [vmem:[%s20766_s5 + $0x158] sm:$0xff]  }
0x1880   : > { %10204 = vmatprep.subr.bf16.mxu0 %v17708_v44 }
0x1883   : > { %10205 = vmatpush1.bf16.msra.mxu0 %v17706_v10 }
0x1884   : > { %10206 = vmatprep.subr.bf16.mxu0 %v17711_v56 }
0x1887   : > { %10207 = vmatpush1.bf16.msra.mxu0 %v17709_v57  ;;  %v10305_v57 = vrot.slane %v20027_v6, 1 }
0x1888   : > { %10208 = vmatprep.subr.bf16.mxu0 %v17714_v62 }
0x188b   : > { %10209 = vmatpush1.bf16.msra.mxu0 %v17712_v45 }
0x188c   : > { %10210 = vmatprep.subr.bf16.mxu0 %v17717_v63 }
0x188f   : > { %10211 = vmatpush1.bf16.msra.mxu0 %v17715_v0  ;;  %v17750_v0 = vld [vmem:[%s20766_s5 + $0x80] sm:$0xff]  }
0x1890   : > { %10212 = vmatprep.subr.bf16.mxu0 %v17720_v2 }
0x1893   : > { %10213 = vmatpush1.bf16.msra.mxu0 %v17718_v4  ;;  %v17751_v4 = vld [vmem:[%s20766_s5 + $0xc8] sm:$0xff]  }
0x1894   : > { %10214 = vmatprep.subr.bf16.mxu0 %v17723_v33  ;;  %v10483_v33 = vpack.c.bf16 %v10305_v57, %v10305_v57  ;;  %v17790_v57 = vld [vmem:[%s20766_s5 + $0x1a0] sm:$0xff]  }
0x1897   : > { %10215 = vmatpush1.bf16.msra.mxu0 %v17721_v54  ;;  %v17752_v54 = vld [vmem:[%s20766_s5 + $0x88] sm:$0xff]  }
0x1898   : > { %10216 = vmatprep.subr.bf16.mxu0 %v17726_v8  ;;  %v17753_v8 = vld [vmem:[%s20766_s5 + $0xd0] sm:$0xff]  }
0x189b   : > { %10217 = vmatpush1.bf16.msra.mxu0 %v17724_v30  ;;  %v17754_v30 = vld [vmem:[%s20766_s5 + $0x90] sm:$0xff]  }
0x189c   : > { %10218 = vmatprep.subr.bf16.mxu0 %v17729_v7  ;;  %v17755_v7 = vld [vmem:[%s20766_s5 + $0xd8] sm:$0xff]  }
0x189f   : > { %10219 = vmatpush1.bf16.msra.mxu0 %v17727_v11  ;;  %v17756_v11 = vld [vmem:[%s20766_s5 + $0x98] sm:$0xff]  }
0x18a0   : > { %10220 = vmatprep.subr.bf16.mxu0 %v17732_v41  ;;  %v17757_v41 = vld [vmem:[%s20766_s5 + $0xe0] sm:$0xff]  }
0x18a3   : > { %10221 = vmatpush1.bf16.msra.mxu0 %v17730_v17  ;;  %v17758_v17 = vld [vmem:[%s20766_s5 + $0xa0] sm:$0xff]  }
0x18a4   : > { %16006 = vmatprep.subr.bf16.mxu0 %v18113_v1 }
0x18a6   : > { %10223 = vmatmul.mubr.bf16.vlgmr.msra.gmra.mrb[116].mxu0 %v19963_v37  ;;  %v17738_v37 = vld [vmem:[%s20766_s5 + $0x10] sm:$0xff]  }
0x18a7   : > { %16008 = vmatprep.mubr.msk.bf16.mxu0 %vm18115_vm2, %v18113_v1 }
0x1939   : > { %v10183_v19 = vpop.f32.mrb[112].mxu0 }
0x193a   : > { %v10185_v24 = vpop.f32.mrb[113].mxu0 }
0x193b   : > { %v10232_v50 = vrot.slane %v10185_v24, 7  ;;  %v10187_v20 = vpop.f32.mrb[114].mxu0  ;;  %v17760_v24 = vld [vmem:[%s20766_s5 + $0xa8] sm:$0xff]  }
0x193c   : > { %v10188_v21 = vpop.f32.mrb[115].mxu0  ;;  %v17762_v20 = vld [vmem:[%s20766_s5 + $0xb0] sm:$0xff]  }
0x193d   : > { %v10240_v22 = vsel %vm7297_vm15, %v10183_v19, %v10232_v50  ;;  %vm10245_vm15 = vcmask 31744   ;;  %v17759_v19 = vld [vmem:[%s20766_s5 + $0xe8] sm:$0xff]   ;;  %v17761_v50 = vld [vmem:[%s20766_s5 + $0xf0] sm:$0xff]   ;;  %v17763_v21 = vld [vmem:[%s20766_s5 + $0xf8] sm:$0xff]  }
0x1979   : > { %v10224_v58 = vpop.f32.mrb[116].mxu0 }
0x197a   : > { %v10235_v23 = vrot.slane %v10224_v58, 6  ;;  %v10226_v59 = vpop.f32.mrb[117].mxu0  ;;  %v17764_v58 = vld [vmem:[%s20766_s5 + $0xb8] sm:$0xff]  }
0x197b   : > { %v10238_v12 = vrot.slane %v10226_v59, 5  ;;  %v10228_v31 = vpop.f32.mrb[118].mxu0  ;;  %v17765_v59 = vld [vmem:[%s20766_s5 + $0x140] sm:$0xff]  }
0x197c   : > { %v10241_v28 = vsel %vm1228_vm0, %v10240_v22, %v10235_v23  ;;  %v10229_v29 = vpop.f32.mrb[119].mxu0  ;;  %v17766_v31 = vld [vmem:[%s20766_s5 + $0x100] sm:$0xff]  }
0x197d   : > { %v10242_v49 = vsel %vm1229_vm1, %v10241_v28, %v10238_v12  ;;  %v10309_v12 = vrot.slane %v20027_v6, 2  ;;  %v17767_v28 = vld [vmem:[%s20766_s5 + $0x148] sm:$0xff]   ;;  %vm15173_vm1 = vmneg %vm1228_vm0 }
0x197e   : > { %v10244_v60 = vpack.c.bf16 %v10242_v49, %v10242_v49  ;;  %v17768_v49 = vld [vmem:[%s20766_s5 + $0x108] sm:$0xff]  }
0x197f   : > { %v10485_v29 = vpack.c.bf16 %v10309_v12, %v10309_v12  ;;  %v17810_v12 = vld [vmem:[%s20766_s5 + $0x230] sm:$0xff]  }
0x1980   : > { %v10250_v32 = vsel %vm1228_vm0, %v10244_v60, 0  ;;  %v17769_v60 = vld [vmem:[%s20766_s5 + $0x150] sm:$0xff]  }
0x1981   : > { %16007 = vmatpush3.bf16.msra.mxu0 %v10250_v32  ;;  %v17772_v32 = vld [vmem:[%s20766_s5 + $0x118] sm:$0xff]  }
0x1982   : > { %15532 = vmatprep.subr.bf16.mxu0 %v17733_v51  ;;  %v17770_v51 = vld [vmem:[%s20766_s5 + $0x110] sm:$0xff]  }
0x1984   : > { %16009 = vmatmul.mubr.msk.bf16.vlgmr.msra.gmra.mrb[120].mxu0 %vm10245_vm15, %v10243_v27  ;;  %v17773_v27 = vld [vmem:[%s20766_s5 + $0x160] sm:$0xff]  }
0x1985   : > { %15061 = vmatprep.mubr.msk.bf16.mxu0 %vm19079_vm13, %v15060_v35  ;;  %15533 = vmatpush3.bf16.msra.mxu0 %v17734_v26  ;;  %v17774_v26 = vld [vmem:[%s20766_s5 + $0x120] sm:$0xff]   ;;  %v17776_v35 = vld [vmem:[%s20766_s5 + $0x128] sm:$0xff]  }
0x1986   : > { %15534 = vmatprep.subr.bf16.mxu0 %v17735_v38  ;;  %v17775_v38 = vld [vmem:[%s20766_s5 + $0x168] sm:$0xff]  }
0x1989   : > { %15535 = vmatpush3.bf16.msra.mxu0 %v17736_v46  ;;  %v17777_v46 = vld [vmem:[%s20766_s5 + $0x170] sm:$0xff]  }
0x198a   : > { %15536 = vmatprep.subr.bf16.mxu0 %v17737_v36  ;;  %v17778_v36 = vld [vmem:[%s20766_s5 + $0x130] sm:$0xff]  }
0x198d   : > { %15537 = vmatpush3.bf16.msra.mxu0 %v17738_v37  ;;  %v17779_v37 = vld [vmem:[%s20766_s5 + $0x178] sm:$0xff]  }
0x198e   : > { %15538 = vmatprep.subr.bf16.mxu0 %v17739_v53  ;;  %v17780_v53 = vld [vmem:[%s20766_s5 + $0x138] sm:$0xff]  }
0x1991   : > { %15539 = vmatpush3.bf16.msra.mxu0 %v17740_v52 }
0x1992   : > { %15540 = vmatprep.subr.bf16.mxu0 %v17741_v42  ;;  %v17781_v42 = vld [vmem:[%s20766_s5 + $0x1c0] sm:$0xff]  }
0x1995   : > { %15541 = vmatpush3.bf16.msra.mxu0 %v17742_v9  ;;  %v10313_v9 = vrot.slane %v20027_v6, 3 }
0x1996   : > { %15542 = vmatprep.subr.bf16.mxu0 %v17743_v3  ;;  %v17782_v3 = vld [vmem:[%s20766_s5 + $0x180] sm:$0xff]  }
0x1999   : > { %15543 = vmatpush3.bf16.msra.mxu0 %v17744_v34 }
0x199a   : > { %15544 = vmatprep.subr.bf16.mxu0 %v17745_v39  ;;  %v17783_v39 = vld [vmem:[%s20766_s5 + $0x1c8] sm:$0xff]  }
0x199d   : > { %15545 = vmatpush3.bf16.msra.mxu0 %v17746_v40  ;;  %v10487_v40 = vpack.c.bf16 %v10313_v9, %v10313_v9  ;;  %v17829_v9 = vld [vmem:[%s20768_s6 + $0x60] sm:$0xff]  }
0x199e   : > { %15546 = vmatprep.subr.bf16.mxu0 %v17747_v5  ;;  %v17784_v5 = vld [vmem:[%s20766_s5 + $0x188] sm:$0xff]  }
0x19a1   : > { %15547 = vmatpush3.bf16.msra.mxu0 %v17748_v43  ;;  %v17785_v43 = vld [vmem:[%s20766_s5 + $0x1d0] sm:$0xff]  }
0x19a2   : > { %15554 = vmatprep.subr.bf16.mxu0 %v17749_v48  ;;  %v17786_v48 = vld [vmem:[%s20766_s5 + $0x190] sm:$0xff]  }
0x1a57   : > { %v10286_v44 = vpop.f32.mrb[120].mxu0 }
0x1a58   : > { %v10294_v10 = vrot.slane %v10286_v44, 6  ;;  %v16010_v56 = vpop.f32.mrb[121].mxu0  ;;  %v17787_v44 = vld [vmem:[%s20766_s5 + $0x1d8] sm:$0xff]  }
0x1a59   : > { %v10289_v62 = vpop.f32.mrb[122].mxu0  ;;  %v17789_v56 = vld [vmem:[%s20766_s5 + $0x1e0] sm:$0xff]  }
0x1a5a   : > { %v10298_v45 = vsel %vm1228_vm0, 0.0, %v10294_v10  ;;  %v16011_v63 = vpop.f32.mrb[123].mxu0  ;;  %v17788_v10 = vld [vmem:[%s20766_s5 + $0x198] sm:$0xff]   ;;  %v17791_v62 = vld [vmem:[%s20766_s5 + $0x1e8] sm:$0xff]  }
0x1a5b   : > { %v15063_v2 = vpack.c.bf16 %v10298_v45, %v10298_v45  ;;  %v20048_v22 = vsel %vm1401_vm4, %v10298_v45, 0.0  ;;  %v17792_v45 = vld [vmem:[%s20766_s5 + $0x1a8] sm:$0xff]   ;;  %v17793_v63 = vld [vmem:[%s20766_s5 + $0x1f0] sm:$0xff]  }
0x1a5c   : > { %v10304_v23 = vrot.slane %v20048_v22, 1  ;;  %v10308_v52 = vrot.slane %v20048_v22, 2 }
0x1a5d   : > { %15064 = vmatmul.mubr.msk.bf16.vlgmr.msra.gmra.mrb[124].mxu0 %vm19079_vm13, %v15063_v2  ;;  %v17795_v2 = vld [vmem:[%s20766_s5 + $0x1f8] sm:$0xff]  }
0x1a5e   : > { %15555 = vmatpush3.bf16.msra.mxu0 %v17750_v0  ;;  %11042 = vmatprep.mubr.bf16.mxu0 %v10483_v33  ;;  %v10482_v13 = vpack.c.bf16 %v10304_v23, %v10304_v23  ;;  %v10484_v34 = vpack.c.bf16 %v10308_v52, %v10308_v52  ;;  %v17794_v0 = vld [vmem:[%s20766_s5 + $0x1b0] sm:$0xff]   ;;  %v10312_v33 = vrot.slane %v20048_v22, 3  ;;  %v17808_v23 = vld [vmem:[%s20766_s5 + $0x228] sm:$0xff]   ;;  %v17826_v52 = vld [vmem:[%s20768_s6 + $0x18] sm:$0xff]  }
0x1a5f   : > { %15556 = vmatprep.subr.bf16.mxu0 %v17751_v4  ;;  %v17796_v4 = vld [vmem:[%s20766_s5 + $0x1b8] sm:$0xff]  }
0x1a62   : > { %15557 = vmatpush3.bf16.msra.mxu0 %v17752_v54  ;;  %v17797_v54 = vld [vmem:[%s20766_s5 + $0x240] sm:$0xff]  }
0x1a63   : > { %15558 = vmatprep.subr.bf16.mxu0 %v17753_v8  ;;  %v10317_v8 = vrot.slane %v20027_v6, 4  ;;  %v17802_v6 = vld [vmem:[%s20766_s5 + $0x210] sm:$0xff]  }
0x1a66   : > { %15559 = vmatpush3.bf16.msra.mxu0 %v17754_v30  ;;  %v17798_v30 = vld [vmem:[%s20766_s5 + $0x200] sm:$0xff]  }
0x1a67   : > { %15560 = vmatprep.subr.bf16.mxu0 %v17755_v7  ;;  %v10486_v7 = vpack.c.bf16 %v10312_v33, %v10312_v33  ;;  %v17842_v33 = vld [vmem:[%s20768_s6 + $0x38] sm:$0xff]  }
0x1a6a   : > { %15561 = vmatpush3.bf16.msra.mxu0 %v17756_v11  ;;  %v17799_v11 = vld [vmem:[%s20766_s5 + $0x248] sm:$0xff]  }
0x1a6b   : > { %15562 = vmatprep.subr.bf16.mxu0 %v17757_v41  ;;  %v10489_v41 = vpack.c.bf16 %v10317_v8, %v10317_v8  ;;  %v17844_v8 = vld [vmem:[%s20768_s6 + $0xb8] sm:$0xff]  }
0x1a6e   : > { %15563 = vmatpush3.bf16.msra.mxu0 %v17758_v17  ;;  %v17800_v17 = vld [vmem:[%s20766_s5 + $0x208] sm:$0xff]  }
0x1a6f   : > { %15564 = vmatprep.subr.bf16.mxu0 %v17759_v19  ;;  %v17801_v19 = vld [vmem:[%s20766_s5 + $0x250] sm:$0xff]  }
0x1a72   : > { %15565 = vmatpush3.bf16.msra.mxu0 %v17760_v24  ;;  %v17803_v24 = vld [vmem:[%s20766_s5 + $0x258] sm:$0xff]  }
0x1a73   : > { %15566 = vmatprep.subr.bf16.mxu0 %v17761_v50  ;;  %v17804_v50 = vld [vmem:[%s20766_s5 + $0x218] sm:$0xff]  }
0x1a76   : > { %15567 = vmatpush3.bf16.msra.mxu0 %v17762_v20  ;;  %v17805_v20 = vld [vmem:[%s20766_s5 + $0x260] sm:$0xff]  }
0x1a77   : > { %15568 = vmatprep.subr.bf16.mxu0 %v17763_v21  ;;  %v17806_v21 = vld [vmem:[%s20766_s5 + $0x220] sm:$0xff]  }
0x1a7a   : > { %15569 = vmatpush3.bf16.msra.mxu0 %v17764_v58  ;;  %v17807_v58 = vld [vmem:[%s20766_s5 + $0x268] sm:$0xff]  }
0x1a7b   : > { %15576 = vmatprep.subr.bf16.mxu0 %v17765_v59  ;;  %v17809_v59 = vld [vmem:[%s20766_s5 + $0x270] sm:$0xff]  }
0x1a7d   : > { %11043 = vmatmul.mubr.bf16.vlgmr.msra.gmra.mrb[128].mxu0 %v10482_v13  ;;  %v17812_v13 = vld [vmem:[%s20766_s5 + $0x238] sm:$0xff]  }
0x1a7e   : > { %15577 = vmatpush3.bf16.msra.mxu0 %v17766_v31  ;;  %11082 = vmatprep.mubr.bf16.mxu0 %v10485_v29  ;;  %v17811_v31 = vld [vmem:[%s20766_s5 + $0x278] sm:$0xff]   ;;  %s20770_s5 = sld [smem:[#allocation24_spill]] }
0x1a7f   : > { %15578 = vmatprep.subr.bf16.mxu0 %v17767_v28  ;;  %v10316_v28 = vrot.slane %v20048_v22, 4  ;;  %v17818_v22 = vld [vmem:[%s20768_s6 + $0x8] sm:$0xff]  }
0x1a81   : > { %v10488_v29 = vpack.c.bf16 %v10316_v28, %v10316_v28 }
0x1a82   : > { %15579 = vmatpush3.bf16.msra.mxu0 %v17768_v49  ;;  %v17813_v49 = vld [vmem:[%s20768_s6 + $0x40] sm:$0xff]  }
0x1a83   : > { %15580 = vmatprep.subr.bf16.mxu0 %v17769_v60  ;;  %v17814_v60 = vld [vmem:[%s20768_s6] sm:$0xff]  }
0x1a86   : > { %15581 = vmatpush3.bf16.msra.mxu0 %v17770_v51  ;;  %v17815_v51 = vld [vmem:[%s20768_s6 + $0xc0] sm:$0xff]  }
0x1a87   : > { %15582 = vmatprep.subr.bf16.mxu0 %v17771_v14  ;;  %v17816_v14 = vld [vmem:[%s20768_s6 + $0x80] sm:$0xff]   ;;  %15664 = vmatprep.subr.bf16.mxu1 %v17815_v51 }
0x1a88   : > { %15665 = vmatpush3.bf16.msra.mxu1 %v17816_v14 }
0x1a8a   : > { %15583 = vmatpush3.bf16.msra.mxu0 %v17772_v32  ;;  %v17817_v32 = vld [vmem:[%s20768_s6 + $0x48] sm:$0xff]  }
0x1a8b   : > { %15584 = vmatprep.subr.bf16.mxu0 %v17773_v27  ;;  %v17819_v27 = vld [vmem:[%s20768_s6 + $0xc8] sm:$0xff]  }
0x1a8c   : > { %15666 = vmatprep.subr.bf16.mxu1 %v17819_v27 }
0x1a8e   : > { %15585 = vmatpush3.bf16.msra.mxu0 %v17774_v26  ;;  %v17820_v26 = vld [vmem:[%s20768_s6 + $0x88] sm:$0xff]  }
0x1a8f   : > { %15586 = vmatprep.subr.bf16.mxu0 %v17775_v38  ;;  %v17821_v38 = vld [vmem:[%s20768_s6 + $0x50] sm:$0xff]   ;;  %15667 = vmatpush3.bf16.msra.mxu1 %v17820_v26 }
0x1a92   : > { %15587 = vmatpush3.bf16.msra.mxu0 %v17776_v35  ;;  %v17823_v35 = vld [vmem:[%s20768_s6 + $0xd0] sm:$0xff]  }
0x1a93   : > { %15588 = vmatprep.subr.bf16.mxu0 %v17777_v46  ;;  %v17822_v46 = vld [vmem:[%s20768_s6 + $0x10] sm:$0xff]   ;;  %15668 = vmatprep.subr.bf16.mxu1 %v17823_v35 }
0x1a96   : > { %15589 = vmatpush3.bf16.msra.mxu0 %v17778_v36  ;;  %v17824_v36 = vld [vmem:[%s20768_s6 + $0x90] sm:$0xff]  }
0x1a97   : > { %15590 = vmatprep.subr.bf16.mxu0 %v17779_v37  ;;  %v17825_v37 = vld [vmem:[%s20768_s6 + $0x58] sm:$0xff]   ;;  %15669 = vmatpush3.bf16.msra.mxu1 %v17824_v36 }
0x1a9a   : > { %15591 = vmatpush3.bf16.msra.mxu0 %v17780_v53  ;;  %v17827_v53 = vld [vmem:[%s20768_s6 + $0xd8] sm:$0xff]  }
0x1a9b   : > { %15598 = vmatprep.subr.bf16.mxu0 %v17781_v42  ;;  %v17828_v42 = vld [vmem:[%s20768_s6 + $0x98] sm:$0xff]   ;;  %15670 = vmatprep.subr.bf16.mxu1 %v17827_v53 }
0x1a9c   : > { %15671 = vmatpush3.bf16.msra.mxu1 %v17828_v42  ;;  %v17845_v42 = vld [vmem:[%s20768_s6 + $0x100] sm:$0xff]  }
0x1a9d   : > { %11083 = vmatmul.mubr.bf16.vlgmr.msra.gmra.mrb[132].mxu0 %v10484_v34  ;;  %v17831_v34 = vld [vmem:[%s20768_s6 + $0xe0] sm:$0xff]  }
0x1a9e   : > { %15599 = vmatpush3.bf16.msra.mxu0 %v17782_v3  ;;  %11122 = vmatprep.mubr.bf16.mxu0 %v10487_v40  ;;  %v17830_v3 = vld [vmem:[%s20768_s6 + $0x20] sm:$0xff]  }
0x1a9f   : > { %15600 = vmatprep.subr.bf16.mxu0 %v17783_v39  ;;  %v17832_v40 = vld [vmem:[%s20768_s6 + $0xa0] sm:$0xff]   ;;  %15672 = vmatprep.subr.bf16.mxu1 %v17831_v34  ;;  %v17847_v34 = vld [vmem:[%s20768_s6 + $0x110] sm:$0xff]  }
0x1aa0   : > { %15673 = vmatpush3.bf16.msra.mxu1 %v17832_v40  ;;  %v17850_v40 = vld [vmem:[%s20768_s6 + $0x128] sm:$0xff]  }
0x1aa2   : > { %15601 = vmatpush3.bf16.msra.mxu0 %v17784_v5 }
0x1aa3   : > { %15602 = vmatprep.subr.bf16.mxu0 %v17785_v43 }
0x1aa6   : > { %15603 = vmatpush3.bf16.msra.mxu0 %v17786_v48 }
0x1aa7   : > { %15604 = vmatprep.subr.bf16.mxu0 %v17787_v44  ;;  %v17833_v44 = vld [vmem:[%s20768_s6 + $0x68] sm:$0xff]  }
0x1aaa   : > { %15605 = vmatpush3.bf16.msra.mxu0 %v17788_v10 }
0x1aab   : > { %15606 = vmatprep.subr.bf16.mxu0 %v17789_v56  ;;  %v17834_v56 = vld [vmem:[%s20768_s6 + $0x28] sm:$0xff]  }
0x1aae   : > { %15607 = vmatpush3.bf16.msra.mxu0 %v17790_v57  ;;  %v17835_v57 = vld [vmem:[%s20768_s6 + $0xe8] sm:$0xff]  }
0x1aaf   : > { %15608 = vmatprep.subr.bf16.mxu0 %v17791_v62  ;;  %v17836_v62 = vld [vmem:[%s20768_s6 + $0xa8] sm:$0xff]   ;;  %15674 = vmatprep.subr.bf16.mxu1 %v17835_v57 }
0x1ab0   : > { %15675 = vmatpush3.bf16.msra.mxu1 %v17836_v62  ;;  %v17856_v57 = vld [vmem:[%s20769_s3 + $0x8] ss:$12 sps:$4 sm:$0xff]  }
0x1ab1   : > { %v17859_v62 = vld [vmem:[%s20769_s3 + $0x1c] ss:$12 sps:$4 sm:$0xff]  }
0x1ab2   : > { %15609 = vmatpush3.bf16.msra.mxu0 %v17792_v45  ;;  %v17837_v45 = vld [vmem:[%s20768_s6 + $0x70] sm:$0xff]  }
0x1ab3   : > { %15610 = vmatprep.subr.bf16.mxu0 %v17793_v63  ;;  %v17838_v63 = vld [vmem:[%s20768_s6 + $0x30] sm:$0xff]  }
0x1ab6   : > { %15611 = vmatpush3.bf16.msra.mxu0 %v17794_v0  ;;  %v17839_v0 = vld [vmem:[%s20768_s6 + $0xf0] sm:$0xff]  }
0x1ab7   : > { %15612 = vmatprep.subr.bf16.mxu0 %v17795_v2  ;;  %v17840_v2 = vld [vmem:[%s20768_s6 + $0xb0] sm:$0xff]   ;;  %15676 = vmatprep.subr.bf16.mxu1 %v17839_v0 }
0x1ab8   : > { %15677 = vmatpush3.bf16.msra.mxu1 %v17840_v2  ;;  %v17863_v0 = vld [vmem:[%s20769_s3 + $0x34] ss:$12 sps:$4 sm:$0xff]   ;;  %v17864_v2 = vld [vmem:[%s20769_s3 + $0x38] ss:$12 sps:$4 sm:$0xff]  }
0x1aba   : > { %15613 = vmatpush3.bf16.msra.mxu0 %v17796_v4  ;;  %v17841_v4 = vld [vmem:[%s20768_s6 + $0x78] sm:$0xff]  }
0x1abb   : > { %15620 = vmatprep.subr.bf16.mxu0 %v17797_v54  ;;  %v17843_v54 = vld [vmem:[%s20768_s6 + $0xf8] sm:$0xff]  }
0x1abc   : > { %15678 = vmatprep.subr.bf16.mxu1 %v17843_v54  ;;  %v17868_v54 = vld [vmem:[%s20769_s3 + $0x50] ss:$12 sps:$4 sm:$0xff]  }
0x1abd   : > { %11123 = vmatmul.mubr.bf16.vlgmr.msra.gmra.mrb[136].mxu0 %v10486_v7  ;;  %15679 = vmatpush3.bf16.msra.mxu1 %v17844_v8  ;;  %v17865_v8 = vld [vmem:[%s20769_s3 + $0x48] ss:$12 sps:$4 sm:$0xff]  }
0x1abe   : > { %15621 = vmatpush3.bf16.msra.mxu0 %v17798_v30  ;;  %11162 = vmatprep.mubr.bf16.mxu0 %v10489_v41 }
0x1abf   : > { %15622 = vmatprep.subr.bf16.mxu0 %v17799_v11 }
0x1ac2   : > { %15623 = vmatpush3.bf16.msra.mxu0 %v17800_v17 }
0x1ac3   : > { %15624 = vmatprep.subr.bf16.mxu0 %v17801_v19 }
0x1ac6   : > { %15625 = vmatpush3.bf16.msra.mxu0 %v17802_v6 }
0x1ac7   : > { %15626 = vmatprep.subr.bf16.mxu0 %v17803_v24 }
0x1aca   : > { %15627 = vmatpush3.bf16.msra.mxu0 %v17804_v50 }
0x1acb   : > { %15628 = vmatprep.subr.bf16.mxu0 %v17805_v20 }
0x1ace   : > { %15629 = vmatpush3.bf16.msra.mxu0 %v17806_v21 }
0x1acf   : > { %15630 = vmatprep.subr.bf16.mxu0 %v17807_v58 }
0x1ad2   : > { %15631 = vmatpush3.bf16.msra.mxu0 %v17808_v23 }
0x1ad3   : > { %15632 = vmatprep.subr.bf16.mxu0 %v17809_v59 }
0x1ad6   : > { %15633 = vmatpush3.bf16.msra.mxu0 %v17810_v12 }
0x1ad7   : > { %15634 = vmatprep.subr.bf16.mxu0 %v17811_v31 }
0x1ada   : > { %15635 = vmatpush3.bf16.msra.mxu0 %v17812_v13 }
0x1adb   : > { %15642 = vmatprep.subr.bf16.mxu0 %v17813_v49 }
0x1add   : > { %11163 = vmatmul.mubr.bf16.vlgmr.msra.gmra.mrb[140].mxu0 %v10488_v29 }
0x1ade   : > { %15643 = vmatpush3.bf16.msra.mxu0 %v17814_v60 }
0x1adf   : > { %15644 = vmatprep.subr.bf16.mxu0 %v17817_v32 }
0x1ae2   : > { %15645 = vmatpush3.bf16.msra.mxu0 %v17818_v22 }
0x1ae3   : > { %15646 = vmatprep.subr.bf16.mxu0 %v17821_v38 }
0x1ae6   : > { %15647 = vmatpush3.bf16.msra.mxu0 %v17822_v46 }
0x1ae7   : > { %15648 = vmatprep.subr.bf16.mxu0 %v17825_v37 }
0x1aea   : > { %15649 = vmatpush3.bf16.msra.mxu0 %v17826_v52 }
0x1aeb   : > { %15650 = vmatprep.subr.bf16.mxu0 %v17829_v9 }
0x1aee   : > { %15651 = vmatpush3.bf16.msra.mxu0 %v17830_v3  ;;  %v17846_v3 = vld [vmem:[%s20768_s6 + $0x108] sm:$0xff]  }
0x1aef   : > { %15652 = vmatprep.subr.bf16.mxu0 %v17833_v44 }
0x1af2   : > { %15653 = vmatpush3.bf16.msra.mxu0 %v17834_v56  ;;  %v17855_v56 = vld [vmem:[%s20769_s3 + $0x4] ss:$12 sps:$4 sm:$0xff]  }
0x1af3   : > { %15654 = vmatprep.subr.bf16.mxu0 %v17837_v45  ;;  %11792 = vmatprep.subr.bf16.mxu1 %v17855_v56  ;;  %v17860_v45 = vld [vmem:[%s20769_s3 + $0x20] ss:$12 sps:$4 sm:$0xff]   ;;  %v17899_v56 = vld [vmem:[%s20770_s5 + $0xd8] sm:$0xff]  }
0x1af6   : > { %15655 = vmatpush3.bf16.msra.mxu0 %v17838_v63  ;;  %v17857_v63 = vld [vmem:[%s20769_s3 + $0x18] ss:$12 sps:$4 sm:$0xff]  }
0x1af7   : > { %15656 = vmatprep.subr.bf16.mxu0 %v17841_v4  ;;  %v17861_v4 = vld [vmem:[%s20769_s3 + $0x30] ss:$12 sps:$4 sm:$0xff]  }
0x1afa   : > { %15657 = vmatpush3.bf16.msra.mxu0 %v17842_v33  ;;  %v17867_v33 = vld [vmem:[%s20769_s3 + $0x4c] ss:$12 sps:$4 sm:$0xff]  }
0x1afb   : > { %16012 = vmatprep.subr.bf16.mxu0 %v18113_v1 }
0x1b30   : > { %v15548_v39 = vpop.f32.mrb[124].mxu0 }
0x1b31   : > { %v15549_v5 = vpop.f32.mrb[125].mxu0 }
0x1b32   : > { %v15550_v43 = vadd.f32 %v15549_v5, %v15548_v39  ;;  %v15551_v48 = vpop.f32.mrb[126].mxu0  ;;  %v17849_v39 = vld [vmem:[%s20768_s6 + $0x120] sm:$0xff]   ;;  %v17851_v5 = vld [vmem:[%s20768_s6 + $0x130] sm:$0xff]  }
0x1b33   : > { %v15552_v10 = vpop.f32.mrb[127].mxu0 }
0x1b34   : > { %v17853_v10 = vld [vmem:[%s20769_s3] ss:$12 sps:$4 sm:$0xff]  }
0x1b50   : > { %v15570_v30 = vpop.f32.mrb[128].mxu0 }
0x1b51   : > { %v15571_v7 = vpop.f32.mrb[129].mxu0 }
0x1b52   : > { %v15572_v11 = vadd.f32 %v15571_v7, %v15570_v30  ;;  %v15573_v41 = vpop.f32.mrb[130].mxu0  ;;  %v17871_v30 = vld [vmem:[%s20769_s3 + $0x64] ss:$12 sps:$4 sm:$0xff]   ;;  %v17872_v7 = vld [vmem:[%s20769_s3 + $0x68] ss:$12 sps:$4 sm:$0xff]  }
0x1b53   : > { %v15574_v17 = vpop.f32.mrb[131].mxu0  ;;  %v17875_v41 = vld [vmem:[%s20769_s3 + $0x7c] ss:$12 sps:$4 sm:$0xff]  }
0x1b54   : > { %v11045_v19 = vadd.f32 %v15572_v11, %v15550_v43  ;;  %v17852_v43 = vld [vmem:[%s20768_s6 + $0x138] sm:$0xff]   ;;  %v17869_v11 = vld [vmem:[%s20769_s3 + $0x60] ss:$12 sps:$4 sm:$0xff]   ;;  %s20772_s6 = sld [smem:[#allocation23_spill]] }
0x1b55   : > { %v17876_v17 = vld [vmem:[%s20769_s3 + $0x80] ss:$12 sps:$4 sm:$0xff]  }
0x1b70   : > { %v15592_v6 = vpop.f32.mrb[132].mxu0 }
0x1b71   : > { %v15593_v24 = vpop.f32.mrb[133].mxu0 }
0x1b72   : > { %v15594_v50 = vadd.f32 %v15593_v24, %v15592_v6  ;;  %v15595_v20 = vpop.f32.mrb[134].mxu0  ;;  %v17879_v6 = vld [vmem:[%s20769_s3 + $0x94] ss:$12 sps:$4 sm:$0xff]   ;;  %v17877_v24 = vld [vmem:[%s20769_s3 + $0x90] ss:$12 sps:$4 sm:$0xff]  }
0x1b73   : > { %v15596_v21 = vpop.f32.mrb[135].mxu0  ;;  %v17883_v20 = vld [vmem:[%s20769_s3 + $0xac] ss:$12 sps:$4 sm:$0xff]  }
0x1b74   : > { %v11085_v58 = vadd.f32 %v15594_v50, %v11045_v19  ;;  %v17873_v19 = vld [vmem:[%s20769_s3 + $0x78] ss:$12 sps:$4 sm:$0xff]   ;;  %v17881_v21 = vld [vmem:[%s20769_s3 + $0xa8] ss:$12 sps:$4 sm:$0xff]  }
0x1b75   : > { %v17880_v50 = vld [vmem:[%s20769_s3 + $0x98] ss:$12 sps:$4 sm:$0xff]  }
0x1b90   : > { %v15614_v23 = vpop.f32.mrb[136].mxu0 }
0x1b91   : > { %v15615_v59 = vpop.f32.mrb[137].mxu0 }
0x1b92   : > { %v15616_v12 = vadd.f32 %v15615_v59, %v15614_v23  ;;  %v15617_v31 = vpop.f32.mrb[138].mxu0 }
0x1b93   : > { %v15618_v13 = vpop.f32.mrb[139].mxu0 }
0x1b94   : > { %v11125_v28 = vadd.f32 %v15616_v12, %v11085_v58  ;;  %v17884_v58 = vld [vmem:[%s20769_s3 + $0xb0] ss:$12 sps:$4 sm:$0xff]   ;;  %s20771_s3 = smov 64  }
0x1bb0   : > { %v15636_v29 = vpop.f32.mrb[140].mxu0 }
0x1bb1   : > { %v15637_v49 = vpop.f32.mrb[141].mxu0 }
0x1bb2   : > { %v15638_v60 = vadd.f32 %v15637_v49, %v15636_v29  ;;  %v15639_v51 = vpop.f32.mrb[142].mxu0 }
0x1bb3   : > { %v15640_v14 = vpop.f32.mrb[143].mxu0 }
0x1bb4   : > { %v11165_v32 = vadd.f32 %v15638_v60, %v11125_v28 }
0x1bb6   : > { %v11170_v27 = vmax.f32 %v11165_v32, 0.0 }
0x1bb8   : > { %v11172_v22 = vrot.slane %v11170_v27, 6 }
0x1bba   : > { %v11174_v26 = vsel %vm1228_vm0, 0.0, %v11172_v22 }
0x1bbb   : > { %v11175_v38 = vsel %vm1401_vm4, %v11174_v26, 0.0  ;;  %v15106_v9 = vpack.c.bf16 %v11174_v26, %v11174_v26 }
0x1bbc   : > { %v11177_v35 = vrot.slane %v11175_v38, 1  ;;  %v11181_v46 = vrot.slane %v11175_v38, 3  ;;  %v11179_v36 = vrot.slane %v11175_v38, 2  ;;  %v11183_v48 = vrot.slane %v11175_v38, 4 }
0x1bbe   : > { %v11266_v37 = vpack.c.bf16 %v11177_v35, %v11177_v35  ;;  %v11268_v53 = vpack.c.bf16 %v11181_v46, %v11181_v46  ;;  %v11267_v52 = vpack.c.bf16 %v11179_v36, %v11179_v36  ;;  %v11269_v44 = vpack.c.bf16 %v11183_v48, %v11183_v48  ;;  %v17892_v48 = vld [vmem:[%s20770_s5 + $0x88] sm:$0xff]  }
0x1bc0   : > { %11542 = vmatprep.mubr.bf16.mxu0 %v11266_v37  ;;  %11582 = vmatprep.mubr.bf16.mxu1 %v11268_v53  ;;  %v17887_v53 = vld [vmem:[%s20770_s5 + $0xc0] sm:$0xff]  }
0x1bc1   : > { %15107 = vmatmul.mubr.msk.bf16.vlgmr.msra.gmra.mrb[144].mxu0 %vm19079_vm13, %v15106_v9  ;;  %11583 = vmatmul.mubr.bf16.vlgmr.msra.gmra.mrb[92].mxu1 %v11267_v52  ;;  %v17888_v52 = vld [vmem:[%s20770_s5 + $0x80] sm:$0xff]   ;;  %vm15175_vm13 = vmpackc.low %vm15173_vm1, %vm15173_vm1 }
0x1bc2   : > { %16013 = vmatpush3.bf16.msra.mxu0 %v17845_v42  ;;  %16028 = vmatprep.mubr.msk.bf16.mxu0 %vm18115_vm2, %v18113_v1 }
0x1bc3   : > { %16014 = vmatprep.subr.bf16.mxu0 %v18113_v1  ;;  %11824 = vmatprep.mubr.bf16.mxu1 %v18116_v15 }
0x1bc4   : > { %11793 = vmatpush1.bf16.msra.mxu1 %v17853_v10  ;;  %v17896_v10 = vld [vmem:[%s20770_s5 + $0x90] sm:$0xff]  }
0x1bc5   : > { %11794 = vmatprep.subr.bf16.mxu1 %v17859_v62  ;;  %v17903_v62 = vld [vmem:[%s20770_s5 + $0xe0] sm:$0xff]  }
0x1bc6   : > { %16015 = vmatpush3.bf16.msra.mxu0 %v17846_v3 }
0x1bc7   : > { %16016 = vmatprep.subr.bf16.mxu0 %v18113_v1 }
0x1bc8   : > { %11795 = vmatpush1.bf16.msra.mxu1 %v17857_v63  ;;  %v17907_v63 = vld [vmem:[%s20770_s5 + $0xe8] sm:$0xff]  }
0x1bc9   : > { %11796 = vmatprep.subr.bf16.mxu1 %v17863_v0 }
0x1bca   : > { %16017 = vmatpush3.bf16.msra.mxu0 %v17847_v34 }
0x1bcb   : > { %16018 = vmatprep.subr.bf16.mxu0 %v18113_v1 }
0x1bcc   : > { %11797 = vmatpush1.bf16.msra.mxu1 %v17861_v4 }
0x1bcd   : > { %11798 = vmatprep.subr.bf16.mxu1 %v17867_v33 }
0x1bce   : > { %16019 = vmatpush3.bf16.msra.mxu0 %v17848_v47 }
0x1bcf   : > { %16020 = vmatprep.subr.bf16.mxu0 %v18113_v1 }
0x1bd0   : > { %11799 = vmatpush1.bf16.msra.mxu1 %v17865_v8 }
0x1bd1   : > { %11800 = vmatprep.subr.bf16.mxu1 %v17871_v30  ;;  %v17885_v30 = vld [vmem:[%s20770_s5 + $0x40] sm:$0xff]  }
0x1bd2   : > { %16021 = vmatpush3.bf16.msra.mxu0 %v17849_v39 }
0x1bd3   : > { %16022 = vmatprep.subr.bf16.mxu0 %v18113_v1 }
0x1bd4   : > { %11801 = vmatpush1.bf16.msra.mxu1 %v17869_v11  ;;  %v11888_v11 = vld [vmem:[%s20772_s6] sm:$0xf]  ;;  %s20773_s6 = sld [smem:[#allocation25_spill]] }
0x1bd5   : > { %11802 = vmatprep.subr.bf16.mxu1 %v17875_v41  ;;  %v17886_v41 = vld [vmem:[%s20770_s5] sm:$0xff]  }
0x1bd6   : > { %16023 = vmatpush3.bf16.msra.mxu0 %v17850_v40 }
0x1bd7   : > { %16024 = vmatprep.subr.bf16.mxu0 %v18113_v1 }
0x1bd8   : > { %11803 = vmatpush1.bf16.msra.mxu1 %v17873_v19  ;;  %v17890_v19 = vld [vmem:[%s20770_s5 + $0x8] sm:$0xff]  }
0x1bd9   : > { %11804 = vmatprep.subr.bf16.mxu1 %v17879_v6  ;;  %v17893_v6 = vld [vmem:[%s20770_s5 + $0x50] sm:$0xff]  }
0x1bda   : > { %16025 = vmatpush3.bf16.msra.mxu0 %v17851_v5 }
0x1bdb   : > { %16026 = vmatprep.subr.bf16.mxu0 %v18113_v1 }
0x1bdc   : > { %11805 = vmatpush1.bf16.msra.mxu1 %v17877_v24  ;;  %v17894_v24 = vld [vmem:[%s20770_s5 + $0x10] sm:$0xff]  }
0x1bdd   : > { %11806 = vmatprep.subr.bf16.mxu1 %v17883_v20  ;;  %v17898_v20 = vld [vmem:[%s20770_s5 + $0x18] sm:$0xff]  }
0x1bde   : > { %16027 = vmatpush3.bf16.msra.mxu0 %v17852_v43  ;;  %v17891_v43 = vld [vmem:[%s20770_s5 + $0xc8] sm:$0xff]  }
0x1bdf   : > { %16032 = vmatprep.subr.bf16.mxu0 %v18113_v1 }
0x1be0   : > { %11807 = vmatpush1.bf16.msra.mxu1 %v17881_v21  ;;  %v17901_v21 = vld [vmem:[%s20770_s5 + $0x60] sm:$0xff]  }
0x1be1   : > { %16029 = vmatmul.mubr.bf16.vlgmr.msra.gmra.mrb[148].mxu0 %v11269_v44  ;;  %16052 = vmatprep.subr.bf16.mxu1 %v18113_v1  ;;  %v17895_v44 = vld [vmem:[%s20770_s5 + $0xd0] sm:$0xff]  }
0x1be2   : > { %16048 = vmatprep.mubr.msk.bf16.mxu0 %vm18115_vm2, %v18113_v1  ;;  %16033 = vmatpush3.bf16.msra.mxu0 %v17856_v57  ;;  %v17900_v57 = vld [vmem:[%s20770_s5 + $0x98] sm:$0xff]  }
0x1be3   : > { %16034 = vmatprep.subr.bf16.mxu0 %v18113_v1 }
0x1be6   : > { %16035 = vmatpush3.bf16.msra.mxu0 %v17860_v45  ;;  %v17904_v45 = vld [vmem:[%s20770_s5 + $0xa0] sm:$0xff]  }
0x1be7   : > { %16036 = vmatprep.subr.bf16.mxu0 %v18113_v1 }
0x1bea   : > { %16037 = vmatpush3.bf16.msra.mxu0 %v17864_v2 }
0x1beb   : > { %16038 = vmatprep.subr.bf16.mxu0 %v18113_v1 }
0x1bee   : > { %16039 = vmatpush3.bf16.msra.mxu0 %v17868_v54 }
0x1bef   : > { %16040 = vmatprep.subr.bf16.mxu0 %v18113_v1 }
0x1bf2   : > { %16041 = vmatpush3.bf16.msra.mxu0 %v17872_v7 }
0x1bf3   : > { %16042 = vmatprep.subr.bf16.mxu0 %v18113_v1 }
0x1bf6   : > { %16043 = vmatpush3.bf16.msra.mxu0 %v17876_v17  ;;  %v17889_v17 = vld [vmem:[%s20770_s5 + $0x48] sm:$0xff]  }
0x1bf7   : > { %16044 = vmatprep.subr.bf16.mxu0 %v18113_v1 }
0x1bfa   : > { %16045 = vmatpush3.bf16.msra.mxu0 %v17880_v50  ;;  %v17897_v50 = vld [vmem:[%s20770_s5 + $0x58] sm:$0xff]  }
0x1bfb   : > { %16046 = vmatprep.subr.bf16.mxu0 %v18113_v1 }
0x1bfe   : > { %16047 = vmatpush3.bf16.msra.mxu0 %v17884_v58  ;;  %v17902_v58 = vld [vmem:[%s20770_s5 + $0x20] sm:$0xff]  }
0x1bff   : > { %15728 = vmatprep.subr.bf16.mxu0 %v17887_v53 }
0x1c94   : > { %v15658_v23 = vpop.f32.mrb[144].mxu0  ;;  %v15680_v59 = vpop.f32.mrb[92].mxu1 }
0x1c95   : > { %v15659_v12 = vpop.f32.mrb[145].mxu0  ;;  %v15681_v31 = vpop.f32.mrb[93].mxu1 }
0x1c96   : > { %v15660_v13 = vadd.f32 %v15659_v12, %v15658_v23  ;;  %v15682_v28 = vadd.f32 %v15681_v31, %v15680_v59  ;;  %v15661_v29 = vpop.f32.mrb[146].mxu0  ;;  %v15683_v49 = vpop.f32.mrb[94].mxu1  ;;  %v17905_v23 = vld [vmem:[%s20770_s5 + $0x68] sm:$0xff]   ;;  %v17909_v31 = vld [vmem:[%s20770_s5 + $0x70] sm:$0xff]  }
0x1c97   : > { %v15662_v60 = vpop.f32.mrb[147].mxu0  ;;  %v15684_v51 = vpop.f32.mrb[95].mxu1  ;;  %v17906_v59 = vld [vmem:[%s20770_s5 + $0x28] sm:$0xff]   ;;  %v17912_v29 = vld [vmem:[%s20770_s5 + $0xb0] sm:$0xff]   ;;  %v17913_v49 = vld [vmem:[%s20770_s5 + $0x78] sm:$0xff]  }
0x1c98   : > { %v11585_v14 = vadd.f32 %v15682_v28, %v15660_v13  ;;  %v17908_v12 = vld [vmem:[%s20770_s5 + $0xa8] sm:$0xff]   ;;  %v17910_v13 = vld [vmem:[%s20770_s5 + $0x30] sm:$0xff]   ;;  %v17914_v60 = vld [vmem:[%s20770_s5 + $0x38] sm:$0xff]  }
0x1c99   : > { %v17911_v28 = vld [vmem:[%s20770_s5 + $0xf0] sm:$0xff]   ;;  %v17915_v51 = vld [vmem:[%s20770_s5 + $0xf8] sm:$0xff]  }
0x1cb4   : > { %v11624_v32 = vpop.f32.mrb[148].mxu0 }
0x1cb5   : > { %v11625_v27 = vadd.f32 %v11624_v32, %v11585_v14  ;;  %v16030_v22 = vpop.f32.mrb[149].mxu0  ;;  %v17916_v14 = vld [vmem:[%s20770_s5 + $0xb8] sm:$0xff]  }
0x1cb6   : > { %v11627_v26 = vpop.f32.mrb[150].mxu0 }
0x1cb7   : > { %v11630_v38 = vmax.f32 %v11625_v27, 0.0  ;;  %v16031_v35 = vpop.f32.mrb[151].mxu0 }
0x1cb9   : > { %v11663_v46 = vpack.c.bf16 %v11630_v38, %v11630_v38 }
0x1cbb   : > { %11825 = vmatmul.mubr.bf16.vlgmr.msra.gmra.mrb[96].mxu1 %v11663_v46  ;;  %16049 = vmatmul.mubr.bf16.vlgmr.msra.gmra.mrb[152].mxu0 %v11663_v46 }
0x1cbc   : > { %16054 = vmatprep.mubr.msk.bf16.mxu1 %vm18115_vm2, %v18113_v1  ;;  %15729 = vmatpush3.bf16.msra.mxu0 %v17888_v52 }
0x1cbd   : > { %15730 = vmatprep.subr.bf16.mxu0 %v17891_v43 }
0x1cc0   : > { %15731 = vmatpush3.bf16.msra.mxu0 %v17892_v48 }
0x1cc1   : > { %15732 = vmatprep.subr.bf16.mxu0 %v17895_v44  ;;  %v17917_v44 = vld [vmem:[%s20770_s5 + $0x100] sm:$0xff]  }
0x1cc4   : > { %15733 = vmatpush3.bf16.msra.mxu0 %v17896_v10 }
0x1cc5   : > { %15734 = vmatprep.subr.bf16.mxu0 %v17899_v56  ;;  %v17918_v56 = vld [vmem:[%s20770_s5 + $0x108] sm:$0xff]  }
0x1cc8   : > { %15735 = vmatpush3.bf16.msra.mxu0 %v17900_v57  ;;  %v17919_v57 = vld [vmem:[%s20770_s5 + $0x110] sm:$0xff]  }
0x1cc9   : > { %15736 = vmatprep.subr.bf16.mxu0 %v17903_v62  ;;  %v17920_v62 = vld [vmem:[%s20770_s5 + $0x118] sm:$0xff]  }
0x1ccc   : > { %15737 = vmatpush3.bf16.msra.mxu0 %v17904_v45  ;;  %v17921_v45 = vld [vmem:[%s20770_s5 + $0x120] sm:$0xff]  }
0x1ccd   : > { %15738 = vmatprep.subr.bf16.mxu0 %v17907_v63  ;;  %v17922_v63 = vld [vmem:[%s20770_s5 + $0x128] sm:$0xff]  }
0x1cd0   : > { %15739 = vmatpush3.bf16.msra.mxu0 %v17908_v12  ;;  %v17940_v12 = vld [vmem:[%s20773_s6 + $0x28] sm:$0xff]  }
0x1cd1   : > { %15740 = vmatprep.subr.bf16.mxu0 %v17911_v28 }
0x1cd4   : > { %15741 = vmatpush3.bf16.msra.mxu0 %v17912_v29 }
0x1cd5   : > { %15742 = vmatprep.subr.bf16.mxu0 %v17915_v51 }
0x1cd8   : > { %15743 = vmatpush3.bf16.msra.mxu0 %v17916_v14 }
0x1d8e   : > { %v11826_v36 = vpop.f32.mrb[96].mxu1  ;;  %v11867_v37 = vpop.f32.mrb[152].mxu0 }
0x1d8f   : > { %v11874_v42 = vrot.slane %v11826_v36, 6  ;;  %v11828_v9 = vpop.f32.mrb[97].mxu1  ;;  %v16050_v3 = vpop.f32.mrb[153].mxu0 }
0x1d90   : > { %v11881_v34 = vrot.slane %v11828_v9, 2  ;;  %v11830_v47 = vpop.f32.mrb[98].mxu1  ;;  %v11870_v39 = vpop.f32.mrb[154].mxu0 }
0x1d91   : > { %v16051_v40 = vpop.f32.mrb[155].mxu0  ;;  %11875 = vrot.lane.b32.xlu0 %v11874_v42, %s20771_s3  ;;  %v11831_v5 = vpop.f32.mrb[99].mxu1 }
0x1d92   : > { %11882 = vrot.lane.b32.xlu1 %v11881_v34, %s20771_s3 }
0x1d95   : > { %11937 = vrot.lane.b32.xlu0 %v19010_v16, %s20771_s3  ;;  %v11879_v16 = vrot.slane %v11828_v9, 4 }
0x1e03   : > { %v11876_v0 = vpop.permute.xlu0 %11875 }
0x1e04   : > { %v11885_v2 = vsel %vm1228_vm0, %v11826_v36, %v11876_v0  ;;  %v11883_v4 = vpop.permute.xlu1 %11882 }
0x1e05   : > { %v11886_v33 = vsel %vm1401_vm4, %v11885_v2, %v11879_v16  ;;  %v17923_v16 = vld [vmem:[%s20770_s5 + $0x130] sm:$0xff]  }
0x1e06   : > { %v11887_v54 = vsel %vm1347_vm8, %v11886_v33, %v11883_v4  ;;  %v17924_v4 = vld [vmem:[%s20770_s5 + $0x138] sm:$0xff]   ;;  %s20774_s5 = sld [smem:[#allocation26_spill]] }
0x1e07   : > { %v11889_v8 = vpack.c.bf16 %v11867_v37, %v11887_v54  ;;  %v11938_v32 = vpop.permute.xlu0 %11937 }
0x1e09   : > { %v11894_v7 = vsel %vm1374_vm5, %v11889_v8, 0  ;;  %v17925_v8 = vld [vmem:[%s20773_s6 + $0x80] sm:$0xff]  }
0x1e0a   : > { %16053 = vmatpush3.bf16.msra.mxu1 %v11894_v7  ;;  %v17927_v7 = vld [vmem:[%s20773_s6 + $0x90] sm:$0xff]  }
0x1e0b   : > { %15706 = vmatprep.subr.bf16.mxu1 %v17885_v30  ;;  %v17926_v30 = vld [vmem:[%s20773_s6 + $0x88] sm:$0xff]  }
0x1e0d   : > { %16055 = vmatmul.mubr.msk.bf16.vlgmr.msra.gmra.mrb[100].mxu1 %vm6016_vm3, %v11888_v11  ;;  %v17928_v11 = vld [vmem:[%s20773_s6 + $0x98] sm:$0xff]  }
0x1e0e   : > { %15707 = vmatpush3.bf16.msra.mxu1 %v17886_v41  ;;  %v17929_v41 = vld [vmem:[%s20773_s6 + $0x40] sm:$0xff]  }
0x1e0f   : > { %15708 = vmatprep.subr.bf16.mxu1 %v17889_v17  ;;  %v17930_v17 = vld [vmem:[%s20773_s6] sm:$0xff]   ;;  %15759 = vmatprep.subr.bf16.mxu0 %v17929_v41 }
0x1e12   : > { %15709 = vmatpush3.bf16.msra.mxu1 %v17890_v19  ;;  %v17931_v19 = vld [vmem:[%s20773_s6 + $0x48] sm:$0xff]  }
0x1e13   : > { %15710 = vmatprep.subr.bf16.mxu1 %v17893_v6  ;;  %v17932_v6 = vld [vmem:[%s20773_s6 + $0x8] sm:$0xff]  }
0x1e16   : > { %15711 = vmatpush3.bf16.msra.mxu1 %v17894_v24  ;;  %v17933_v24 = vld [vmem:[%s20773_s6 + $0x50] sm:$0xff]  }
0x1e17   : > { %15712 = vmatprep.subr.bf16.mxu1 %v17897_v50  ;;  %v17934_v50 = vld [vmem:[%s20773_s6 + $0x10] sm:$0xff]  }
0x1e1a   : > { %15713 = vmatpush3.bf16.msra.mxu1 %v17898_v20  ;;  %v17935_v20 = vld [vmem:[%s20773_s6 + $0x58] sm:$0xff]  }
0x1e1b   : > { %15714 = vmatprep.subr.bf16.mxu1 %v17901_v21  ;;  %v17936_v21 = vld [vmem:[%s20773_s6 + $0x18] sm:$0xff]  }
0x1e1e   : > { %15715 = vmatpush3.bf16.msra.mxu1 %v17902_v58  ;;  %v17937_v58 = vld [vmem:[%s20773_s6 + $0x60] sm:$0xff]  }
0x1e1f   : > { %15716 = vmatprep.subr.bf16.mxu1 %v17905_v23  ;;  %v17938_v23 = vld [vmem:[%s20773_s6 + $0x20] sm:$0xff]  }
0x1e22   : > { %15717 = vmatpush3.bf16.msra.mxu1 %v17906_v59  ;;  %v17939_v59 = vld [vmem:[%s20773_s6 + $0x68] sm:$0xff]  }
0x1e23   : > { %15718 = vmatprep.subr.bf16.mxu1 %v17909_v31  ;;  %v17941_v31 = vld [vmem:[%s20773_s6 + $0x70] sm:$0xff]  }
0x1e26   : > { %15719 = vmatpush3.bf16.msra.mxu1 %v17910_v13  ;;  %v17942_v13 = vld [vmem:[%s20773_s6 + $0x30] sm:$0xff]  }
0x1e27   : > { %15720 = vmatprep.subr.bf16.mxu1 %v17913_v49 }
0x1e2a   : > { %15721 = vmatpush3.bf16.msra.mxu1 %v17914_v60 }
0x1e2b   : > { %16058 = vmatprep.subr.bf16.mxu1 %v18113_v1 }
0x1ee0   : > { %v11930_v27 = vpop.f32.mrb[100].mxu1 }
0x1ee1   : > { %v11940_v22 = vsel %vm1424_vm9, %v11930_v27, %v11938_v32  ;;  %v16056_v26 = vpop.f32.mrb[101].mxu1 }
0x1ee2   : > { %v11942_v38 = vrot.slane %v11940_v22, 6  ;;  %v11933_v35 = vpop.f32.mrb[102].mxu1 }
0x1ee3   : > { %v16057_v46 = vpop.f32.mrb[103].mxu1 }
0x1ee4   : > { %v11944_v36 = vsel %vm1228_vm0, 0.0, %v11942_v38  ;;  %v11945_v37 = vsel %vm1228_vm0, %v11942_v38, 0.0  ;;  %v15176_v10 = vpack.c.bf16 %v11942_v38, %v11942_v38 }
0x1ee5   : > { %v11952_v53 = vrot.slane %v11944_v36, 2  ;;  %v11953_v52 = vrot.slane %v11945_v37, 2  ;;  %v11948_v42 = vrot.slane %v11944_v36, 1  ;;  %v11949_v9 = vrot.slane %v11945_v37, 1 }
0x1ee6   : > { %v11956_v3 = vrot.slane %v11944_v36, 3  ;;  %v11957_v34 = vrot.slane %v11945_v37, 3  ;;  %v11960_v0 = vrot.slane %v11944_v36, 4  ;;  %v11961_v2 = vrot.slane %v11945_v37, 4  ;;  %v17943_v37 = vld [vmem:[%s20773_s6 + $0x78] sm:$0xff]  }
0x1ee7   : > { %v11954_v47 = vsel %vm1347_vm8, %v11952_v53, %v11953_v52  ;;  %v11950_v39 = vsel %vm1320_vm6, %v11948_v42, %v11949_v9  ;;  %v17944_v52 = vld [vmem:[%s20773_s6 + $0x38] sm:$0xff]   ;;  %s20776_s6 = smov 32  }
0x1ee8   : > { %v11958_v40 = vsel %vm1374_vm5, %v11956_v3, %v11957_v34  ;;  %v12046_v5 = vpack.c.bf16 %v11954_v47, %v11954_v47  ;;  %v12045_v43 = vpack.c.bf16 %v11950_v39, %v11950_v39  ;;  %v11962_v33 = vsel %vm1401_vm4, %v11960_v0, %v11961_v2  ;;  %v17950_v0 = vld [vmem:[%s20774_s5 + $0x14] ss:$8 sps:$4 sm:$0xff]   ;;  %v17948_v2 = vld [vmem:[%s20774_s5 + $0x10] ss:$8 sps:$4 sm:$0xff]  }
0x1ee9   : > { %v12047_v48 = vpack.c.bf16 %v11958_v40, %v11958_v40  ;;  %v12048_v54 = vpack.c.bf16 %v11962_v33, %v11962_v33 }
0x1eea   : > { %12321 = vmatprep.mubr.bf16.mxu1 %v12045_v43 }
0x1eeb   : > { %12361 = vmatprep.mubr.bf16.mxu0 %v12047_v48  ;;  %15177 = vmatmul.mubr.msk.bf16.vlgmr.msra.gmra.mrb[104].mxu1 %vm15175_vm13, %v15176_v10 }
0x1eec   : > { %12362 = vmatmul.mubr.bf16.vlgmr.msra.gmra.mrb[156].mxu0 %v12046_v5  ;;  %16059 = vmatpush3.bf16.msra.mxu1 %v17917_v44 }
0x1eed   : > { %16074 = vmatprep.mubr.msk.bf16.mxu1 %vm18115_vm2, %v18113_v1  ;;  %16060 = vmatprep.subr.bf16.mxu1 %v18113_v1 }
0x1eee   : > { %15760 = vmatpush3.bf16.msra.mxu0 %v17930_v17 }
0x1eef   : > { %15761 = vmatprep.subr.bf16.mxu0 %v17931_v19 }
0x1ef0   : > { %16061 = vmatpush3.bf16.msra.mxu1 %v17918_v56 }
0x1ef1   : > { %16062 = vmatprep.subr.bf16.mxu1 %v18113_v1 }
0x1ef2   : > { %15762 = vmatpush3.bf16.msra.mxu0 %v17932_v6  ;;  %v17953_v6 = vld [vmem:[%s20774_s5 + $0x24] ss:$8 sps:$4 sm:$0xff]  }
0x1ef3   : > { %15763 = vmatprep.subr.bf16.mxu0 %v17933_v24  ;;  %v17951_v24 = vld [vmem:[%s20774_s5 + $0x20] ss:$8 sps:$4 sm:$0xff]  }
0x1ef4   : > { %16063 = vmatpush3.bf16.msra.mxu1 %v17919_v57 }
0x1ef5   : > { %16064 = vmatprep.subr.bf16.mxu1 %v18113_v1 }
0x1ef6   : > { %15764 = vmatpush3.bf16.msra.mxu0 %v17934_v50  ;;  %v17956_v50 = vld [vmem:[%s20774_s5 + $0x34] ss:$8 sps:$4 sm:$0xff]  }
0x1ef7   : > { %15765 = vmatprep.subr.bf16.mxu0 %v17935_v20  ;;  %v17954_v20 = vld [vmem:[%s20774_s5 + $0x30] ss:$8 sps:$4 sm:$0xff]  }
0x1ef8   : > { %16065 = vmatpush3.bf16.msra.mxu1 %v17920_v62 }
0x1ef9   : > { %16066 = vmatprep.subr.bf16.mxu1 %v18113_v1 }
0x1efa   : > { %15766 = vmatpush3.bf16.msra.mxu0 %v17936_v21 }
0x1efb   : > { %15767 = vmatprep.subr.bf16.mxu0 %v17937_v58 }
0x1efc   : > { %16067 = vmatpush3.bf16.msra.mxu1 %v17921_v45 }
0x1efd   : > { %16068 = vmatprep.subr.bf16.mxu1 %v18113_v1 }
0x1efe   : > { %15768 = vmatpush3.bf16.msra.mxu0 %v17938_v23 }
0x1eff   : > { %15769 = vmatprep.subr.bf16.mxu0 %v17939_v59 }
0x1f00   : > { %16069 = vmatpush3.bf16.msra.mxu1 %v17922_v63  ;;  %v17945_v63 = vld [vmem:[%s20774_s5] ss:$8 sps:$4 sm:$0xff]  }
0x1f01   : > { %16070 = vmatprep.subr.bf16.mxu1 %v18113_v1 }
0x1f02   : > { %15770 = vmatpush3.bf16.msra.mxu0 %v17940_v12 }
0x1f03   : > { %15771 = vmatprep.subr.bf16.mxu0 %v17941_v31 }
0x1f04   : > { %16071 = vmatpush3.bf16.msra.mxu1 %v17923_v16  ;;  %v17947_v16 = vld [vmem:[%s20774_s5 + $0x4] ss:$8 sps:$4 sm:$0xff]   ;;  %s20775_s5 = smov 96  }
0x1f05   : > { %16072 = vmatprep.subr.bf16.mxu1 %v18113_v1 }
0x1f06   : > { %15772 = vmatpush3.bf16.msra.mxu0 %v17942_v13 }
0x1f07   : > { %15773 = vmatprep.subr.bf16.mxu0 %v17943_v37  ;;  %v17959_v37 = vld [vmem:[%s20777_s8 + $0x10] ss:$0 sps:$4 sm:$0xff]  }
0x1f08   : > { %16073 = vmatpush3.bf16.msra.mxu1 %v17924_v4 }
0x1f09   : > { %16078 = vmatprep.subr.bf16.mxu1 %v18113_v1 }
0x1f0a   : > { %15774 = vmatpush3.bf16.msra.mxu0 %v17944_v52  ;;  %v17961_v52 = vld [vmem:[%s20778_s9 + $0x88] sm:$0xff]  }
0x1f0b   : > { %16075 = vmatmul.mubr.bf16.vlgmr.msra.gmra.mrb[108].mxu1 %v12048_v54  ;;  %16090 = vmatprep.subr.bf16.mxu0 %v18113_v1 }
0x1f0c   : > { %16086 = vmatprep.mubr.msk.bf16.mxu1 %vm18115_vm2, %v18113_v1  ;;  %16079 = vmatpush3.bf16.msra.mxu1 %v17925_v8 }
0x1f0d   : > { %16080 = vmatprep.subr.bf16.mxu1 %v18113_v1 }
0x1f10   : > { %16081 = vmatpush3.bf16.msra.mxu1 %v17926_v30 }
0x1f11   : > { %16082 = vmatprep.subr.bf16.mxu1 %v18113_v1 }
0x1f14   : > { %16083 = vmatpush3.bf16.msra.mxu1 %v17927_v7 }
0x1f15   : > { %16084 = vmatprep.subr.bf16.mxu1 %v18113_v1 }
0x1f18   : > { %16085 = vmatpush3.bf16.msra.mxu1 %v17928_v11 }
0x1f19   : > { %12738 = vmatprep.subr.bf16.mxu1 %v17947_v16 }
0x1fbe   : > { %v15722_v28 = vpop.f32.mrb[104].mxu1 }
0x1fbf   : > { %v15744_v29 = vpop.f32.mrb[156].mxu0  ;;  %v15723_v49 = vpop.f32.mrb[105].mxu1 }
0x1fc0   : > { %v15745_v60 = vpop.f32.mrb[157].mxu0  ;;  %v15724_v51 = vadd.f32 %v15723_v49, %v15722_v28  ;;  %v15725_v32 = vpop.f32.mrb[106].mxu1 }
0x1fc1   : > { %v15746_v14 = vadd.f32 %v15745_v60, %v15744_v29  ;;  %v15747_v27 = vpop.f32.mrb[158].mxu0  ;;  %v15726_v22 = vpop.f32.mrb[107].mxu1 }
0x1fc2   : > { %v15748_v26 = vpop.f32.mrb[159].mxu0 }
0x1fc3   : > { %v12364_v38 = vadd.f32 %v15746_v14, %v15724_v51 }
0x1fde   : > { %v12403_v35 = vpop.f32.mrb[108].mxu1 }
0x1fdf   : > { %v12404_v46 = vadd.f32 %v12403_v35, %v12364_v38  ;;  %v16076_v36 = vpop.f32.mrb[109].mxu1 }
0x1fe0   : > { %v12406_v53 = vpop.f32.mrb[110].mxu1 }
0x1fe1   : > { %v12409_v42 = vmax.f32 %v12404_v46, 0.0  ;;  %v16077_v9 = vpop.f32.mrb[111].mxu1  ;;  %v17960_v53 = vld [vmem:[%s20778_s9 + $0x80] sm:$0xff]  }
0x1fe2   : > { %v17963_v9 = vld [vmem:[%s20778_s9 + $0x98] sm:$0xff]  }
0x1fe3   : > { %v12411_v3 = vrot.slane %v12409_v42, 6  ;;  %v17962_v42 = vld [vmem:[%s20778_s9 + $0x90] sm:$0xff]  }
0x1fe5   : > { %v12413_v34 = vsel %vm1228_vm0, 0.0, %v12411_v3  ;;  %v12414_v47 = vsel %vm1228_vm0, %v12411_v3, 0.0  ;;  %v17964_v3 = vld [vmem:[%s20778_s9 + $0x40] sm:$0xff]  }
0x1fe6   : > { %v12418_v39 = vrot.slane %v12414_v47, 1  ;;  %v12428_v40 = vrot.slane %v12414_v47, 3  ;;  %v12433_v5 = vrot.slane %v12413_v34, 4  ;;  %v12434_v43 = vrot.slane %v12414_v47, 4 }
0x1fe7   : > { %v12417_v48 = vrot.slane %v12413_v34, 1  ;;  %v12427_v44 = vrot.slane %v12413_v34, 3  ;;  %v12423_v4 = vrot.slane %v12413_v34, 2  ;;  %v12424_v33 = vrot.slane %v12414_v47, 2  ;;  %v17966_v47 = vld [vmem:[%s20778_s9 + $0x48] sm:$0xff]  }
0x1fe8   : > { %v12435_v10 = vsel %vm1401_vm4, %v12433_v5, %v12434_v43  ;;  %v17969_v5 = vld [vmem:[%s20778_s9 + $0x10] sm:$0xff]   ;;  %v17970_v43 = vld [vmem:[%s20778_s9 + $0x58] sm:$0xff]  }
0x1fe9   : > { %v12419_v56 = vsel %vm1320_vm6, %v12417_v48, %v12418_v39  ;;  %v12429_v57 = vsel %vm1374_vm5, %v12427_v44, %v12428_v40  ;;  %v12481_v62 = vpack.c.bf16 %v12435_v10, %v12435_v10  ;;  %v12425_v7 = vsel %vm1347_vm8, %v12423_v4, %v12424_v33  ;;  %v17967_v39 = vld [vmem:[%s20778_s9 + $0x8] sm:$0xff]   ;;  %v17968_v40 = vld [vmem:[%s20778_s9 + $0x50] sm:$0xff]   ;;  %v17971_v48 = vld [vmem:[%s20778_s9 + $0x18] sm:$0xff]  }
0x1fea   : > { %v16447_v45 = vpack.i.bf16 %v12419_v56, %v12429_v57  ;;  %v17972_v44 = vld [vmem:[%s20778_s9 + $0x60] sm:$0xff]   ;;  %v17974_v56 = vld [vmem:[%s20778_s9 + $0x68] sm:$0xff]  }
0x1feb   : > { %16087 = vmatmul.mubr.msk.bf16.vlgmr.msra.gmra.mrb[112].mxu1 %vm1424_vm9, %v12481_v62  ;;  %v17973_v10 = vld [vmem:[%s20778_s9 + $0x20] sm:$0xff]   ;;  %v17975_v57 = vld [vmem:[%s20778_s9 + $0x28] sm:$0xff]   ;;  %v17976_v62 = vld [vmem:[%s20778_s9 + $0x70] sm:$0xff]  }
0x1fec   : > { %16448 = vrot.lane.b32.xlu1 %v16447_v45, %s20771_s3  ;;  %12770 = vmatprep.mubr.bf16.mxu1 %v18116_v15  ;;  %v17977_v45 = vld [vmem:[%s20778_s9 + $0x30] sm:$0xff]  }
0x1fed   : > { %12739 = vmatpush1.bf16.msra.mxu1 %v17945_v63 }
0x1fee   : > { %12740 = vmatprep.subr.bf16.mxu1 %v17950_v0 }
0x1ff1   : > { %12741 = vmatpush1.bf16.msra.mxu1 %v17948_v2 }
0x1ff2   : > { %12742 = vmatprep.subr.bf16.mxu1 %v17953_v6 }
0x1ff5   : > { %12743 = vmatpush1.bf16.msra.mxu1 %v17951_v24 }
0x1ff6   : > { %12744 = vmatprep.subr.bf16.mxu1 %v17956_v50  ;;  %v17979_v50 = vld [vmem:[%s20778_s9 + $0x38] sm:$0xff]  }
0x1ff9   : > { %12745 = vmatpush1.bf16.msra.mxu1 %v17954_v20 }
0x1ffa   : > { %15792 = vmatprep.subr.bf16.mxu1 %v17964_v3 }
0x205e   : > { %v16449_v54 = vpop.permute.xlu1 %16448 }
0x205f   : > { %v16451_v8 = vunpack.i.h.bf16 %v16449_v54  ;;  %v16450_v30 = vunpack.i.l.bf16 %v16449_v54 }
0x2061   : > { %v12437_v11 = vsel %vm1424_vm9, %v12413_v34, %v16451_v8  ;;  %v12438_v41 = vsel %vm1424_vm9, %v12425_v7, %v16450_v30  ;;  %v17965_v34 = vld [vmem:[%s20778_s9] sm:$0xff]  }
0x2062   : > { %v12479_v17 = vpack.c.bf16 %v12437_v11, %v12437_v11  ;;  %v12480_v19 = vpack.c.bf16 %v12438_v41, %v12438_v41 }
0x2064   : > { %12637 = vmatprep.mubr.bf16.mxu0 %v12480_v19  ;;  %v17978_v19 = vld [vmem:[%s20778_s9 + $0x78] sm:$0xff]  }
0x2065   : > { %12638 = vmatmul.mubr.bf16.vlgmr.msra.gmra.mrb[160].mxu0 %v12479_v17 }
0x2066   : > { %16096 = vmatprep.mubr.msk.bf16.mxu0 %vm18115_vm2, %v18113_v1 }
0x20be   : > { %v12679_v21 = vpop.f32.mrb[112].mxu1 }
0x20bf   : > { %v16088_v58 = vpop.f32.mrb[113].mxu1 }
0x20c0   : > { %v12682_v23 = vpop.f32.mrb[114].mxu1 }
0x20c1   : > { %v16089_v59 = vpop.f32.mrb[115].mxu1 }
0x2138   : > { %v15775_v12 = vpop.f32.mrb[160].mxu0 }
0x2139   : > { %v15776_v31 = vpop.f32.mrb[161].mxu0 }
0x213a   : > { %v15777_v13 = vadd.f32 %v15776_v31, %v15775_v12  ;;  %v15778_v28 = vpop.f32.mrb[162].mxu0 }
0x213b   : > { %v15779_v29 = vpop.f32.mrb[163].mxu0 }
0x213c   : > { %v12680_v49 = vadd.f32 %v15777_v13, %v12679_v21 }
0x213e   : > { %v12685_v60 = vmax.f32 %v12680_v49, 0.0 }
0x2140   : > { %v12694_v51 = vpack.c.bf16 %v12685_v60, %v12685_v60 }
0x2142   : > { %15207 = vmatmul.mubr.msk.bf16.vlgmr.msra.gmra.mrb[116].mxu1 %vm1424_vm9, %v12694_v51 }
0x2143   : > { %15793 = vmatpush3.bf16.msra.mxu1 %v17965_v34 }
0x2144   : > { %15794 = vmatprep.subr.bf16.mxu1 %v17966_v47 }
0x2147   : > { %15795 = vmatpush3.bf16.msra.mxu1 %v17967_v39 }
0x2148   : > { %15796 = vmatprep.subr.bf16.mxu1 %v17968_v40 }
0x214b   : > { %15797 = vmatpush3.bf16.msra.mxu1 %v17969_v5 }
0x214c   : > { %15798 = vmatprep.subr.bf16.mxu1 %v17970_v43 }
0x214f   : > { %15799 = vmatpush3.bf16.msra.mxu1 %v17971_v48 }
0x2150   : > { %15800 = vmatprep.subr.bf16.mxu1 %v17972_v44 }
0x2153   : > { %15801 = vmatpush3.bf16.msra.mxu1 %v17973_v10 }
0x2154   : > { %15802 = vmatprep.subr.bf16.mxu1 %v17974_v56 }
0x2157   : > { %15803 = vmatpush3.bf16.msra.mxu1 %v17975_v57 }
0x2158   : > { %15804 = vmatprep.subr.bf16.mxu1 %v17976_v62 }
0x215b   : > { %15805 = vmatpush3.bf16.msra.mxu1 %v17977_v45 }
0x215c   : > { %15806 = vmatprep.subr.bf16.mxu1 %v17978_v19 }
0x215f   : > { %15807 = vmatpush3.bf16.msra.mxu1 %v17979_v50 }
0x2160   : > { %16128 = vmatprep.subr.bf16.mxu1 %v18113_v1 }
0x2215   : > { %v12772_v14 = vpop.f32.mrb[116].mxu1 }
0x2216   : > { %12783 = vrot.lane.b32.xlu1 %v12772_v14, %s20771_s3  ;;  %12780 = vrot.lane.b32.xlu0 %v12772_v14, %s20775_s5  ;;  %v12774_v32 = vpop.f32.mrb[117].mxu1 }
0x2217   : > { %v12776_v27 = vpop.f32.mrb[118].mxu1 }
0x2218   : > { %v12777_v22 = vpop.f32.mrb[119].mxu1 }
0x221a   : > { %16453 = vrot.lane.b32.xlu1 %v18806_v61, %s20776_s6  ;;  %12786 = vrot.lane.b32.xlu0 %v12772_v14, %s20776_s6  ;;  %v12796_v61 = vpack.c.bf16 %v12774_v32, %v12774_v32 }
0x221e   : > { %16458 = vrot.lane.b32.xlu1 %v18825_v18, %s20776_s6  ;;  %12887 = vrot.lane.b32.xlu0 %v2223_v25, %s20776_s6  ;;  %v12820_v18 = vsel %vm1401_vm4, %v12796_v61, 0  ;;  %v17958_v25 = vld [vmem:[%s20777_s8 + $0x8] sm:$0xff]   ;;  %s20779_s8 = sld [smem:[#allocation29_spill]] }
0x2288   : > { %v12781_v26 = vpop.permute.xlu0 %12780  ;;  %v12784_v35 = vpop.permute.xlu1 %12783 }
0x2289   : > { %v12794_v38 = vpack.c.bf16 %v12781_v26, %v12772_v14 }
0x228b   : > { %16091 = vmatpush3.bf16.msra.mxu0 %v12794_v38 }
0x228c   : > { %v12787_v46 = vpop.permute.xlu0 %12786  ;;  %16092 = vmatprep.subr.bf16.mxu0 %v18113_v1  ;;  %v16454_v63 = vpop.permute.xlu1 %16453 }
0x228d   : > { %v12795_v36 = vpack.c.bf16 %v12787_v46, %v12784_v35  ;;  %v16455_v16 = vunpack.i.l.bf16 %v16454_v63  ;;  %v16456_v2 = vunpack.i.h.bf16 %v16454_v63 }
0x228f   : > { %16093 = vmatpush3.bf16.msra.mxu0 %v12795_v36 }
0x2290   : > { %16094 = vmatprep.subr.bf16.mxu0 %v18113_v1  ;;  %v16459_v41 = vpop.permute.xlu1 %16458  ;;  %v12888_v6 = vpop.permute.xlu0 %12887 }
0x2291   : > { %v16460_v20 = vunpack.i.l.bf16 %v16459_v41  ;;  %v16461_v35 = vunpack.i.h.bf16 %v16459_v41 }
0x2293   : > { %16095 = vmatpush3.bf16.msra.mxu0 %v12820_v18 }
0x2294   : > { %16108 = vmatprep.subr.bf16.mxu0 %v18113_v1 }
0x2296   : > { %16097 = vmatmul.mubr.msk.bf16.vlgmr.msra.gmra.mrb[164].mxu0 %vm2792_vm12, %v17957_v55 }
0x2297   : > { %16100 = vmatprep.mubr.msk.bf16.mxu0 %vm18115_vm2, %v18113_v1  ;;  %16109 = vmatpush3.bf16.msra.mxu0 %v17960_v53 }
0x2298   : > { %16110 = vmatprep.subr.bf16.mxu0 %v18113_v1 }
0x229b   : > { %16111 = vmatpush3.bf16.msra.mxu0 %v17961_v52 }
0x229c   : > { %16112 = vmatprep.subr.bf16.mxu0 %v18113_v1 }
0x229e   : > { %16101 = vmatmul.mubr.msk.bf16.gmra.mrb[168].mxu0 %vm2792_vm12, %v17958_v25 }
0x229f   : > { %16104 = vmatprep.mubr.msk.bf16.mxu0 %vm18115_vm2, %v18113_v1  ;;  %16113 = vmatpush3.bf16.msra.mxu0 %v17962_v42 }
0x22a0   : > { %16114 = vmatprep.subr.bf16.mxu0 %v18113_v1 }
0x22a3   : > { %16115 = vmatpush3.bf16.msra.mxu0 %v17963_v9 }
0x22a4   : > { %13544 = vmatprep.subr.bf16.mxu0 %v18116_v15 }
0x22a6   : > { %16105 = vmatmul.mubr.msk.bf16.gmra.mrb[172].mxu0 %vm2792_vm12, %v17959_v37 }
0x22a7   : > { %16116 = vmatprep.mubr.msk.bf16.mxu0 %vm18115_vm2, %v18113_v1 }
0x2369   : > { %v12856_v0 = vpop.f32.mrb[164].mxu0 }
0x236a   : > { %v12898_v4 = vsel %vm1418_vm7, %v12856_v0, %v16455_v16  ;;  %v16098_v33 = vpop.f32.mrb[165].mxu0 }
0x236b   : > { %v12859_v54 = vpop.f32.mrb[166].mxu0  ;;  %v12908_v7 = vrot.slane %v12898_v4, 6 }
0x236c   : > { %v12899_v8 = vsel %vm1418_vm7, %v12859_v54, %v16456_v2  ;;  %v16099_v30 = vpop.f32.mrb[167].mxu0 }
0x236d   : > { %v12909_v11 = vrot.slane %v12899_v8, 6  ;;  %v20371_v21 = vsel %vm1228_vm0, 0.0, %v12908_v7 }
0x236e   : > { %v12995_v60 = vrot.slane %v20371_v21, 4  ;;  %v12969_v32 = vrot.slane %v20371_v21, 3  ;;  %v12927_v26 = vrot.slane %v20371_v21, 1 }
0x236f   : > { %v20366_v17 = vsel %vm1228_vm0, %v12908_v7, %v12909_v11 }
0x2370   : > { %v12996_v59 = vrot.slane %v20366_v17, 4  ;;  %v12970_v13 = vrot.slane %v20366_v17, 3  ;;  %v12928_v49 = vrot.slane %v20366_v17, 1 }
0x2371   : > { %v12864_v24 = vpop.f32.mrb[168].mxu0 }
0x2372   : > { %v12900_v58 = vsel %vm1418_vm7, %v12864_v24, %v12888_v6  ;;  %v16102_v23 = vpop.f32.mrb[169].mxu0  ;;  %v12997_v46 = vsel %vm1401_vm4, %v12995_v60, %v12996_v59  ;;  %v12971_v61 = vsel %vm1374_vm5, %v12969_v32, %v12970_v13  ;;  %v12929_v25 = vsel %vm1320_vm6, %v12927_v26, %v12928_v49 }
0x2373   : > { %v12911_v12 = vrot.slane %v12900_v58, 6  ;;  %v12867_v31 = vpop.f32.mrb[170].mxu0  ;;  %v12953_v23 = vrot.slane %v20371_v21, 2 }
0x2374   : > { %v12901_v28 = vsel %vm1418_vm7, %v12867_v31, %v16460_v20  ;;  %v16103_v29 = vpop.f32.mrb[171].mxu0  ;;  %v12954_v20 = vrot.slane %v20366_v17, 2 }
0x2375   : > { %v20381_v51 = vsel %vm1228_vm0, %v12909_v11, %v12911_v12  ;;  %v12913_v14 = vrot.slane %v12901_v28, 6 }
0x2376   : > { %v12998_v27 = vrot.slane %v20381_v51, 4  ;;  %v12972_v22 = vrot.slane %v20381_v51, 3  ;;  %v12930_v38 = vrot.slane %v20381_v51, 1  ;;  %v12956_v58 = vrot.slane %v20381_v51, 2 }
0x2377   : > { %v20390_v36 = vsel %vm1228_vm0, %v12911_v12, %v12913_v14 }
0x2378   : > { %v12999_v18 = vsel %vm1401_vm4, %v12996_v59, %v12998_v27  ;;  %v12973_v55 = vsel %vm1374_vm5, %v12970_v13, %v12972_v22  ;;  %v12931_v37 = vsel %vm1320_vm6, %v12928_v49, %v12930_v38  ;;  %v13000_v40 = vrot.slane %v20390_v36, 4 }
0x2379   : > { %v12872_v53 = vpop.f32.mrb[172].mxu0  ;;  %v13063_v52 = vpack.c.bf16 %v12999_v18, %v12997_v46  ;;  %v16462_v42 = vpack.i.bf16 %v12973_v55, %v12971_v61  ;;  %v16467_v9 = vpack.i.bf16 %v12931_v37, %v12929_v25  ;;  %v12974_v43 = vrot.slane %v20390_v36, 3 }
0x237a   : > { %v12902_v3 = vsel %vm1418_vm7, %v12872_v53, %v16461_v35  ;;  %v16106_v34 = vpop.f32.mrb[173].mxu0  ;;  %v12932_v10 = vrot.slane %v20390_v36, 1  ;;  %v13001_v16 = vsel %vm1401_vm4, %v12998_v27, %v13000_v40  ;;  %v12955_v49 = vsel %vm1347_vm8, %v12953_v23, %v12954_v20 }
0x237b   : > { %v12915_v47 = vrot.slane %v12902_v3, 6  ;;  %16117 = vmatmul.mubr.msk.bf16.vlgmr.msra.gmra.mrb[176].mxu0 %vm1424_vm9, %v13063_v52  ;;  %16463 = vrot.lane.b32.xlu0 %v16462_v42, %s20771_s3  ;;  %v12875_v39 = vpop.f32.mrb[174].mxu0  ;;  %v12975_v2 = vsel %vm1374_vm5, %v12972_v22, %v12974_v43  ;;  %v12957_v60 = vsel %vm1347_vm8, %v12954_v20, %v12956_v58  ;;  %v12958_v35 = vrot.slane %v20390_v36, 2 }
0x237c   : > { %16468 = vrot.lane.b32.xlu1 %v16467_v9, %s20771_s3  ;;  %v16107_v5 = vpop.f32.mrb[175].mxu0  ;;  %16120 = vmatprep.mubr.msk.bf16.mxu0 %vm18115_vm2, %v18113_v1  ;;  %v12933_v54 = vsel %vm1320_vm6, %v12930_v38, %v12932_v10 }
0x237d   : > { %v20406_v48 = vsel %vm1228_vm0, %v12913_v14, %v12915_v47  ;;  %v20409_v44 = vsel %vm1228_vm0, %v12915_v47, 0.0 }
0x237e   : > { %v13002_v56 = vrot.slane %v20406_v48, 4  ;;  %v12936_v57 = vrot.slane %v20409_v44, 1  ;;  %v12978_v62 = vrot.slane %v20409_v44, 3  ;;  %v12976_v45 = vrot.slane %v20406_v48, 3 }
0x237f   : > { %v12934_v63 = vrot.slane %v20406_v48, 1  ;;  %v13004_v30 = vrot.slane %v20409_v44, 4  ;;  %v12960_v46 = vrot.slane %v20406_v48, 2  ;;  %v12962_v52 = vrot.slane %v20409_v44, 2 }
0x2380   : > { %v13003_v0 = vsel %vm1401_vm4, %v13000_v40, %v13002_v56  ;;  %v12977_v33 = vsel %vm1374_vm5, %v12974_v43, %v12976_v45  ;;  %v12979_v19 = vsel %vm1374_vm5, %v12976_v45, %v12978_v62 }
0x2381   : > { %v13066_v4 = vpack.c.bf16 %v13003_v0, %v13001_v16  ;;  %v12935_v8 = vsel %vm1320_vm6, %v12932_v10, %v12934_v63  ;;  %v16472_v7 = vpack.i.bf16 %v12977_v33, %v12975_v2  ;;  %v12937_v41 = vsel %vm1320_vm6, %v12934_v63, %v12936_v57 }
0x2382   : > { %v16477_v11 = vpack.i.bf16 %v12935_v8, %v12933_v54  ;;  %v16482_v6 = vpack.i.bf16 %v12937_v41, %v12979_v19  ;;  %v13005_v24 = vsel %vm1401_vm4, %v13002_v56, %v13004_v30  ;;  %v12963_v44 = vsel %vm1347_vm8, %v12960_v46, %v12962_v52  ;;  %v17980_v30 = vld [vmem:[%s20779_s8] sm:$0xff]   ;;  %v17983_v41 = vld [vmem:[%s20779_s8 + $0x18] sm:$0xff]  }
0x2383   : > { %16121 = vmatmul.mubr.msk.bf16.gmra.mrb[180].mxu0 %vm1424_vm9, %v13066_v4  ;;  %16473 = vrot.lane.b32.xlu0 %v16472_v7, %s20771_s3  ;;  %v13069_v50 = vpack.c.bf16 %v13005_v24, %v13005_v24  ;;  %v17981_v7 = vld [vmem:[%s20779_s8 + $0x8] sm:$0xff]   ;;  %v17984_v19 = vld [vmem:[%s20779_s8 + $0x20] sm:$0xff]   ;;  %v17986_v24 = vld [vmem:[%s20779_s8 + $0x30] sm:$0xff]  }
0x2384   : > { %16478 = vrot.lane.b32.xlu1 %v16477_v11, %s20771_s3  ;;  %16124 = vmatprep.mubr.msk.bf16.mxu0 %vm18115_vm2, %v18113_v1  ;;  %v17982_v11 = vld [vmem:[%s20779_s8 + $0x10] sm:$0xff]  }
0x2385   : > { %13545 = vmatpush1.bf16.msra.mxu0 %v17980_v30 }
0x2386   : > { %13546 = vmatprep.subr.bf16.mxu0 %v18116_v15 }
0x2387   : > { %16483 = vrot.lane.b32.xlu0 %v16482_v6, %s20771_s3  ;;  %v17985_v6 = vld [vmem:[%s20779_s8 + $0x28] sm:$0xff]  }
0x2389   : > { %13547 = vmatpush1.bf16.msra.mxu0 %v17981_v7 }
0x238a   : > { %13548 = vmatprep.subr.bf16.mxu0 %v18116_v15 }
0x238b   : > { %16125 = vmatmul.mubr.msk.bf16.gmra.mrb[184].mxu0 %vm1424_vm9, %v13069_v50  ;;  %v17987_v50 = vld [vmem:[%s20779_s8 + $0x38] sm:$0xff]  }
0x238d   : > { %13549 = vmatpush1.bf16.msra.mxu0 %v17982_v11 }
0x238e   : > { %13550 = vmatprep.subr.bf16.mxu0 %v18116_v15 }
0x2391   : > { %13551 = vmatpush1.bf16.msra.mxu0 %v17983_v41 }
0x2392   : > { %13552 = vmatprep.subr.bf16.mxu0 %v18116_v15 }
0x2395   : > { %13553 = vmatpush1.bf16.msra.mxu0 %v17984_v19 }
0x2396   : > { %13554 = vmatprep.subr.bf16.mxu0 %v18116_v15 }
0x2399   : > { %13555 = vmatpush1.bf16.msra.mxu0 %v17985_v6 }
0x239a   : > { %13556 = vmatprep.subr.bf16.mxu0 %v18116_v15 }
0x239d   : > { %13557 = vmatpush1.bf16.msra.mxu0 %v17986_v24 }
0x239e   : > { %13558 = vmatprep.subr.bf16.mxu0 %v18116_v15 }
0x23a1   : > { %13559 = vmatpush1.bf16.msra.mxu0 %v17987_v50 }
0x23a2   : > { %13560 = vmatprep.subr.bf16.mxu0 %v18116_v15 }
0x23ed   : > { %v16464_v59 = vpop.permute.xlu0 %16463 }
0x23ee   : > { %v16466_v12 = vunpack.i.h.bf16 %v16464_v59  ;;  %v16465_v31 = vunpack.i.l.bf16 %v16464_v59  ;;  %v16469_v13 = vpop.permute.xlu1 %16468 }
0x23ef   : > { %v16471_v28 = vunpack.i.h.bf16 %v16469_v13  ;;  %v16470_v29 = vunpack.i.l.bf16 %v16469_v13 }
0x23f0   : > { %v13016_v14 = vsel %vm1424_vm9, %v12955_v49, %v16465_v31  ;;  %v13017_v32 = vsel %vm1424_vm9, %v12957_v60, %v16466_v12 }
0x23f1   : > { %v13012_v27 = vsel %vm1424_vm9, %v20366_v17, %v16471_v28  ;;  %v13011_v22 = vsel %vm1424_vm9, %v20371_v21, %v16470_v29  ;;  %v13062_v26 = vpack.c.bf16 %v13017_v32, %v13016_v14  ;;  %v12959_v17 = vsel %vm1347_vm8, %v12956_v58, %v12958_v35 }
0x23f2   : > { %v13061_v38 = vpack.c.bf16 %v13012_v27, %v13011_v22  ;;  %v12961_v21 = vsel %vm1347_vm8, %v12958_v35, %v12960_v46 }
0x23f3   : > { %13231 = vmatprep.mubr.bf16.mxu1 %v13062_v26 }
0x23f4   : > { %13232 = vmatmul.mubr.bf16.vlgmr.msra.gmra.mrb[120].mxu1 %v13061_v38 }
0x23f5   : > { %v16474_v61 = vpop.permute.xlu0 %16473 }
0x23f6   : > { %v16479_v18 = vpop.permute.xlu1 %16478  ;;  %v16476_v55 = vunpack.i.h.bf16 %v16474_v61  ;;  %v16475_v25 = vunpack.i.l.bf16 %v16474_v61 }
0x23f7   : > { %v16481_v37 = vunpack.i.h.bf16 %v16479_v18  ;;  %v16480_v53 = vunpack.i.l.bf16 %v16479_v18  ;;  %v17988_v18 = vld [vmem:[%s20779_s8 + $0x40] sm:$0xff]  }
0x23f8   : > { %v13018_v42 = vsel %vm1424_vm9, %v12959_v17, %v16475_v25  ;;  %v13019_v9 = vsel %vm1424_vm9, %v12961_v21, %v16476_v55  ;;  %13561 = vmatpush1.bf16.msra.mxu0 %v17988_v18 }
0x23f9   : > { %v13013_v3 = vsel %vm1424_vm9, %v20381_v51, %v16480_v53  ;;  %v13014_v34 = vsel %vm1424_vm9, %v20390_v36, %v16481_v37  ;;  %v16484_v47 = vpop.permute.xlu0 %16483  ;;  %v13065_v39 = vpack.c.bf16 %v13019_v9, %v13018_v42  ;;  %13562 = vmatprep.subr.bf16.mxu0 %v18116_v15 }
0x23fa   : > { %v13064_v40 = vpack.c.bf16 %v13014_v34, %v13013_v3  ;;  %v16485_v5 = vunpack.i.l.bf16 %v16484_v47  ;;  %v16486_v43 = vunpack.i.h.bf16 %v16484_v47 }
0x23fb   : > { %13239 = vmatprep.mubr.bf16.mxu1 %v13065_v39 }
0x23fc   : > { %13240 = vmatmul.mubr.bf16.gmra.mrb[124].mxu1 %v13064_v40  ;;  %v13020_v10 = vsel %vm1424_vm9, %v12963_v44, %v16485_v5  ;;  %v13015_v57 = vsel %vm1424_vm9, %v20406_v48, %v16486_v43  ;;  %v17989_v40 = vld [vmem:[%s20779_s8 + $0x48] sm:$0xff]   ;;  %s20783_s8 = sld [smem:[#allocation32_spill]] }
0x23fd   : > { %v13068_v56 = vpack.c.bf16 %v13020_v10, %v13020_v10  ;;  %v13067_v51 = vpack.c.bf16 %v13015_v57, %v13015_v57  ;;  %13563 = vmatpush1.bf16.msra.mxu0 %v17989_v40 }
0x23fe   : > { %16158 = vmatprep.subr.bf16.mxu0 %v18113_v1 }
0x23ff   : > { %13247 = vmatprep.mubr.bf16.mxu1 %v13068_v56 }
0x2404   : > { %13248 = vmatmul.mubr.bf16.gmra.mrb[128].mxu1 %v13067_v51 }
0x2405   : > { %16134 = vmatprep.mubr.msk.bf16.mxu1 %vm18115_vm2, %v18113_v1 }
0x244e   : > { %v13289_v36 = vpop.f32.mrb[176].mxu0 }
0x244f   : > { %v16118_v62 = vpop.f32.mrb[177].mxu0 }
0x2450   : > { %v13292_v45 = vpop.f32.mrb[178].mxu0 }
0x2451   : > { %v16119_v63 = vpop.f32.mrb[179].mxu0 }
0x2456   : > { %v13297_v16 = vpop.f32.mrb[180].mxu0 }
0x2457   : > { %v16122_v0 = vpop.f32.mrb[181].mxu0 }
0x2458   : > { %v13300_v2 = vpop.f32.mrb[182].mxu0 }
0x2459   : > { %v16123_v4 = vpop.f32.mrb[183].mxu0 }
0x245e   : > { %v20462_v33 = vpop.f32.mrb[184].mxu0 }
0x245f   : > { %v16126_v48 = vpop.f32.mrb[185].mxu0 }
0x2460   : > { %v13308_v54 = vpop.f32.mrb[186].mxu0 }
0x2461   : > { %v16127_v8 = vpop.f32.mrb[187].mxu0 }
0x24c7   : > { %v15808_v20 = vpop.f32.mrb[120].mxu1 }
0x24c8   : > { %v15809_v58 = vpop.f32.mrb[121].mxu1 }
0x24c9   : > { %v15810_v23 = vadd.f32 %v15809_v58, %v15808_v20  ;;  %v15811_v59 = vpop.f32.mrb[122].mxu1 }
0x24ca   : > { %v15812_v12 = vpop.f32.mrb[123].mxu1 }
0x24cb   : > { %v13290_v31 = vadd.f32 %v15810_v23, %v13289_v36  ;;  %v15813_v13 = vadd.f32 %v15812_v12, %v15811_v59 }
0x24cd   : > { %v13311_v28 = vmax.f32 %v13290_v31, 0.0  ;;  %v13293_v29 = vadd.f32 %v15813_v13, %v13292_v45 }
0x24cf   : > { %v13312_v49 = vmax.f32 %v13293_v29, 0.0  ;;  %v15814_v60 = vpop.f32.mrb[124].mxu1  ;;  %v13321_v14 = vrot.slane %v13311_v28, 6 }
0x24d0   : > { %v15815_v27 = vpop.f32.mrb[125].mxu1 }
0x24d1   : > { %v13322_v32 = vrot.slane %v13312_v49, 6  ;;  %v15816_v22 = vadd.f32 %v15815_v27, %v15814_v60  ;;  %v15817_v26 = vpop.f32.mrb[126].mxu1  ;;  %v20485_v55 = vsel %vm1228_vm0, 0.0, %v13321_v14 }
0x24d2   : > { %v15818_v35 = vpop.f32.mrb[127].mxu1  ;;  %v13418_v9 = vrot.slane %v20485_v55, 4  ;;  %v13366_v34 = vrot.slane %v20485_v55, 2  ;;  %v13340_v47 = vrot.slane %v20485_v55, 1  ;;  %v13392_v41 = vrot.slane %v20485_v55, 3 }
0x24d3   : > { %v20481_v38 = vsel %vm1228_vm0, %v13321_v14, %v13322_v32  ;;  %v13298_v46 = vadd.f32 %v15816_v22, %v13297_v16  ;;  %v15819_v61 = vadd.f32 %v15818_v35, %v15817_v26 }
0x24d4   : > { %v13419_v53 = vrot.slane %v20481_v38, 4  ;;  %v13367_v42 = vrot.slane %v20481_v38, 2  ;;  %v13341_v39 = vrot.slane %v20481_v38, 1  ;;  %v13393_v56 = vrot.slane %v20481_v38, 3 }
0x24d5   : > { %v13313_v25 = vmax.f32 %v13298_v46, 0.0  ;;  %v13301_v37 = vadd.f32 %v15819_v61, %v13300_v2 }
0x24d6   : > { %v13420_v15 = vsel %vm1401_vm4, %v13418_v9, %v13419_v53  ;;  %v13368_v16 = vsel %vm1347_vm8, %v13366_v34, %v13367_v42  ;;  %v13342_v48 = vsel %vm1320_vm6, %v13340_v47, %v13341_v39  ;;  %v13394_v20 = vsel %vm1374_vm5, %v13392_v41, %v13393_v56 }
0x24d7   : > { %v13324_v52 = vrot.slane %v13313_v25, 6  ;;  %v13314_v17 = vmax.f32 %v13301_v37, 0.0  ;;  %v15820_v21 = vpop.f32.mrb[128].mxu1 }
0x24d8   : > { %v15821_v3 = vpop.f32.mrb[129].mxu1 }
0x24d9   : > { %v20496_v5 = vsel %vm1228_vm0, %v13322_v32, %v13324_v52  ;;  %v13326_v43 = vrot.slane %v13314_v17, 6  ;;  %v15822_v44 = vadd.f32 %v15821_v3, %v15820_v21  ;;  %v15823_v10 = vpop.f32.mrb[130].mxu1 }
0x24da   : > { %v15824_v57 = vpop.f32.mrb[131].mxu1  ;;  %v13421_v51 = vrot.slane %v20496_v5, 4  ;;  %v13369_v36 = vrot.slane %v20496_v5, 2  ;;  %v13343_v62 = vrot.slane %v20496_v5, 1  ;;  %v13395_v0 = vrot.slane %v20496_v5, 3 }
0x24db   : > { %v20504_v45 = vsel %vm1228_vm0, %v13324_v52, %v13326_v43  ;;  %v13306_v63 = vadd.f32 %v15822_v44, %v20462_v33 }
0x24dc   : > { %v13422_v2 = vsel %vm1401_vm4, %v13419_v53, %v13421_v51  ;;  %v13370_v4 = vsel %vm1347_vm8, %v13367_v42, %v13369_v36  ;;  %v13344_v54 = vsel %vm1320_vm6, %v13341_v39, %v13343_v62  ;;  %v13396_v19 = vsel %vm1374_vm5, %v13393_v56, %v13395_v0 }
0x24dd   : > { %v13315_v8 = vmax.f32 %v13306_v63, 0.0  ;;  %v13470_v30 = vpack.c.bf16 %v13422_v2, %v13420_v15  ;;  %v16492_v7 = vpack.i.bf16 %v13370_v4, %v13368_v16  ;;  %v16487_v33 = vpack.i.bf16 %v13344_v54, %v13342_v48 }
0x24de   : > { %v13345_v6 = vrot.slane %v20504_v45, 1  ;;  %v13371_v24 = vrot.slane %v20504_v45, 2  ;;  %v16497_v58 = vpack.i.bf16 %v13396_v19, %v13394_v20  ;;  %v13397_v13 = vrot.slane %v20504_v45, 3 }
0x24df   : > { %v13328_v11 = vrot.slane %v13315_v8, 6  ;;  %15247 = vmatprep.mubr.msk.bf16.mxu0 %vm1418_vm7, %v13470_v30  ;;  %16493 = vrot.lane.b32.xlu0 %v16492_v7, %s20771_s3  ;;  %v13423_v40 = vrot.slane %v20504_v45, 4 }
0x24e0   : > { %16488 = vrot.lane.b32.xlu1 %v16487_v33, %s20776_s6  ;;  %v13346_v31 = vsel %vm1320_vm6, %v13343_v62, %v13345_v6  ;;  %v13372_v49 = vsel %vm1347_vm8, %v13369_v36, %v13371_v24  ;;  %v13398_v26 = vsel %vm1374_vm5, %v13395_v0, %v13397_v13 }
0x24e1   : > { %v20524_v50 = vsel %vm1228_vm0, %v13326_v43, %v13328_v11  ;;  %v20533_v28 = vsel %vm1228_vm0, %v13328_v11, 0.0  ;;  %v13424_v0 = vsel %vm1401_vm4, %v13421_v51, %v13423_v40  ;;  %vm13671_vm0 = vcmask 654336  }
0x24e2   : > { %v13347_v23 = vrot.slane %v20524_v50, 1  ;;  %v13373_v59 = vrot.slane %v20524_v50, 2  ;;  %v13399_v12 = vrot.slane %v20524_v50, 3  ;;  %v13349_v22 = vrot.slane %v20533_v28, 1 }
0x24e3   : > { %v13375_v46 = vrot.slane %v20533_v28, 2  ;;  %v13401_v18 = vrot.slane %v20533_v28, 3  ;;  %v13425_v3 = vrot.slane %v20524_v50, 4  ;;  %v13427_v54 = vrot.slane %v20533_v28, 4 }
0x24e4   : > { %16498 = vrot.lane.b32.xlu1 %v16497_v58, %s20775_s5  ;;  %v13348_v29 = vsel %vm1320_vm6, %v13345_v6, %v13347_v23  ;;  %v13374_v60 = vsel %vm1347_vm8, %v13371_v24, %v13373_v59  ;;  %v13400_v27 = vsel %vm1374_vm5, %v13397_v13, %v13399_v12  ;;  %v13350_v61 = vsel %vm1320_vm6, %v13347_v23, %v13349_v22 }
0x24e5   : > { %v16502_v14 = vpack.i.bf16 %v13348_v29, %v13346_v31  ;;  %v16507_v32 = vpack.i.bf16 %v13374_v60, %v13372_v49  ;;  %v16512_v35 = vpack.i.bf16 %v13400_v27, %v13398_v26  ;;  %v13376_v25 = vsel %vm1347_vm8, %v13373_v59, %v13375_v46 }
0x24e6   : > { %v13402_v37 = vsel %vm1374_vm5, %v13399_v12, %v13401_v18  ;;  %v13426_v57 = vsel %vm1401_vm4, %v13423_v40, %v13425_v3 }
0x24e7   : > { %16503 = vrot.lane.b32.xlu0 %v16502_v14, %s20776_s6  ;;  %v13472_v48 = vpack.c.bf16 %v13426_v57, %v13424_v0 }
0x24e8   : > { %16508 = vrot.lane.b32.xlu1 %v16507_v32, %s20771_s3 }
0x24eb   : > { %16513 = vrot.lane.b32.xlu0 %v16512_v35, %s20775_s5 }
0x24ec   : > { %13359 = vrot.lane.b32.xlu1 %v13350_v61, %s20776_s6  ;;  %s20782_s6 = sld [smem:[#allocation33_spill]] }
0x24ef   : > { %13385 = vrot.lane.b32.xlu0 %v13376_v25, %s20771_s3  ;;  %s20781_s3 = sld [smem:[#allocation31_spill]] }
0x24f0   : > { %13411 = vrot.lane.b32.xlu1 %v13402_v37, %s20775_s5  ;;  %s20780_s5 = sld [smem:[#allocation30_spill]] }
0x24f5   : > { %v17992_v40 = vld [vmem:[%s20781_s3 + $0x10] sm:$0xff]   ;;  %v17997_v57 = vld [vmem:[%s20781_s3 + $0x38] ss:$0 sps:$4 sm:$0xff]  }
0x2551   : > { %v16494_v53 = vpop.permute.xlu0 %16493 }
0x2552   : > { %v16489_v52 = vpop.permute.xlu1 %16488  ;;  %v16496_v42 = vunpack.i.h.bf16 %v16494_v53  ;;  %v16495_v9 = vunpack.i.l.bf16 %v16494_v53 }
0x2553   : > { %v16491_v17 = vunpack.i.h.bf16 %v16489_v52  ;;  %v16490_v21 = vunpack.i.l.bf16 %v16489_v52 }
0x2555   : > { %v13435_v34 = vsel %vm1418_vm7, %v20481_v38, %v16491_v17  ;;  %v13434_v47 = vsel %vm1418_vm7, %v20485_v55, %v16490_v21 }
0x2556   : > { %v16499_v39 = vpop.permute.xlu1 %16498  ;;  %v13439_v10 = vsel %vm1424_vm9, %v13434_v47, %v16495_v9  ;;  %v13440_v56 = vsel %vm1424_vm9, %v13435_v34, %v16496_v42  ;;  %v13605_v34 = vld [vmem:[%s20780_s5] sm:$0x3]  ;;  %s18125_s5 = smov 40  }
0x2557   : > { %v16501_v43 = vunpack.i.h.bf16 %v16499_v39  ;;  %v16500_v44 = vunpack.i.l.bf16 %v16499_v39  ;;  %v17990_v47 = vld [vmem:[%s20781_s3] sm:$0xff]   ;;  %v17991_v39 = vld [vmem:[%s20781_s3 + $0x8] sm:$0xff]  }
0x2559   : > { %v13444_v15 = vsel %vm1430_vm10, %v13439_v10, %v16500_v44  ;;  %v13445_v36 = vsel %vm1430_vm10, %v13440_v56, %v16501_v43  ;;  %v16504_v62 = vpop.permute.xlu0 %16503  ;;  %v17993_v43 = vld [vmem:[%s20781_s3 + $0x18] sm:$0xff]   ;;  %v17994_v44 = vld [vmem:[%s20781_s3 + $0x20] sm:$0xff]   ;;  %v17995_v10 = vld [vmem:[%s20781_s3 + $0x28] sm:$0xff]  }
0x255a   : > { %v13469_v38 = vpack.c.bf16 %v13445_v36, %v13444_v15  ;;  %v16506_v63 = vunpack.i.h.bf16 %v16504_v62  ;;  %v16505_v16 = vunpack.i.l.bf16 %v16504_v62  ;;  %v16509_v55 = vpop.permute.xlu1 %16508  ;;  %v17996_v56 = vld [vmem:[%s20781_s3 + $0x30] sm:$0xff]   ;;  %v13740_v15 = vsel %vm1401_vm4, %v17997_v57, 0  ;;  %v17998_v36 = vld [vmem:[%s20782_s6] sm:$0xff]   ;;  %v17999_v62 = vld [vmem:[%s20782_s6 + $0x8] sm:$0xff]   ;;  %s18126_s3 = smov 80  }
0x255b   : > { %v16511_v2 = vunpack.i.h.bf16 %v16509_v55  ;;  %v16510_v4 = vunpack.i.l.bf16 %v16509_v55 }
0x255c   : > { %v13437_v8 = vsel %vm1418_vm7, %v20504_v45, %v16506_v63  ;;  %v13436_v30 = vsel %vm1418_vm7, %v20496_v5, %v16505_v16  ;;  %13577 = vmatmul.mubr.bf16.vlgmr.msra.gmra.mrb[188].mxu0 %v13469_v38  ;;  %v13428_v45 = vsel %vm1401_vm4, %v13425_v3, %v13427_v54  ;;  %vm13735_vm4 = vcmask 982016  }
0x255d   : > { %15248 = vmatprep.mubr.msk.bf16.mxu0 %vm1418_vm7, %v13472_v48  ;;  %v16514_v7 = vpop.permute.xlu0 %16513  ;;  %v13442_v51 = vsel %vm1424_vm9, %v13437_v8, %v16511_v2  ;;  %v13441_v19 = vsel %vm1424_vm9, %v13436_v30, %v16510_v4  ;;  %v13474_v23 = vpack.c.bf16 %v13428_v45, %v13428_v45  ;;  %16159 = vmatpush3.bf16.msra.mxu0 %v17998_v36 }
0x255e   : > { %v16516_v33 = vunpack.i.h.bf16 %v16514_v7  ;;  %v16515_v11 = vunpack.i.l.bf16 %v16514_v7  ;;  %v13360_v41 = vpop.permute.xlu1 %13359  ;;  %16160 = vmatprep.subr.bf16.mxu0 %v18113_v1  ;;  %v18000_v7 = vld [vmem:[%s20782_s6 + $0x10] sm:$0xff]  }
0x255f   : > { %v13438_v5 = vsel %vm1418_vm7, %v20524_v50, %v13360_v41 }
0x2560   : > { %v13446_v6 = vsel %vm1430_vm10, %v13441_v19, %v16515_v11  ;;  %v13447_v24 = vsel %vm1430_vm10, %v13442_v51, %v16516_v33  ;;  %v18001_v33 = vld [vmem:[%s20782_s6 + $0x18] sm:$0xff]   ;;  %v13689_v11 = vld [vmem:[%s20783_s8] sm:$0x1]  ;;  %s1201_s8 = sand.u32 1, %s18063_s1  }
0x2561   : > { %v13386_v20 = vpop.permute.xlu0 %13385  ;;  %v13471_v58 = vpack.c.bf16 %v13447_v24, %v13446_v6  ;;  %16161 = vmatpush3.bf16.msra.mxu0 %v17999_v62  ;;  %s13925_s9 = scalar_lea.sflag [#allocation3], %s1201_s8 }
0x2562   : > { %v13443_v59 = vsel %vm1424_vm9, %v13438_v5, %v13386_v20  ;;  %v13412_v12 = vpop.permute.xlu1 %13411  ;;  %16162 = vmatprep.subr.bf16.mxu0 %v18113_v1  ;;  %v18003_v5 = vld [vmem:[%s20745_s12 + $0x8] sm:$0xff]  }
0x2563   : > { %v13448_v31 = vsel %vm1430_vm10, %v13443_v59, %v13412_v12 }
0x2564   : > { %13585 = vmatmul.mubr.bf16.gmra.mrb[192].mxu0 %v13471_v58  ;;  %v13473_v13 = vpack.c.bf16 %v13448_v31, %v13448_v31  ;;  %v18002_v58 = vld [vmem:[%s20745_s12] sm:$0xff]  }
0x2565   : > { %15249 = vmatprep.mubr.msk.bf16.mxu0 %vm1418_vm7, %v13474_v23  ;;  %16163 = vmatpush3.bf16.msra.mxu0 %v18000_v7  ;;  %v13792_v23 = vld [vmem:[%s20784_s4] sm:$0x1] }
0x2566   : > { %16164 = vmatprep.subr.bf16.mxu0 %v18113_v1 }
0x2569   : > { %16165 = vmatpush3.bf16.msra.mxu0 %v18001_v33 }
0x256c   : > { %13593 = vmatmul.mubr.bf16.gmra.mrb[196].mxu0 %v13473_v13 }
0x256d   : > { %16166 = vmatprep.mubr.msk.bf16.mxu0 %vm18115_vm2, %v18113_v1 }
0x262f   : > { %v13578_v28 = vpop.f32.mrb[188].mxu0 }
0x2630   : > { %v13580_v29 = vpop.f32.mrb[189].mxu0  ;;  %v13600_v60 = vmax.f32 %v13578_v28, 0.0 }
0x2631   : > { %v13581_v49 = vpop.f32.mrb[190].mxu0 }
0x2632   : > { %v13601_v14 = vmax.f32 %v13581_v49, 0.0  ;;  %v13583_v50 = vpop.f32.mrb[191].mxu0 }
0x2634   : > { %v13606_v32 = vpack.c.bf16 %v13601_v14, %v13600_v60  ;;  %v13866_v60 = vld [vmem:[%s18331_s20] sm:$0x1] }
0x2636   : > { %v13613_v27 = vsel %vm1418_vm7, %v13606_v32, 0 }
0x2637   : > { %v13586_v22 = vpop.f32.mrb[192].mxu0  ;;  %16129 = vmatpush3.bf16.xpose.msra.mxu1 %v13613_v27 }
0x2638   : > { %v13588_v26 = vpop.f32.mrb[193].mxu0  ;;  %16130 = vmatprep.subr.bf16.mxu1 %v18113_v1  ;;  %v13602_v46 = vmax.f32 %v13586_v22, 0.0 }
0x2639   : > { %v13589_v35 = vpop.f32.mrb[194].mxu0 }
0x263a   : > { %v13603_v61 = vmax.f32 %v13589_v35, 0.0  ;;  %v13591_v18 = vpop.f32.mrb[195].mxu0 }
0x263c   : > { %v13607_v25 = vpack.c.bf16 %v13603_v61, %v13602_v46 }
0x263e   : > { %v13616_v37 = vsel %vm1418_vm7, %v13607_v25, 0 }
0x263f   : > { %v13594_v53 = vpop.f32.mrb[196].mxu0  ;;  %16131 = vmatpush3.bf16.xpose.msra.mxu1 %v13616_v37 }
0x2640   : > { %v13604_v52 = vmax.f32 %v13594_v53, 0.0  ;;  %v13596_v17 = vpop.f32.mrb[197].mxu0  ;;  %16132 = vmatprep.subr.bf16.mxu1 %v18113_v1 }
0x2641   : > { %v13597_v21 = vpop.f32.mrb[198].mxu0 }
0x2642   : > { %v13608_v42 = vpack.c.bf16 %v13604_v52, %v13604_v52  ;;  %v13598_v9 = vpop.f32.mrb[199].mxu0 }
0x2644   : > { %v13619_v3 = vsel %vm1418_vm7, %v13608_v42, 0 }
0x2647   : > { %16133 = vmatpush3.bf16.xpose.msra.mxu1 %v13619_v3 }
0x2648   : > { %16138 = vmatprep.subr.bf16.mxu1 %v18113_v1 }
0x264e   : > { %16135 = vmatmul.mubr.msk.bf16.vlgmr.msra.gmra.mrb[132].mxu1 %vm1418_vm7, %v13605_v34 }
0x264f   : > { %16154 = vmatprep.mubr.msk.bf16.mxu1 %vm18115_vm2, %v18113_v1  ;;  %16139 = vmatpush3.bf16.msra.mxu1 %v17990_v47 }
0x2650   : > { %16140 = vmatprep.subr.bf16.mxu1 %v18113_v1 }
0x2653   : > { %16141 = vmatpush3.bf16.msra.mxu1 %v17991_v39 }
0x2654   : > { %16142 = vmatprep.subr.bf16.mxu1 %v18113_v1 }
0x2657   : > { %16143 = vmatpush3.bf16.msra.mxu1 %v17992_v40 }
0x2658   : > { %16144 = vmatprep.subr.bf16.mxu1 %v18113_v1 }
0x265b   : > { %16145 = vmatpush3.bf16.msra.mxu1 %v17993_v43 }
0x265c   : > { %16146 = vmatprep.subr.bf16.mxu1 %v18113_v1 }
0x265f   : > { %16147 = vmatpush3.bf16.msra.mxu1 %v17994_v44 }
0x2660   : > { %16148 = vmatprep.subr.bf16.mxu1 %v18113_v1 }
0x2663   : > { %16149 = vmatpush3.bf16.msra.mxu1 %v17995_v10 }
0x2664   : > { %16150 = vmatprep.subr.bf16.mxu1 %v18113_v1 }
0x2667   : > { %16151 = vmatpush3.bf16.msra.mxu1 %v17996_v56 }
0x2668   : > { %16152 = vmatprep.subr.bf16.mxu1 %v18113_v1 }
0x266b   : > { %16153 = vmatpush3.bf16.msra.mxu1 %v13740_v15 }
0x266c   : > { %16170 = vmatprep.subr.bf16.mxu1 %v18113_v1 }
0x2721   : > { %v13655_v38 = vpop.f32.mrb[132].mxu1 }
0x2722   : > { %v13662_v63 = vrot.slane %v13655_v38, 1  ;;  %v13666_v16 = vrot.slane %v13655_v38, 2  ;;  %v16136_v55 = vpop.f32.mrb[133].mxu1 }
0x2723   : > { %v13658_v0 = vpop.f32.mrb[134].mxu1 }
0x2724   : > { %13663 = vrot.lane.b32.xlu0 %v13662_v63, %s18125_s5  ;;  %13667 = vrot.lane.b32.xlu1 %v13666_v16, %s18126_s3  ;;  %v16137_v2 = vpop.f32.mrb[135].mxu1  ;;  %s15268_s3 = sshll.u32 %s18359_s0, 4  ;;  %s1202_s5 = scalar_lea.vmem [#allocation2], %s1201_s8 }
0x2725   : > { %s13937_s6 = sshll.u32 %s1202_s5, 4  ;;  %s20633_s4 = scalar_lea.hbm %s18336_s27, %s15268_s3  ;;  %s20635_s6 = int_to_ptr.vmem [resolvable:$true] %s13937_s6 }
0x2726   : > { %s18009_s10 = scalar_lea.vmem %s20635_s6, 16  ;;  %s18127_s0 = smov [#allocation2]  }
0x2727   : > { %p18010_p11 = scmp.ne.s32.totalorder %s20635_s6, %s18009_s10  ;;  %s18013_s12 = sshll.u32 %s18127_s0, 4  ;;  %s18014_s12 = int_to_ptr.vmem [resolvable:$false] %s18013_s12 }
0x2728   : > { %s18015_s13 = scalar_lea.vmem %s18014_s12, 32  ;;  %p18016_p0 = scmp.lt.s32.totalorder %s20635_s6, %s18014_s12 }
0x2729   : > { %p18011_p12 = pnand %p18010_p11, %p18376_p5  ;;  %p18017_p1 = scmp.lt.s32.totalorder %s18015_s13, %s18009_s10 }
0x272b   : > { %p18012_p13 = pneg %p18011_p12  ;;  %p18018_p2 = por %p18017_p1, %p18016_p0 }
0x272d   : > { %p18019_p3 = pnand %p18018_p2, %p18012_p13 }
0x2796   : > { %v13664_v4 = vpop.permute.xlu0 %13663  ;;  %v13668_v48 = vpop.permute.xlu1 %13667 }
0x2797   : > { %v13670_v54 = vsel %vm2792_vm12, %v13655_v38, %v13664_v4 }
0x2798   : > { %v13672_v8 = vsel %vm13671_vm0, %v13670_v54, %v13668_v48 }
0x2799   : > { %v13688_v30 = vpack.c.bf16 %v13672_v8, %v13672_v8 }
0x279b   : > { %16155 = vmatmul.mubr.msk.bf16.vlgmr.msra.gmra.mrb[136].mxu1 %vm13735_vm4, %v13688_v30 }
0x279c   : > { %16174 = vmatprep.mubr.msk.bf16.mxu1 %vm18115_vm2, %v18113_v1  ;;  %16171 = vmatpush3.bf16.msra.mxu1 %v18002_v58  ;;  %vm13922_vm2 = vcmask 106496  }
0x279d   : > { %16172 = vmatprep.subr.bf16.mxu1 %v18113_v1 }
0x27a0   : > { %16173 = vmatpush3.bf16.msra.mxu1 %v18003_v5 }
0x286e   : > { %v13776_v41 = vpop.f32.mrb[136].mxu1 }
0x286f   : > { %v13777_v51 = vadd.f32 %v13776_v41, %v13689_v11  ;;  %v16156_v19 = vpop.f32.mrb[137].mxu1 }
0x2870   : > { %v13779_v6 = vpop.f32.mrb[138].mxu1 }
0x2871   : > { %v13782_v24 = vmax.f32 %v13777_v51, 0.0  ;;  %v16157_v45 = vpop.f32.mrb[139].mxu1 }
0x2873   : > { %v13791_v20 = vpack.c.bf16 %v13782_v24, %v13782_v24 }
0x2875   : > { %16167 = vmatmul.mubr.msk.bf16.vlgmr.msra.gmra.mrb[200].mxu0 %vm1424_vm9, %v13791_v20 }
0x2948   : > { %v13854_v59 = vpop.f32.mrb[200].mxu0 }
0x2949   : > { %v13855_v12 = vadd.f32 %v13854_v59, %v13792_v23  ;;  %v16168_v31 = vpop.f32.mrb[201].mxu0 }
0x294a   : > { %v13857_v13 = vpop.f32.mrb[202].mxu0 }
0x294b   : > { %v13860_v28 = vmax.f32 %v13855_v12, 0.0  ;;  %v16169_v29 = vpop.f32.mrb[203].mxu0 }
0x294d   : > { %v13865_v49 = vpack.c.bf16 %v13860_v28, %v13860_v28 }
0x294f   : > { %16175 = vmatmul.mubr.msk.bf16.vlgmr.msra.gmra.mrb[140].mxu1 %vm1418_vm7, %v13865_v49 }
0x2a22   : > { %v13916_v1 = vpop.f32.mrb[140].mxu1 }
0x2a23   : > { %v13917_v14 = vadd.f32 %v13916_v1, %v13866_v60  ;;  %v16176_v50 = vpop.f32.mrb[141].mxu1 }
0x2a24   : > { %v13919_v32 = vpop.f32.mrb[142].mxu1 }
0x2a25   : > { %v16177_v27 = vpop.f32.mrb[143].mxu1  ;;  %13923 = vst.msk [vmem:[%s1202_s5] sm:$0x1] %vm13922_vm2, %v13917_v14 }
0x2a26   : > { %18022 = shalt.err (!%p18019_p3)
}
0x2a27   : > { %s18023_s8 = scalar_lea.hbm %s20633_s4, 16  ;;  %s18027_s3 = scalar_lea.hbm %s18336_s27, 32 }
0x2a28   : > { %p18024_p4 = scmp.ne.s32.totalorder %s20633_s4, %s18023_s8  ;;  %p18028_p9 = scmp.lt.u32.totalorder %s20633_s4, %s18336_s27 }
0x2a29   : > { %p18029_p10 = scmp.lt.u32.totalorder %s18027_s3, %s18023_s8  ;;  %p18031_p12 = scmp.lt.u32.totalorder %s18023_s8, %s20633_s4 }
0x2a2a   : > { %p18025_p7 = pnand %p18024_p4, %p18376_p5 }
0x2a2b   : > { %p18030_p11 = por %p18029_p10, %p18028_p9 }
0x2a2c   : > { %p18026_p8 = pneg %p18025_p7 }
0x2a2d   : > { %p18032_p0 = por %p18031_p12, %p18030_p11 }
0x2a2f   : > { %p18033_p13 = pnand %p18032_p0, %p18026_p8 }
0x2a31   : > { %18036 = shalt.err (!%p18033_p13)
}
0x2a32   : > { %16227 = dma.vmem_to_hbm [thread:$0]  (%p18376_p5), %s20635_s6, 16, %s20633_s4, %s13925_s9  }
0x2a33 PF: > { %p16233_p1 = scmp.ge.s32.totalorder %s18071_s7, 2  ;;  %s13949_s13 = sand.u32 1, %s18059_s28  }
0x2a34   : > { %s13950_s12 = scalar_lea.sflag [#allocation3], %s13949_s13 }
0x2a35   : > { %p16230_p2 = pnand %p16233_p1, %p18380_p6 }
0x2a37   : > { %18054 = dma.done.wait (!%p16230_p2), %s13950_s12, 16  }
0x2a38   : > { %18056 = vsyncadd (!%p16230_p2), %s13950_s12, 4294967280  ;;  %p91_p3 = scmp.ge.s32.totalorder %s18363_s11, 4   ;;  %s20785_s28 = smov %s18063_s1 }
0x2a39   : > { %s20786_s1 = smov %s18067_s2  ;;  %s20787_s2 = smov %s18374_s18 }
0x2a3a   : > { %s20788_s7 = smov %s18363_s11  ;;  %93 = sbr.rel (!%p91_p3) target bundleno = 90 (0x5a), region = 255 }
0x2a41   :  { %13954 = vsyncpa [#allocation3], 1 }
0x2a42   :  { %13956 = vsyncpa [#allocation3 + $0x1], 1 }

</bundles_post_ra>
